<compile_context>
chip_gen: v6e
topology: v6e:2x2x1
jax: 0.10.0
libtpu: 0.0.40
codegen_flags: <defaults>
</compile_context>

<pallas_src>
import functools
import math

import jax
import jax.numpy as jnp
from jax import lax
from jax.experimental import pallas as pl
from jax.experimental.pallas import tpu as pltpu

BN_EPS = 1e-5
LN_EPS = 1e-5


# ----------------------------- generic matmul kernel -------------------------
def _matmul_bias_kernel(x_ref, w_ref, b_ref, o_ref, *, relu):
    acc = jnp.dot(x_ref[...], w_ref[...], preferred_element_type=jnp.float32)
    acc = acc + b_ref[...]
    if relu:
        acc = jnp.maximum(acc, 0.0)
    o_ref[...] = acc.astype(o_ref.dtype)


def matmul_bias(x, w, b, relu=False):
    """x: (M, K), w: (K, N), b: (N,) -> (M, N). Full-array blocks (small shapes)."""
    M, _ = x.shape
    N = w.shape[1]
    return pl.pallas_call(
        functools.partial(_matmul_bias_kernel, relu=relu),
        out_shape=jax.ShapeDtypeStruct((M, N), jnp.float32),
    )(x, w, b.reshape(1, N))


# --------------------- fused SqueezeExcite + initial 1x1 conv ----------------
def _se_init_kernel(x_ref, w1_ref, w2_ref, wi_ref, bi_ref, o_ref, *, B):
    w1 = w1_ref[...]           # (C, C//16)
    w2 = w2_ref[...]           # (C//16, C)
    wi = wi_ref[...]           # (C, C)   BN-folded init conv
    bi = bi_ref[...]           # (1, C)
    for b in range(B):                              # static tiny loop
        xb = x_ref[b]                               # (T, C)
        y = jnp.mean(xb, axis=0, keepdims=True)     # squeeze -> (1, C)
        y = jnp.maximum(jnp.dot(y, w1, preferred_element_type=jnp.float32), 0.0)
        y = jax.nn.sigmoid(jnp.dot(y, w2, preferred_element_type=jnp.float32))
        xb = xb * y                                 # excite
        o_ref[b] = jnp.maximum(
            jnp.dot(xb, wi, preferred_element_type=jnp.float32) + bi, 0.0)


# --------------------- fused residual depthwise-separable block --------------
def _resblock_kernel(xp_ref, dww_ref, dwb_ref, wpw_ref, bpw_ref,
                     wsk_ref, bsk_ref, s2_ref, t2_ref, o_ref,
                     *, B, T, K, dilation, pad, skip_identity):
    dww = dww_ref[...]         # (K, cin)
    dwb = dwb_ref[...]         # (1, cin)
    wpw = wpw_ref[...]         # (cin, cout)  bn1 folded
    bpw = bpw_ref[...]         # (1, cout)
    s2 = s2_ref[...]           # (1, cout)    bn2 scale
    t2 = t2_ref[...]           # (1, cout)    bn2 shift
    for b in range(B):                              # static tiny loop
        xb = xp_ref[b]                              # (T + 2*pad, cin), zero padded
        acc = jnp.zeros((T, xb.shape[-1]), jnp.float32)
        for k in range(K):                          # static taps -> static slices
            acc = acc + xb[k * dilation:k * dilation + T, :] * dww[k]
        dw = acc + dwb
        pre = jnp.dot(dw, wpw, preferred_element_type=jnp.float32) + bpw
        h = jnp.maximum(pre, 0.0)                   # relu(bn1(pointwise(depthwise)))
        h = h * s2 + t2                             # bn2
        center = xb[pad:pad + T, :]                 # original (unpadded) x
        if skip_identity:
            idn = center
        else:
            idn = jnp.dot(center, wsk_ref[...],
                          preferred_element_type=jnp.float32) + bsk_ref[...]
        o_ref[b] = jnp.maximum(h + idn, 0.0)


# ------------------------------- fused GRU layer ------------------------------
def _gru_layer_kernel(gx_ref, whh_ref, bhh_ref, h_out_ref, *, T):
    # grid = (2,) over direction; whole time recurrence runs inside the kernel.
    # gx_ref: (T, B, 3H) input-projected gates for this direction (time order).
    d = pl.program_id(0)                 # 0 = forward, 1 = reverse
    whh = whh_ref[...]                   # (H, 3H) -> one fused gate matmul
    bhh = bhh_ref[...]                   # (1, 3H)
    H = whh.shape[0]
    B = gx_ref.shape[1]
    h0 = jnp.zeros((B, H), jnp.float32)

    def step(s, h_prev):
        t = jnp.where(d == 0, s, T - 1 - s)              # scan direction
        gx_t = gx_ref[t]                                 # (B, 3H)
        gh = jnp.dot(h_prev, whh, preferred_element_type=jnp.float32) + bhh
        r = jax.nn.sigmoid(gx_t[:, :H] + gh[:, :H])
        z = jax.nn.sigmoid(gx_t[:, H:2 * H] + gh[:, H:2 * H])
        n = jnp.tanh(gx_t[:, 2 * H:] + r * gh[:, 2 * H:])
        h_new = (1.0 - z) * n + z * h_prev
        h_out_ref[t] = h_new
        return h_new

    lax.fori_loop(0, T, step, h0)


def gru_layer(x_btd, dirs):
    """One bidirectional PyTorch GRU layer. x: (B, T, D) -> (B, T, 2H)."""
    B, T, D = x_btd.shape
    H = dirs[0]["w_hh"].shape[1]
    # One input projection for BOTH directions: (din, 6H).
    w_ih_cat = jnp.concatenate([dirs[0]["w_ih"], dirs[1]["w_ih"]], axis=0).T
    b_ih_cat = jnp.concatenate([dirs[0]["b_ih"], dirs[1]["b_ih"]], axis=0)
    gx = matmul_bias(x_btd.reshape(B * T, D), w_ih_cat, b_ih_cat)   # (B*T, 6H)
    gx = gx.reshape(B, T, 2, 3 * H).transpose(2, 1, 0, 3)           # (2, T, B, 3H)
    whh = jnp.stack([dirs[0]["w_hh"].T, dirs[1]["w_hh"].T])         # (2, H, 3H)
    bhh = jnp.stack([dirs[0]["b_hh"], dirs[1]["b_hh"]]).reshape(2, 1, 3 * H)

    h_all = pl.pallas_call(
        functools.partial(_gru_layer_kernel, T=T),
        out_shape=jax.ShapeDtypeStruct((2, T, B, H), jnp.float32),
        grid_spec=pltpu.PrefetchScalarGridSpec(
            num_scalar_prefetch=0,
            grid=(2,),                                   # direction axis
            in_specs=[
                pl.BlockSpec((None, T, B, 3 * H), lambda d: (d, 0, 0, 0)),
                pl.BlockSpec((None, H, 3 * H), lambda d: (d, 0, 0)),
                pl.BlockSpec((None, 1, 3 * H), lambda d: (d, 0, 0)),
            ],
            out_specs=pl.BlockSpec((None, T, B, H), lambda d: (d, 0, 0, 0)),
        ),
        compiler_params=pltpu.CompilerParams(dimension_semantics=("parallel",)),
    )(gx, whh, bhh)
    # (2, T, B, H) -> (B, T, [fwd|rev]) matching torch bidirectional concat.
    return jnp.transpose(h_all, (2, 1, 0, 3)).reshape(B, T, 2 * H)


# ------------------------- fully fused multi-head attention ------------------
def _mha_kernel(x_ref, wqkv_ref, bqkv_ref, wo_ref, bo_ref, o_ref,
                *, num_heads, scale):
    x = x_ref[...]                                   # (T, E)
    qkv = jnp.dot(x, wqkv_ref[...], preferred_element_type=jnp.float32) + bqkv_ref[...]
    E = x.shape[-1]
    dh = E // num_heads
    ctx_heads = []
    for h in range(num_heads):                       # static head loop
        q = qkv[:, h * dh:(h + 1) * dh]
        k = qkv[:, E + h * dh:E + (h + 1) * dh]
        v = qkv[:, 2 * E + h * dh:2 * E + (h + 1) * dh]
        s = jnp.dot(q, k.T, preferred_element_type=jnp.float32) * scale
        s = s - jnp.max(s, axis=-1, keepdims=True)
        p = jnp.exp(s)
        p = p / jnp.sum(p, axis=-1, keepdims=True)
        ctx_heads.append(jnp.dot(p, v, preferred_element_type=jnp.float32))
    ctx = jnp.concatenate(ctx_heads, axis=-1)        # (T, E) lane-dense
    o_ref[...] = jnp.dot(ctx, wo_ref[...],
                         preferred_element_type=jnp.float32) + bo_ref[...]


def multihead_attention(x_bte, ap, num_heads):
    B, T, E = x_bte.shape
    dh = E // num_heads
    wqkv = jnp.concatenate([ap["wq"].T, ap["wk"].T, ap["wv"].T], axis=1)   # (E, 3E)
    bqkv = jnp.concatenate([ap["bq"], ap["bk"], ap["bv"]]).reshape(1, 3 * E)
    return pl.pallas_call(
        functools.partial(_mha_kernel, num_heads=num_heads,
                          scale=1.0 / math.sqrt(dh)),
        out_shape=jax.ShapeDtypeStruct((B, T, E), jnp.float32),
        grid_spec=pltpu.PrefetchScalarGridSpec(
            num_scalar_prefetch=0,
            grid=(B,),
            in_specs=[
                pl.BlockSpec((None, T, E), lambda b: (b, 0, 0)),
                pl.BlockSpec((E, 3 * E), lambda b: (0, 0)),
                pl.BlockSpec((1, 3 * E), lambda b: (0, 0)),
                pl.BlockSpec((E, E), lambda b: (0, 0)),
                pl.BlockSpec((1, E), lambda b: (0, 0)),
            ],
            out_specs=pl.BlockSpec((None, T, E), lambda b: (b, 0, 0)),
        ),
        compiler_params=pltpu.CompilerParams(dimension_semantics=("parallel",)),
    )(x_bte, wqkv, bqkv, ap["wo"].T, ap["bo"].reshape(1, E))


# ---------------------- fused classification head (pool + MLP) ---------------
def _head_kernel(x_ref, w1_ref, b1_ref, g1_ref, be1_ref,
                 w2_ref, b2_ref, g2_ref, be2_ref, wo_ref, bo_ref, o_ref):
    x = x_ref[...]                                   # (B, T, E)
    pooled = jnp.mean(x, axis=1) + jnp.max(x, axis=1)    # avg_pool + max_pool

    def lnr(h, g, be):
        mu = jnp.mean(h, axis=-1, keepdims=True)
        var = jnp.mean((h - mu) ** 2, axis=-1, keepdims=True)
        return jnp.maximum((h - mu) * lax.rsqrt(var + LN_EPS) * g + be, 0.0)

    h = jnp.dot(pooled, w1_ref[...], preferred_element_type=jnp.float32) + b1_ref[...]
    h = lnr(h, g1_ref[...], be1_ref[...])            # Linear + LayerNorm + ReLU
    h = jnp.dot(h, w2_ref[...], preferred_element_type=jnp.float32) + b2_ref[...]
    h = lnr(h, g2_ref[...], be2_ref[...])
    o_ref[...] = jnp.dot(h, wo_ref[...],
                         preferred_element_type=jnp.float32) + bo_ref[...]


# ------------------------------- glue helpers --------------------------------
def bn_fold(bn):
    s = bn["gamma"] / jnp.sqrt(bn["var"] + BN_EPS)
    t = bn["beta"] - bn["mean"] * s
    return s, t


def adaptive_avg_pool_time(x_btc, out_size):
    # Exact torch.nn.AdaptiveAvgPool1d fallback (only used when T % out_size != 0).
    T = x_btc.shape[1]
    cols = []
    for i in range(out_size):
        s = (i * T) // out_size
        e = -(-((i + 1) * T) // out_size)
        cols.append(jnp.mean(x_btc[:, s:e, :], axis=1))
    return jnp.stack(cols, axis=1)


# -------------------------------- parameters ---------------------------------
def _xavier(key, out_dim, in_dim):
    limit = math.sqrt(6.0 / (in_dim + out_dim))
    return jax.random.uniform(key, (out_dim, in_dim), jnp.float32, -limit, limit)


def init_params(input_dim, hidden_dim, num_classes, key):
    keys = iter(jax.random.split(key, 128))
    nk = lambda: next(keys)
    bn = lambda c: dict(gamma=jnp.ones(c), beta=jnp.zeros(c),
                        mean=jnp.zeros(c), var=jnp.ones(c))
    C, H = input_dim, hidden_dim
    E = 2 * H
    p = {}
    p["se_w1"] = _xavier(nk(), C // 16, C)           # Linear(C, C//16, bias=False)
    p["se_w2"] = _xavier(nk(), C, C // 16)
    p["init_w"] = _xavier(nk(), C, C)                # Conv1d(C, C, k=1)
    p["init_b"] = jnp.zeros(C)
    p["init_bn"] = bn(C)

    blocks, specs, cin = [], [], C
    for i in range(3):
        cout = 64 * 2 ** min(i, 2)
        K = 5 if i == 0 else 3
        d = i + 1
        blk = dict(
            dw_w=0.1 * jax.random.normal(nk(), (cin, K), jnp.float32),
            dw_b=jnp.zeros(cin),
            pw_w=_xavier(nk(), cout, cin), pw_b=jnp.zeros(cout),
            bn1=bn(cout), bn2=bn(cout),
        )
        if cin != cout:                              # PyTorch skip = conv+bn else Identity
            blk.update(skip_w=_xavier(nk(), cout, cin), skip_b=jnp.zeros(cout),
                       skip_bn=bn(cout))
        blocks.append(blk)
        specs.append((cin, cout, K, d))
        cin = cout
    p["blocks"] = blocks

    p["dim_w"] = _xavier(nk(), H, 256)
    p["dim_b"] = jnp.zeros(H)

    gru = []
    for layer in range(2):
        din = H if layer == 0 else 2 * H
        sc = 1.0 / math.sqrt(H)
        dirs = []
        for _ in range(2):                           # forward, reverse
            dirs.append(dict(
                w_ih=jax.random.uniform(nk(), (3 * H, din), jnp.float32, -sc, sc),
                w_hh=jax.random.uniform(nk(), (3 * H, H), jnp.float32, -sc, sc),
                b_ih=jax.random.uniform(nk(), (3 * H,), jnp.float32, -sc, sc),
                b_hh=jax.random.uniform(nk(), (3 * H,), jnp.float32, -sc, sc),
            ))
        gru.append(dirs)
    p["gru"] = gru

    p["attn"] = dict(
        wq=_xavier(nk(), E, E), bq=jnp.zeros(E),
        wk=_xavier(nk(), E, E), bk=jnp.zeros(E),
        wv=_xavier(nk(), E, E), bv=jnp.zeros(E),
        wo=_xavier(nk(), E, E), bo=jnp.zeros(E),
    )
    p["head_w1"] = _xavier(nk(), H, E); p["head_b1"] = jnp.zeros(H)
    p["ln1_g"] = jnp.ones(H); p["ln1_b"] = jnp.zeros(H)
    p["head_w2"] = _xavier(nk(), H // 2, H); p["head_b2"] = jnp.zeros(H // 2)
    p["ln2_g"] = jnp.ones(H // 2); p["ln2_b"] = jnp.zeros(H // 2)
    p["out_w"] = _xavier(nk(), num_classes, H // 2); p["out_b"] = jnp.zeros(num_classes)
    return p, specs


# --------------------------------- forward -----------------------------------
def forward(x_nct, p, conv_specs, num_heads):
    # x arrives PyTorch-style NCT (B, C, T); work internally in (B, T, C).
    x = jnp.transpose(x_nct, (0, 2, 1)).astype(jnp.float32)
    B, T, C = x.shape

    # --- fused SE block + initial 1x1 conv + BN + ReLU (one kernel) ---
    s, t = bn_fold(p["init_bn"])
    wi = (p["init_w"] * s[:, None]).T
    bi = (p["init_b"] * s + t).reshape(1, C)
    x = pl.pallas_call(
        functools.partial(_se_init_kernel, B=B),
        out_shape=jax.ShapeDtypeStruct((B, T, C), jnp.float32),
    )(x, p["se_w1"].T, p["se_w2"].T, wi, bi)

    # --- fused residual depthwise-separable blocks (one kernel per block) ---
    for blk, (cin, cout, K, d) in zip(p["blocks"], conv_specs):
        pad = (K // 2) * d
        x_pad = jnp.pad(x, ((0, 0), (pad, pad), (0, 0)))
        s1, t1 = bn_fold(blk["bn1"])
        w_pw = (blk["pw_w"] * s1[:, None]).T
        b_pw = (blk["pw_b"] * s1 + t1).reshape(1, cout)
        s2, t2 = bn_fold(blk["bn2"])
        skip_identity = "skip_w" not in blk
        if skip_identity:
            w_sk = jnp.zeros((cin, cout), jnp.float32)   # unused (identity skip)
            b_sk = jnp.zeros((1, cout), jnp.float32)
        else:
            ss, ts = bn_fold(blk["skip_bn"])
            w_sk = (blk["skip_w"] * ss[:, None]).T
            b_sk = (blk["skip_b"] * ss + ts).reshape(1, cout)
        x = pl.pallas_call(
            functools.partial(_resblock_kernel, B=B, T=T, K=K, dilation=d,
                              pad=pad, skip_identity=skip_identity),
            out_shape=jax.ShapeDtypeStruct((B, T, cout), jnp.float32),
        )(x_pad, blk["dw_w"].T, blk["dw_b"].reshape(1, cin),
          w_pw, b_pw, w_sk, b_sk, s2.reshape(1, cout), t2.reshape(1, cout))

    # --- AdaptiveAvgPool1d(50) over time: single reshape-mean when divisible ---
    OUT_T = 50
    Cx = x.shape[-1]
    if T % OUT_T == 0:
        x = x.reshape(B, OUT_T, T // OUT_T, Cx).mean(axis=2)
    else:
        x = adaptive_avg_pool_time(x, OUT_T)
    T = OUT_T

    # --- dim_matching Linear(256 -> hidden) ---
    x = matmul_bias(x.reshape(B * T, Cx), p["dim_w"].T, p["dim_b"]).reshape(B, T, -1)

    # --- 2-layer bidirectional GRU: fused projection + in-kernel time scan ---
    h = x
    for dirs in p["gru"]:
        h = gru_layer(h, dirs)
    gru_out = h                                          # (B, T, 2*hidden)

    # --- fused multi-head self-attention (QKV + softmax + out proj) ---
    attn_out = multihead_attention(gru_out, p["attn"], num_heads)

    # --- fused classification head (pool + Linear/LN/ReLU x2 + fc_out) ---
    H = p["head_w1"].shape[0]
    Hh = H // 2
    out = pl.pallas_call(
        _head_kernel,
        out_shape=jax.ShapeDtypeStruct((B, p["out_w"].shape[0]), jnp.float32),
    )(attn_out,
      p["head_w1"].T, p["head_b1"].reshape(1, H),
      p["ln1_g"].reshape(1, H), p["ln1_b"].reshape(1, H),
      p["head_w2"].T, p["head_b2"].reshape(1, Hh),
      p["ln2_g"].reshape(1, Hh), p["ln2_b"].reshape(1, Hh),
      p["out_w"].T, p["out_b"].reshape(1, -1))
    return out


# ----------------------------------- main -------------------------------------
if __name__ == "__main__":
    INPUT_DIM = 32      # mel features (must be >= 16 for the SE reduction)
    HIDDEN_DIM = 32
    NUM_CLASSES = 10
    NUM_HEADS = 4
    BATCH, T_IN = 2, 100

    key = jax.random.PRNGKey(0)
    k_x, k_p = jax.random.split(key)
    x = jax.random.normal(k_x, (BATCH, INPUT_DIM, T_IN), jnp.float32)  # NCT input

    params, conv_specs = init_params(INPUT_DIM, HIDDEN_DIM, NUM_CLASSES, k_p)

    fwd = jax.jit(lambda inp: forward(inp, params, conv_specs, NUM_HEADS))
    out = jax.block_until_ready(fwd(x))

    assert out.shape == (BATCH, NUM_CLASSES), out.shape
    assert bool(jnp.all(jnp.isfinite(out)))
    print("KERNEL_OK")
</pallas_src>

<mosaic_0001>
module attributes {stable_mosaic.version = 11 : i64} {
  func.func @_se_init_kernel(%arg0: memref<2x100x32xf32, #tpu.memory_space<vmem>>, %arg1: memref<32x2xf32, #tpu.memory_space<vmem>>, %arg2: memref<2x32xf32, #tpu.memory_space<vmem>>, %arg3: memref<32x32xf32, #tpu.memory_space<vmem>>, %arg4: memref<1x32xf32, #tpu.memory_space<vmem>>, %arg5: memref<2x100x32xf32, #tpu.memory_space<vmem>>) attributes {dimension_semantics = [], scalar_prefetch = 0 : i64, scratch_operands = 0 : i64, tpu.core_type = #tpu.core_type<tc>} {
    %c0 = arith.constant 0 : index
    %c0_0 = arith.constant 0 : index
    %0 = vector.load %arg1[%c0, %c0_0] : memref<32x2xf32, #tpu.memory_space<vmem>>, vector<32x2xf32>
    %c0_1 = arith.constant 0 : index
    %c0_2 = arith.constant 0 : index
    %1 = vector.load %arg2[%c0_1, %c0_2] : memref<2x32xf32, #tpu.memory_space<vmem>>, vector<2x32xf32>
    %c0_3 = arith.constant 0 : index
    %c0_4 = arith.constant 0 : index
    %2 = vector.load %arg3[%c0_3, %c0_4] : memref<32x32xf32, #tpu.memory_space<vmem>>, vector<32x32xf32>
    %c0_5 = arith.constant 0 : index
    %c0_6 = arith.constant 0 : index
    %3 = vector.load %arg4[%c0_5, %c0_6] : memref<1x32xf32, #tpu.memory_space<vmem>>, vector<1x32xf32>
    %c0_7 = arith.constant 0 : index
    %c0_8 = arith.constant 0 : index
    %c0_9 = arith.constant 0 : index
    %4 = vector.load %arg0[%c0_7, %c0_8, %c0_9] : memref<2x100x32xf32, #tpu.memory_space<vmem>>, vector<1x100x32xf32>
    %5 = vector.shape_cast %4 : vector<1x100x32xf32> to vector<100x32xf32>
    %cst = arith.constant dense<0.000000e+00> : vector<32xf32>
    %6 = vector.multi_reduction <add>, %5, %cst [0] : vector<100x32xf32> to vector<32xf32>
    %7 = vector.shape_cast %6 : vector<32xf32> to vector<1x32xf32>
    %cst_10 = arith.constant 1.000000e+02 : f32
    %8 = vector.broadcast %cst_10 : f32 to vector<1x32xf32>
    %9 = arith.divf %7, %8 : vector<1x32xf32>
    %cst_11 = arith.constant dense<0.000000e+00> : vector<1x2xf32>
    %10 = tpu.matmul %9, %0, %cst_11 {dimension_numbers = #tpu.dot_dimension_numbers<[1], [0], [0], [1], [0, 0, 1, 1], [], []>} : vector<1x32xf32>, vector<32x2xf32>, vector<1x2xf32> -> vector<1x2xf32>
    %cst_12 = arith.constant 0.000000e+00 : f32
    %11 = vector.broadcast %cst_12 : f32 to vector<1x2xf32>
    %12 = arith.maximumf %10, %11 : vector<1x2xf32>
    %cst_13 = arith.constant dense<0.000000e+00> : vector<1x32xf32>
    %13 = tpu.matmul %12, %1, %cst_13 {dimension_numbers = #tpu.dot_dimension_numbers<[1], [0], [0], [1], [0, 0, 1, 1], [], []>} : vector<1x2xf32>, vector<2x32xf32>, vector<1x32xf32> -> vector<1x32xf32>
    %14 = arith.negf %13 : vector<1x32xf32>
    %15 = math.exp %14 : vector<1x32xf32>
    %cst_14 = arith.constant 1.000000e+00 : f32
    %16 = vector.broadcast %cst_14 : f32 to vector<1x32xf32>
    %17 = arith.addf %16, %15 : vector<1x32xf32>
    %18 = arith.divf %16, %17 : vector<1x32xf32>
    %19 = vector.broadcast %18 : vector<1x32xf32> to vector<100x32xf32>
    %20 = arith.mulf %5, %19 : vector<100x32xf32>
    %cst_15 = arith.constant dense<0.000000e+00> : vector<100x32xf32>
    %21 = tpu.matmul %20, %2, %cst_15 {dimension_numbers = #tpu.dot_dimension_numbers<[1], [0], [0], [1], [0, 0, 1, 1], [], []>} : vector<100x32xf32>, vector<32x32xf32>, vector<100x32xf32> -> vector<100x32xf32>
    %22 = vector.broadcast %3 : vector<1x32xf32> to vector<100x32xf32>
    %23 = arith.addf %21, %22 : vector<100x32xf32>
    %cst_16 = arith.constant 0.000000e+00 : f32
    %24 = vector.broadcast %cst_16 : f32 to vector<100x32xf32>
    %25 = arith.maximumf %23, %24 : vector<100x32xf32>
    %c0_17 = arith.constant 0 : index
    %c0_18 = arith.constant 0 : index
    %c0_19 = arith.constant 0 : index
    %26 = vector.load %arg5[%c0_17, %c0_18, %c0_19] : memref<2x100x32xf32, #tpu.memory_space<vmem>>, vector<1x100x32xf32>
    %27 = vector.shape_cast %26 : vector<1x100x32xf32> to vector<100x32xf32>
    %28 = vector.shape_cast %25 : vector<100x32xf32> to vector<1x100x32xf32>
    tpu.vector_store %arg5[%c0_17, %c0_18, %c0_19], %28 {strides = array<i32>} : memref<2x100x32xf32, #tpu.memory_space<vmem>>, vector<1x100x32xf32>,
    %c1 = arith.constant 1 : index
    %c0_20 = arith.constant 0 : index
    %c0_21 = arith.constant 0 : index
    %29 = vector.load %arg0[%c1, %c0_20, %c0_21] : memref<2x100x32xf32, #tpu.memory_space<vmem>>, vector<1x100x32xf32>
    %30 = vector.shape_cast %29 : vector<1x100x32xf32> to vector<100x32xf32>
    %cst_22 = arith.constant dense<0.000000e+00> : vector<32xf32>
    %31 = vector.multi_reduction <add>, %30, %cst_22 [0] : vector<100x32xf32> to vector<32xf32>
    %32 = vector.shape_cast %31 : vector<32xf32> to vector<1x32xf32>
    %cst_23 = arith.constant 1.000000e+02 : f32
    %33 = vector.broadcast %cst_23 : f32 to vector<1x32xf32>
    %34 = arith.divf %32, %33 : vector<1x32xf32>
    %cst_24 = arith.constant dense<0.000000e+00> : vector<1x2xf32>
    %35 = tpu.matmul %34, %0, %cst_24 {dimension_numbers = #tpu.dot_dimension_numbers<[1], [0], [0], [1], [0, 0, 1, 1], [], []>} : vector<1x32xf32>, vector<32x2xf32>, vector<1x2xf32> -> vector<1x2xf32>
    %cst_25 = arith.constant 0.000000e+00 : f32
    %36 = vector.broadcast %cst_25 : f32 to vector<1x2xf32>
    %37 = arith.maximumf %35, %36 : vector<1x2xf32>
    %cst_26 = arith.constant dense<0.000000e+00> : vector<1x32xf32>
    %38 = tpu.matmul %37, %1, %cst_26 {dimension_numbers = #tpu.dot_dimension_numbers<[1], [0], [0], [1], [0, 0, 1, 1], [], []>} : vector<1x2xf32>, vector<2x32xf32>, vector<1x32xf32> -> vector<1x32xf32>
    %39 = arith.negf %38 : vector<1x32xf32>
    %40 = math.exp %39 : vector<1x32xf32>
    %cst_27 = arith.constant 1.000000e+00 : f32
    %41 = vector.broadcast %cst_27 : f32 to vector<1x32xf32>
    %42 = arith.addf %41, %40 : vector<1x32xf32>
    %43 = arith.divf %41, %42 : vector<1x32xf32>
    %44 = vector.broadcast %43 : vector<1x32xf32> to vector<100x32xf32>
    %45 = arith.mulf %30, %44 : vector<100x32xf32>
    %cst_28 = arith.constant dense<0.000000e+00> : vector<100x32xf32>
    %46 = tpu.matmul %45, %2, %cst_28 {dimension_numbers = #tpu.dot_dimension_numbers<[1], [0], [0], [1], [0, 0, 1, 1], [], []>} : vector<100x32xf32>, vector<32x32xf32>, vector<100x32xf32> -> vector<100x32xf32>
    %47 = vector.broadcast %3 : vector<1x32xf32> to vector<100x32xf32>
    %48 = arith.addf %46, %47 : vector<100x32xf32>
    %cst_29 = arith.constant 0.000000e+00 : f32
    %49 = vector.broadcast %cst_29 : f32 to vector<100x32xf32>
    %50 = arith.maximumf %48, %49 : vector<100x32xf32>
    %c1_30 = arith.constant 1 : index
    %c0_31 = arith.constant 0 : index
    %c0_32 = arith.constant 0 : index
    %51 = vector.load %arg5[%c1_30, %c0_31, %c0_32] : memref<2x100x32xf32, #tpu.memory_space<vmem>>, vector<1x100x32xf32>
    %52 = vector.shape_cast %51 : vector<1x100x32xf32> to vector<100x32xf32>
    %53 = vector.shape_cast %50 : vector<100x32xf32> to vector<1x100x32xf32>
    tpu.vector_store %arg5[%c1_30, %c0_31, %c0_32], %53 {strides = array<i32>} : memref<2x100x32xf32, #tpu.memory_space<vmem>>, vector<1x100x32xf32>,
    return
  }
}

module attributes {stable_mosaic.version = 11 : i64} {
  func.func @_resblock_kernel(%arg0: memref<2x104x32xf32, #tpu.memory_space<vmem>>, %arg1: memref<5x32xf32, #tpu.memory_space<vmem>>, %arg2: memref<1x32xf32, #tpu.memory_space<vmem>>, %arg3: memref<32x64xf32, #tpu.memory_space<vmem>>, %arg4: memref<1x64xf32, #tpu.memory_space<vmem>>, %arg5: memref<32x64xf32, #tpu.memory_space<vmem>>, %arg6: memref<1x64xf32, #tpu.memory_space<vmem>>, %arg7: memref<1x64xf32, #tpu.memory_space<vmem>>, %arg8: memref<1x64xf32, #tpu.memory_space<vmem>>, %arg9: memref<2x100x64xf32, #tpu.memory_space<vmem>>) attributes {dimension_semantics = [], scalar_prefetch = 0 : i64, scratch_operands = 0 : i64, tpu.core_type = #tpu.core_type<tc>} {
    %c0 = arith.constant 0 : index
    %c0_0 = arith.constant 0 : index
    %0 = vector.load %arg1[%c0, %c0_0] : memref<5x32xf32, #tpu.memory_space<vmem>>, vector<5x32xf32>
    %c0_1 = arith.constant 0 : index
    %c0_2 = arith.constant 0 : index
    %1 = vector.load %arg2[%c0_1, %c0_2] : memref<1x32xf32, #tpu.memory_space<vmem>>, vector<1x32xf32>
    %c0_3 = arith.constant 0 : index
    %c0_4 = arith.constant 0 : index
    %2 = vector.load %arg3[%c0_3, %c0_4] : memref<32x64xf32, #tpu.memory_space<vmem>>, vector<32x64xf32>
    %c0_5 = arith.constant 0 : index
    %c0_6 = arith.constant 0 : index
    %3 = vector.load %arg4[%c0_5, %c0_6] : memref<1x64xf32, #tpu.memory_space<vmem>>, vector<1x64xf32>
    %c0_7 = arith.constant 0 : index
    %c0_8 = arith.constant 0 : index
    %4 = vector.load %arg7[%c0_7, %c0_8] : memref<1x64xf32, #tpu.memory_space<vmem>>, vector<1x64xf32>
    %c0_9 = arith.constant 0 : index
    %c0_10 = arith.constant 0 : index
    %5 = vector.load %arg8[%c0_9, %c0_10] : memref<1x64xf32, #tpu.memory_space<vmem>>, vector<1x64xf32>
    %c0_11 = arith.constant 0 : index
    %c0_12 = arith.constant 0 : index
    %c0_13 = arith.constant 0 : index
    %6 = vector.load %arg0[%c0_11, %c0_12, %c0_13] : memref<2x104x32xf32, #tpu.memory_space<vmem>>, vector<1x104x32xf32>
    %7 = vector.shape_cast %6 : vector<1x104x32xf32> to vector<104x32xf32>
    %cst = arith.constant 0.000000e+00 : f32
    %8 = vector.broadcast %cst : f32 to vector<100x32xf32>
    %9 = vector.extract_strided_slice %7 {offsets = [0, 0], sizes = [100, 32], strides = [1, 1]} : vector<104x32xf32> to vector<100x32xf32>
    %10 = vector.extract_strided_slice %0 {offsets = [0, 0], sizes = [1, 32], strides = [1, 1]} : vector<5x32xf32> to vector<1x32xf32>
    %11 = vector.shape_cast %10 : vector<1x32xf32> to vector<32xf32>
    %12 = vector.shape_cast %11 : vector<32xf32> to vector<1x32xf32>
    %13 = vector.broadcast %12 : vector<1x32xf32> to vector<100x32xf32>
    %14 = arith.mulf %9, %13 : vector<100x32xf32>
    %15 = arith.addf %8, %14 : vector<100x32xf32>
    %16 = vector.extract_strided_slice %7 {offsets = [1, 0], sizes = [100, 32], strides = [1, 1]} : vector<104x32xf32> to vector<100x32xf32>
    %17 = vector.extract_strided_slice %0 {offsets = [1, 0], sizes = [1, 32], strides = [1, 1]} : vector<5x32xf32> to vector<1x32xf32>
    %18 = vector.shape_cast %17 : vector<1x32xf32> to vector<32xf32>
    %19 = vector.shape_cast %18 : vector<32xf32> to vector<1x32xf32>
    %20 = vector.broadcast %19 : vector<1x32xf32> to vector<100x32xf32>
    %21 = arith.mulf %16, %20 : vector<100x32xf32>
    %22 = arith.addf %15, %21 : vector<100x32xf32>
    %23 = vector.extract_strided_slice %7 {offsets = [2, 0], sizes = [100, 32], strides = [1, 1]} : vector<104x32xf32> to vector<100x32xf32>
    %24 = vector.extract_strided_slice %0 {offsets = [2, 0], sizes = [1, 32], strides = [1, 1]} : vector<5x32xf32> to vector<1x32xf32>
    %25 = vector.shape_cast %24 : vector<1x32xf32> to vector<32xf32>
    %26 = vector.shape_cast %25 : vector<32xf32> to vector<1x32xf32>
    %27 = vector.broadcast %26 : vector<1x32xf32> to vector<100x32xf32>
    %28 = arith.mulf %23, %27 : vector<100x32xf32>
    %29 = arith.addf %22, %28 : vector<100x32xf32>
    %30 = vector.extract_strided_slice %7 {offsets = [3, 0], sizes = [100, 32], strides = [1, 1]} : vector<104x32xf32> to vector<100x32xf32>
    %31 = vector.extract_strided_slice %0 {offsets = [3, 0], sizes = [1, 32], strides = [1, 1]} : vector<5x32xf32> to vector<1x32xf32>
    %32 = vector.shape_cast %31 : vector<1x32xf32> to vector<32xf32>
    %33 = vector.shape_cast %32 : vector<32xf32> to vector<1x32xf32>
    %34 = vector.broadcast %33 : vector<1x32xf32> to vector<100x32xf32>
    %35 = arith.mulf %30, %34 : vector<100x32xf32>
    %36 = arith.addf %29, %35 : vector<100x32xf32>
    %37 = vector.extract_strided_slice %7 {offsets = [4, 0], sizes = [100, 32], strides = [1, 1]} : vector<104x32xf32> to vector<100x32xf32>
    %38 = vector.extract_strided_slice %0 {offsets = [4, 0], sizes = [1, 32], strides = [1, 1]} : vector<5x32xf32> to vector<1x32xf32>
    %39 = vector.shape_cast %38 : vector<1x32xf32> to vector<32xf32>
    %40 = vector.shape_cast %39 : vector<32xf32> to vector<1x32xf32>
    %41 = vector.broadcast %40 : vector<1x32xf32> to vector<100x32xf32>
    %42 = arith.mulf %37, %41 : vector<100x32xf32>
    %43 = arith.addf %36, %42 : vector<100x32xf32>
    %44 = vector.broadcast %1 : vector<1x32xf32> to vector<100x32xf32>
    %45 = arith.addf %43, %44 : vector<100x32xf32>
    %cst_14 = arith.constant dense<0.000000e+00> : vector<100x64xf32>
    %46 = tpu.matmul %45, %2, %cst_14 {dimension_numbers = #tpu.dot_dimension_numbers<[1], [0], [0], [1], [0, 0, 1, 1], [], []>} : vector<100x32xf32>, vector<32x64xf32>, vector<100x64xf32> -> vector<100x64xf32>
    %47 = vector.broadcast %3 : vector<1x64xf32> to vector<100x64xf32>
    %48 = arith.addf %46, %47 : vector<100x64xf32>
    %cst_15 = arith.constant 0.000000e+00 : f32
    %49 = vector.broadcast %cst_15 : f32 to vector<100x64xf32>
    %50 = arith.maximumf %48, %49 : vector<100x64xf32>
    %51 = vector.broadcast %4 : vector<1x64xf32> to vector<100x64xf32>
    %52 = arith.mulf %50, %51 : vector<100x64xf32>
    %53 = vector.broadcast %5 : vector<1x64xf32> to vector<100x64xf32>
    %54 = arith.addf %52, %53 : vector<100x64xf32>
    %55 = vector.extract_strided_slice %7 {offsets = [2, 0], sizes = [100, 32], strides = [1, 1]} : vector<104x32xf32> to vector<100x32xf32>
    %c0_16 = arith.constant 0 : index
    %c0_17 = arith.constant 0 : index
    %56 = vector.load %arg5[%c0_16, %c0_17] : memref<32x64xf32, #tpu.memory_space<vmem>>, vector<32x64xf32>
    %cst_18 = arith.constant dense<0.000000e+00> : vector<100x64xf32>
    %57 = tpu.matmul %55, %56, %cst_18 {dimension_numbers = #tpu.dot_dimension_numbers<[1], [0], [0], [1], [0, 0, 1, 1], [], []>} : vector<100x32xf32>, vector<32x64xf32>, vector<100x64xf32> -> vector<100x64xf32>
    %c0_19 = arith.constant 0 : index
    %c0_20 = arith.constant 0 : index
    %58 = vector.load %arg6[%c0_19, %c0_20] : memref<1x64xf32, #tpu.memory_space<vmem>>, vector<1x64xf32>
    %59 = vector.broadcast %58 : vector<1x64xf32> to vector<100x64xf32>
    %60 = arith.addf %57, %59 : vector<100x64xf32>
    %61 = arith.addf %54, %60 : vector<100x64xf32>
    %cst_21 = arith.constant 0.000000e+00 : f32
    %62 = vector.broadcast %cst_21 : f32 to vector<100x64xf32>
    %63 = arith.maximumf %61, %62 : vector<100x64xf32>
    %c0_22 = arith.constant 0 : index
    %c0_23 = arith.constant 0 : index
    %c0_24 = arith.constant 0 : index
    %64 = vector.load %arg9[%c0_22, %c0_23, %c0_24] : memref<2x100x64xf32, #tpu.memory_space<vmem>>, vector<1x100x64xf32>
    %65 = vector.shape_cast %64 : vector<1x100x64xf32> to vector<100x64xf32>
    %66 = vector.shape_cast %63 : vector<100x64xf32> to vector<1x100x64xf32>
    tpu.vector_store %arg9[%c0_22, %c0_23, %c0_24], %66 {strides = array<i32>} : memref<2x100x64xf32, #tpu.memory_space<vmem>>, vector<1x100x64xf32>,
    %c1 = arith.constant 1 : index
    %c0_25 = arith.constant 0 : index
    %c0_26 = arith.constant 0 : index
    %67 = vector.load %arg0[%c1, %c0_25, %c0_26] : memref<2x104x32xf32, #tpu.memory_space<vmem>>, vector<1x104x32xf32>
    %68 = vector.shape_cast %67 : vector<1x104x32xf32> to vector<104x32xf32>
    %cst_27 = arith.constant 0.000000e+00 : f32
    %69 = vector.broadcast %cst_27 : f32 to vector<100x32xf32>
    %70 = vector.extract_strided_slice %68 {offsets = [0, 0], sizes = [100, 32], strides = [1, 1]} : vector<104x32xf32> to vector<100x32xf32>
    %71 = vector.extract_strided_slice %0 {offsets = [0, 0], sizes = [1, 32], strides = [1, 1]} : vector<5x32xf32> to vector<1x32xf32>
    %72 = vector.shape_cast %71 : vector<1x32xf32> to vector<32xf32>
    %73 = vector.shape_cast %72 : vector<32xf32> to vector<1x32xf32>
    %74 = vector.broadcast %73 : vector<1x32xf32> to vector<100x32xf32>
    %75 = arith.mulf %70, %74 : vector<100x32xf32>
    %76 = arith.addf %69, %75 : vector<100x32xf32>
    %77 = vector.extract_strided_slice %68 {offsets = [1, 0], sizes = [100, 32], strides = [1, 1]} : vector<104x32xf32> to vector<100x32xf32>
    %78 = vector.extract_strided_slice %0 {offsets = [1, 0], sizes = [1, 32], strides = [1, 1]} : vector<5x32xf32> to vector<1x32xf32>
    %79 = vector.shape_cast %78 : vector<1x32xf32> to vector<32xf32>
    %80 = vector.shape_cast %79 : vector<32xf32> to vector<1x32xf32>
    %81 = vector.broadcast %80 : vector<1x32xf32> to vector<100x32xf32>
    %82 = arith.mulf %77, %81 : vector<100x32xf32>
    %83 = arith.addf %76, %82 : vector<100x32xf32>
    %84 = vector.extract_strided_slice %68 {offsets = [2, 0], sizes = [100, 32], strides = [1, 1]} : vector<104x32xf32> to vector<100x32xf32>
    %85 = vector.extract_strided_slice %0 {offsets = [2, 0], sizes = [1, 32], strides = [1, 1]} : vector<5x32xf32> to vector<1x32xf32>
    %86 = vector.shape_cast %85 : vector<1x32xf32> to vector<32xf32>
    %87 = vector.shape_cast %86 : vector<32xf32> to vector<1x32xf32>
    %88 = vector.broadcast %87 : vector<1x32xf32> to vector<100x32xf32>
    %89 = arith.mulf %84, %88 : vector<100x32xf32>
    %90 = arith.addf %83, %89 : vector<100x32xf32>
    %91 = vector.extract_strided_slice %68 {offsets = [3, 0], sizes = [100, 32], strides = [1, 1]} : vector<104x32xf32> to vector<100x32xf32>
    %92 = vector.extract_strided_slice %0 {offsets = [3, 0], sizes = [1, 32], strides = [1, 1]} : vector<5x32xf32> to vector<1x32xf32>
    %93 = vector.shape_cast %92 : vector<1x32xf32> to vector<32xf32>
    %94 = vector.shape_cast %93 : vector<32xf32> to vector<1x32xf32>
    %95 = vector.broadcast %94 : vector<1x32xf32> to vector<100x32xf32>
    %96 = arith.mulf %91, %95 : vector<100x32xf32>
    %97 = arith.addf %90, %96 : vector<100x32xf32>
    %98 = vector.extract_strided_slice %68 {offsets = [4, 0], sizes = [100, 32], strides = [1, 1]} : vector<104x32xf32> to vector<100x32xf32>
    %99 = vector.extract_strided_slice %0 {offsets = [4, 0], sizes = [1, 32], strides = [1, 1]} : vector<5x32xf32> to vector<1x32xf32>
    %100 = vector.shape_cast %99 : vector<1x32xf32> to vector<32xf32>
    %101 = vector.shape_cast %100 : vector<32xf32> to vector<1x32xf32>
    %102 = vector.broadcast %101 : vector<1x32xf32> to vector<100x32xf32>
    %103 = arith.mulf %98, %102 : vector<100x32xf32>
    %104 = arith.addf %97, %103 : vector<100x32xf32>
    %105 = vector.broadcast %1 : vector<1x32xf32> to vector<100x32xf32>
    %106 = arith.addf %104, %105 : vector<100x32xf32>
    %cst_28 = arith.constant dense<0.000000e+00> : vector<100x64xf32>
    %107 = tpu.matmul %106, %2, %cst_28 {dimension_numbers = #tpu.dot_dimension_numbers<[1], [0], [0], [1], [0, 0, 1, 1], [], []>} : vector<100x32xf32>, vector<32x64xf32>, vector<100x64xf32> -> vector<100x64xf32>
    %108 = vector.broadcast %3 : vector<1x64xf32> to vector<100x64xf32>
    %109 = arith.addf %107, %108 : vector<100x64xf32>
    %cst_29 = arith.constant 0.000000e+00 : f32
    %110 = vector.broadcast %cst_29 : f32 to vector<100x64xf32>
    %111 = arith.maximumf %109, %110 : vector<100x64xf32>
    %112 = vector.broadcast %4 : vector<1x64xf32> to vector<100x64xf32>
    %113 = arith.mulf %111, %112 : vector<100x64xf32>
    %114 = vector.broadcast %5 : vector<1x64xf32> to vector<100x64xf32>
    %115 = arith.addf %113, %114 : vector<100x64xf32>
    %116 = vector.extract_strided_slice %68 {offsets = [2, 0], sizes = [100, 32], strides = [1, 1]} : vector<104x32xf32> to vector<100x32xf32>
    %c0_30 = arith.constant 0 : index
    %c0_31 = arith.constant 0 : index
    %117 = vector.load %arg5[%c0_30, %c0_31] : memref<32x64xf32, #tpu.memory_space<vmem>>, vector<32x64xf32>
    %cst_32 = arith.constant dense<0.000000e+00> : vector<100x64xf32>
    %118 = tpu.matmul %116, %117, %cst_32 {dimension_numbers = #tpu.dot_dimension_numbers<[1], [0], [0], [1], [0, 0, 1, 1], [], []>} : vector<100x32xf32>, vector<32x64xf32>, vector<100x64xf32> -> vector<100x64xf32>
    %c0_33 = arith.constant 0 : index
    %c0_34 = arith.constant 0 : index
    %119 = vector.load %arg6[%c0_33, %c0_34] : memref<1x64xf32, #tpu.memory_space<vmem>>, vector<1x64xf32>
    %120 = vector.broadcast %119 : vector<1x64xf32> to vector<100x64xf32>
    %121 = arith.addf %118, %120 : vector<100x64xf32>
    %122 = arith.addf %115, %121 : vector<100x64xf32>
    %cst_35 = arith.constant 0.000000e+00 : f32
    %123 = vector.broadcast %cst_35 : f32 to vector<100x64xf32>
    %124 = arith.maximumf %122, %123 : vector<100x64xf32>
    %c1_36 = arith.constant 1 : index
    %c0_37 = arith.constant 0 : index
    %c0_38 = arith.constant 0 : index
    %125 = vector.load %arg9[%c1_36, %c0_37, %c0_38] : memref<2x100x64xf32, #tpu.memory_space<vmem>>, vector<1x100x64xf32>
    %126 = vector.shape_cast %125 : vector<1x100x64xf32> to vector<100x64xf32>
    %127 = vector.shape_cast %124 : vector<100x64xf32> to vector<1x100x64xf32>
    tpu.vector_store %arg9[%c1_36, %c0_37, %c0_38], %127 {strides = array<i32>} : memref<2x100x64xf32, #tpu.memory_space<vmem>>, vector<1x100x64xf32>,
    return
  }
}

module attributes {stable_mosaic.version = 11 : i64} {
  func.func @_resblock_kernel(%arg0: memref<2x104x64xf32, #tpu.memory_space<vmem>>, %arg1: memref<3x64xf32, #tpu.memory_space<vmem>>, %arg2: memref<1x64xf32, #tpu.memory_space<vmem>>, %arg3: memref<64x128xf32, #tpu.memory_space<vmem>>, %arg4: memref<1x128xf32, #tpu.memory_space<vmem>>, %arg5: memref<64x128xf32, #tpu.memory_space<vmem>>, %arg6: memref<1x128xf32, #tpu.memory_space<vmem>>, %arg7: memref<1x128xf32, #tpu.memory_space<vmem>>, %arg8: memref<1x128xf32, #tpu.memory_space<vmem>>, %arg9: memref<2x100x128xf32, #tpu.memory_space<vmem>>) attributes {dimension_semantics = [], scalar_prefetch = 0 : i64, scratch_operands = 0 : i64, tpu.core_type = #tpu.core_type<tc>} {
    %c0 = arith.constant 0 : index
    %c0_0 = arith.constant 0 : index
    %0 = vector.load %arg1[%c0, %c0_0] : memref<3x64xf32, #tpu.memory_space<vmem>>, vector<3x64xf32>
    %c0_1 = arith.constant 0 : index
    %c0_2 = arith.constant 0 : index
    %1 = vector.load %arg2[%c0_1, %c0_2] : memref<1x64xf32, #tpu.memory_space<vmem>>, vector<1x64xf32>
    %c0_3 = arith.constant 0 : index
    %c0_4 = arith.constant 0 : index
    %2 = vector.load %arg3[%c0_3, %c0_4] : memref<64x128xf32, #tpu.memory_space<vmem>>, vector<64x128xf32>
    %c0_5 = arith.constant 0 : index
    %c0_6 = arith.constant 0 : index
    %3 = vector.load %arg4[%c0_5, %c0_6] : memref<1x128xf32, #tpu.memory_space<vmem>>, vector<1x128xf32>
    %c0_7 = arith.constant 0 : index
    %c0_8 = arith.constant 0 : index
    %4 = vector.load %arg7[%c0_7, %c0_8] : memref<1x128xf32, #tpu.memory_space<vmem>>, vector<1x128xf32>
    %c0_9 = arith.constant 0 : index
    %c0_10 = arith.constant 0 : index
    %5 = vector.load %arg8[%c0_9, %c0_10] : memref<1x128xf32, #tpu.memory_space<vmem>>, vector<1x128xf32>
    %c0_11 = arith.constant 0 : index
    %c0_12 = arith.constant 0 : index
    %c0_13 = arith.constant 0 : index
    %6 = vector.load %arg0[%c0_11, %c0_12, %c0_13] : memref<2x104x64xf32, #tpu.memory_space<vmem>>, vector<1x104x64xf32>
    %7 = vector.shape_cast %6 : vector<1x104x64xf32> to vector<104x64xf32>
    %cst = arith.constant 0.000000e+00 : f32
    %8 = vector.broadcast %cst : f32 to vector<100x64xf32>
    %9 = vector.extract_strided_slice %7 {offsets = [0, 0], sizes = [100, 64], strides = [1, 1]} : vector<104x64xf32> to vector<100x64xf32>
    %10 = vector.extract_strided_slice %0 {offsets = [0, 0], sizes = [1, 64], strides = [1, 1]} : vector<3x64xf32> to vector<1x64xf32>
    %11 = vector.shape_cast %10 : vector<1x64xf32> to vector<64xf32>
    %12 = vector.shape_cast %11 : vector<64xf32> to vector<1x64xf32>
    %13 = vector.broadcast %12 : vector<1x64xf32> to vector<100x64xf32>
    %14 = arith.mulf %9, %13 : vector<100x64xf32>
    %15 = arith.addf %8, %14 : vector<100x64xf32>
    %16 = vector.extract_strided_slice %7 {offsets = [2, 0], sizes = [100, 64], strides = [1, 1]} : vector<104x64xf32> to vector<100x64xf32>
    %17 = vector.extract_strided_slice %0 {offsets = [1, 0], sizes = [1, 64], strides = [1, 1]} : vector<3x64xf32> to vector<1x64xf32>
    %18 = vector.shape_cast %17 : vector<1x64xf32> to vector<64xf32>
    %19 = vector.shape_cast %18 : vector<64xf32> to vector<1x64xf32>
    %20 = vector.broadcast %19 : vector<1x64xf32> to vector<100x64xf32>
    %21 = arith.mulf %16, %20 : vector<100x64xf32>
    %22 = arith.addf %15, %21 : vector<100x64xf32>
    %23 = vector.extract_strided_slice %7 {offsets = [4, 0], sizes = [100, 64], strides = [1, 1]} : vector<104x64xf32> to vector<100x64xf32>
    %24 = vector.extract_strided_slice %0 {offsets = [2, 0], sizes = [1, 64], strides = [1, 1]} : vector<3x64xf32> to vector<1x64xf32>
    %25 = vector.shape_cast %24 : vector<1x64xf32> to vector<64xf32>
    %26 = vector.shape_cast %25 : vector<64xf32> to vector<1x64xf32>
    %27 = vector.broadcast %26 : vector<1x64xf32> to vector<100x64xf32>
    %28 = arith.mulf %23, %27 : vector<100x64xf32>
    %29 = arith.addf %22, %28 : vector<100x64xf32>
    %30 = vector.broadcast %1 : vector<1x64xf32> to vector<100x64xf32>
    %31 = arith.addf %29, %30 : vector<100x64xf32>
    %cst_14 = arith.constant dense<0.000000e+00> : vector<100x128xf32>
    %32 = tpu.matmul %31, %2, %cst_14 {dimension_numbers = #tpu.dot_dimension_numbers<[1], [0], [0], [1], [0, 0, 1, 1], [], []>} : vector<100x64xf32>, vector<64x128xf32>, vector<100x128xf32> -> vector<100x128xf32>
    %33 = vector.broadcast %3 : vector<1x128xf32> to vector<100x128xf32>
    %34 = arith.addf %32, %33 : vector<100x128xf32>
    %cst_15 = arith.constant 0.000000e+00 : f32
    %35 = vector.broadcast %cst_15 : f32 to vector<100x128xf32>
    %36 = arith.maximumf %34, %35 : vector<100x128xf32>
    %37 = vector.broadcast %4 : vector<1x128xf32> to vector<100x128xf32>
    %38 = arith.mulf %36, %37 : vector<100x128xf32>
    %39 = vector.broadcast %5 : vector<1x128xf32> to vector<100x128xf32>
    %40 = arith.addf %38, %39 : vector<100x128xf32>
    %41 = vector.extract_strided_slice %7 {offsets = [2, 0], sizes = [100, 64], strides = [1, 1]} : vector<104x64xf32> to vector<100x64xf32>
    %c0_16 = arith.constant 0 : index
    %c0_17 = arith.constant 0 : index
    %42 = vector.load %arg5[%c0_16, %c0_17] : memref<64x128xf32, #tpu.memory_space<vmem>>, vector<64x128xf32>
    %cst_18 = arith.constant dense<0.000000e+00> : vector<100x128xf32>
    %43 = tpu.matmul %41, %42, %cst_18 {dimension_numbers = #tpu.dot_dimension_numbers<[1], [0], [0], [1], [0, 0, 1, 1], [], []>} : vector<100x64xf32>, vector<64x128xf32>, vector<100x128xf32> -> vector<100x128xf32>
    %c0_19 = arith.constant 0 : index
    %c0_20 = arith.constant 0 : index
    %44 = vector.load %arg6[%c0_19, %c0_20] : memref<1x128xf32, #tpu.memory_space<vmem>>, vector<1x128xf32>
    %45 = vector.broadcast %44 : vector<1x128xf32> to vector<100x128xf32>
    %46 = arith.addf %43, %45 : vector<100x128xf32>
    %47 = arith.addf %40, %46 : vector<100x128xf32>
    %cst_21 = arith.constant 0.000000e+00 : f32
    %48 = vector.broadcast %cst_21 : f32 to vector<100x128xf32>
    %49 = arith.maximumf %47, %48 : vector<100x128xf32>
    %c0_22 = arith.constant 0 : index
    %c0_23 = arith.constant 0 : index
    %c0_24 = arith.constant 0 : index
    %50 = vector.load %arg9[%c0_22, %c0_23, %c0_24] : memref<2x100x128xf32, #tpu.memory_space<vmem>>, vector<1x100x128xf32>
    %51 = vector.shape_cast %50 : vector<1x100x128xf32> to vector<100x128xf32>
    %52 = vector.shape_cast %49 : vector<100x128xf32> to vector<1x100x128xf32>
    tpu.vector_store %arg9[%c0_22, %c0_23, %c0_24], %52 {strides = array<i32>} : memref<2x100x128xf32, #tpu.memory_space<vmem>>, vector<1x100x128xf32>,
    %c1 = arith.constant 1 : index
    %c0_25 = arith.constant 0 : index
    %c0_26 = arith.constant 0 : index
    %53 = vector.load %arg0[%c1, %c0_25, %c0_26] : memref<2x104x64xf32, #tpu.memory_space<vmem>>, vector<1x104x64xf32>
    %54 = vector.shape_cast %53 : vector<1x104x64xf32> to vector<104x64xf32>
    %cst_27 = arith.constant 0.000000e+00 : f32
    %55 = vector.broadcast %cst_27 : f32 to vector<100x64xf32>
    %56 = vector.extract_strided_slice %54 {offsets = [0, 0], sizes = [100, 64], strides = [1, 1]} : vector<104x64xf32> to vector<100x64xf32>
    %57 = vector.extract_strided_slice %0 {offsets = [0, 0], sizes = [1, 64], strides = [1, 1]} : vector<3x64xf32> to vector<1x64xf32>
    %58 = vector.shape_cast %57 : vector<1x64xf32> to vector<64xf32>
    %59 = vector.shape_cast %58 : vector<64xf32> to vector<1x64xf32>
    %60 = vector.broadcast %59 : vector<1x64xf32> to vector<100x64xf32>
    %61 = arith.mulf %56, %60 : vector<100x64xf32>
    %62 = arith.addf %55, %61 : vector<100x64xf32>
    %63 = vector.extract_strided_slice %54 {offsets = [2, 0], sizes = [100, 64], strides = [1, 1]} : vector<104x64xf32> to vector<100x64xf32>
    %64 = vector.extract_strided_slice %0 {offsets = [1, 0], sizes = [1, 64], strides = [1, 1]} : vector<3x64xf32> to vector<1x64xf32>
    %65 = vector.shape_cast %64 : vector<1x64xf32> to vector<64xf32>
    %66 = vector.shape_cast %65 : vector<64xf32> to vector<1x64xf32>
    %67 = vector.broadcast %66 : vector<1x64xf32> to vector<100x64xf32>
    %68 = arith.mulf %63, %67 : vector<100x64xf32>
    %69 = arith.addf %62, %68 : vector<100x64xf32>
    %70 = vector.extract_strided_slice %54 {offsets = [4, 0], sizes = [100, 64], strides = [1, 1]} : vector<104x64xf32> to vector<100x64xf32>
    %71 = vector.extract_strided_slice %0 {offsets = [2, 0], sizes = [1, 64], strides = [1, 1]} : vector<3x64xf32> to vector<1x64xf32>
    %72 = vector.shape_cast %71 : vector<1x64xf32> to vector<64xf32>
    %73 = vector.shape_cast %72 : vector<64xf32> to vector<1x64xf32>
    %74 = vector.broadcast %73 : vector<1x64xf32> to vector<100x64xf32>
    %75 = arith.mulf %70, %74 : vector<100x64xf32>
    %76 = arith.addf %69, %75 : vector<100x64xf32>
    %77 = vector.broadcast %1 : vector<1x64xf32> to vector<100x64xf32>
    %78 = arith.addf %76, %77 : vector<100x64xf32>
    %cst_28 = arith.constant dense<0.000000e+00> : vector<100x128xf32>
    %79 = tpu.matmul %78, %2, %cst_28 {dimension_numbers = #tpu.dot_dimension_numbers<[1], [0], [0], [1], [0, 0, 1, 1], [], []>} : vector<100x64xf32>, vector<64x128xf32>, vector<100x128xf32> -> vector<100x128xf32>
    %80 = vector.broadcast %3 : vector<1x128xf32> to vector<100x128xf32>
    %81 = arith.addf %79, %80 : vector<100x128xf32>
    %cst_29 = arith.constant 0.000000e+00 : f32
    %82 = vector.broadcast %cst_29 : f32 to vector<100x128xf32>
    %83 = arith.maximumf %81, %82 : vector<100x128xf32>
    %84 = vector.broadcast %4 : vector<1x128xf32> to vector<100x128xf32>
    %85 = arith.mulf %83, %84 : vector<100x128xf32>
    %86 = vector.broadcast %5 : vector<1x128xf32> to vector<100x128xf32>
    %87 = arith.addf %85, %86 : vector<100x128xf32>
    %88 = vector.extract_strided_slice %54 {offsets = [2, 0], sizes = [100, 64], strides = [1, 1]} : vector<104x64xf32> to vector<100x64xf32>
    %c0_30 = arith.constant 0 : index
    %c0_31 = arith.constant 0 : index
    %89 = vector.load %arg5[%c0_30, %c0_31] : memref<64x128xf32, #tpu.memory_space<vmem>>, vector<64x128xf32>
    %cst_32 = arith.constant dense<0.000000e+00> : vector<100x128xf32>
    %90 = tpu.matmul %88, %89, %cst_32 {dimension_numbers = #tpu.dot_dimension_numbers<[1], [0], [0], [1], [0, 0, 1, 1], [], []>} : vector<100x64xf32>, vector<64x128xf32>, vector<100x128xf32> -> vector<100x128xf32>
    %c0_33 = arith.constant 0 : index
    %c0_34 = arith.constant 0 : index
    %91 = vector.load %arg6[%c0_33, %c0_34] : memref<1x128xf32, #tpu.memory_space<vmem>>, vector<1x128xf32>
    %92 = vector.broadcast %91 : vector<1x128xf32> to vector<100x128xf32>
    %93 = arith.addf %90, %92 : vector<100x128xf32>
    %94 = arith.addf %87, %93 : vector<100x128xf32>
    %cst_35 = arith.constant 0.000000e+00 : f32
    %95 = vector.broadcast %cst_35 : f32 to vector<100x128xf32>
    %96 = arith.maximumf %94, %95 : vector<100x128xf32>
    %c1_36 = arith.constant 1 : index
    %c0_37 = arith.constant 0 : index
    %c0_38 = arith.constant 0 : index
    %97 = vector.load %arg9[%c1_36, %c0_37, %c0_38] : memref<2x100x128xf32, #tpu.memory_space<vmem>>, vector<1x100x128xf32>
    %98 = vector.shape_cast %97 : vector<1x100x128xf32> to vector<100x128xf32>
    %99 = vector.shape_cast %96 : vector<100x128xf32> to vector<1x100x128xf32>
    tpu.vector_store %arg9[%c1_36, %c0_37, %c0_38], %99 {strides = array<i32>} : memref<2x100x128xf32, #tpu.memory_space<vmem>>, vector<1x100x128xf32>,
    return
  }
}

module attributes {stable_mosaic.version = 11 : i64} {
  func.func @_resblock_kernel(%arg0: memref<2x106x128xf32, #tpu.memory_space<vmem>>, %arg1: memref<3x128xf32, #tpu.memory_space<vmem>>, %arg2: memref<1x128xf32, #tpu.memory_space<vmem>>, %arg3: memref<128x256xf32, #tpu.memory_space<vmem>>, %arg4: memref<1x256xf32, #tpu.memory_space<vmem>>, %arg5: memref<128x256xf32, #tpu.memory_space<vmem>>, %arg6: memref<1x256xf32, #tpu.memory_space<vmem>>, %arg7: memref<1x256xf32, #tpu.memory_space<vmem>>, %arg8: memref<1x256xf32, #tpu.memory_space<vmem>>, %arg9: memref<2x100x256xf32, #tpu.memory_space<vmem>>) attributes {dimension_semantics = [], scalar_prefetch = 0 : i64, scratch_operands = 0 : i64, tpu.core_type = #tpu.core_type<tc>} {
    %c0 = arith.constant 0 : index
    %c0_0 = arith.constant 0 : index
    %0 = vector.load %arg1[%c0, %c0_0] : memref<3x128xf32, #tpu.memory_space<vmem>>, vector<3x128xf32>
    %c0_1 = arith.constant 0 : index
    %c0_2 = arith.constant 0 : index
    %1 = vector.load %arg2[%c0_1, %c0_2] : memref<1x128xf32, #tpu.memory_space<vmem>>, vector<1x128xf32>
    %c0_3 = arith.constant 0 : index
    %c0_4 = arith.constant 0 : index
    %2 = vector.load %arg3[%c0_3, %c0_4] : memref<128x256xf32, #tpu.memory_space<vmem>>, vector<128x256xf32>
    %c0_5 = arith.constant 0 : index
    %c0_6 = arith.constant 0 : index
    %3 = vector.load %arg4[%c0_5, %c0_6] : memref<1x256xf32, #tpu.memory_space<vmem>>, vector<1x256xf32>
    %c0_7 = arith.constant 0 : index
    %c0_8 = arith.constant 0 : index
    %4 = vector.load %arg7[%c0_7, %c0_8] : memref<1x256xf32, #tpu.memory_space<vmem>>, vector<1x256xf32>
    %c0_9 = arith.constant 0 : index
    %c0_10 = arith.constant 0 : index
    %5 = vector.load %arg8[%c0_9, %c0_10] : memref<1x256xf32, #tpu.memory_space<vmem>>, vector<1x256xf32>
    %c0_11 = arith.constant 0 : index
    %c0_12 = arith.constant 0 : index
    %c0_13 = arith.constant 0 : index
    %6 = vector.load %arg0[%c0_11, %c0_12, %c0_13] : memref<2x106x128xf32, #tpu.memory_space<vmem>>, vector<1x106x128xf32>
    %7 = vector.shape_cast %6 : vector<1x106x128xf32> to vector<106x128xf32>
    %cst = arith.constant 0.000000e+00 : f32
    %8 = vector.broadcast %cst : f32 to vector<100x128xf32>
    %9 = vector.extract_strided_slice %7 {offsets = [0, 0], sizes = [100, 128], strides = [1, 1]} : vector<106x128xf32> to vector<100x128xf32>
    %10 = vector.extract_strided_slice %0 {offsets = [0, 0], sizes = [1, 128], strides = [1, 1]} : vector<3x128xf32> to vector<1x128xf32>
    %11 = vector.shape_cast %10 : vector<1x128xf32> to vector<128xf32>
    %12 = vector.shape_cast %11 : vector<128xf32> to vector<1x128xf32>
    %13 = vector.broadcast %12 : vector<1x128xf32> to vector<100x128xf32>
    %14 = arith.mulf %9, %13 : vector<100x128xf32>
    %15 = arith.addf %8, %14 : vector<100x128xf32>
    %16 = vector.extract_strided_slice %7 {offsets = [3, 0], sizes = [100, 128], strides = [1, 1]} : vector<106x128xf32> to vector<100x128xf32>
    %17 = vector.extract_strided_slice %0 {offsets = [1, 0], sizes = [1, 128], strides = [1, 1]} : vector<3x128xf32> to vector<1x128xf32>
    %18 = vector.shape_cast %17 : vector<1x128xf32> to vector<128xf32>
    %19 = vector.shape_cast %18 : vector<128xf32> to vector<1x128xf32>
    %20 = vector.broadcast %19 : vector<1x128xf32> to vector<100x128xf32>
    %21 = arith.mulf %16, %20 : vector<100x128xf32>
    %22 = arith.addf %15, %21 : vector<100x128xf32>
    %23 = vector.extract_strided_slice %7 {offsets = [6, 0], sizes = [100, 128], strides = [1, 1]} : vector<106x128xf32> to vector<100x128xf32>
    %24 = vector.extract_strided_slice %0 {offsets = [2, 0], sizes = [1, 128], strides = [1, 1]} : vector<3x128xf32> to vector<1x128xf32>
    %25 = vector.shape_cast %24 : vector<1x128xf32> to vector<128xf32>
    %26 = vector.shape_cast %25 : vector<128xf32> to vector<1x128xf32>
    %27 = vector.broadcast %26 : vector<1x128xf32> to vector<100x128xf32>
    %28 = arith.mulf %23, %27 : vector<100x128xf32>
    %29 = arith.addf %22, %28 : vector<100x128xf32>
    %30 = vector.broadcast %1 : vector<1x128xf32> to vector<100x128xf32>
    %31 = arith.addf %29, %30 : vector<100x128xf32>
    %cst_14 = arith.constant dense<0.000000e+00> : vector<100x256xf32>
    %32 = tpu.matmul %31, %2, %cst_14 {dimension_numbers = #tpu.dot_dimension_numbers<[1], [0], [0], [1], [0, 0, 1, 1], [], []>} : vector<100x128xf32>, vector<128x256xf32>, vector<100x256xf32> -> vector<100x256xf32>
    %33 = vector.broadcast %3 : vector<1x256xf32> to vector<100x256xf32>
    %34 = arith.addf %32, %33 : vector<100x256xf32>
    %cst_15 = arith.constant 0.000000e+00 : f32
    %35 = vector.broadcast %cst_15 : f32 to vector<100x256xf32>
    %36 = arith.maximumf %34, %35 : vector<100x256xf32>
    %37 = vector.broadcast %4 : vector<1x256xf32> to vector<100x256xf32>
    %38 = arith.mulf %36, %37 : vector<100x256xf32>
    %39 = vector.broadcast %5 : vector<1x256xf32> to vector<100x256xf32>
    %40 = arith.addf %38, %39 : vector<100x256xf32>
    %41 = vector.extract_strided_slice %7 {offsets = [3, 0], sizes = [100, 128], strides = [1, 1]} : vector<106x128xf32> to vector<100x128xf32>
    %c0_16 = arith.constant 0 : index
    %c0_17 = arith.constant 0 : index
    %42 = vector.load %arg5[%c0_16, %c0_17] : memref<128x256xf32, #tpu.memory_space<vmem>>, vector<128x256xf32>
    %cst_18 = arith.constant dense<0.000000e+00> : vector<100x256xf32>
    %43 = tpu.matmul %41, %42, %cst_18 {dimension_numbers = #tpu.dot_dimension_numbers<[1], [0], [0], [1], [0, 0, 1, 1], [], []>} : vector<100x128xf32>, vector<128x256xf32>, vector<100x256xf32> -> vector<100x256xf32>
    %c0_19 = arith.constant 0 : index
    %c0_20 = arith.constant 0 : index
    %44 = vector.load %arg6[%c0_19, %c0_20] : memref<1x256xf32, #tpu.memory_space<vmem>>, vector<1x256xf32>
    %45 = vector.broadcast %44 : vector<1x256xf32> to vector<100x256xf32>
    %46 = arith.addf %43, %45 : vector<100x256xf32>
    %47 = arith.addf %40, %46 : vector<100x256xf32>
    %cst_21 = arith.constant 0.000000e+00 : f32
    %48 = vector.broadcast %cst_21 : f32 to vector<100x256xf32>
    %49 = arith.maximumf %47, %48 : vector<100x256xf32>
    %c0_22 = arith.constant 0 : index
    %c0_23 = arith.constant 0 : index
    %c0_24 = arith.constant 0 : index
    %50 = vector.load %arg9[%c0_22, %c0_23, %c0_24] : memref<2x100x256xf32, #tpu.memory_space<vmem>>, vector<1x100x256xf32>
    %51 = vector.shape_cast %50 : vector<1x100x256xf32> to vector<100x256xf32>
    %52 = vector.shape_cast %49 : vector<100x256xf32> to vector<1x100x256xf32>
    tpu.vector_store %arg9[%c0_22, %c0_23, %c0_24], %52 {strides = array<i32>} : memref<2x100x256xf32, #tpu.memory_space<vmem>>, vector<1x100x256xf32>,
    %c1 = arith.constant 1 : index
    %c0_25 = arith.constant 0 : index
    %c0_26 = arith.constant 0 : index
    %53 = vector.load %arg0[%c1, %c0_25, %c0_26] : memref<2x106x128xf32, #tpu.memory_space<vmem>>, vector<1x106x128xf32>
    %54 = vector.shape_cast %53 : vector<1x106x128xf32> to vector<106x128xf32>
    %cst_27 = arith.constant 0.000000e+00 : f32
    %55 = vector.broadcast %cst_27 : f32 to vector<100x128xf32>
    %56 = vector.extract_strided_slice %54 {offsets = [0, 0], sizes = [100, 128], strides = [1, 1]} : vector<106x128xf32> to vector<100x128xf32>
    %57 = vector.extract_strided_slice %0 {offsets = [0, 0], sizes = [1, 128], strides = [1, 1]} : vector<3x128xf32> to vector<1x128xf32>
    %58 = vector.shape_cast %57 : vector<1x128xf32> to vector<128xf32>
    %59 = vector.shape_cast %58 : vector<128xf32> to vector<1x128xf32>
    %60 = vector.broadcast %59 : vector<1x128xf32> to vector<100x128xf32>
    %61 = arith.mulf %56, %60 : vector<100x128xf32>
    %62 = arith.addf %55, %61 : vector<100x128xf32>
    %63 = vector.extract_strided_slice %54 {offsets = [3, 0], sizes = [100, 128], strides = [1, 1]} : vector<106x128xf32> to vector<100x128xf32>
    %64 = vector.extract_strided_slice %0 {offsets = [1, 0], sizes = [1, 128], strides = [1, 1]} : vector<3x128xf32> to vector<1x128xf32>
    %65 = vector.shape_cast %64 : vector<1x128xf32> to vector<128xf32>
    %66 = vector.shape_cast %65 : vector<128xf32> to vector<1x128xf32>
    %67 = vector.broadcast %66 : vector<1x128xf32> to vector<100x128xf32>
    %68 = arith.mulf %63, %67 : vector<100x128xf32>
    %69 = arith.addf %62, %68 : vector<100x128xf32>
    %70 = vector.extract_strided_slice %54 {offsets = [6, 0], sizes = [100, 128], strides = [1, 1]} : vector<106x128xf32> to vector<100x128xf32>
    %71 = vector.extract_strided_slice %0 {offsets = [2, 0], sizes = [1, 128], strides = [1, 1]} : vector<3x128xf32> to vector<1x128xf32>
    %72 = vector.shape_cast %71 : vector<1x128xf32> to vector<128xf32>
    %73 = vector.shape_cast %72 : vector<128xf32> to vector<1x128xf32>
    %74 = vector.broadcast %73 : vector<1x128xf32> to vector<100x128xf32>
    %75 = arith.mulf %70, %74 : vector<100x128xf32>
    %76 = arith.addf %69, %75 : vector<100x128xf32>
    %77 = vector.broadcast %1 : vector<1x128xf32> to vector<100x128xf32>
    %78 = arith.addf %76, %77 : vector<100x128xf32>
    %cst_28 = arith.constant dense<0.000000e+00> : vector<100x256xf32>
    %79 = tpu.matmul %78, %2, %cst_28 {dimension_numbers = #tpu.dot_dimension_numbers<[1], [0], [0], [1], [0, 0, 1, 1], [], []>} : vector<100x128xf32>, vector<128x256xf32>, vector<100x256xf32> -> vector<100x256xf32>
    %80 = vector.broadcast %3 : vector<1x256xf32> to vector<100x256xf32>
    %81 = arith.addf %79, %80 : vector<100x256xf32>
    %cst_29 = arith.constant 0.000000e+00 : f32
    %82 = vector.broadcast %cst_29 : f32 to vector<100x256xf32>
    %83 = arith.maximumf %81, %82 : vector<100x256xf32>
    %84 = vector.broadcast %4 : vector<1x256xf32> to vector<100x256xf32>
    %85 = arith.mulf %83, %84 : vector<100x256xf32>
    %86 = vector.broadcast %5 : vector<1x256xf32> to vector<100x256xf32>
    %87 = arith.addf %85, %86 : vector<100x256xf32>
    %88 = vector.extract_strided_slice %54 {offsets = [3, 0], sizes = [100, 128], strides = [1, 1]} : vector<106x128xf32> to vector<100x128xf32>
    %c0_30 = arith.constant 0 : index
    %c0_31 = arith.constant 0 : index
    %89 = vector.load %arg5[%c0_30, %c0_31] : memref<128x256xf32, #tpu.memory_space<vmem>>, vector<128x256xf32>
    %cst_32 = arith.constant dense<0.000000e+00> : vector<100x256xf32>
    %90 = tpu.matmul %88, %89, %cst_32 {dimension_numbers = #tpu.dot_dimension_numbers<[1], [0], [0], [1], [0, 0, 1, 1], [], []>} : vector<100x128xf32>, vector<128x256xf32>, vector<100x256xf32> -> vector<100x256xf32>
    %c0_33 = arith.constant 0 : index
    %c0_34 = arith.constant 0 : index
    %91 = vector.load %arg6[%c0_33, %c0_34] : memref<1x256xf32, #tpu.memory_space<vmem>>, vector<1x256xf32>
    %92 = vector.broadcast %91 : vector<1x256xf32> to vector<100x256xf32>
    %93 = arith.addf %90, %92 : vector<100x256xf32>
    %94 = arith.addf %87, %93 : vector<100x256xf32>
    %cst_35 = arith.constant 0.000000e+00 : f32
    %95 = vector.broadcast %cst_35 : f32 to vector<100x256xf32>
    %96 = arith.maximumf %94, %95 : vector<100x256xf32>
    %c1_36 = arith.constant 1 : index
    %c0_37 = arith.constant 0 : index
    %c0_38 = arith.constant 0 : index
    %97 = vector.load %arg9[%c1_36, %c0_37, %c0_38] : memref<2x100x256xf32, #tpu.memory_space<vmem>>, vector<1x100x256xf32>
    %98 = vector.shape_cast %97 : vector<1x100x256xf32> to vector<100x256xf32>
    %99 = vector.shape_cast %96 : vector<100x256xf32> to vector<1x100x256xf32>
    tpu.vector_store %arg9[%c1_36, %c0_37, %c0_38], %99 {strides = array<i32>} : memref<2x100x256xf32, #tpu.memory_space<vmem>>, vector<1x100x256xf32>,
    return
  }
}

module attributes {stable_mosaic.version = 11 : i64} {
  func.func @_matmul_bias_kernel(%arg0: memref<100x256xf32, #tpu.memory_space<vmem>>, %arg1: memref<256x32xf32, #tpu.memory_space<vmem>>, %arg2: memref<1x32xf32, #tpu.memory_space<vmem>>, %arg3: memref<100x32xf32, #tpu.memory_space<vmem>>) attributes {dimension_semantics = [], scalar_prefetch = 0 : i64, scratch_operands = 0 : i64, tpu.core_type = #tpu.core_type<tc>} {
    %c0 = arith.constant 0 : index
    %c0_0 = arith.constant 0 : index
    %0 = vector.load %arg0[%c0, %c0_0] : memref<100x256xf32, #tpu.memory_space<vmem>>, vector<100x256xf32>
    %c0_1 = arith.constant 0 : index
    %c0_2 = arith.constant 0 : index
    %1 = vector.load %arg1[%c0_1, %c0_2] : memref<256x32xf32, #tpu.memory_space<vmem>>, vector<256x32xf32>
    %cst = arith.constant dense<0.000000e+00> : vector<100x32xf32>
    %2 = tpu.matmul %0, %1, %cst {dimension_numbers = #tpu.dot_dimension_numbers<[1], [0], [0], [1], [0, 0, 1, 1], [], []>} : vector<100x256xf32>, vector<256x32xf32>, vector<100x32xf32> -> vector<100x32xf32>
    %c0_3 = arith.constant 0 : index
    %c0_4 = arith.constant 0 : index
    %3 = vector.load %arg2[%c0_3, %c0_4] : memref<1x32xf32, #tpu.memory_space<vmem>>, vector<1x32xf32>
    %4 = vector.broadcast %3 : vector<1x32xf32> to vector<100x32xf32>
    %5 = arith.addf %2, %4 : vector<100x32xf32>
    %c0_5 = arith.constant 0 : index
    %c0_6 = arith.constant 0 : index
    %6 = vector.load %arg3[%c0_5, %c0_6] : memref<100x32xf32, #tpu.memory_space<vmem>>, vector<100x32xf32>
    tpu.vector_store %arg3[%c0_5, %c0_6], %5 {strides = array<i32>} : memref<100x32xf32, #tpu.memory_space<vmem>>, vector<100x32xf32>,
    return
  }
}

module attributes {stable_mosaic.version = 11 : i64} {
  func.func @_matmul_bias_kernel(%arg0: memref<100x32xf32, #tpu.memory_space<vmem>>, %arg1: memref<32x192xf32, #tpu.memory_space<vmem>>, %arg2: memref<1x192xf32, #tpu.memory_space<vmem>>, %arg3: memref<100x192xf32, #tpu.memory_space<vmem>>) attributes {dimension_semantics = [], scalar_prefetch = 0 : i64, scratch_operands = 0 : i64, tpu.core_type = #tpu.core_type<tc>} {
    %c0 = arith.constant 0 : index
    %c0_0 = arith.constant 0 : index
    %0 = vector.load %arg0[%c0, %c0_0] : memref<100x32xf32, #tpu.memory_space<vmem>>, vector<100x32xf32>
    %c0_1 = arith.constant 0 : index
    %c0_2 = arith.constant 0 : index
    %1 = vector.load %arg1[%c0_1, %c0_2] : memref<32x192xf32, #tpu.memory_space<vmem>>, vector<32x192xf32>
    %cst = arith.constant dense<0.000000e+00> : vector<100x192xf32>
    %2 = tpu.matmul %0, %1, %cst {dimension_numbers = #tpu.dot_dimension_numbers<[1], [0], [0], [1], [0, 0, 1, 1], [], []>} : vector<100x32xf32>, vector<32x192xf32>, vector<100x192xf32> -> vector<100x192xf32>
    %c0_3 = arith.constant 0 : index
    %c0_4 = arith.constant 0 : index
    %3 = vector.load %arg2[%c0_3, %c0_4] : memref<1x192xf32, #tpu.memory_space<vmem>>, vector<1x192xf32>
    %4 = vector.broadcast %3 : vector<1x192xf32> to vector<100x192xf32>
    %5 = arith.addf %2, %4 : vector<100x192xf32>
    %c0_5 = arith.constant 0 : index
    %c0_6 = arith.constant 0 : index
    %6 = vector.load %arg3[%c0_5, %c0_6] : memref<100x192xf32, #tpu.memory_space<vmem>>, vector<100x192xf32>
    tpu.vector_store %arg3[%c0_5, %c0_6], %5 {strides = array<i32>} : memref<100x192xf32, #tpu.memory_space<vmem>>, vector<100x192xf32>,
    return
  }
}

module attributes {stable_mosaic.version = 11 : i64} {
  func.func @_gru_layer_kernel(%arg0: i32, %arg1: memref<1x50x2x96xf32, #tpu.memory_space<vmem>>, %arg2: memref<1x32x96xf32, #tpu.memory_space<vmem>>, %arg3: memref<1x1x96xf32, #tpu.memory_space<vmem>>, %arg4: memref<1x50x2x32xf32, #tpu.memory_space<vmem>>) attributes {dimension_semantics = [#tpu.dimension_semantics<parallel>], iteration_bounds = array<i64: 2>, scalar_prefetch = 0 : i64, scratch_operands = 0 : i64, tpu.core_type = #tpu.core_type<tc>, window_params = [{transform_indices = @transform_0, window_bounds = array<i64: 1, 50, 2, 96>}, {transform_indices = @transform_1, window_bounds = array<i64: 1, 32, 96>}, {transform_indices = @transform_2, window_bounds = array<i64: 1, 1, 96>}, {transform_indices = @transform_3, window_bounds = array<i64: 1, 50, 2, 32>}]} {
    %c0 = arith.constant 0 : index
    %c0_0 = arith.constant 0 : index
    %c0_1 = arith.constant 0 : index
    %0 = vector.load %arg2[%c0, %c0_0, %c0_1] : memref<1x32x96xf32, #tpu.memory_space<vmem>>, vector<1x32x96xf32>
    %1 = vector.shape_cast %0 : vector<1x32x96xf32> to vector<32x96xf32>
    %c0_2 = arith.constant 0 : index
    %c0_3 = arith.constant 0 : index
    %c0_4 = arith.constant 0 : index
    %2 = vector.load %arg3[%c0_2, %c0_3, %c0_4] : memref<1x1x96xf32, #tpu.memory_space<vmem>>, vector<1x1x96xf32>
    %3 = vector.shape_cast %2 : vector<1x1x96xf32> to vector<1x96xf32>
    %cst = arith.constant 0.000000e+00 : f32
    %4 = vector.broadcast %cst : f32 to vector<2x32xf32>
    %c0_i32 = arith.constant 0 : i32
    %c50_i32 = arith.constant 50 : i32
    %5 = arith.addi %c0_i32, %c50_i32 : i32
    %c1_i32 = arith.constant 1 : i32
    %6 = scf.for %arg5 = %c0_i32 to %5 step %c1_i32 iter_args(%arg6 = %4) -> (vector<2x32xf32>)  : i32 {
      %c0_i32_6 = arith.constant 0 : i32
      %7 = arith.cmpi eq, %arg0, %c0_i32_6 : i32
      %c49_i32 = arith.constant 49 : i32
      %8 = arith.subi %c49_i32, %arg5 : i32
      %9 = arith.select %7, %arg5, %8 : i32
      %c0_7 = arith.constant 0 : index
      %10 = arith.index_cast %9 : i32 to index
      %c0_8 = arith.constant 0 : index
      %c0_9 = arith.constant 0 : index
      %11 = vector.load %arg1[%c0_7, %10, %c0_8, %c0_9] : memref<1x50x2x96xf32, #tpu.memory_space<vmem>>, vector<1x1x2x96xf32>
      %12 = vector.shape_cast %11 : vector<1x1x2x96xf32> to vector<2x96xf32>
      %cst_10 = arith.constant dense<0.000000e+00> : vector<2x96xf32>
      %13 = tpu.matmul %arg6, %1, %cst_10 {dimension_numbers = #tpu.dot_dimension_numbers<[1], [0], [0], [1], [0, 0, 1, 1], [], []>} : vector<2x32xf32>, vector<32x96xf32>, vector<2x96xf32> -> vector<2x96xf32>
      %14 = vector.broadcast %3 : vector<1x96xf32> to vector<2x96xf32>
      %15 = arith.addf %13, %14 : vector<2x96xf32>
      %16 = vector.extract_strided_slice %12 {offsets = [0, 0], sizes = [2, 32], strides = [1, 1]} : vector<2x96xf32> to vector<2x32xf32>
      %17 = vector.extract_strided_slice %15 {offsets = [0, 0], sizes = [2, 32], strides = [1, 1]} : vector<2x96xf32> to vector<2x32xf32>
      %18 = arith.addf %16, %17 : vector<2x32xf32>
      %19 = arith.negf %18 : vector<2x32xf32>
      %20 = math.exp %19 : vector<2x32xf32>
      %cst_11 = arith.constant 1.000000e+00 : f32
      %21 = vector.broadcast %cst_11 : f32 to vector<2x32xf32>
      %22 = arith.addf %21, %20 : vector<2x32xf32>
      %23 = arith.divf %21, %22 : vector<2x32xf32>
      %24 = vector.extract_strided_slice %12 {offsets = [0, 32], sizes = [2, 32], strides = [1, 1]} : vector<2x96xf32> to vector<2x32xf32>
      %25 = vector.extract_strided_slice %15 {offsets = [0, 32], sizes = [2, 32], strides = [1, 1]} : vector<2x96xf32> to vector<2x32xf32>
      %26 = arith.addf %24, %25 : vector<2x32xf32>
      %27 = arith.negf %26 : vector<2x32xf32>
      %28 = math.exp %27 : vector<2x32xf32>
      %cst_12 = arith.constant 1.000000e+00 : f32
      %29 = vector.broadcast %cst_12 : f32 to vector<2x32xf32>
      %30 = arith.addf %29, %28 : vector<2x32xf32>
      %31 = arith.divf %29, %30 : vector<2x32xf32>
      %32 = vector.extract_strided_slice %12 {offsets = [0, 64], sizes = [2, 32], strides = [1, 1]} : vector<2x96xf32> to vector<2x32xf32>
      %33 = vector.extract_strided_slice %15 {offsets = [0, 64], sizes = [2, 32], strides = [1, 1]} : vector<2x96xf32> to vector<2x32xf32>
      %34 = arith.mulf %23, %33 : vector<2x32xf32>
      %35 = arith.addf %32, %34 : vector<2x32xf32>
      %36 = math.tanh %35 : vector<2x32xf32>
      %cst_13 = arith.constant 1.000000e+00 : f32
      %37 = vector.broadcast %cst_13 : f32 to vector<2x32xf32>
      %38 = arith.subf %37, %31 : vector<2x32xf32>
      %39 = arith.mulf %38, %36 : vector<2x32xf32>
      %40 = arith.mulf %31, %arg6 : vector<2x32xf32>
      %41 = arith.addf %39, %40 : vector<2x32xf32>
      %c0_14 = arith.constant 0 : index
      %42 = arith.index_cast %9 : i32 to index
      %c0_15 = arith.constant 0 : index
      %c0_16 = arith.constant 0 : index
      %43 = vector.load %arg4[%c0_14, %42, %c0_15, %c0_16] : memref<1x50x2x32xf32, #tpu.memory_space<vmem>>, vector<1x1x2x32xf32>
      %44 = vector.shape_cast %43 : vector<1x1x2x32xf32> to vector<2x32xf32>
      %45 = vector.shape_cast %41 : vector<2x32xf32> to vector<1x1x2x32xf32>
      tpu.vector_store %arg4[%c0_14, %42, %c0_15, %c0_16], %45 {strides = array<i32>} : memref<1x50x2x32xf32, #tpu.memory_space<vmem>>, vector<1x1x2x32xf32>,
      scf.yield %41 : vector<2x32xf32>
    }
    %c50_i32_5 = arith.constant 50 : i32
    return
  }
  func.func @transform_0(%arg0: i32) -> (i32, i32, i32, i32) {
    %c0_i32 = arith.constant 0 : i32
    %c0_i32_0 = arith.constant 0 : i32
    %c0_i32_1 = arith.constant 0 : i32
    %c0_i32_2 = arith.constant 0 : i32
    return %arg0, %c0_i32, %c0_i32_0, %c0_i32_1 : i32, i32, i32, i32
  }
  func.func @transform_1(%arg0: i32) -> (i32, i32, i32) {
    %c0_i32 = arith.constant 0 : i32
    %c0_i32_0 = arith.constant 0 : i32
    %c0_i32_1 = arith.constant 0 : i32
    return %arg0, %c0_i32, %c0_i32_0 : i32, i32, i32
  }
  func.func @transform_2(%arg0: i32) -> (i32, i32, i32) {
    %c0_i32 = arith.constant 0 : i32
    %c0_i32_0 = arith.constant 0 : i32
    %c0_i32_1 = arith.constant 0 : i32
    return %arg0, %c0_i32, %c0_i32_0 : i32, i32, i32
  }
  func.func @transform_3(%arg0: i32) -> (i32, i32, i32, i32) {
    %c0_i32 = arith.constant 0 : i32
    %c0_i32_0 = arith.constant 0 : i32
    %c0_i32_1 = arith.constant 0 : i32
    %c0_i32_2 = arith.constant 0 : i32
    return %arg0, %c0_i32, %c0_i32_0, %c0_i32_1 : i32, i32, i32, i32
  }
}

module attributes {stable_mosaic.version = 11 : i64} {
  func.func @_matmul_bias_kernel(%arg0: memref<100x64xf32, #tpu.memory_space<vmem>>, %arg1: memref<64x192xf32, #tpu.memory_space<vmem>>, %arg2: memref<1x192xf32, #tpu.memory_space<vmem>>, %arg3: memref<100x192xf32, #tpu.memory_space<vmem>>) attributes {dimension_semantics = [], scalar_prefetch = 0 : i64, scratch_operands = 0 : i64, tpu.core_type = #tpu.core_type<tc>} {
    %c0 = arith.constant 0 : index
    %c0_0 = arith.constant 0 : index
    %0 = vector.load %arg0[%c0, %c0_0] : memref<100x64xf32, #tpu.memory_space<vmem>>, vector<100x64xf32>
    %c0_1 = arith.constant 0 : index
    %c0_2 = arith.constant 0 : index
    %1 = vector.load %arg1[%c0_1, %c0_2] : memref<64x192xf32, #tpu.memory_space<vmem>>, vector<64x192xf32>
    %cst = arith.constant dense<0.000000e+00> : vector<100x192xf32>
    %2 = tpu.matmul %0, %1, %cst {dimension_numbers = #tpu.dot_dimension_numbers<[1], [0], [0], [1], [0, 0, 1, 1], [], []>} : vector<100x64xf32>, vector<64x192xf32>, vector<100x192xf32> -> vector<100x192xf32>
    %c0_3 = arith.constant 0 : index
    %c0_4 = arith.constant 0 : index
    %3 = vector.load %arg2[%c0_3, %c0_4] : memref<1x192xf32, #tpu.memory_space<vmem>>, vector<1x192xf32>
    %4 = vector.broadcast %3 : vector<1x192xf32> to vector<100x192xf32>
    %5 = arith.addf %2, %4 : vector<100x192xf32>
    %c0_5 = arith.constant 0 : index
    %c0_6 = arith.constant 0 : index
    %6 = vector.load %arg3[%c0_5, %c0_6] : memref<100x192xf32, #tpu.memory_space<vmem>>, vector<100x192xf32>
    tpu.vector_store %arg3[%c0_5, %c0_6], %5 {strides = array<i32>} : memref<100x192xf32, #tpu.memory_space<vmem>>, vector<100x192xf32>,
    return
  }
}

module attributes {stable_mosaic.version = 11 : i64} {
  func.func @_head_kernel(%arg0: memref<2x50x64xf32, #tpu.memory_space<vmem>>, %arg1: memref<64x32xf32, #tpu.memory_space<vmem>>, %arg2: memref<1x32xf32, #tpu.memory_space<vmem>>, %arg3: memref<1x32xf32, #tpu.memory_space<vmem>>, %arg4: memref<1x32xf32, #tpu.memory_space<vmem>>, %arg5: memref<32x16xf32, #tpu.memory_space<vmem>>, %arg6: memref<1x16xf32, #tpu.memory_space<vmem>>, %arg7: memref<1x16xf32, #tpu.memory_space<vmem>>, %arg8: memref<1x16xf32, #tpu.memory_space<vmem>>, %arg9: memref<16x10xf32, #tpu.memory_space<vmem>>, %arg10: memref<1x10xf32, #tpu.memory_space<vmem>>, %arg11: memref<2x10xf32, #tpu.memory_space<vmem>>) attributes {dimension_semantics = [], scalar_prefetch = 0 : i64, scratch_operands = 0 : i64, tpu.core_type = #tpu.core_type<tc>} {
    %c0 = arith.constant 0 : index
    %c0_0 = arith.constant 0 : index
    %c0_1 = arith.constant 0 : index
    %0 = vector.load %arg0[%c0, %c0_0, %c0_1] : memref<2x50x64xf32, #tpu.memory_space<vmem>>, vector<2x50x64xf32>
    %cst = arith.constant dense<0.000000e+00> : vector<2x64xf32>
    %1 = vector.multi_reduction <add>, %0, %cst [1] : vector<2x50x64xf32> to vector<2x64xf32>
    %cst_2 = arith.constant 5.000000e+01 : f32
    %2 = vector.broadcast %cst_2 : f32 to vector<2x64xf32>
    %3 = arith.divf %1, %2 : vector<2x64xf32>
    %cst_3 = arith.constant dense<0xFF800000> : vector<2x64xf32>
    %4 = vector.multi_reduction <maximumf>, %0, %cst_3 [1] : vector<2x50x64xf32> to vector<2x64xf32>
    %5 = arith.addf %3, %4 : vector<2x64xf32>
    %c0_4 = arith.constant 0 : index
    %c0_5 = arith.constant 0 : index
    %6 = vector.load %arg1[%c0_4, %c0_5] : memref<64x32xf32, #tpu.memory_space<vmem>>, vector<64x32xf32>
    %cst_6 = arith.constant dense<0.000000e+00> : vector<2x32xf32>
    %7 = tpu.matmul %5, %6, %cst_6 {dimension_numbers = #tpu.dot_dimension_numbers<[1], [0], [0], [1], [0, 0, 1, 1], [], []>} : vector<2x64xf32>, vector<64x32xf32>, vector<2x32xf32> -> vector<2x32xf32>
    %c0_7 = arith.constant 0 : index
    %c0_8 = arith.constant 0 : index
    %8 = vector.load %arg2[%c0_7, %c0_8] : memref<1x32xf32, #tpu.memory_space<vmem>>, vector<1x32xf32>
    %9 = vector.broadcast %8 : vector<1x32xf32> to vector<2x32xf32>
    %10 = arith.addf %7, %9 : vector<2x32xf32>
    %c0_9 = arith.constant 0 : index
    %c0_10 = arith.constant 0 : index
    %11 = vector.load %arg3[%c0_9, %c0_10] : memref<1x32xf32, #tpu.memory_space<vmem>>, vector<1x32xf32>
    %c0_11 = arith.constant 0 : index
    %c0_12 = arith.constant 0 : index
    %12 = vector.load %arg4[%c0_11, %c0_12] : memref<1x32xf32, #tpu.memory_space<vmem>>, vector<1x32xf32>
    %cst_13 = arith.constant dense<0.000000e+00> : vector<2xf32>
    %13 = vector.multi_reduction <add>, %10, %cst_13 [1] : vector<2x32xf32> to vector<2xf32>
    %14 = vector.shape_cast %13 : vector<2xf32> to vector<2x1xf32>
    %cst_14 = arith.constant 3.200000e+01 : f32
    %15 = vector.broadcast %cst_14 : f32 to vector<2x1xf32>
    %16 = arith.divf %14, %15 : vector<2x1xf32>
    %17 = vector.broadcast %16 : vector<2x1xf32> to vector<2x32xf32>
    %18 = arith.subf %10, %17 : vector<2x32xf32>
    %19 = arith.mulf %18, %18 : vector<2x32xf32>
    %cst_15 = arith.constant dense<0.000000e+00> : vector<2xf32>
    %20 = vector.multi_reduction <add>, %19, %cst_15 [1] : vector<2x32xf32> to vector<2xf32>
    %21 = vector.shape_cast %20 : vector<2xf32> to vector<2x1xf32>
    %cst_16 = arith.constant 3.200000e+01 : f32
    %22 = vector.broadcast %cst_16 : f32 to vector<2x1xf32>
    %23 = arith.divf %21, %22 : vector<2x1xf32>
    %24 = vector.broadcast %16 : vector<2x1xf32> to vector<2x32xf32>
    %25 = arith.subf %10, %24 : vector<2x32xf32>
    %cst_17 = arith.constant 9.99999974E-6 : f32
    %26 = vector.broadcast %cst_17 : f32 to vector<2x1xf32>
    %27 = arith.addf %23, %26 : vector<2x1xf32>
    %28 = math.rsqrt %27 : vector<2x1xf32>
    %29 = vector.broadcast %28 : vector<2x1xf32> to vector<2x32xf32>
    %30 = arith.mulf %25, %29 : vector<2x32xf32>
    %31 = vector.broadcast %11 : vector<1x32xf32> to vector<2x32xf32>
    %32 = arith.mulf %30, %31 : vector<2x32xf32>
    %33 = vector.broadcast %12 : vector<1x32xf32> to vector<2x32xf32>
    %34 = arith.addf %32, %33 : vector<2x32xf32>
    %cst_18 = arith.constant 0.000000e+00 : f32
    %35 = vector.broadcast %cst_18 : f32 to vector<2x32xf32>
    %36 = arith.maximumf %34, %35 : vector<2x32xf32>
    %c0_19 = arith.constant 0 : index
    %c0_20 = arith.constant 0 : index
    %37 = vector.load %arg5[%c0_19, %c0_20] : memref<32x16xf32, #tpu.memory_space<vmem>>, vector<32x16xf32>
    %cst_21 = arith.constant dense<0.000000e+00> : vector<2x16xf32>
    %38 = tpu.matmul %36, %37, %cst_21 {dimension_numbers = #tpu.dot_dimension_numbers<[1], [0], [0], [1], [0, 0, 1, 1], [], []>} : vector<2x32xf32>, vector<32x16xf32>, vector<2x16xf32> -> vector<2x16xf32>
    %c0_22 = arith.constant 0 : index
    %c0_23 = arith.constant 0 : index
    %39 = vector.load %arg6[%c0_22, %c0_23] : memref<1x16xf32, #tpu.memory_space<vmem>>, vector<1x16xf32>
    %40 = vector.broadcast %39 : vector<1x16xf32> to vector<2x16xf32>
    %41 = arith.addf %38, %40 : vector<2x16xf32>
    %c0_24 = arith.constant 0 : index
    %c0_25 = arith.constant 0 : index
    %42 = vector.load %arg7[%c0_24, %c0_25] : memref<1x16xf32, #tpu.memory_space<vmem>>, vector<1x16xf32>
    %c0_26 = arith.constant 0 : index
    %c0_27 = arith.constant 0 : index
    %43 = vector.load %arg8[%c0_26, %c0_27] : memref<1x16xf32, #tpu.memory_space<vmem>>, vector<1x16xf32>
    %cst_28 = arith.constant dense<0.000000e+00> : vector<2xf32>
    %44 = vector.multi_reduction <add>, %41, %cst_28 [1] : vector<2x16xf32> to vector<2xf32>
    %45 = vector.shape_cast %44 : vector<2xf32> to vector<2x1xf32>
    %cst_29 = arith.constant 1.600000e+01 : f32
    %46 = vector.broadcast %cst_29 : f32 to vector<2x1xf32>
    %47 = arith.divf %45, %46 : vector<2x1xf32>
    %48 = vector.broadcast %47 : vector<2x1xf32> to vector<2x16xf32>
    %49 = arith.subf %41, %48 : vector<2x16xf32>
    %50 = arith.mulf %49, %49 : vector<2x16xf32>
    %cst_30 = arith.constant dense<0.000000e+00> : vector<2xf32>
    %51 = vector.multi_reduction <add>, %50, %cst_30 [1] : vector<2x16xf32> to vector<2xf32>
    %52 = vector.shape_cast %51 : vector<2xf32> to vector<2x1xf32>
    %cst_31 = arith.constant 1.600000e+01 : f32
    %53 = vector.broadcast %cst_31 : f32 to vector<2x1xf32>
    %54 = arith.divf %52, %53 : vector<2x1xf32>
    %55 = vector.broadcast %47 : vector<2x1xf32> to vector<2x16xf32>
    %56 = arith.subf %41, %55 : vector<2x16xf32>
    %cst_32 = arith.constant 9.99999974E-6 : f32
    %57 = vector.broadcast %cst_32 : f32 to vector<2x1xf32>
    %58 = arith.addf %54, %57 : vector<2x1xf32>
    %59 = math.rsqrt %58 : vector<2x1xf32>
    %60 = vector.broadcast %59 : vector<2x1xf32> to vector<2x16xf32>
    %61 = arith.mulf %56, %60 : vector<2x16xf32>
    %62 = vector.broadcast %42 : vector<1x16xf32> to vector<2x16xf32>
    %63 = arith.mulf %61, %62 : vector<2x16xf32>
    %64 = vector.broadcast %43 : vector<1x16xf32> to vector<2x16xf32>
    %65 = arith.addf %63, %64 : vector<2x16xf32>
    %cst_33 = arith.constant 0.000000e+00 : f32
    %66 = vector.broadcast %cst_33 : f32 to vector<2x16xf32>
    %67 = arith.maximumf %65, %66 : vector<2x16xf32>
    %c0_34 = arith.constant 0 : index
    %c0_35 = arith.constant 0 : index
    %68 = vector.load %arg9[%c0_34, %c0_35] : memref<16x10xf32, #tpu.memory_space<vmem>>, vector<16x10xf32>
    %cst_36 = arith.constant dense<0.000000e+00> : vector<2x10xf32>
    %69 = tpu.matmul %67, %68, %cst_36 {dimension_numbers = #tpu.dot_dimension_numbers<[1], [0], [0], [1], [0, 0, 1, 1], [], []>} : vector<2x16xf32>, vector<16x10xf32>, vector<2x10xf32> -> vector<2x10xf32>
    %c0_37 = arith.constant 0 : index
    %c0_38 = arith.constant 0 : index
    %70 = vector.load %arg10[%c0_37, %c0_38] : memref<1x10xf32, #tpu.memory_space<vmem>>, vector<1x10xf32>
    %71 = vector.broadcast %70 : vector<1x10xf32> to vector<2x10xf32>
    %72 = arith.addf %69, %71 : vector<2x10xf32>
    %c0_39 = arith.constant 0 : index
    %c0_40 = arith.constant 0 : index
    %73 = vector.load %arg11[%c0_39, %c0_40] : memref<2x10xf32, #tpu.memory_space<vmem>>, vector<2x10xf32>
    tpu.vector_store %arg11[%c0_39, %c0_40], %72 {strides = array<i32>} : memref<2x10xf32, #tpu.memory_space<vmem>>, vector<2x10xf32>,
    return
  }
}

module attributes {stable_mosaic.version = 11 : i64} {
  func.func @_mha_kernel(%arg0: i32, %arg1: memref<1x50x64xf32, #tpu.memory_space<vmem>>, %arg2: memref<64x192xf32, #tpu.memory_space<vmem>>, %arg3: memref<1x192xf32, #tpu.memory_space<vmem>>, %arg4: memref<64x64xf32, #tpu.memory_space<vmem>>, %arg5: memref<1x64xf32, #tpu.memory_space<vmem>>, %arg6: memref<1x50x64xf32, #tpu.memory_space<vmem>>) attributes {dimension_semantics = [#tpu.dimension_semantics<parallel>], iteration_bounds = array<i64: 2>, scalar_prefetch = 0 : i64, scratch_operands = 0 : i64, tpu.core_type = #tpu.core_type<tc>, window_params = [{transform_indices = @transform_0, window_bounds = array<i64: 1, 50, 64>}, {pipeline_mode = #tpu.pipeline_mode<synchronous>, transform_indices = @transform_1, window_bounds = array<i64: 64, 192>}, {pipeline_mode = #tpu.pipeline_mode<synchronous>, transform_indices = @transform_2, window_bounds = array<i64: 1, 192>}, {pipeline_mode = #tpu.pipeline_mode<synchronous>, transform_indices = @transform_3, window_bounds = array<i64: 64, 64>}, {pipeline_mode = #tpu.pipeline_mode<synchronous>, transform_indices = @transform_4, window_bounds = array<i64: 1, 64>}, {transform_indices = @transform_5, window_bounds = array<i64: 1, 50, 64>}]} {
    %c0 = arith.constant 0 : index
    %c0_0 = arith.constant 0 : index
    %c0_1 = arith.constant 0 : index
    %0 = vector.load %arg1[%c0, %c0_0, %c0_1] : memref<1x50x64xf32, #tpu.memory_space<vmem>>, vector<1x50x64xf32>
    %1 = vector.shape_cast %0 : vector<1x50x64xf32> to vector<50x64xf32>
    %c0_2 = arith.constant 0 : index
    %c0_3 = arith.constant 0 : index
    %2 = vector.load %arg2[%c0_2, %c0_3] : memref<64x192xf32, #tpu.memory_space<vmem>>, vector<64x192xf32>
    %cst = arith.constant dense<0.000000e+00> : vector<50x192xf32>
    %3 = tpu.matmul %1, %2, %cst {dimension_numbers = #tpu.dot_dimension_numbers<[1], [0], [0], [1], [0, 0, 1, 1], [], []>} : vector<50x64xf32>, vector<64x192xf32>, vector<50x192xf32> -> vector<50x192xf32>
    %c0_4 = arith.constant 0 : index
    %c0_5 = arith.constant 0 : index
    %4 = vector.load %arg3[%c0_4, %c0_5] : memref<1x192xf32, #tpu.memory_space<vmem>>, vector<1x192xf32>
    %5 = vector.broadcast %4 : vector<1x192xf32> to vector<50x192xf32>
    %6 = arith.addf %3, %5 : vector<50x192xf32>
    %7 = vector.extract_strided_slice %6 {offsets = [0, 0], sizes = [50, 16], strides = [1, 1]} : vector<50x192xf32> to vector<50x16xf32>
    %8 = vector.extract_strided_slice %6 {offsets = [0, 64], sizes = [50, 16], strides = [1, 1]} : vector<50x192xf32> to vector<50x16xf32>
    %9 = vector.extract_strided_slice %6 {offsets = [0, 128], sizes = [50, 16], strides = [1, 1]} : vector<50x192xf32> to vector<50x16xf32>
    %10 = tpu.transpose %8, [1, 0] : vector<50x16xf32> -> vector<16x50xf32>
    %cst_6 = arith.constant dense<0.000000e+00> : vector<50x50xf32>
    %11 = tpu.matmul %7, %10, %cst_6 {dimension_numbers = #tpu.dot_dimension_numbers<[1], [0], [0], [1], [0, 0, 1, 1], [], []>} : vector<50x16xf32>, vector<16x50xf32>, vector<50x50xf32> -> vector<50x50xf32>
    %cst_7 = arith.constant 2.500000e-01 : f32
    %12 = vector.broadcast %cst_7 : f32 to vector<50x50xf32>
    %13 = arith.mulf %11, %12 : vector<50x50xf32>
    %cst_8 = arith.constant dense<0xFF800000> : vector<50xf32>
    %14 = vector.multi_reduction <maximumf>, %13, %cst_8 [1] : vector<50x50xf32> to vector<50xf32>
    %15 = vector.shape_cast %14 : vector<50xf32> to vector<50x1xf32>
    %16 = vector.broadcast %15 : vector<50x1xf32> to vector<50x50xf32>
    %17 = arith.subf %13, %16 : vector<50x50xf32>
    %18 = math.exp %17 : vector<50x50xf32>
    %cst_9 = arith.constant dense<0.000000e+00> : vector<50xf32>
    %19 = vector.multi_reduction <add>, %18, %cst_9 [1] : vector<50x50xf32> to vector<50xf32>
    %20 = vector.shape_cast %19 : vector<50xf32> to vector<50x1xf32>
    %21 = vector.broadcast %20 : vector<50x1xf32> to vector<50x50xf32>
    %22 = arith.divf %18, %21 : vector<50x50xf32>
    %cst_10 = arith.constant dense<0.000000e+00> : vector<50x16xf32>
    %23 = tpu.matmul %22, %9, %cst_10 {dimension_numbers = #tpu.dot_dimension_numbers<[1], [0], [0], [1], [0, 0, 1, 1], [], []>} : vector<50x50xf32>, vector<50x16xf32>, vector<50x16xf32> -> vector<50x16xf32>
    %24 = vector.extract_strided_slice %6 {offsets = [0, 16], sizes = [50, 16], strides = [1, 1]} : vector<50x192xf32> to vector<50x16xf32>
    %25 = vector.extract_strided_slice %6 {offsets = [0, 80], sizes = [50, 16], strides = [1, 1]} : vector<50x192xf32> to vector<50x16xf32>
    %26 = vector.extract_strided_slice %6 {offsets = [0, 144], sizes = [50, 16], strides = [1, 1]} : vector<50x192xf32> to vector<50x16xf32>
    %27 = tpu.transpose %25, [1, 0] : vector<50x16xf32> -> vector<16x50xf32>
    %cst_11 = arith.constant dense<0.000000e+00> : vector<50x50xf32>
    %28 = tpu.matmul %24, %27, %cst_11 {dimension_numbers = #tpu.dot_dimension_numbers<[1], [0], [0], [1], [0, 0, 1, 1], [], []>} : vector<50x16xf32>, vector<16x50xf32>, vector<50x50xf32> -> vector<50x50xf32>
    %cst_12 = arith.constant 2.500000e-01 : f32
    %29 = vector.broadcast %cst_12 : f32 to vector<50x50xf32>
    %30 = arith.mulf %28, %29 : vector<50x50xf32>
    %cst_13 = arith.constant dense<0xFF800000> : vector<50xf32>
    %31 = vector.multi_reduction <maximumf>, %30, %cst_13 [1] : vector<50x50xf32> to vector<50xf32>
    %32 = vector.shape_cast %31 : vector<50xf32> to vector<50x1xf32>
    %33 = vector.broadcast %32 : vector<50x1xf32> to vector<50x50xf32>
    %34 = arith.subf %30, %33 : vector<50x50xf32>
    %35 = math.exp %34 : vector<50x50xf32>
    %cst_14 = arith.constant dense<0.000000e+00> : vector<50xf32>
    %36 = vector.multi_reduction <add>, %35, %cst_14 [1] : vector<50x50xf32> to vector<50xf32>
    %37 = vector.shape_cast %36 : vector<50xf32> to vector<50x1xf32>
    %38 = vector.broadcast %37 : vector<50x1xf32> to vector<50x50xf32>
    %39 = arith.divf %35, %38 : vector<50x50xf32>
    %cst_15 = arith.constant dense<0.000000e+00> : vector<50x16xf32>
    %40 = tpu.matmul %39, %26, %cst_15 {dimension_numbers = #tpu.dot_dimension_numbers<[1], [0], [0], [1], [0, 0, 1, 1], [], []>} : vector<50x50xf32>, vector<50x16xf32>, vector<50x16xf32> -> vector<50x16xf32>
    %41 = vector.extract_strided_slice %6 {offsets = [0, 32], sizes = [50, 16], strides = [1, 1]} : vector<50x192xf32> to vector<50x16xf32>
    %42 = vector.extract_strided_slice %6 {offsets = [0, 96], sizes = [50, 16], strides = [1, 1]} : vector<50x192xf32> to vector<50x16xf32>
    %43 = vector.extract_strided_slice %6 {offsets = [0, 160], sizes = [50, 16], strides = [1, 1]} : vector<50x192xf32> to vector<50x16xf32>
    %44 = tpu.transpose %42, [1, 0] : vector<50x16xf32> -> vector<16x50xf32>
    %cst_16 = arith.constant dense<0.000000e+00> : vector<50x50xf32>
    %45 = tpu.matmul %41, %44, %cst_16 {dimension_numbers = #tpu.dot_dimension_numbers<[1], [0], [0], [1], [0, 0, 1, 1], [], []>} : vector<50x16xf32>, vector<16x50xf32>, vector<50x50xf32> -> vector<50x50xf32>
    %cst_17 = arith.constant 2.500000e-01 : f32
    %46 = vector.broadcast %cst_17 : f32 to vector<50x50xf32>
    %47 = arith.mulf %45, %46 : vector<50x50xf32>
    %cst_18 = arith.constant dense<0xFF800000> : vector<50xf32>
    %48 = vector.multi_reduction <maximumf>, %47, %cst_18 [1] : vector<50x50xf32> to vector<50xf32>
    %49 = vector.shape_cast %48 : vector<50xf32> to vector<50x1xf32>
    %50 = vector.broadcast %49 : vector<50x1xf32> to vector<50x50xf32>
    %51 = arith.subf %47, %50 : vector<50x50xf32>
    %52 = math.exp %51 : vector<50x50xf32>
    %cst_19 = arith.constant dense<0.000000e+00> : vector<50xf32>
    %53 = vector.multi_reduction <add>, %52, %cst_19 [1] : vector<50x50xf32> to vector<50xf32>
    %54 = vector.shape_cast %53 : vector<50xf32> to vector<50x1xf32>
    %55 = vector.broadcast %54 : vector<50x1xf32> to vector<50x50xf32>
    %56 = arith.divf %52, %55 : vector<50x50xf32>
    %cst_20 = arith.constant dense<0.000000e+00> : vector<50x16xf32>
    %57 = tpu.matmul %56, %43, %cst_20 {dimension_numbers = #tpu.dot_dimension_numbers<[1], [0], [0], [1], [0, 0, 1, 1], [], []>} : vector<50x50xf32>, vector<50x16xf32>, vector<50x16xf32> -> vector<50x16xf32>
    %58 = vector.extract_strided_slice %6 {offsets = [0, 48], sizes = [50, 16], strides = [1, 1]} : vector<50x192xf32> to vector<50x16xf32>
    %59 = vector.extract_strided_slice %6 {offsets = [0, 112], sizes = [50, 16], strides = [1, 1]} : vector<50x192xf32> to vector<50x16xf32>
    %60 = vector.extract_strided_slice %6 {offsets = [0, 176], sizes = [50, 16], strides = [1, 1]} : vector<50x192xf32> to vector<50x16xf32>
    %61 = tpu.transpose %59, [1, 0] : vector<50x16xf32> -> vector<16x50xf32>
    %cst_21 = arith.constant dense<0.000000e+00> : vector<50x50xf32>
    %62 = tpu.matmul %58, %61, %cst_21 {dimension_numbers = #tpu.dot_dimension_numbers<[1], [0], [0], [1], [0, 0, 1, 1], [], []>} : vector<50x16xf32>, vector<16x50xf32>, vector<50x50xf32> -> vector<50x50xf32>
    %cst_22 = arith.constant 2.500000e-01 : f32
    %63 = vector.broadcast %cst_22 : f32 to vector<50x50xf32>
    %64 = arith.mulf %62, %63 : vector<50x50xf32>
    %cst_23 = arith.constant dense<0xFF800000> : vector<50xf32>
    %65 = vector.multi_reduction <maximumf>, %64, %cst_23 [1] : vector<50x50xf32> to vector<50xf32>
    %66 = vector.shape_cast %65 : vector<50xf32> to vector<50x1xf32>
    %67 = vector.broadcast %66 : vector<50x1xf32> to vector<50x50xf32>
    %68 = arith.subf %64, %67 : vector<50x50xf32>
    %69 = math.exp %68 : vector<50x50xf32>
    %cst_24 = arith.constant dense<0.000000e+00> : vector<50xf32>
    %70 = vector.multi_reduction <add>, %69, %cst_24 [1] : vector<50x50xf32> to vector<50xf32>
    %71 = vector.shape_cast %70 : vector<50xf32> to vector<50x1xf32>
    %72 = vector.broadcast %71 : vector<50x1xf32> to vector<50x50xf32>
    %73 = arith.divf %69, %72 : vector<50x50xf32>
    %cst_25 = arith.constant dense<0.000000e+00> : vector<50x16xf32>
    %74 = tpu.matmul %73, %60, %cst_25 {dimension_numbers = #tpu.dot_dimension_numbers<[1], [0], [0], [1], [0, 0, 1, 1], [], []>} : vector<50x50xf32>, vector<50x16xf32>, vector<50x16xf32> -> vector<50x16xf32>
    %75 = tpu.concatenate %23, %40, %57, %74 in 1 : vector<50x16xf32>, vector<50x16xf32>, vector<50x16xf32>, vector<50x16xf32> -> vector<50x64xf32>
    %c0_26 = arith.constant 0 : index
    %c0_27 = arith.constant 0 : index
    %76 = vector.load %arg4[%c0_26, %c0_27] : memref<64x64xf32, #tpu.memory_space<vmem>>, vector<64x64xf32>
    %cst_28 = arith.constant dense<0.000000e+00> : vector<50x64xf32>
    %77 = tpu.matmul %75, %76, %cst_28 {dimension_numbers = #tpu.dot_dimension_numbers<[1], [0], [0], [1], [0, 0, 1, 1], [], []>} : vector<50x64xf32>, vector<64x64xf32>, vector<50x64xf32> -> vector<50x64xf32>
    %c0_29 = arith.constant 0 : index
    %c0_30 = arith.constant 0 : index
    %78 = vector.load %arg5[%c0_29, %c0_30] : memref<1x64xf32, #tpu.memory_space<vmem>>, vector<1x64xf32>
    %79 = vector.broadcast %78 : vector<1x64xf32> to vector<50x64xf32>
    %80 = arith.addf %77, %79 : vector<50x64xf32>
    %c0_31 = arith.constant 0 : index
    %c0_32 = arith.constant 0 : index
    %c0_33 = arith.constant 0 : index
    %81 = vector.load %arg6[%c0_31, %c0_32, %c0_33] : memref<1x50x64xf32, #tpu.memory_space<vmem>>, vector<1x50x64xf32>
    %82 = vector.shape_cast %81 : vector<1x50x64xf32> to vector<50x64xf32>
    %83 = vector.shape_cast %80 : vector<50x64xf32> to vector<1x50x64xf32>
    tpu.vector_store %arg6[%c0_31, %c0_32, %c0_33], %83 {strides = array<i32>} : memref<1x50x64xf32, #tpu.memory_space<vmem>>, vector<1x50x64xf32>,
    return
  }
  func.func @transform_0(%arg0: i32) -> (i32, i32, i32) {
    %c0_i32 = arith.constant 0 : i32
    %c0_i32_0 = arith.constant 0 : i32
    %c0_i32_1 = arith.constant 0 : i32
    return %arg0, %c0_i32, %c0_i32_0 : i32, i32, i32
  }
  func.func @transform_1(%arg0: i32) -> (i32, i32) {
    %c0_i32 = arith.constant 0 : i32
    %c0_i32_0 = arith.constant 0 : i32
    %c0_i32_1 = arith.constant 0 : i32
    return %c0_i32, %c0_i32_0 : i32, i32
  }
  func.func @transform_2(%arg0: i32) -> (i32, i32) {
    %c0_i32 = arith.constant 0 : i32
    %c0_i32_0 = arith.constant 0 : i32
    %c0_i32_1 = arith.constant 0 : i32
    return %c0_i32, %c0_i32_0 : i32, i32
  }
  func.func @transform_3(%arg0: i32) -> (i32, i32) {
    %c0_i32 = arith.constant 0 : i32
    %c0_i32_0 = arith.constant 0 : i32
    %c0_i32_1 = arith.constant 0 : i32
    return %c0_i32, %c0_i32_0 : i32, i32
  }
  func.func @transform_4(%arg0: i32) -> (i32, i32) {
    %c0_i32 = arith.constant 0 : i32
    %c0_i32_0 = arith.constant 0 : i32
    %c0_i32_1 = arith.constant 0 : i32
    return %c0_i32, %c0_i32_0 : i32, i32
  }
  func.func @transform_5(%arg0: i32) -> (i32, i32, i32) {
    %c0_i32 = arith.constant 0 : i32
    %c0_i32_0 = arith.constant 0 : i32
    %c0_i32_1 = arith.constant 0 : i32
    return %arg0, %c0_i32, %c0_i32_0 : i32, i32, i32
  }
}

</mosaic_0001>

<bundles_post_ra>
// kernel: _lambda_.11
= control target key start
LH: loop header
LB: loop body
LE: loop exit
PB: predicated region body
PF: predicated region fallthrough
CT: control target
= control target key end

     0   :  { %vm43_vm0 = vcmask 261120   ;;  %v1115_v0 = vmov 0.0   ;;  %vm1116_vm1 = vmmov 0   ;;  %vm67_vm2 = vcmask 257024   ;;  %s1653_s1 = inlined_call_operand.vmem [shape: f32[32,2], index: 1, kind: input, shape index: {}]   ;;  %s1654_s0 = inlined_call_operand.vmem [shape: f32[2,100,32], index: 0, kind: input, shape index: {}]   ;;  %s1655_s2 = inlined_call_operand.vmem [shape: f32[2,32], index: 2, kind: input, shape index: {}]   ;;  %s1656_s3 = inlined_call_operand.vmem [shape: f32[32,32], index: 3, kind: input, shape index: {}]   ;;  %s1657_s4 = inlined_call_operand.vmem [shape: f32[1,32], index: 4, kind: input, shape index: {}]   ;;  %s1658_s5 = inlined_call_operand.vmem [shape: f32[2,100,32], index: 5, kind: output, shape index: {}]  }
   0x1   :  { %979 = vmatprep.subr.mxu1 %v1115_v0  ;;  %1042 = vmatprep.subr.mxu0 %v1115_v0  ;;  %v23_v1 = vld [vmem:[%s1653_s1 + $0x18] sm:$0xff]  ;;  %v22_v2 = vld [vmem:[%s1653_s1 + $0x10] sm:$0xff]  ;;  %v1158_v3 = vld [vmem:[%s1654_s0] sm:$0xff]  ;;  %vm156_vm3 = vcmask 1041408   ;;  %vm152_vm4 = vcmask 15360  }
   0x2   :  { %980 = vmatpush3.msra.mxu1 %v23_v1  ;;  %1043 = vmatpush3.msra.mxu0 %v23_v1  ;;  %v1163_v4 = vld [vmem:[%s1654_s0 + $0x8] sm:$0xff]  ;;  %v1173_v6 = vld [vmem:[%s1654_s0 + $0x10] sm:$0xff]  ;;  %v1178_v7 = vld [vmem:[%s1654_s0 + $0x18] sm:$0xff]  ;;  %v44_v8 = vsel %vm43_vm0, %v1158_v3, 0.0 }
   0x3   :  { %981 = vmatprep.subr.mxu1 %v1115_v0  ;;  %1044 = vmatprep.subr.mxu0 %v1115_v0  ;;  %v21_v5 = vld [vmem:[%s1653_s1 + $0x8] sm:$0xff]  ;;  %v45_v9 = vsel %vm43_vm0, %v1163_v4, 0.0  ;;  %v1187_v10 = vld [vmem:[%s1654_s0 + $0x20] sm:$0xff]  ;;  %v47_v12 = vsel %vm43_vm0, %v1173_v6, 0.0  ;;  %v49_v14 = vsel %vm43_vm0, %v1178_v7, 0.0  ;;  %v1215_v19 = vld [vmem:[%s1654_s0 + $0x70] sm:$0xff] }
   0x4   :  { %982 = vmatpush3.msra.mxu1 %v22_v2  ;;  %1045 = vmatpush3.msra.mxu0 %v22_v2  ;;  %v46_v11 = vadd.f32 %v45_v9, %v44_v8  ;;  %v20_v13 = vld [vmem:[%s1653_s1] sm:$0xff]  ;;  %v1201_v15 = vld [vmem:[%s1654_s0 + $0x28] sm:$0xff]  ;;  %v51_v17 = vsel %vm43_vm0, %v1187_v10, 0.0  ;;  %v1220_v20 = vld [vmem:[%s1654_s0 + $0x78] sm:$0xff]  ;;  %v469_v25 = vsel %vm43_vm0, %v1215_v19, 0.0 }
   0x5   :  { %983 = vmatprep.subr.mxu1 %v1115_v0  ;;  %1046 = vmatprep.subr.mxu0 %v1115_v0  ;;  %v1210_v18 = vld [vmem:[%s1654_s0 + $0x68] sm:$0xff]  ;;  %v1227_v21 = vld [vmem:[%s1654_s0 + $0x30] sm:$0xff]  ;;  %v1232_v23 = vld [vmem:[%s1654_s0 + $0x80] sm:$0xff]  ;;  %v471_v26 = vsel %vm43_vm0, %v1220_v20, 0.0  ;;  %v53_v27 = vsel %vm43_vm0, %v1201_v15, 0.0 }
   0x6   :  { %984 = vmatpush3.msra.mxu1 %v21_v5  ;;  %1047 = vmatpush3.msra.mxu0 %v21_v5  ;;  %v48_v16 = vadd.f32 %v47_v12, %v46_v11  ;;  %v468_v24 = vsel %vm43_vm0, %v1210_v18, 0.0  ;;  %v1247_v28 = vld [vmem:[%s1654_s0 + $0x88] sm:$0xff]  ;;  %v1252_v30 = vld [vmem:[%s1654_s0 + $0x38] sm:$0xff]  ;;  %v473_v32 = vsel %vm43_vm0, %v1232_v23, 0.0  ;;  %v55_v33 = vsel %vm43_vm0, %v1227_v21, 0.0  ;;  %v1263_v34 = vld [vmem:[%s1654_s0 + $0x90] sm:$0xff] }
   0x7   :  { %985 = vmatprep.subr.mxu1 %v1115_v0  ;;  %1048 = vmatprep.subr.mxu0 %v1115_v0  ;;  %v470_v29 = vadd.f32 %v469_v25, %v468_v24  ;;  %v1268_v36 = vld [vmem:[%s1654_s0 + $0x40] sm:$0xff]  ;;  %v475_v38 = vsel %vm43_vm0, %v1247_v28, 0.0  ;;  %v57_v39 = vsel %vm43_vm0, %v1252_v30, 0.0  ;;  %v1277_v40 = vld [vmem:[%s1654_s0 + $0x98] sm:$0xff]  ;;  %v1282_v42 = vld [vmem:[%s1654_s0 + $0x48] sm:$0xff]  ;;  %v477_v44 = vsel %vm43_vm0, %v1263_v34, 0.0 }
   0x8   :  { %986 = vmatpush3.msra.mxu1 %v20_v13  ;;  %987 = vmatprep.mubr.msk.f32.mxu1 %vm1116_vm1, %v1115_v0  ;;  %v50_v22 = vadd.f32 %v49_v14, %v48_v16  ;;  %v59_v45 = vsel %vm43_vm0, %v1268_v36, 0.0  ;;  %v1291_v46 = vld [vmem:[%s1654_s0 + $0xa0] sm:$0xff]  ;;  %v1296_v48 = vld [vmem:[%s1654_s0 + $0x50] sm:$0xff]  ;;  %v479_v50 = vsel %vm43_vm0, %v1277_v40, 0.0  ;;  %v61_v51 = vsel %vm43_vm0, %v1282_v42, 0.0  ;;  %v1305_v52 = vld [vmem:[%s1654_s0 + $0xa8] sm:$0xff] }
   0x9   :  { %1049 = vmatpush3.msra.mxu0 %v20_v13  ;;  %1050 = vmatprep.mubr.msk.f32.mxu0 %vm1116_vm1, %v1115_v0  ;;  %v472_v35 = vadd.f32 %v471_v26, %v470_v29  ;;  %v1310_v54 = vld [vmem:[%s1654_s0 + $0x58] sm:$0xff]  ;;  %v481_v56 = vsel %vm43_vm0, %v1291_v46, 0.0  ;;  %v63_v57 = vsel %vm43_vm0, %v1296_v48, 0.0  ;;  %v1319_v58 = vld [vmem:[%s1654_s0 + $0xb0] sm:$0xff]  ;;  %v1324_v60 = vld [vmem:[%s1654_s0 + $0x60] sm:$0xf] }
   0xa   :  { %v52_v31 = vadd.f32 %v51_v17, %v50_v22  ;;  %990 = vmatprep.subr.mxu1 %v1115_v0  ;;  %1053 = vmatprep.subr.mxu0 %v1115_v0  ;;  %v483_v62 = vsel %vm43_vm0, %v1305_v52, 0.0  ;;  %v65_v63 = vsel %vm43_vm0, %v1310_v54, 0.0  ;;  %v1333_v1 = vld [vmem:[%s1654_s0 + $0xb8] sm:$0xff]  ;;  %v485_v8 = vsel %vm43_vm0, %v1319_v58, 0.0  ;;  %v1342_v11 = vld [vmem:[%s1654_s0 + $0xc0] sm:$0xff] }
   0xb   :  { %v474_v41 = vadd.f32 %v473_v32, %v472_v35  ;;  %v68_v9 = vsel %vm67_vm2, %v1324_v60, 0.0  ;;  %v487_v14 = vsel %vm43_vm0, %v1333_v1, 0.0  ;;  %v1349_v16 = vld [vmem:[%s1654_s0 + $0xc8] sm:$0xf]  ;;  %v489_v24 = vsel %vm43_vm0, %v1342_v11, 0.0 }
   0xc   :  { %v54_v37 = vadd.f32 %v53_v27, %v52_v31  ;;  %v491_v27 = vsel %vm67_vm2, %v1349_v16, 0.0 }
   0xd   :  { %v476_v47 = vadd.f32 %v475_v38, %v474_v41 }
   0xe   :  { %v56_v43 = vadd.f32 %v55_v33, %v54_v37 }
   0xf   :  { %v478_v53 = vadd.f32 %v477_v44, %v476_v47  ;;  %v24_v47 = vld [vmem:[%s1655_s2] sm:$0x3] }
  0x10   :  { %v58_v49 = vadd.f32 %v57_v39, %v56_v43 }
  0x11   :  { %v480_v59 = vadd.f32 %v479_v50, %v478_v53 }
  0x12   :  { %v60_v55 = vadd.f32 %v59_v45, %v58_v49 }
  0x13   :  { %v482_v2 = vadd.f32 %v481_v56, %v480_v59 }
  0x14   :  { %v62_v61 = vadd.f32 %v61_v51, %v60_v55 }
  0x15   :  { %v484_v12 = vadd.f32 %v483_v62, %v482_v2  ;;  %v28_v62 = vld [vmem:[%s1656_s3 + $0x18] sm:$0xff]  ;;  %v26_v2 = vld [vmem:[%s1656_s3 + $0x8] sm:$0xff] }
  0x16   :  { %v64_v5 = vadd.f32 %v63_v57, %v62_v61 }
  0x17   :  { %v486_v17 = vadd.f32 %v485_v8, %v484_v12 }
  0x18   :  { %v66_v13 = vadd.f32 %v65_v63, %v64_v5  ;;  %v27_v63 = vld [vmem:[%s1656_s3 + $0x10] sm:$0xff]  ;;  %v25_v5 = vld [vmem:[%s1656_s3] sm:$0xff] }
  0x19   :  { %v488_v25 = vadd.f32 %v487_v14, %v486_v17 }
  0x1a   :  { %v69_v22 = vadd.f32 %v68_v9, %v66_v13 }
  0x1b   :  { %v490_v29 = vadd.f32 %v489_v24, %v488_v25 }
  0x1c   :  { %v70_v26 = vrot.slane %v69_v22, 4 }
  0x1d   :  { %v492_v32 = vadd.f32 %v491_v27, %v490_v29 }
  0x1e   :  { %v71_v31 = vadd.f32 %v70_v26, %v69_v22  ;;  %v236_v26 = vlaneseq }
  0x1f   :  { %v493_v35 = vrot.slane %v492_v32, 4 }
  0x20   :  { %v72_v33 = vrot.slane %v71_v31, 2  ;;  %v237_v29 = vshrl.u32 %v236_v26, 7 }
  0x21   :  { %v494_v38 = vadd.f32 %v493_v35, %v492_v32 }
  0x22   :  { %v73_v37 = vadd.f32 %v72_v33, %v71_v31  ;;  %v238_v31 = vsub.s32 0, %v237_v29 }
  0x23   :  { %v495_v41 = vrot.slane %v494_v38, 2 }
  0x24   :  { %v74_v39 = vrot.slane %v73_v37, 1 }
  0x25   :  { %v496_v44 = vadd.f32 %v495_v41, %v494_v38 }
  0x26   :  { %v75_v43 = vadd.f32 %v74_v39, %v73_v37 }
  0x27   :  { %v497_v49 = vrot.slane %v496_v44, 1 }
  0x28   :  { %v77_v45 = vmul.f32 0.01, %v75_v43 }
  0x29   :  { %v498_v50 = vadd.f32 %v497_v49, %v496_v44 }
  0x2a   :  { %988 = vmatmul.mubr.msk.f32.vlgmr.msra.gmra.mxu1 %vm43_vm0, %v77_v45 }
  0x2b   :  { %991 = vmatpush3.msk.msra.mxu1 %vm156_vm3, %v24_v47  ;;  %992 = vmatprep.mubr.msk.f32.mxu1 %vm1116_vm1, %v1115_v0  ;;  %v499_v51 = vmul.f32 0.01, %v498_v50 }
  0x2c   :  { %995 = vmatprep.subr.mxu1 %v1115_v0 }
  0x2d   :  { %1051 = vmatmul.mubr.msk.f32.vlgmr.msra.gmra.mxu0 %vm43_vm0, %v499_v51 }
  0x2e   :  { %1054 = vmatpush3.msk.msra.mxu0 %vm156_vm3, %v24_v47  ;;  %1055 = vmatprep.mubr.msk.f32.mxu0 %vm1116_vm1, %v1115_v0 }
  0x2f   :  { %1058 = vmatprep.subr.mxu0 %v1115_v0 }
  0xea   :  { %v147_v53 = vpop.f32.mrf.mxu1 }
  0xeb   :  { %v151_v55 = vmax.f32 %v147_v53, 0.0 }
  0xec   :  { %v989_v56 = vpop.f32.mrf.mxu1 }
  0xed   :  { %993 = vmatmul.mubr.msk.f32.vlgmr.msra.gmra.mxu1 %vm152_vm4, %v151_v55  ;;  %v569_v57 = vpop.f32.mrf.mxu0 }
  0xee   :  { %1003 = vmatprep.mubr.msk.f32.mxu1 %vm1116_vm1, %v1115_v0  ;;  %v573_v59 = vmax.f32 %v569_v57, 0.0  ;;  %996 = vmatpush3.msra.mxu1 %v28_v62 }
  0xef   :  { %v1052_v61 = vpop.f32.mrf.mxu0  ;;  %997 = vmatprep.subr.mxu1 %v1115_v0 }
  0xf0   :  { %1056 = vmatmul.mubr.msk.f32.vlgmr.msra.gmra.mxu0 %vm152_vm4, %v573_v59  ;;  %998 = vmatpush3.msra.mxu1 %v27_v63 }
  0xf1   :  { %1066 = vmatprep.mubr.msk.f32.mxu0 %vm1116_vm1, %v1115_v0  ;;  %1059 = vmatpush3.msra.mxu0 %v28_v62 }
  0xf2   :  { %1060 = vmatprep.subr.mxu0 %v1115_v0  ;;  %999 = vmatprep.subr.mxu1 %v1115_v0 }
  0xf3   :  { %1061 = vmatpush3.msra.mxu0 %v27_v63  ;;  %1000 = vmatpush3.msra.mxu1 %v26_v2 }
  0xf4   :  { %1062 = vmatprep.subr.mxu0 %v1115_v0  ;;  %1001 = vmatprep.subr.mxu1 %v1115_v0 }
  0xf5   :  { %1063 = vmatpush3.msra.mxu0 %v26_v2  ;;  %1002 = vmatpush3.msra.mxu1 %v25_v5 }
  0xf6   :  { %1064 = vmatprep.subr.mxu0 %v1115_v0 }
  0xf7   :  { %1065 = vmatpush3.msra.mxu0 %v25_v5 }
 0x1ad   :  { %v226_v8 = vpop.f32.mrf.mxu1 }
 0x1ae   :  { %v873_v9 = vmul.f32 -1.442695, %v226_v8 }
 0x1af   :  { %v994_v12 = vpop.f32.mrf.mxu1 }
 0x1b0   :  { %1107 = vpow2.f32 %v873_v9  ;;  %v643_v13 = vpop.f32.mrf.mxu0 }
 0x1b1   :  { %v904_v14 = vmul.f32 -1.442695, %v643_v13 }
 0x1b2   :  { %v1057_v17 = vpop.f32.mrf.mxu0 }
 0x1b3   :  { %1109 = vpow2.f32 %v904_v14 }
 0x1bd   :  { %v1108_v22 = vpop.eup %1107 }
 0x1be   :  { %v233_v24 = vadd.f32 1.0, %v1108_v22 }
 0x1c0   :  { %1111 = vrcp.f32 %v233_v24  ;;  %v1110_v25 = vpop.eup %1109 }
 0x1c1   :  { %v650_v27 = vadd.f32 1.0, %v1110_v25 }
 0x1c3   :  { %1113 = vrcp.f32 %v650_v27 }
 0x1cd   :  { %v1112_v32 = vpop.eup %1111 }
 0x1ce   :  { %v1388_v33 = vrot.slane %v1112_v32, %v238_v31 }
 0x1d0   :  { %v240_v35 = vmul.f32 %v1388_v33, %v1158_v3  ;;  %v1114_v37 = vpop.eup %1113  ;;  %v241_v39 = vmul.f32 %v1388_v33, %v1163_v4  ;;  %v242_v3 = vmul.f32 %v1388_v33, %v1173_v6  ;;  %v243_v4 = vmul.f32 %v1388_v33, %v1178_v7 }
 0x1d1   :  { %v1393_v38 = vrot.slane %v1114_v37, %v238_v31  ;;  %v244_v6 = vmul.f32 %v1388_v33, %v1187_v10  ;;  %v245_v7 = vmul.f32 %v1388_v33, %v1201_v15  ;;  %v246_v10 = vmul.f32 %v1388_v33, %v1227_v21 }
 0x1d2   :  { %1004 = vmatmul.mubr.msk.f32.vlgmr.msra.gmra.mxu1 %vm43_vm0, %v240_v35  ;;  %v247_v15 = vmul.f32 %v1388_v33, %v1252_v30  ;;  %v248_v21 = vmul.f32 %v1388_v33, %v1268_v36  ;;  %v249_v30 = vmul.f32 %v1388_v33, %v1282_v42  ;;  %v250_v36 = vmul.f32 %v1388_v33, %v1296_v48 }
 0x1d3   :  { %1006 = vmatprep.mubr.msk.f32.mxu1 %vm1116_vm1, %v1115_v0  ;;  %v657_v41 = vmul.f32 %v1210_v18, %v1393_v38  ;;  %v658_v43 = vmul.f32 %v1215_v19, %v1393_v38  ;;  %v659_v18 = vmul.f32 %v1220_v20, %v1393_v38  ;;  %v660_v19 = vmul.f32 %v1232_v23, %v1393_v38 }
 0x1d4   :  { %v661_v20 = vmul.f32 %v1247_v28, %v1393_v38  ;;  %v662_v23 = vmul.f32 %v1263_v34, %v1393_v38  ;;  %v663_v28 = vmul.f32 %v1277_v40, %v1393_v38  ;;  %v664_v34 = vmul.f32 %v1291_v46, %v1393_v38 }
 0x1d5   :  { %1067 = vmatmul.mubr.msk.f32.vlgmr.msra.gmra.mxu0 %vm43_vm0, %v657_v41  ;;  %v665_v40 = vmul.f32 %v1305_v52, %v1393_v38  ;;  %v666_v46 = vmul.f32 %v1319_v58, %v1393_v38  ;;  %v251_v42 = vmul.f32 %v1388_v33, %v1310_v54  ;;  %v667_v52 = vmul.f32 %v1333_v1, %v1393_v38  ;;  %v1521_v1 = vld [vmem:[%s1657_s4] ss:$0 sm:$0xff] }
 0x1d6   :  { %1007 = vmatmul.mubr.msk.f32.gmra.mxu1 %vm43_vm0, %v241_v39  ;;  %1069 = vmatprep.mubr.msk.f32.mxu0 %vm1116_vm1, %v1115_v0  ;;  %v252_v48 = vmul.f32 %v1388_v33, %v1324_v60  ;;  %v668_v58 = vmul.f32 %v1342_v11, %v1393_v38  ;;  %v669_v54 = vmul.f32 %v1349_v16, %v1393_v38 }
 0x1d7   :  { %1009 = vmatprep.mubr.msk.f32.mxu1 %vm1116_vm1, %v1115_v0 }
 0x1d9   :  { %1070 = vmatmul.mubr.msk.f32.gmra.mxu0 %vm43_vm0, %v658_v43 }
 0x1da   :  { %1010 = vmatmul.mubr.msk.f32.gmra.mxu1 %vm43_vm0, %v242_v3  ;;  %1072 = vmatprep.mubr.msk.f32.mxu0 %vm1116_vm1, %v1115_v0 }
 0x1db   :  { %1012 = vmatprep.mubr.msk.f32.mxu1 %vm1116_vm1, %v1115_v0 }
 0x1dd   :  { %1073 = vmatmul.mubr.msk.f32.gmra.mxu0 %vm43_vm0, %v659_v18 }
 0x1de   :  { %1013 = vmatmul.mubr.msk.f32.gmra.mxu1 %vm43_vm0, %v243_v4  ;;  %1075 = vmatprep.mubr.msk.f32.mxu0 %vm1116_vm1, %v1115_v0 }
 0x1df   :  { %1015 = vmatprep.mubr.msk.f32.mxu1 %vm1116_vm1, %v1115_v0 }
 0x1e1   :  { %1076 = vmatmul.mubr.msk.f32.gmra.mxu0 %vm43_vm0, %v660_v19 }
 0x1e2   :  { %1016 = vmatmul.mubr.msk.f32.gmra.mxu1 %vm43_vm0, %v244_v6  ;;  %1078 = vmatprep.mubr.msk.f32.mxu0 %vm1116_vm1, %v1115_v0 }
 0x1e3   :  { %1018 = vmatprep.mubr.msk.f32.mxu1 %vm1116_vm1, %v1115_v0 }
 0x1e5   :  { %1079 = vmatmul.mubr.msk.f32.gmra.mxu0 %vm43_vm0, %v661_v20 }
 0x1e6   :  { %1019 = vmatmul.mubr.msk.f32.gmra.mxu1 %vm43_vm0, %v245_v7  ;;  %1081 = vmatprep.mubr.msk.f32.mxu0 %vm1116_vm1, %v1115_v0 }
 0x1e7   :  { %1021 = vmatprep.mubr.msk.f32.mxu1 %vm1116_vm1, %v1115_v0 }
 0x1e9   :  { %1082 = vmatmul.mubr.msk.f32.gmra.mxu0 %vm43_vm0, %v662_v23 }
 0x1ea   :  { %1022 = vmatmul.mubr.msk.f32.gmra.mxu1 %vm43_vm0, %v246_v10  ;;  %1084 = vmatprep.mubr.msk.f32.mxu0 %vm1116_vm1, %v1115_v0 }
 0x1eb   :  { %1024 = vmatprep.mubr.msk.f32.mxu1 %vm1116_vm1, %v1115_v0 }
 0x1ed   :  { %1085 = vmatmul.mubr.msk.f32.gmra.mxu0 %vm43_vm0, %v663_v28 }
 0x1ee   :  { %1025 = vmatmul.mubr.msk.f32.gmra.mxu1 %vm43_vm0, %v247_v15  ;;  %1087 = vmatprep.mubr.msk.f32.mxu0 %vm1116_vm1, %v1115_v0 }
 0x1ef   :  { %1027 = vmatprep.mubr.msk.f32.mxu1 %vm1116_vm1, %v1115_v0 }
 0x1f1   :  { %1088 = vmatmul.mubr.msk.f32.gmra.mxu0 %vm43_vm0, %v664_v34 }
 0x1f2   :  { %1028 = vmatmul.mubr.msk.f32.gmra.mxu1 %vm43_vm0, %v248_v21  ;;  %1090 = vmatprep.mubr.msk.f32.mxu0 %vm1116_vm1, %v1115_v0 }
 0x1f3   :  { %1030 = vmatprep.mubr.msk.f32.mxu1 %vm1116_vm1, %v1115_v0 }
 0x1f5   :  { %1091 = vmatmul.mubr.msk.f32.gmra.mxu0 %vm43_vm0, %v665_v40 }
 0x1f6   :  { %1031 = vmatmul.mubr.msk.f32.gmra.mxu1 %vm43_vm0, %v249_v30  ;;  %1093 = vmatprep.mubr.msk.f32.mxu0 %vm1116_vm1, %v1115_v0 }
 0x1f7   :  { %1033 = vmatprep.mubr.msk.f32.mxu1 %vm1116_vm1, %v1115_v0 }
 0x1f9   :  { %1094 = vmatmul.mubr.msk.f32.gmra.mxu0 %vm43_vm0, %v666_v46 }
 0x1fa   :  { %1034 = vmatmul.mubr.msk.f32.gmra.mxu1 %vm43_vm0, %v250_v36  ;;  %1096 = vmatprep.mubr.msk.f32.mxu0 %vm1116_vm1, %v1115_v0 }
 0x1fb   :  { %1036 = vmatprep.mubr.msk.f32.mxu1 %vm1116_vm1, %v1115_v0 }
 0x1fd   :  { %1097 = vmatmul.mubr.msk.f32.gmra.mxu0 %vm43_vm0, %v667_v52 }
 0x1fe   :  { %1037 = vmatmul.mubr.msk.f32.gmra.mxu1 %vm43_vm0, %v251_v42  ;;  %1099 = vmatprep.mubr.msk.f32.mxu0 %vm1116_vm1, %v1115_v0 }
 0x1ff   :  { %1039 = vmatprep.mubr.msk.f32.mxu1 %vm1116_vm1, %v1115_v0 }
 0x201   :  { %1100 = vmatmul.mubr.msk.f32.gmra.mxu0 %vm43_vm0, %v668_v58 }
 0x202   :  { %1040 = vmatmul.mubr.msk.f32.gmra.mxu1 %vm43_vm0, %v252_v48  ;;  %1102 = vmatprep.mubr.msk.f32.mxu0 %vm1116_vm1, %v1115_v0 }
 0x205   :  { %1103 = vmatmul.mubr.msk.f32.gmra.mxu0 %vm43_vm0, %v669_v54 }
 0x292   :  { %v364_v60 = vpop.f32.mrf.mxu1 }
 0x293   :  { %v365_v11 = vadd.f32 %v1521_v1, %v364_v60 }
 0x294   :  { %v1005_v44 = vpop.f32.mrf.mxu1 }
 0x295   :  { %v428_v45 = vmax.f32 %v365_v11, 0.0  ;;  %v775_v0 = vpop.f32.mrf.mxu0 }
 0x296   :  { %v369_v47 = vpop.f32.mrf.mxu1  ;;  %v776_v49 = vadd.f32 %v1521_v1, %v775_v0 }
 0x297   :  { %441 = vst.msk [vmem:[%s1658_s5] sm:$0xff] %vm43_vm0, %v428_v45  ;;  %v370_v16 = vadd.f32 %v1521_v1, %v369_v47  ;;  %v1068_v51 = vpop.f32.mrf.mxu0 }
 0x298   :  { %v1008_v50 = vpop.f32.mrf.mxu1  ;;  %v839_v55 = vmax.f32 %v776_v49, 0.0 }
 0x299   :  { %v429_v53 = vmax.f32 %v370_v16, 0.0  ;;  %v780_v57 = vpop.f32.mrf.mxu0 }
 0x29a   :  { %v374_v56 = vpop.f32.mrf.mxu1  ;;  %918 = vst.msk [vmem:[%s1658_s5 + $0x68] sm:$0xff] %vm43_vm0, %v839_v55  ;;  %v781_v61 = vadd.f32 %v1521_v1, %v780_v57 }
 0x29b   :  { %442 = vst.msk [vmem:[%s1658_s5 + $0x8] sm:$0xff] %vm43_vm0, %v429_v53  ;;  %v375_v59 = vadd.f32 %v1521_v1, %v374_v56  ;;  %v1071_v63 = vpop.f32.mrf.mxu0 }
 0x29c   :  { %v1011_v62 = vpop.f32.mrf.mxu1  ;;  %v840_v5 = vmax.f32 %v781_v61, 0.0 }
 0x29d   :  { %v430_v2 = vmax.f32 %v375_v59, 0.0  ;;  %v785_v9 = vpop.f32.mrf.mxu0 }
 0x29e   :  { %v379_v8 = vpop.f32.mrf.mxu1  ;;  %919 = vst.msk [vmem:[%s1658_s5 + $0x70] sm:$0xff] %vm43_vm0, %v840_v5  ;;  %v786_v13 = vadd.f32 %v1521_v1, %v785_v9 }
 0x29f   :  { %443 = vst.msk [vmem:[%s1658_s5 + $0x10] sm:$0xff] %vm43_vm0, %v430_v2  ;;  %v380_v12 = vadd.f32 %v1521_v1, %v379_v8  ;;  %v1074_v17 = vpop.f32.mrf.mxu0 }
 0x2a0   :  { %v1014_v14 = vpop.f32.mrf.mxu1  ;;  %v841_v24 = vmax.f32 %v786_v13, 0.0 }
 0x2a1   :  { %v431_v22 = vmax.f32 %v380_v12, 0.0  ;;  %v790_v26 = vpop.f32.mrf.mxu0 }
 0x2a2   :  { %v384_v25 = vpop.f32.mrf.mxu1  ;;  %920 = vst.msk [vmem:[%s1658_s5 + $0x78] sm:$0xff] %vm43_vm0, %v841_v24  ;;  %v791_v29 = vadd.f32 %v1521_v1, %v790_v26 }
 0x2a3   :  { %444 = vst.msk [vmem:[%s1658_s5 + $0x18] sm:$0xff] %vm43_vm0, %v431_v22  ;;  %v385_v27 = vadd.f32 %v1521_v1, %v384_v25  ;;  %v1077_v32 = vpop.f32.mrf.mxu0 }
 0x2a4   :  { %v1017_v31 = vpop.f32.mrf.mxu1  ;;  %v842_v35 = vmax.f32 %v791_v29, 0.0 }
 0x2a5   :  { %v432_v33 = vmax.f32 %v385_v27, 0.0  ;;  %v795_v38 = vpop.f32.mrf.mxu0 }
 0x2a6   :  { %v389_v37 = vpop.f32.mrf.mxu1  ;;  %921 = vst.msk [vmem:[%s1658_s5 + $0x80] sm:$0xff] %vm43_vm0, %v842_v35  ;;  %v796_v41 = vadd.f32 %v1521_v1, %v795_v38 }
 0x2a7   :  { %445 = vst.msk [vmem:[%s1658_s5 + $0x20] sm:$0xff] %vm43_vm0, %v432_v33  ;;  %v390_v39 = vadd.f32 %v1521_v1, %v389_v37  ;;  %v1080_v43 = vpop.f32.mrf.mxu0 }
 0x2a8   :  { %v1020_v3 = vpop.f32.mrf.mxu1  ;;  %v843_v18 = vmax.f32 %v796_v41, 0.0 }
 0x2a9   :  { %v433_v4 = vmax.f32 %v390_v39, 0.0  ;;  %v800_v19 = vpop.f32.mrf.mxu0 }
 0x2aa   :  { %v394_v6 = vpop.f32.mrf.mxu1  ;;  %922 = vst.msk [vmem:[%s1658_s5 + $0x88] sm:$0xff] %vm43_vm0, %v843_v18  ;;  %v801_v20 = vadd.f32 %v1521_v1, %v800_v19 }
 0x2ab   :  { %446 = vst.msk [vmem:[%s1658_s5 + $0x28] sm:$0xff] %vm43_vm0, %v433_v4  ;;  %v395_v7 = vadd.f32 %v1521_v1, %v394_v6  ;;  %v1083_v23 = vpop.f32.mrf.mxu0 }
 0x2ac   :  { %v1023_v10 = vpop.f32.mrf.mxu1  ;;  %v844_v28 = vmax.f32 %v801_v20, 0.0 }
 0x2ad   :  { %v434_v15 = vmax.f32 %v395_v7, 0.0  ;;  %v805_v34 = vpop.f32.mrf.mxu0 }
 0x2ae   :  { %v399_v21 = vpop.f32.mrf.mxu1  ;;  %923 = vst.msk [vmem:[%s1658_s5 + $0x90] sm:$0xff] %vm43_vm0, %v844_v28  ;;  %v806_v40 = vadd.f32 %v1521_v1, %v805_v34 }
 0x2af   :  { %447 = vst.msk [vmem:[%s1658_s5 + $0x30] sm:$0xff] %vm43_vm0, %v434_v15  ;;  %v400_v30 = vadd.f32 %v1521_v1, %v399_v21  ;;  %v1086_v46 = vpop.f32.mrf.mxu0 }
 0x2b0   :  { %v1026_v36 = vpop.f32.mrf.mxu1  ;;  %v845_v52 = vmax.f32 %v806_v40, 0.0 }
 0x2b1   :  { %v435_v42 = vmax.f32 %v400_v30, 0.0  ;;  %v810_v58 = vpop.f32.mrf.mxu0 }
 0x2b2   :  { %v404_v48 = vpop.f32.mrf.mxu1  ;;  %924 = vst.msk [vmem:[%s1658_s5 + $0x98] sm:$0xff] %vm43_vm0, %v845_v52  ;;  %v811_v60 = vadd.f32 %v1521_v1, %v810_v58 }
 0x2b3   :  { %448 = vst.msk [vmem:[%s1658_s5 + $0x38] sm:$0xff] %vm43_vm0, %v435_v42  ;;  %v405_v54 = vadd.f32 %v1521_v1, %v404_v48  ;;  %v1089_v44 = vpop.f32.mrf.mxu0 }
 0x2b4   :  { %v1029_v11 = vpop.f32.mrf.mxu1  ;;  %v846_v47 = vmax.f32 %v811_v60, 0.0 }
 0x2b5   :  { %v436_v45 = vmax.f32 %v405_v54, 0.0  ;;  %v815_v16 = vpop.f32.mrf.mxu0 }
 0x2b6   :  { %v409_v0 = vpop.f32.mrf.mxu1  ;;  %925 = vst.msk [vmem:[%s1658_s5 + $0xa0] sm:$0xff] %vm43_vm0, %v846_v47  ;;  %v816_v50 = vadd.f32 %v1521_v1, %v815_v16 }
 0x2b7   :  { %449 = vst.msk [vmem:[%s1658_s5 + $0x40] sm:$0xff] %vm43_vm0, %v436_v45  ;;  %v410_v49 = vadd.f32 %v1521_v1, %v409_v0  ;;  %v1092_v53 = vpop.f32.mrf.mxu0 }
 0x2b8   :  { %v1032_v51 = vpop.f32.mrf.mxu1  ;;  %v847_v56 = vmax.f32 %v816_v50, 0.0 }
 0x2b9   :  { %v437_v55 = vmax.f32 %v410_v49, 0.0  ;;  %v820_v59 = vpop.f32.mrf.mxu0 }
 0x2ba   :  { %v414_v57 = vpop.f32.mrf.mxu1  ;;  %926 = vst.msk [vmem:[%s1658_s5 + $0xa8] sm:$0xff] %vm43_vm0, %v847_v56  ;;  %v821_v62 = vadd.f32 %v1521_v1, %v820_v59 }
 0x2bb   :  { %450 = vst.msk [vmem:[%s1658_s5 + $0x48] sm:$0xff] %vm43_vm0, %v437_v55  ;;  %v415_v61 = vadd.f32 %v1521_v1, %v414_v57  ;;  %v1095_v2 = vpop.f32.mrf.mxu0 }
 0x2bc   :  { %v1035_v63 = vpop.f32.mrf.mxu1  ;;  %v848_v8 = vmax.f32 %v821_v62, 0.0 }
 0x2bd   :  { %v438_v5 = vmax.f32 %v415_v61, 0.0  ;;  %v825_v12 = vpop.f32.mrf.mxu0 }
 0x2be   :  { %v419_v9 = vpop.f32.mrf.mxu1  ;;  %927 = vst.msk [vmem:[%s1658_s5 + $0xb0] sm:$0xff] %vm43_vm0, %v848_v8  ;;  %v826_v14 = vadd.f32 %v1521_v1, %v825_v12 }
 0x2bf   :  { %451 = vst.msk [vmem:[%s1658_s5 + $0x50] sm:$0xff] %vm43_vm0, %v438_v5  ;;  %v420_v13 = vadd.f32 %v1521_v1, %v419_v9  ;;  %v1098_v22 = vpop.f32.mrf.mxu0 }
 0x2c0   :  { %v1038_v17 = vpop.f32.mrf.mxu1  ;;  %v849_v25 = vmax.f32 %v826_v14, 0.0 }
 0x2c1   :  { %v439_v24 = vmax.f32 %v420_v13, 0.0  ;;  %v830_v27 = vpop.f32.mrf.mxu0 }
 0x2c2   :  { %v424_v26 = vpop.f32.mrf.mxu1  ;;  %928 = vst.msk [vmem:[%s1658_s5 + $0xb8] sm:$0xff] %vm43_vm0, %v849_v25  ;;  %v831_v31 = vadd.f32 %v1521_v1, %v830_v27 }
 0x2c3   :  { %452 = vst.msk [vmem:[%s1658_s5 + $0x58] sm:$0xff] %vm43_vm0, %v439_v24  ;;  %v425_v29 = vadd.f32 %v1521_v1, %v424_v26  ;;  %v1101_v33 = vpop.f32.mrf.mxu0 }
 0x2c4   :  { %v1041_v32 = vpop.f32.mrf.mxu1  ;;  %v850_v37 = vmax.f32 %v831_v31, 0.0 }
 0x2c5   :  { %v440_v35 = vmax.f32 %v425_v29, 0.0  ;;  %v835_v38 = vpop.f32.mrf.mxu0 }
 0x2c6   :  { %929 = vst.msk [vmem:[%s1658_s5 + $0xc0] sm:$0xff] %vm43_vm0, %v850_v37  ;;  %v836_v39 = vadd.f32 %v1521_v1, %v835_v38 }
 0x2c7   :  { %453 = vst.msk [vmem:[%s1658_s5 + $0x60] sm:$0xf] %vm67_vm2, %v440_v35  ;;  %v1104_v41 = vpop.f32.mrf.mxu0 }
 0x2c8   :  { %v851_v3 = vmax.f32 %v836_v39, 0.0 }
 0x2ca   :  { %930 = vst.msk [vmem:[%s1658_s5 + $0xc8] sm:$0xf] %vm67_vm2, %v851_v3 }

// kernel: _lambda_.12
= control target key start
LH: loop header
LB: loop body
LE: loop exit
PB: predicated region body
PF: predicated region fallthrough
CT: control target
= control target key end

     0   :  { %v54_v0 = vlaneseq  ;;  %v2065_v1 = vmov 0.0   ;;  %vm2066_vm0 = vmmov 0   ;;  %vm114_vm1 = vcmask 1046528   ;;  %s3146_s3 = inlined_call_operand.vmem [shape: f32[32,64], index: 3, kind: input, shape index: {}]   ;;  %s3147_s5 = inlined_call_operand.vmem [shape: f32[32,64], index: 5, kind: input, shape index: {}]   ;;  %s3148_s1 = inlined_call_operand.vmem [shape: f32[5,32], index: 1, kind: input, shape index: {}]   ;;  %s3149_s0 = inlined_call_operand.vmem [shape: f32[2,104,32], index: 0, kind: input, shape index: {}]   ;;  %s3150_s2 = inlined_call_operand.vmem [shape: f32[1,32], index: 2, kind: input, shape index: {}]   ;;  %s3151_s4 = inlined_call_operand.vmem [shape: f32[1,64], index: 4, kind: input, shape index: {}, may-alias: {4,6,8}]   ;;  %s3152_s7 = inlined_call_operand.vmem [shape: f32[1,64], index: 7, kind: input, shape index: {}]   ;;  %s3153_s6 = inlined_call_operand.vmem [shape: f32[1,64], index: 6, kind: input, shape index: {}, may-alias: {4,6,8}]   ;;  %s3154_s8 = inlined_call_operand.vmem [shape: f32[1,64], index: 8, kind: input, shape index: {}, may-alias: {4,6,8}]   ;;  %s3155_s9 = inlined_call_operand.vmem [shape: f32[2,100,64], index: 9, kind: output, shape index: {}]  }
   0x1   :  { %1874 = vmatprep.subr.mxu0 %v2065_v1  ;;  %v2121_v2 = vld [vmem:[%s3146_s3 + $0x18] sm:$0xff]  ;;  %v2126_v3 = vld [vmem:[%s3146_s3 + $0x10] sm:$0xff]  ;;  %1921 = vmatprep.subr.mxu1 %v2065_v1  ;;  %v2146_v7 = vld [vmem:[%s3146_s3 + $0x8] sm:$0xff]  ;;  %vm196_vm2 = vcmask 1045504   ;;  %vm278_vm3 = vcmask 1044480   ;;  %vm360_vm4 = vcmask 1043456  }
   0x2   :  { %1875 = vmatpush3.msra.mxu0 %v2121_v2  ;;  %v2133_v4 = vld [vmem:[%s3147_s5 + $0x18] sm:$0xff]  ;;  %1882 = vmatprep.mubr.msk.f32.mxu0 %vm2066_vm0, %v2065_v1  ;;  %v2140_v5 = vld [vmem:[%s3147_s5 + $0x10] sm:$0xff]  ;;  %v55_v6 = vshrl.u32 %v54_v0, 7  ;;  %v32_v8 = vld [vmem:[%s3148_s1] sm:$0x1f]  ;;  %vm437_vm5 = vcmask 261120  }
   0x3   :  { %1876 = vmatprep.subr.mxu0 %v2065_v1  ;;  %1922 = vmatpush3.msra.mxu1 %v2133_v4  ;;  %v41_v9 = vld [vmem:[%s3149_s0] sm:$0xff]  ;;  %v2160_v10 = vld [vmem:[%s3149_s0 + $0x8] sm:$0xff]  ;;  %v2182_v23 = vld [vmem:[%s3149_s0 + $0x10] sm:$0xff]  ;;  %vm889_vm6 = vcmask 523264   ;;  %vm902_vm7 = vcmask 519168  }
   0x4   :  { %1877 = vmatpush3.msra.mxu0 %v2126_v3  ;;  %1923 = vmatprep.subr.mxu1 %v2065_v1  ;;  %v56_v11 = vsub.s32 0, %v55_v6  ;;  %v86_v12 = vsub.s32 1, %v55_v6  ;;  %v168_v13 = vsub.s32 2, %v55_v6  ;;  %v250_v14 = vsub.s32 3, %v55_v6  ;;  %v2166_v15 = vld [vmem:[%s3146_s3] sm:$0xff]  ;;  %v2187_v24 = vld [vmem:[%s3149_s0 + $0x18] sm:$0xff] }
   0x5   :  { %1878 = vmatprep.subr.mxu0 %v2065_v1  ;;  %1924 = vmatpush3.msra.mxu1 %v2140_v5  ;;  %v332_v16 = vsub.s32 4, %v55_v6  ;;  %v682_v17 = vrot.slane %v41_v9, 2  ;;  %v683_v18 = vrot.slane %v2160_v10, 2  ;;  %v2196_v26 = vld [vmem:[%s3147_s5 + $0x8] sm:$0xff]  ;;  %v685_v28 = vrot.slane %v2182_v23, 2  ;;  %v2219_v38 = vld [vmem:[%s3147_s5] sm:$0xff] }
   0x6   :  { %1879 = vmatpush3.msra.mxu0 %v2146_v7  ;;  %v2171_v19 = vrot.slane %v32_v8, %v56_v11  ;;  %v2173_v20 = vrot.slane %v32_v8, %v86_v12  ;;  %v2175_v21 = vrot.slane %v32_v8, %v168_v13  ;;  %v2177_v22 = vrot.slane %v32_v8, %v250_v14  ;;  %v2260_v13 = vld [vmem:[%s3150_s2] ss:$0 sm:$0xff] }
   0x7   :  { %1880 = vmatprep.subr.mxu0 %v2065_v1  ;;  %v2190_v25 = vrot.slane %v32_v8, %v332_v16  ;;  %1925 = vmatprep.subr.mxu1 %v2065_v1  ;;  %v684_v27 = vsel %vm196_vm2, %v682_v17, %v683_v18  ;;  %v687_v29 = vrot.slane %v2187_v24, 2 }
   0x8   :  { %1881 = vmatpush3.msra.mxu0 %v2166_v15  ;;  %v58_v30 = vmul.f32 %v2171_v19, %v41_v9  ;;  %v88_v31 = vmul.f32 %v2173_v20, %v41_v9  ;;  %v89_v32 = vmul.f32 %v2173_v20, %v2160_v10  ;;  %v170_v33 = vmul.f32 %v2175_v21, %v41_v9 }
   0x9   :  { %1968 = vmatprep.subr.mxu0 %v2065_v1  ;;  %v171_v34 = vmul.f32 %v2175_v21, %v2160_v10  ;;  %v252_v35 = vmul.f32 %v2177_v22, %v41_v9  ;;  %v253_v36 = vmul.f32 %v2177_v22, %v2160_v10  ;;  %v334_v37 = vmul.f32 %v2190_v25, %v41_v9 }
   0xa   :  { %v115_v39 = vrot.slane %v88_v31, 1  ;;  %v116_v40 = vrot.slane %v89_v32, 1  ;;  %v197_v41 = vrot.slane %v170_v33, 2  ;;  %v335_v42 = vmul.f32 %v2190_v25, %v2160_v10  ;;  %1926 = vmatpush3.msra.mxu1 %v2196_v26  ;;  %1929 = vmatprep.mubr.msk.f32.mxu1 %vm2066_vm0, %v2065_v1  ;;  %v2273_v33 = vld [vmem:[%s3149_s0 + $0x20] sm:$0xff] }
   0xb   :  { %v198_v43 = vrot.slane %v171_v34, 2  ;;  %v279_v44 = vrot.slane %v252_v35, 3  ;;  %v280_v45 = vrot.slane %v253_v36, 3  ;;  %v361_v46 = vrot.slane %v334_v37, 4  ;;  %1927 = vmatprep.subr.mxu1 %v2065_v1 }
   0xc   :  { %v117_v47 = vsel %vm114_vm1, %v115_v39, %v116_v40  ;;  %v362_v48 = vrot.slane %v335_v42, 4  ;;  %1928 = vmatpush3.msra.mxu1 %v2219_v38  ;;  %v59_v49 = vmul.f32 %v2171_v19, %v2160_v10  ;;  %v90_v50 = vmul.f32 %v2173_v20, %v2182_v23 }
   0xd   :  { %v153_v51 = vadd.f32 %v117_v47, %v58_v30  ;;  %v199_v52 = vsel %vm196_vm2, %v197_v41, %v198_v43  ;;  %v281_v53 = vsel %vm278_vm3, %v279_v44, %v280_v45  ;;  %v172_v54 = vmul.f32 %v2175_v21, %v2182_v23  ;;  %1930 = vmatmul.mubr.msk.f32.vlgmr.msra.gmra.mxu1 %vm437_vm5, %v684_v27 }
   0xe   :  { %v363_v55 = vsel %vm360_vm4, %v361_v46, %v362_v48  ;;  %v118_v56 = vrot.slane %v90_v50, 1  ;;  %v254_v57 = vmul.f32 %v2177_v22, %v2182_v23  ;;  %v336_v58 = vmul.f32 %v2190_v25, %v2182_v23  ;;  %2015 = vmatprep.subr.mxu1 %v2065_v1  ;;  %1932 = vmatprep.mubr.msk.f32.mxu1 %vm2066_vm0, %v2065_v1 }
   0xf   :  { %v235_v59 = vadd.f32 %v199_v52, %v153_v51  ;;  %v200_v60 = vrot.slane %v172_v54, 2  ;;  %2016 = vmatpush3.msra.mxu1 %v2133_v4  ;;  %v60_v61 = vmul.f32 %v2171_v19, %v2182_v23  ;;  %v91_v62 = vmul.f32 %v2173_v20, %v2187_v24  ;;  %v2311_v52 = vld [vmem:[%s3149_s0 + $0x28] sm:$0xff] }
  0x10   :  { %v119_v63 = vsel %vm114_vm1, %v116_v40, %v118_v56  ;;  %v282_v0 = vrot.slane %v254_v57, 3  ;;  %v364_v6 = vrot.slane %v336_v58, 4  ;;  %v173_v8 = vmul.f32 %v2175_v21, %v2187_v24  ;;  %2017 = vmatprep.subr.mxu1 %v2065_v1 }
  0x11   :  { %v317_v9 = vadd.f32 %v281_v53, %v235_v59  ;;  %v154_v11 = vadd.f32 %v119_v63, %v59_v49  ;;  %v201_v12 = vsel %vm196_vm2, %v198_v43, %v200_v60  ;;  %v120_v4 = vrot.slane %v91_v62, 1  ;;  %2018 = vmatpush3.msra.mxu1 %v2140_v5  ;;  %v2332_v62 = vld [vmem:[%s3149_s0 + $0x30] sm:$0xff] }
  0x12   :  { %v283_v14 = vsel %vm278_vm3, %v280_v45, %v282_v0  ;;  %v365_v16 = vsel %vm360_vm4, %v362_v48, %v364_v6  ;;  %v202_v17 = vrot.slane %v173_v8, 2  ;;  %v255_v27 = vmul.f32 %v2177_v22, %v2187_v24  ;;  %2019 = vmatprep.subr.mxu1 %v2065_v1 }
  0x13   :  { %v399_v30 = vadd.f32 %v363_v55, %v317_v9  ;;  %v236_v31 = vadd.f32 %v201_v12, %v154_v11  ;;  %v121_v32 = vsel %vm114_vm1, %v118_v56, %v120_v4  ;;  %v337_v5 = vmul.f32 %v2190_v25, %v2187_v24  ;;  %2020 = vmatpush3.msra.mxu1 %v2196_v26 }
  0x14   :  { %v155_v34 = vadd.f32 %v121_v32, %v60_v61  ;;  %v203_v35 = vsel %vm196_vm2, %v200_v60, %v202_v17  ;;  %v284_v36 = vrot.slane %v255_v27, 3  ;;  %v686_v37 = vsel %vm196_vm2, %v683_v18, %v685_v28  ;;  %2021 = vmatprep.subr.mxu1 %v2065_v1 }
  0x15   :  { %v418_v39 = vadd.f32 %v2260_v13, %v399_v30  ;;  %v318_v40 = vadd.f32 %v283_v14, %v236_v31  ;;  %v366_v41 = vrot.slane %v337_v5, 4  ;;  %1933 = vmatmul.mubr.msk.f32.gmra.mxu1 %vm437_vm5, %v686_v37  ;;  %v61_v26 = vmul.f32 %v2171_v19, %v2187_v24 }
  0x16   :  { %v237_v42 = vadd.f32 %v203_v35, %v155_v34  ;;  %v285_v43 = vsel %vm278_vm3, %v282_v0, %v284_v36  ;;  %1935 = vmatprep.mubr.msk.f32.mxu1 %vm2066_vm0, %v2065_v1  ;;  %v92_v10 = vmul.f32 %v2173_v20, %v2273_v33  ;;  %v174_v18 = vmul.f32 %v2175_v21, %v2273_v33 }
  0x17   :  { %1883 = vmatmul.mubr.msk.f32.vlgmr.msra.gmra.mxu0 %vm437_vm5, %v418_v39  ;;  %v400_v44 = vadd.f32 %v365_v16, %v318_v40  ;;  %v367_v45 = vsel %vm360_vm4, %v364_v6, %v366_v41  ;;  %v256_v46 = vmul.f32 %v2177_v22, %v2273_v33  ;;  %v338_v47 = vmul.f32 %v2190_v25, %v2273_v33 }
  0x18   :  { %1969 = vmatpush3.msra.mxu0 %v2121_v2  ;;  %1885 = vmatprep.mubr.msk.f32.mxu0 %vm2066_vm0, %v2065_v1  ;;  %v319_v48 = vadd.f32 %v285_v43, %v237_v42  ;;  %v122_v49 = vrot.slane %v92_v10, 1  ;;  %v204_v50 = vrot.slane %v174_v18, 2  ;;  %v688_v51 = vsel %vm196_vm2, %v685_v28, %v687_v29 }
  0x19   :  { %v419_v53 = vadd.f32 %v2260_v13, %v400_v44  ;;  %v286_v2 = vrot.slane %v256_v46, 3  ;;  %v368_v54 = vrot.slane %v338_v47, 4  ;;  %1936 = vmatmul.mubr.msk.f32.gmra.mxu1 %vm437_vm5, %v688_v51  ;;  %1970 = vmatprep.subr.mxu0 %v2065_v1  ;;  %v62_v55 = vmul.f32 %v2171_v19, %v2273_v33 }
  0x1a   :  { %v401_v56 = vadd.f32 %v367_v45, %v319_v48  ;;  %v123_v23 = vsel %vm114_vm1, %v120_v4, %v122_v49  ;;  %v205_v28 = vsel %vm196_vm2, %v202_v17, %v204_v50  ;;  %1971 = vmatpush3.msra.mxu0 %v2126_v3  ;;  %1938 = vmatprep.mubr.msk.f32.mxu1 %vm2066_vm0, %v2065_v1  ;;  %v689_v57 = vrot.slane %v2273_v33, 2 }
  0x1b   :  { %1886 = vmatmul.mubr.msk.f32.gmra.mxu0 %vm437_vm5, %v419_v53  ;;  %v156_v58 = vadd.f32 %v123_v23, %v61_v26  ;;  %v287_v59 = vsel %vm278_vm3, %v284_v36, %v286_v2  ;;  %v369_v60 = vsel %vm360_vm4, %v366_v41, %v368_v54  ;;  %v93_v61 = vmul.f32 %v2173_v20, %v2311_v52  ;;  %v2371_v36 = vld [vmem:[%s3149_s0 + $0x38] sm:$0xff]  ;;  %v2403_v23 = vld [vmem:[%s3149_s0 + $0x40] sm:$0xff] }
  0x1c   :  { %1888 = vmatprep.mubr.msk.f32.mxu0 %vm2066_vm0, %v2065_v1  ;;  %v420_v3 = vadd.f32 %v2260_v13, %v401_v56  ;;  %v175_v63 = vmul.f32 %v2175_v21, %v2311_v52  ;;  %v257_v0 = vmul.f32 %v2177_v22, %v2311_v52  ;;  %v339_v6 = vmul.f32 %v2190_v25, %v2311_v52 }
  0x1d   :  { %v238_v8 = vadd.f32 %v205_v28, %v156_v58  ;;  %v124_v9 = vrot.slane %v93_v61, 1  ;;  %v690_v11 = vsel %vm196_vm2, %v687_v29, %v689_v57  ;;  %v63_v12 = vmul.f32 %v2171_v19, %v2311_v52  ;;  %1972 = vmatprep.subr.mxu0 %v2065_v1  ;;  %2022 = vmatpush3.msra.mxu1 %v2219_v38 }
  0x1e   :  { %v206_v4 = vrot.slane %v175_v63, 2  ;;  %v288_v14 = vrot.slane %v257_v0, 3  ;;  %v370_v16 = vrot.slane %v339_v6, 4  ;;  %1939 = vmatmul.mubr.msk.f32.gmra.mxu1 %vm437_vm5, %v690_v11  ;;  %v94_v17 = vmul.f32 %v2173_v20, %v2332_v62  ;;  %1973 = vmatpush3.msra.mxu0 %v2146_v7 }
  0x1f   :  { %1889 = vmatmul.mubr.msk.f32.gmra.mxu0 %vm437_vm5, %v420_v3  ;;  %v320_v24 = vadd.f32 %v287_v59, %v238_v8  ;;  %v125_v29 = vsel %vm114_vm1, %v122_v49, %v124_v9  ;;  %1941 = vmatprep.mubr.msk.f32.mxu1 %vm2066_vm0, %v2065_v1  ;;  %v176_v38 = vmul.f32 %v2175_v21, %v2332_v62  ;;  %v691_v27 = vrot.slane %v2311_v52, 2 }
  0x20   :  { %1891 = vmatprep.mubr.msk.f32.mxu0 %vm2066_vm0, %v2065_v1  ;;  %v157_v30 = vadd.f32 %v125_v29, %v62_v55  ;;  %v207_v31 = vsel %vm196_vm2, %v204_v50, %v206_v4  ;;  %v289_v7 = vsel %vm278_vm3, %v286_v2, %v288_v14  ;;  %v371_v32 = vsel %vm360_vm4, %v368_v54, %v370_v16 }
  0x21   :  { %v402_v5 = vadd.f32 %v369_v60, %v320_v24  ;;  %v126_v33 = vrot.slane %v94_v17, 1  ;;  %v208_v34 = vrot.slane %v176_v38, 2  ;;  %v258_v35 = vmul.f32 %v2177_v22, %v2332_v62  ;;  %1974 = vmatprep.subr.mxu0 %v2065_v1 }
  0x22   :  { %v239_v37 = vadd.f32 %v207_v31, %v157_v30  ;;  %v340_v39 = vmul.f32 %v2190_v25, %v2332_v62  ;;  %v692_v40 = vsel %vm196_vm2, %v689_v57, %v691_v27  ;;  %v64_v41 = vmul.f32 %v2171_v19, %v2332_v62  ;;  %1975 = vmatpush3.msra.mxu0 %v2166_v15 }
  0x23   :  { %v421_v26 = vadd.f32 %v2260_v13, %v402_v5  ;;  %v127_v42 = vsel %vm114_vm1, %v124_v9, %v126_v33  ;;  %v209_v43 = vsel %vm196_vm2, %v206_v4, %v208_v34  ;;  %v290_v10 = vrot.slane %v258_v35, 3  ;;  %1942 = vmatmul.mubr.msk.f32.gmra.mxu1 %vm437_vm5, %v692_v40 }
  0x24   :  { %v321_v18 = vadd.f32 %v289_v7, %v239_v37  ;;  %v158_v44 = vadd.f32 %v127_v42, %v63_v12  ;;  %v372_v45 = vrot.slane %v340_v39, 4  ;;  %1944 = vmatprep.mubr.msk.f32.mxu1 %vm2066_vm0, %v2065_v1  ;;  %v95_v46 = vmul.f32 %v2173_v20, %v2371_v36  ;;  %v2456_v42 = vld [vmem:[%s3149_s0 + $0x50] sm:$0xff] }
  0x25   :  { %1892 = vmatmul.mubr.msk.f32.gmra.mxu0 %vm437_vm5, %v421_v26  ;;  %v291_v15 = vsel %vm278_vm3, %v288_v14, %v290_v10  ;;  %v177_v47 = vmul.f32 %v2175_v21, %v2371_v36  ;;  %v259_v48 = vmul.f32 %v2177_v22, %v2371_v36  ;;  %v341_v49 = vmul.f32 %v2190_v25, %v2371_v36  ;;  %v2429_v14 = vld [vmem:[%s3149_s0 + $0x48] sm:$0xff] }
  0x26   :  { %1894 = vmatprep.mubr.msk.f32.mxu0 %vm2066_vm0, %v2065_v1  ;;  %v403_v50 = vadd.f32 %v371_v32, %v321_v18  ;;  %v240_v51 = vadd.f32 %v209_v43, %v158_v44  ;;  %v373_v52 = vsel %vm360_vm4, %v370_v16, %v372_v45  ;;  %v128_v53 = vrot.slane %v95_v46, 1 }
  0x27   :  { %v210_v2 = vrot.slane %v177_v47, 2  ;;  %v292_v54 = vrot.slane %v259_v48, 3  ;;  %v374_v55 = vrot.slane %v341_v49, 4  ;;  %v693_v56 = vrot.slane %v2332_v62, 2 }
  0x28   :  { %v422_v28 = vadd.f32 %v2260_v13, %v403_v50  ;;  %v322_v57 = vadd.f32 %v291_v15, %v240_v51  ;;  %v129_v58 = vsel %vm114_vm1, %v126_v33, %v128_v53  ;;  %v65_v59 = vmul.f32 %v2171_v19, %v2371_v36 }
  0x29   :  { %v159_v60 = vadd.f32 %v129_v58, %v64_v41  ;;  %v211_v61 = vsel %vm196_vm2, %v208_v34, %v210_v2  ;;  %v293_v3 = vsel %vm278_vm3, %v290_v10, %v292_v54  ;;  %v375_v62 = vsel %vm360_vm4, %v372_v45, %v374_v55 }
  0x2a   :  { %1895 = vmatmul.mubr.msk.f32.gmra.mxu0 %vm437_vm5, %v422_v28  ;;  %v404_v63 = vadd.f32 %v373_v52, %v322_v57  ;;  %v694_v0 = vsel %vm196_vm2, %v691_v27, %v693_v56  ;;  %v96_v6 = vmul.f32 %v2173_v20, %v2403_v23  ;;  %v178_v8 = vmul.f32 %v2175_v21, %v2403_v23  ;;  %v2485_v57 = vld [vmem:[%s3149_s0 + $0x58] sm:$0xff] }
  0x2b   :  { %1897 = vmatprep.mubr.msk.f32.mxu0 %vm2066_vm0, %v2065_v1  ;;  %v241_v9 = vadd.f32 %v211_v61, %v159_v60  ;;  %1945 = vmatmul.mubr.msk.f32.gmra.mxu1 %vm437_vm5, %v694_v0  ;;  %v260_v11 = vmul.f32 %v2177_v22, %v2403_v23  ;;  %v342_v12 = vmul.f32 %v2190_v25, %v2403_v23  ;;  %v695_v4 = vrot.slane %v2371_v36, 2 }
  0x2c   :  { %v423_v16 = vadd.f32 %v2260_v13, %v404_v63  ;;  %1947 = vmatprep.mubr.msk.f32.mxu1 %vm2066_vm0, %v2065_v1  ;;  %v130_v17 = vrot.slane %v96_v6, 1  ;;  %v212_v24 = vrot.slane %v178_v8, 2  ;;  %v66_v29 = vmul.f32 %v2171_v19, %v2403_v23 }
  0x2d   :  { %v323_v38 = vadd.f32 %v293_v3, %v241_v9  ;;  %v294_v27 = vrot.slane %v260_v11, 3  ;;  %v376_v30 = vrot.slane %v342_v12, 4  ;;  %v696_v31 = vsel %vm196_vm2, %v693_v56, %v695_v4 }
  0x2e   :  { %1898 = vmatmul.mubr.msk.f32.gmra.mxu0 %vm437_vm5, %v423_v16  ;;  %v131_v7 = vsel %vm114_vm1, %v128_v53, %v130_v17  ;;  %v213_v32 = vsel %vm196_vm2, %v210_v2, %v212_v24  ;;  %v97_v5 = vmul.f32 %v2173_v20, %v2429_v14  ;;  %v179_v33 = vmul.f32 %v2175_v21, %v2429_v14 }
  0x2f   :  { %1900 = vmatprep.mubr.msk.f32.mxu0 %vm2066_vm0, %v2065_v1  ;;  %v405_v34 = vadd.f32 %v375_v62, %v323_v38  ;;  %v160_v35 = vadd.f32 %v131_v7, %v65_v59  ;;  %v295_v36 = vsel %vm278_vm3, %v292_v54, %v294_v27  ;;  %v377_v37 = vsel %vm360_vm4, %v374_v55, %v376_v30 }
  0x30   :  { %1948 = vmatmul.mubr.msk.f32.gmra.mxu1 %vm437_vm5, %v696_v31  ;;  %v132_v39 = vrot.slane %v97_v5, 1  ;;  %v214_v40 = vrot.slane %v179_v33, 2  ;;  %v261_v41 = vmul.f32 %v2177_v22, %v2429_v14  ;;  %v343_v26 = vmul.f32 %v2190_v25, %v2429_v14 }
  0x31   :  { %v424_v43 = vadd.f32 %v2260_v13, %v405_v34  ;;  %v242_v10 = vadd.f32 %v213_v32, %v160_v35  ;;  %1950 = vmatprep.mubr.msk.f32.mxu1 %vm2066_vm0, %v2065_v1  ;;  %v697_v18 = vrot.slane %v2403_v23, 2  ;;  %v67_v44 = vmul.f32 %v2171_v19, %v2429_v14 }
  0x32   :  { %v133_v45 = vsel %vm114_vm1, %v130_v17, %v132_v39  ;;  %v215_v46 = vsel %vm196_vm2, %v212_v24, %v214_v40  ;;  %v296_v15 = vrot.slane %v261_v41, 3  ;;  %v378_v47 = vrot.slane %v343_v26, 4 }
  0x33   :  { %1901 = vmatmul.mubr.msk.f32.gmra.mxu0 %vm437_vm5, %v424_v43  ;;  %v324_v48 = vadd.f32 %v295_v36, %v242_v10  ;;  %v161_v49 = vadd.f32 %v133_v45, %v66_v29  ;;  %v698_v50 = vsel %vm196_vm2, %v695_v4, %v697_v18  ;;  %v98_v51 = vmul.f32 %v2173_v20, %v2456_v42 }
  0x34   :  { %1903 = vmatprep.mubr.msk.f32.mxu0 %vm2066_vm0, %v2065_v1  ;;  %v297_v52 = vsel %vm278_vm3, %v294_v27, %v296_v15  ;;  %v379_v53 = vsel %vm360_vm4, %v376_v30, %v378_v47  ;;  %1951 = vmatmul.mubr.msk.f32.gmra.mxu1 %vm437_vm5, %v698_v50  ;;  %v180_v2 = vmul.f32 %v2175_v21, %v2456_v42  ;;  %v699_v54 = vrot.slane %v2429_v14, 2  ;;  %v2513_v27 = vld [vmem:[%s3149_s0 + $0x60] sm:$0xff] }
  0x35   :  { %v406_v55 = vadd.f32 %v377_v37, %v324_v48  ;;  %v243_v56 = vadd.f32 %v215_v46, %v161_v49  ;;  %1953 = vmatprep.mubr.msk.f32.mxu1 %vm2066_vm0, %v2065_v1  ;;  %v134_v23 = vrot.slane %v98_v51, 1  ;;  %v262_v28 = vmul.f32 %v2177_v22, %v2456_v42 }
  0x36   :  { %v216_v58 = vrot.slane %v180_v2, 2  ;;  %v344_v59 = vmul.f32 %v2190_v25, %v2456_v42  ;;  %v700_v60 = vsel %vm196_vm2, %v697_v18, %v699_v54  ;;  %v68_v61 = vmul.f32 %v2171_v19, %v2456_v42  ;;  %v2552_v2 = vld [vmem:[%s3149_s0 + $0x70] sm:$0xff] }
  0x37   :  { %v425_v3 = vadd.f32 %v2260_v13, %v406_v55  ;;  %v325_v62 = vadd.f32 %v297_v52, %v243_v56  ;;  %v135_v63 = vsel %vm114_vm1, %v132_v39, %v134_v23  ;;  %v298_v0 = vrot.slane %v262_v28, 3 }
  0x38   :  { %v162_v6 = vadd.f32 %v135_v63, %v67_v44  ;;  %v217_v8 = vsel %vm196_vm2, %v214_v40, %v216_v58  ;;  %v380_v9 = vrot.slane %v344_v59, 4  ;;  %1954 = vmatmul.mubr.msk.f32.gmra.mxu1 %vm437_vm5, %v700_v60  ;;  %v99_v11 = vmul.f32 %v2173_v20, %v2485_v57 }
  0x39   :  { %1904 = vmatmul.mubr.msk.f32.gmra.mxu0 %vm437_vm5, %v425_v3  ;;  %v407_v12 = vadd.f32 %v379_v53, %v325_v62  ;;  %v299_v4 = vsel %vm278_vm3, %v296_v15, %v298_v0  ;;  %1956 = vmatprep.mubr.msk.f32.mxu1 %vm2066_vm0, %v2065_v1  ;;  %v181_v14 = vmul.f32 %v2175_v21, %v2485_v57  ;;  %v701_v16 = vrot.slane %v2456_v42, 2  ;;  %v2547_v53 = vld [vmem:[%s3149_s0 + $0x68] sm:$0xff] }
  0x3a   :  { %1906 = vmatprep.mubr.msk.f32.mxu0 %vm2066_vm0, %v2065_v1  ;;  %v244_v17 = vadd.f32 %v217_v8, %v162_v6  ;;  %v381_v24 = vsel %vm360_vm4, %v378_v47, %v380_v9  ;;  %v136_v29 = vrot.slane %v99_v11, 1  ;;  %v263_v38 = vmul.f32 %v2177_v22, %v2485_v57 }
  0x3b   :  { %v426_v30 = vadd.f32 %v2260_v13, %v407_v12  ;;  %v218_v31 = vrot.slane %v181_v14, 2  ;;  %v345_v7 = vmul.f32 %v2190_v25, %v2485_v57  ;;  %v702_v32 = vsel %vm196_vm2, %v699_v54, %v701_v16 }
  0x3c   :  { %v326_v5 = vadd.f32 %v299_v4, %v244_v17  ;;  %v137_v33 = vsel %vm114_vm1, %v134_v23, %v136_v29  ;;  %v300_v34 = vrot.slane %v263_v38, 3  ;;  %1957 = vmatmul.mubr.msk.f32.gmra.mxu1 %vm437_vm5, %v702_v32  ;;  %v69_v35 = vmul.f32 %v2171_v19, %v2485_v57 }
  0x3d   :  { %1907 = vmatmul.mubr.msk.f32.gmra.mxu0 %vm437_vm5, %v426_v30  ;;  %v163_v36 = vadd.f32 %v137_v33, %v68_v61  ;;  %v219_v37 = vsel %vm196_vm2, %v216_v58, %v218_v31  ;;  %v382_v39 = vrot.slane %v345_v7, 4  ;;  %1959 = vmatprep.mubr.msk.f32.mxu1 %vm2066_vm0, %v2065_v1  ;;  %v100_v40 = vmul.f32 %v2173_v20, %v2513_v27  ;;  %v2593_v33 = vld [vmem:[%s3149_s0 + $0x78] sm:$0xff] }
  0x3e   :  { %1909 = vmatprep.mubr.msk.f32.mxu0 %vm2066_vm0, %v2065_v1  ;;  %v408_v41 = vadd.f32 %v381_v24, %v326_v5  ;;  %v301_v26 = vsel %vm278_vm3, %v298_v0, %v300_v34  ;;  %v182_v42 = vmul.f32 %v2175_v21, %v2513_v27  ;;  %v264_v43 = vmul.f32 %v2177_v22, %v2513_v27 }
  0x3f   :  { %v245_v10 = vadd.f32 %v219_v37, %v163_v36  ;;  %v383_v18 = vsel %vm360_vm4, %v380_v9, %v382_v39  ;;  %v138_v44 = vrot.slane %v100_v40, 1  ;;  %v346_v45 = vmul.f32 %v2190_v25, %v2513_v27 }
  0x40   :  { %v427_v46 = vadd.f32 %v2260_v13, %v408_v41  ;;  %v220_v15 = vrot.slane %v182_v42, 2  ;;  %v302_v47 = vrot.slane %v264_v43, 3  ;;  %v703_v48 = vrot.slane %v2485_v57, 2 }
  0x41   :  { %v327_v49 = vadd.f32 %v301_v26, %v245_v10  ;;  %v139_v50 = vsel %vm114_vm1, %v136_v29, %v138_v44  ;;  %v384_v51 = vrot.slane %v346_v45, 4  ;;  %v70_v52 = vmul.f32 %v2171_v19, %v2513_v27 }
  0x42   :  { %1910 = vmatmul.mubr.msk.f32.gmra.mxu0 %vm437_vm5, %v427_v46  ;;  %v164_v54 = vadd.f32 %v139_v50, %v69_v35  ;;  %v221_v55 = vsel %vm196_vm2, %v218_v31, %v220_v15  ;;  %v303_v56 = vsel %vm278_vm3, %v300_v34, %v302_v47  ;;  %v704_v23 = vsel %vm196_vm2, %v701_v16, %v703_v48 }
  0x43   :  { %1912 = vmatprep.mubr.msk.f32.mxu0 %vm2066_vm0, %v2065_v1  ;;  %v409_v28 = vadd.f32 %v383_v18, %v327_v49  ;;  %v385_v57 = vsel %vm360_vm4, %v382_v39, %v384_v51  ;;  %1960 = vmatmul.mubr.msk.f32.gmra.mxu1 %vm437_vm5, %v704_v23  ;;  %v165_v58 = vadd.f32 %v138_v44, %v70_v52  ;;  %v705_v59 = vrot.slane %v2513_v27, 2 }
  0x44   :  { %v246_v60 = vadd.f32 %v221_v55, %v164_v54  ;;  %1962 = vmatprep.mubr.msk.f32.mxu1 %vm2066_vm0, %v2065_v1  ;;  %v918_v61 = vmul.f32 %v2547_v53, %v2171_v19  ;;  %v944_v3 = vmul.f32 %v2547_v53, %v2173_v20  ;;  %v945_v62 = vmul.f32 %v2552_v2, %v2173_v20  ;;  %v2624_v55 = vld [vmem:[%s3149_s0 + $0x80] sm:$0xff] }
  0x45   :  { %v428_v63 = vadd.f32 %v2260_v13, %v409_v28  ;;  %v247_v0 = vadd.f32 %v220_v15, %v165_v58  ;;  %v706_v6 = vsel %vm196_vm2, %v703_v48, %v705_v59  ;;  %v1021_v8 = vmul.f32 %v2547_v53, %v2175_v21 }
  0x46   :  { %v328_v9 = vadd.f32 %v303_v56, %v246_v60  ;;  %v970_v11 = vrot.slane %v944_v3, 1  ;;  %v971_v12 = vrot.slane %v945_v62, 1  ;;  %v1022_v4 = vmul.f32 %v2552_v2, %v2175_v21 }
  0x47   :  { %1913 = vmatmul.mubr.msk.f32.gmra.mxu0 %vm437_vm5, %v428_v63  ;;  %v329_v14 = vadd.f32 %v302_v47, %v247_v0  ;;  %1963 = vmatmul.mubr.msk.f32.gmra.mxu1 %vm437_vm5, %v706_v6  ;;  %v1047_v16 = vrot.slane %v1021_v8, 2  ;;  %v1098_v17 = vmul.f32 %v2547_v53, %v2177_v22  ;;  %v1099_v24 = vmul.f32 %v2552_v2, %v2177_v22 }
  0x48   :  { %1915 = vmatprep.mubr.msk.f32.mxu0 %vm2066_vm0, %v2065_v1  ;;  %v410_v29 = vadd.f32 %v385_v57, %v328_v9  ;;  %1965 = vmatprep.mubr.msk.f32.mxu1 %vm2066_vm0, %v2065_v1  ;;  %v972_v38 = vsel %vm114_vm1, %v970_v11, %v971_v12  ;;  %v1048_v27 = vrot.slane %v1022_v4, 2  ;;  %v1175_v30 = vmul.f32 %v2547_v53, %v2190_v25  ;;  %v2637_v57 = vld [vmem:[%s3149_s0 + $0x88] sm:$0xff] }
  0x49   :  { %v411_v31 = vadd.f32 %v384_v51, %v329_v14  ;;  %v1008_v7 = vadd.f32 %v972_v38, %v918_v61  ;;  %v1124_v32 = vrot.slane %v1098_v17, 3  ;;  %v1125_v5 = vrot.slane %v1099_v24, 3 }
  0x4a   :  { %v429_v34 = vadd.f32 %v2260_v13, %v410_v29  ;;  %v1049_v35 = vsel %vm196_vm2, %v1047_v16, %v1048_v27  ;;  %v1176_v36 = vmul.f32 %v2552_v2, %v2190_v25  ;;  %v1201_v37 = vrot.slane %v1175_v30, 4 }
  0x4b   :  { %v430_v39 = vadd.f32 %v2260_v13, %v411_v31  ;;  %1966 = vmatmul.mubr.msk.f32.gmra.mxu1 %vm437_vm5, %v705_v59  ;;  %v1085_v40 = vadd.f32 %v1049_v35, %v1008_v7  ;;  %v1126_v41 = vsel %vm278_vm3, %v1124_v32, %v1125_v5  ;;  %v919_v26 = vmul.f32 %v2552_v2, %v2171_v19  ;;  %v2677_v35 = vld [vmem:[%s3149_s0 + $0x90] sm:$0xff] }
  0x4c   :  { %1916 = vmatmul.mubr.msk.f32.gmra.mxu0 %vm437_vm5, %v429_v34  ;;  %v1202_v42 = vrot.slane %v1176_v36, 4  ;;  %2023 = vmatprep.mubr.msk.f32.mxu1 %vm2066_vm0, %v2065_v1  ;;  %v946_v43 = vmul.f32 %v2593_v33, %v2173_v20  ;;  %v1023_v10 = vmul.f32 %v2593_v33, %v2175_v21  ;;  %v1100_v18 = vmul.f32 %v2593_v33, %v2177_v22 }
  0x4d   :  { %1918 = vmatprep.mubr.msk.f32.mxu0 %vm2066_vm0, %v2065_v1  ;;  %v1162_v44 = vadd.f32 %v1126_v41, %v1085_v40  ;;  %v1177_v45 = vmul.f32 %v2593_v33, %v2190_v25  ;;  %v1497_v46 = vrot.slane %v2547_v53, 2  ;;  %v1498_v15 = vrot.slane %v2552_v2, 2 }
  0x4e   :  { %v1203_v47 = vsel %vm360_vm4, %v1201_v37, %v1202_v42  ;;  %v973_v48 = vrot.slane %v946_v43, 1  ;;  %v1050_v49 = vrot.slane %v1023_v10, 2  ;;  %v1127_v50 = vrot.slane %v1100_v18, 3 }
  0x4f   :  { %v1239_v51 = vadd.f32 %v1203_v47, %v1162_v44  ;;  %v1204_v52 = vrot.slane %v1177_v45, 4  ;;  %v1499_v54 = vsel %vm196_vm2, %v1497_v46, %v1498_v15  ;;  %v920_v56 = vmul.f32 %v2593_v33, %v2171_v19 }
  0x50   :  { %1919 = vmatmul.mubr.msk.f32.gmra.mxu0 %vm437_vm5, %v430_v39  ;;  %v974_v53 = vsel %vm114_vm1, %v971_v12, %v973_v48  ;;  %v1051_v2 = vsel %vm196_vm2, %v1048_v27, %v1050_v49  ;;  %v1128_v23 = vsel %vm278_vm3, %v1125_v5, %v1127_v50  ;;  %2024 = vmatmul.mubr.msk.f32.vlgmr.msra.gmra.mxu1 %vm437_vm5, %v1499_v54  ;;  %v1500_v28 = vrot.slane %v2593_v33, 2 }
  0x51   :  { %1976 = vmatprep.mubr.msk.f32.mxu0 %vm2066_vm0, %v2065_v1  ;;  %v1252_v58 = vadd.f32 %v2260_v13, %v1239_v51  ;;  %v1009_v59 = vadd.f32 %v974_v53, %v919_v26  ;;  %v1205_v60 = vsel %vm360_vm4, %v1202_v42, %v1204_v52  ;;  %2026 = vmatprep.mubr.msk.f32.mxu1 %vm2066_vm0, %v2065_v1  ;;  %v1502_v61 = vrot.slane %v2624_v55, 2 }
  0x52   :  { %v947_v3 = vmul.f32 %v2624_v55, %v2173_v20  ;;  %v1024_v62 = vmul.f32 %v2624_v55, %v2175_v21  ;;  %v1101_v63 = vmul.f32 %v2624_v55, %v2177_v22  ;;  %v1178_v0 = vmul.f32 %v2624_v55, %v2190_v25 }
  0x53   :  { %v1086_v6 = vadd.f32 %v1051_v2, %v1009_v59  ;;  %v1501_v8 = vsel %vm196_vm2, %v1498_v15, %v1500_v28  ;;  %v921_v9 = vmul.f32 %v2624_v55, %v2171_v19  ;;  %v948_v11 = vmul.f32 %v2637_v57, %v2173_v20  ;;  %v2706_v2 = vld [vmem:[%s3149_s0 + $0x98] sm:$0xff] }
  0x54   :  { %1977 = vmatmul.mubr.msk.f32.vlgmr.msra.gmra.mxu0 %vm437_vm5, %v1252_v58  ;;  %v975_v12 = vrot.slane %v947_v3, 1  ;;  %v1052_v4 = vrot.slane %v1024_v62, 2  ;;  %v1129_v14 = vrot.slane %v1101_v63, 3  ;;  %v1206_v16 = vrot.slane %v1178_v0, 4  ;;  %2027 = vmatmul.mubr.msk.f32.gmra.mxu1 %vm437_vm5, %v1501_v8  ;;  %v2719_v63 = vld [vmem:[%s3149_s0 + $0xa0] sm:$0xff] }
  0x55   :  { %1979 = vmatprep.mubr.msk.f32.mxu0 %vm2066_vm0, %v2065_v1  ;;  %v1163_v17 = vadd.f32 %v1128_v23, %v1086_v6  ;;  %2029 = vmatprep.mubr.msk.f32.mxu1 %vm2066_vm0, %v2065_v1  ;;  %v977_v24 = vrot.slane %v948_v11, 1  ;;  %v1025_v29 = vmul.f32 %v2637_v57, %v2175_v21  ;;  %v1102_v38 = vmul.f32 %v2637_v57, %v2177_v22 }
  0x56   :  { %v976_v27 = vsel %vm114_vm1, %v973_v48, %v975_v12  ;;  %v1053_v30 = vsel %vm196_vm2, %v1050_v49, %v1052_v4  ;;  %v1130_v31 = vsel %vm278_vm3, %v1127_v50, %v1129_v14  ;;  %v1207_v7 = vsel %vm360_vm4, %v1204_v52, %v1206_v16 }
  0x57   :  { %v1240_v32 = vadd.f32 %v1205_v60, %v1163_v17  ;;  %v1010_v5 = vadd.f32 %v976_v27, %v920_v56  ;;  %v978_v33 = vsel %vm114_vm1, %v975_v12, %v977_v24  ;;  %v1054_v34 = vrot.slane %v1025_v29, 2 }
  0x58   :  { %v1011_v36 = vadd.f32 %v978_v33, %v921_v9  ;;  %v1131_v37 = vrot.slane %v1102_v38, 3  ;;  %v1179_v39 = vmul.f32 %v2637_v57, %v2190_v25  ;;  %v1503_v40 = vsel %vm196_vm2, %v1500_v28, %v1502_v61 }
  0x59   :  { %v1253_v41 = vadd.f32 %v2260_v13, %v1240_v32  ;;  %v1087_v26 = vadd.f32 %v1053_v30, %v1010_v5  ;;  %v1055_v42 = vsel %vm196_vm2, %v1052_v4, %v1054_v34  ;;  %2030 = vmatmul.mubr.msk.f32.gmra.mxu1 %vm437_vm5, %v1503_v40  ;;  %v922_v43 = vmul.f32 %v2637_v57, %v2171_v19 }
  0x5a   :  { %v1088_v10 = vadd.f32 %v1055_v42, %v1011_v36  ;;  %v1132_v18 = vsel %vm278_vm3, %v1129_v14, %v1131_v37  ;;  %v1208_v44 = vrot.slane %v1179_v39, 4  ;;  %2032 = vmatprep.mubr.msk.f32.mxu1 %vm2066_vm0, %v2065_v1  ;;  %v949_v45 = vmul.f32 %v2677_v35, %v2173_v20 }
  0x5b   :  { %1980 = vmatmul.mubr.msk.f32.gmra.mxu0 %vm437_vm5, %v1253_v41  ;;  %v1164_v46 = vadd.f32 %v1130_v31, %v1087_v26  ;;  %v1026_v15 = vmul.f32 %v2677_v35, %v2175_v21  ;;  %v1103_v47 = vmul.f32 %v2677_v35, %v2177_v22  ;;  %v1180_v48 = vmul.f32 %v2677_v35, %v2190_v25  ;;  %v2762_v26 = vld [vmem:[%s3149_s0 + $0xa8] sm:$0xff] }
  0x5c   :  { %1982 = vmatprep.mubr.msk.f32.mxu0 %vm2066_vm0, %v2065_v1  ;;  %v1165_v49 = vadd.f32 %v1132_v18, %v1088_v10  ;;  %v1209_v50 = vsel %vm360_vm4, %v1206_v16, %v1208_v44  ;;  %v979_v51 = vrot.slane %v949_v45, 1  ;;  %v1504_v52 = vrot.slane %v2637_v57, 2 }
  0x5d   :  { %v1241_v54 = vadd.f32 %v1207_v7, %v1164_v46  ;;  %v1056_v55 = vrot.slane %v1026_v15, 2  ;;  %v1133_v56 = vrot.slane %v1103_v47, 3  ;;  %v1210_v53 = vrot.slane %v1180_v48, 4 }
  0x5e   :  { %v1242_v23 = vadd.f32 %v1209_v50, %v1165_v49  ;;  %v980_v28 = vsel %vm114_vm1, %v977_v24, %v979_v51  ;;  %v1505_v58 = vsel %vm196_vm2, %v1502_v61, %v1504_v52  ;;  %v923_v59 = vmul.f32 %v2677_v35, %v2171_v19 }
  0x5f   :  { %v1254_v60 = vadd.f32 %v2260_v13, %v1241_v54  ;;  %v1012_v57 = vadd.f32 %v980_v28, %v922_v43  ;;  %v1057_v3 = vsel %vm196_vm2, %v1054_v34, %v1056_v55  ;;  %v1134_v62 = vsel %vm278_vm3, %v1131_v37, %v1133_v56  ;;  %2033 = vmatmul.mubr.msk.f32.gmra.mxu1 %vm437_vm5, %v1505_v58  ;;  %v2788_v28 = vld [vmem:[%s3149_s0 + $0xb0] sm:$0xff] }
  0x60   :  { %v1255_v0 = vadd.f32 %v2260_v13, %v1242_v23  ;;  %v1211_v61 = vsel %vm360_vm4, %v1208_v44, %v1210_v53  ;;  %2035 = vmatprep.mubr.msk.f32.mxu1 %vm2066_vm0, %v2065_v1  ;;  %v950_v6 = vmul.f32 %v2706_v2, %v2173_v20  ;;  %v1027_v8 = vmul.f32 %v2706_v2, %v2175_v21 }
  0x61   :  { %1983 = vmatmul.mubr.msk.f32.gmra.mxu0 %vm437_vm5, %v1254_v60  ;;  %v1089_v9 = vadd.f32 %v1057_v3, %v1012_v57  ;;  %v1104_v11 = vmul.f32 %v2706_v2, %v2177_v22  ;;  %v1181_v12 = vmul.f32 %v2706_v2, %v2190_v25  ;;  %v1506_v4 = vrot.slane %v2677_v35, 2 }
  0x62   :  { %1985 = vmatprep.mubr.msk.f32.mxu0 %vm2066_vm0, %v2065_v1  ;;  %v981_v14 = vrot.slane %v950_v6, 1  ;;  %v1058_v16 = vrot.slane %v1027_v8, 2  ;;  %v924_v17 = vmul.f32 %v2706_v2, %v2171_v19  ;;  %v951_v24 = vmul.f32 %v2719_v63, %v2173_v20 }
  0x63   :  { %v1166_v29 = vadd.f32 %v1134_v62, %v1089_v9  ;;  %v1135_v38 = vrot.slane %v1104_v11, 3  ;;  %v1212_v27 = vrot.slane %v1181_v12, 4  ;;  %v1507_v30 = vsel %vm196_vm2, %v1504_v52, %v1506_v4 }
  0x64   :  { %v982_v31 = vsel %vm114_vm1, %v979_v51, %v981_v14  ;;  %v1059_v7 = vsel %vm196_vm2, %v1056_v55, %v1058_v16  ;;  %2036 = vmatmul.mubr.msk.f32.gmra.mxu1 %vm437_vm5, %v1507_v30  ;;  %v983_v32 = vrot.slane %v951_v24, 1  ;;  %v1028_v5 = vmul.f32 %v2719_v63, %v2175_v21 }
  0x65   :  { %1986 = vmatmul.mubr.msk.f32.gmra.mxu0 %vm437_vm5, %v1255_v0  ;;  %v1243_v33 = vadd.f32 %v1211_v61, %v1166_v29  ;;  %v1013_v34 = vadd.f32 %v982_v31, %v923_v59  ;;  %v1136_v35 = vsel %vm278_vm3, %v1133_v56, %v1135_v38  ;;  %v1213_v36 = vsel %vm360_vm4, %v1210_v53, %v1212_v27 }
  0x66   :  { %1988 = vmatprep.mubr.msk.f32.mxu0 %vm2066_vm0, %v2065_v1  ;;  %2038 = vmatprep.mubr.msk.f32.mxu1 %vm2066_vm0, %v2065_v1  ;;  %v984_v37 = vsel %vm114_vm1, %v981_v14, %v983_v32  ;;  %v1060_v39 = vrot.slane %v1028_v5, 2  ;;  %v1105_v40 = vmul.f32 %v2719_v63, %v2177_v22  ;;  %v1182_v41 = vmul.f32 %v2719_v63, %v2190_v25 }
  0x67   :  { %v1256_v42 = vadd.f32 %v2260_v13, %v1243_v33  ;;  %v1090_v43 = vadd.f32 %v1059_v7, %v1013_v34  ;;  %v1014_v10 = vadd.f32 %v984_v37, %v924_v17  ;;  %v1508_v18 = vrot.slane %v2706_v2, 2 }
  0x68   :  { %v1061_v44 = vsel %vm196_vm2, %v1058_v16, %v1060_v39  ;;  %v1137_v45 = vrot.slane %v1105_v40, 3  ;;  %v1214_v46 = vrot.slane %v1182_v41, 4  ;;  %v925_v15 = vmul.f32 %v2719_v63, %v2171_v19  ;;  %v2812_v16 = vld [vmem:[%s3149_s0 + $0xb8] sm:$0xff] }
  0x69   :  { %1989 = vmatmul.mubr.msk.f32.gmra.mxu0 %vm437_vm5, %v1256_v42  ;;  %v1167_v47 = vadd.f32 %v1136_v35, %v1090_v43  ;;  %v1091_v48 = vadd.f32 %v1061_v44, %v1014_v10  ;;  %v1509_v49 = vsel %vm196_vm2, %v1506_v4, %v1508_v18  ;;  %v952_v50 = vmul.f32 %v2762_v26, %v2173_v20  ;;  %v1764_v44 = vld [vmem:[%s3149_s0 + $0xc0] sm:$0xff] }
  0x6a   :  { %1991 = vmatprep.mubr.msk.f32.mxu0 %vm2066_vm0, %v2065_v1  ;;  %v1138_v51 = vsel %vm278_vm3, %v1135_v38, %v1137_v45  ;;  %v1215_v52 = vsel %vm360_vm4, %v1212_v27, %v1214_v46  ;;  %2039 = vmatmul.mubr.msk.f32.gmra.mxu1 %vm437_vm5, %v1509_v49  ;;  %v1029_v54 = vmul.f32 %v2762_v26, %v2175_v21  ;;  %v1510_v55 = vrot.slane %v2719_v63, 2 }
  0x6b   :  { %v1244_v56 = vadd.f32 %v1213_v36, %v1167_v47  ;;  %v1168_v53 = vadd.f32 %v1138_v51, %v1091_v48  ;;  %2041 = vmatprep.mubr.msk.f32.mxu1 %vm2066_vm0, %v2065_v1  ;;  %v985_v2 = vrot.slane %v952_v50, 1  ;;  %v1106_v23 = vmul.f32 %v2762_v26, %v2177_v22 }
  0x6c   :  { %v1062_v58 = vrot.slane %v1029_v54, 2  ;;  %v1183_v59 = vmul.f32 %v2762_v26, %v2190_v25  ;;  %v1511_v60 = vsel %vm196_vm2, %v1508_v18, %v1510_v55  ;;  %v926_v57 = vmul.f32 %v2762_v26, %v2171_v19 }
  0x6d   :  { %v1257_v3 = vadd.f32 %v2260_v13, %v1244_v56  ;;  %v1245_v62 = vadd.f32 %v1215_v52, %v1168_v53  ;;  %v986_v63 = vsel %vm114_vm1, %v983_v32, %v985_v2  ;;  %v1139_v0 = vrot.slane %v1106_v23, 3 }
  0x6e   :  { %v1015_v61 = vadd.f32 %v986_v63, %v925_v15  ;;  %v1063_v6 = vsel %vm196_vm2, %v1060_v39, %v1062_v58  ;;  %v1216_v8 = vrot.slane %v1183_v59, 4  ;;  %2042 = vmatmul.mubr.msk.f32.gmra.mxu1 %vm437_vm5, %v1511_v60  ;;  %v953_v9 = vmul.f32 %v2788_v28, %v2173_v20 }
  0x6f   :  { %1992 = vmatmul.mubr.msk.f32.gmra.mxu0 %vm437_vm5, %v1257_v3  ;;  %v1258_v11 = vadd.f32 %v2260_v13, %v1245_v62  ;;  %v1140_v12 = vsel %vm278_vm3, %v1137_v45, %v1139_v0  ;;  %2044 = vmatprep.mubr.msk.f32.mxu1 %vm2066_vm0, %v2065_v1  ;;  %v1030_v4 = vmul.f32 %v2788_v28, %v2175_v21  ;;  %v1512_v14 = vrot.slane %v2762_v26, 2  ;;  %v2848_v45 = vld [vmem:[%s3150_s2] ss:$0 sm:$0xff]  ;;  %v1765_v62 = vld [vmem:[%s3149_s0 + $0xc8] sm:$0xff] }
  0x70   :  { %1994 = vmatprep.mubr.msk.f32.mxu0 %vm2066_vm0, %v2065_v1  ;;  %v1092_v17 = vadd.f32 %v1063_v6, %v1015_v61  ;;  %v1217_v13 = vsel %vm360_vm4, %v1214_v46, %v1216_v8  ;;  %v987_v24 = vrot.slane %v953_v9, 1  ;;  %v1107_v29 = vmul.f32 %v2788_v28, %v2177_v22 }
  0x71   :  { %v1064_v38 = vrot.slane %v1030_v4, 2  ;;  %v1184_v27 = vmul.f32 %v2788_v28, %v2190_v25  ;;  %v1513_v30 = vsel %vm196_vm2, %v1510_v55, %v1512_v14  ;;  %v927_v31 = vmul.f32 %v2788_v28, %v2171_v19 }
  0x72   :  { %v1169_v7 = vadd.f32 %v1140_v12, %v1092_v17  ;;  %v988_v32 = vsel %vm114_vm1, %v985_v2, %v987_v24  ;;  %v1141_v5 = vrot.slane %v1107_v29, 3  ;;  %2045 = vmatmul.mubr.msk.f32.gmra.mxu1 %vm437_vm5, %v1513_v30  ;;  %v954_v33 = vmul.f32 %v2812_v16, %v2173_v20 }
  0x73   :  { %1995 = vmatmul.mubr.msk.f32.gmra.mxu0 %vm437_vm5, %v1258_v11  ;;  %v1016_v34 = vadd.f32 %v988_v32, %v926_v57  ;;  %v1065_v35 = vsel %vm196_vm2, %v1062_v58, %v1064_v38  ;;  %v1218_v36 = vrot.slane %v1184_v27, 4  ;;  %2047 = vmatprep.mubr.msk.f32.mxu1 %vm2066_vm0, %v2065_v1  ;;  %v1031_v37 = vmul.f32 %v2812_v16, %v2175_v21 }
  0x74   :  { %1997 = vmatprep.mubr.msk.f32.mxu0 %vm2066_vm0, %v2065_v1  ;;  %v1246_v39 = vadd.f32 %v1217_v13, %v1169_v7  ;;  %v1142_v40 = vsel %vm278_vm3, %v1139_v0, %v1141_v5  ;;  %v989_v41 = vrot.slane %v954_v33, 1  ;;  %v1108_v26 = vmul.f32 %v2812_v16, %v2177_v22 }
  0x75   :  { %v1093_v42 = vadd.f32 %v1065_v35, %v1016_v34  ;;  %v1219_v43 = vsel %vm360_vm4, %v1216_v8, %v1218_v36  ;;  %v1066_v10 = vrot.slane %v1031_v37, 2  ;;  %v1185_v18 = vmul.f32 %v2812_v16, %v2190_v25 }
  0x76   :  { %v1259_v46 = vadd.f32 %v2848_v45, %v1246_v39  ;;  %v990_v15 = vsel %vm114_vm1, %v987_v24, %v989_v41  ;;  %v1143_v47 = vrot.slane %v1108_v26, 3  ;;  %v1514_v48 = vrot.slane %v2788_v28, 2 }
  0x77   :  { %v1170_v49 = vadd.f32 %v1142_v40, %v1093_v42  ;;  %v1017_v50 = vadd.f32 %v990_v15, %v927_v31  ;;  %v1067_v51 = vsel %vm196_vm2, %v1064_v38, %v1066_v10  ;;  %v1220_v52 = vrot.slane %v1185_v18, 4 }
  0x78   :  { %1998 = vmatmul.mubr.msk.f32.gmra.mxu0 %vm437_vm5, %v1259_v46  ;;  %v1144_v54 = vsel %vm278_vm3, %v1141_v5, %v1143_v47  ;;  %v1515_v55 = vsel %vm196_vm2, %v1512_v14, %v1514_v48  ;;  %v928_v56 = vmul.f32 %v2812_v16, %v2171_v19  ;;  %v955_v53 = vmul.f32 %v1764_v44, %v2173_v20 }
  0x79   :  { %2000 = vmatprep.mubr.msk.f32.mxu0 %vm2066_vm0, %v2065_v1  ;;  %v1247_v2 = vadd.f32 %v1219_v43, %v1170_v49  ;;  %v1094_v23 = vadd.f32 %v1067_v51, %v1017_v50  ;;  %v1221_v28 = vsel %vm360_vm4, %v1218_v36, %v1220_v52  ;;  %2048 = vmatmul.mubr.msk.f32.gmra.mxu1 %vm437_vm5, %v1515_v55  ;;  %v1516_v58 = vrot.slane %v2812_v16, 2  ;;  %v2921_v51 = vld [vmem:[%s3151_s4] ss:$0 sm:$0xff] }
  0x7a   :  { %2050 = vmatprep.mubr.msk.f32.mxu1 %vm2066_vm0, %v2065_v1  ;;  %v991_v59 = vrot.slane %v955_v53, 1  ;;  %v1032_v60 = vmul.f32 %v1764_v44, %v2175_v21  ;;  %v1109_v57 = vmul.f32 %v1764_v44, %v2177_v22  ;;  %v1186_v3 = vmul.f32 %v1764_v44, %v2190_v25  ;;  %v2932_v53 = vld [vmem:[%s3153_s6] ss:$0 sm:$0xff] }
  0x7b   :  { %v1260_v63 = vadd.f32 %v2848_v45, %v1247_v2  ;;  %v1171_v0 = vadd.f32 %v1144_v54, %v1094_v23  ;;  %v1517_v61 = vsel %vm196_vm2, %v1514_v48, %v1516_v58  ;;  %v929_v6 = vmul.f32 %v1764_v44, %v2171_v19 }
  0x7c   :  { %v992_v8 = vsel %vm114_vm1, %v989_v41, %v991_v59  ;;  %v1068_v9 = vrot.slane %v1032_v60, 2  ;;  %v1145_v11 = vrot.slane %v1109_v57, 3  ;;  %v1222_v12 = vrot.slane %v1186_v3, 4 }
  0x7d   :  { %2001 = vmatmul.mubr.msk.f32.gmra.mxu0 %vm437_vm5, %v1260_v63  ;;  %v1248_v4 = vadd.f32 %v1221_v28, %v1171_v0  ;;  %v1018_v14 = vadd.f32 %v992_v8, %v928_v56  ;;  %2051 = vmatmul.mubr.msk.f32.gmra.mxu1 %vm437_vm5, %v1517_v61  ;;  %v956_v16 = vmul.f32 %v1765_v62, %v2173_v20  ;;  %v1518_v17 = vrot.slane %v1764_v44, 2 }
  0x7e   :  { %2003 = vmatprep.mubr.msk.f32.mxu0 %vm2066_vm0, %v2065_v1  ;;  %v1069_v13 = vsel %vm196_vm2, %v1066_v10, %v1068_v9  ;;  %v1146_v24 = vsel %vm278_vm3, %v1143_v47, %v1145_v11  ;;  %v1223_v29 = vsel %vm360_vm4, %v1220_v52, %v1222_v12  ;;  %2053 = vmatprep.mubr.msk.f32.mxu1 %vm2066_vm0, %v2065_v1  ;;  %v1520_v38 = vrot.slane %v1765_v62, 2 }
  0x7f   :  { %v1261_v27 = vadd.f32 %v2848_v45, %v1248_v4  ;;  %v1095_v30 = vadd.f32 %v1069_v13, %v1018_v14  ;;  %v993_v31 = vrot.slane %v956_v16, 1  ;;  %v1033_v20 = vmul.f32 %v1765_v62, %v2175_v21 }
  0x80   :  { %v1110_v7 = vmul.f32 %v1765_v62, %v2177_v22  ;;  %v1187_v32 = vmul.f32 %v1765_v62, %v2190_v25  ;;  %v1519_v5 = vsel %vm196_vm2, %v1516_v58, %v1518_v17  ;;  %v930_v33 = vmul.f32 %v1765_v62, %v2171_v19  ;;  %v2937_v58 = vld [vmem:[%s3154_s8] ss:$0 sm:$0xff] }
  0x81   :  { %2004 = vmatmul.mubr.msk.f32.gmra.mxu0 %vm437_vm5, %v1261_v27  ;;  %v1172_v34 = vadd.f32 %v1146_v24, %v1095_v30  ;;  %v994_v35 = vsel %vm114_vm1, %v991_v59, %v993_v31  ;;  %v1070_v36 = vrot.slane %v1033_v20, 2  ;;  %2054 = vmatmul.mubr.msk.f32.gmra.mxu1 %vm437_vm5, %v1519_v5  ;;  %v1521_v37 = vsel %vm196_vm2, %v1518_v17, %v1520_v38 }
  0x82   :  { %2006 = vmatprep.mubr.msk.f32.mxu0 %vm2066_vm0, %v2065_v1  ;;  %v1019_v21 = vadd.f32 %v994_v35, %v929_v6  ;;  %v1147_v22 = vrot.slane %v1110_v7, 3  ;;  %v1224_v25 = vrot.slane %v1187_v32, 4  ;;  %2056 = vmatprep.mubr.msk.f32.mxu1 %vm2066_vm0, %v2065_v1  ;;  %v1020_v19 = vadd.f32 %v993_v31, %v930_v33 }
  0x83   :  { %v1249_v39 = vadd.f32 %v1223_v29, %v1172_v34  ;;  %v1071_v40 = vsel %vm196_vm2, %v1068_v9, %v1070_v36 }
  0x84   :  { %v1096_v41 = vadd.f32 %v1071_v40, %v1019_v21  ;;  %v1148_v26 = vsel %vm278_vm3, %v1145_v11, %v1147_v22  ;;  %v1097_v42 = vadd.f32 %v1070_v36, %v1020_v19  ;;  %v1225_v10 = vsel %vm360_vm4, %v1222_v12, %v1224_v25 }
  0x85   :  { %v1262_v43 = vadd.f32 %v2848_v45, %v1249_v39  ;;  %2057 = vmatmul.mubr.msk.f32.gmra.mxu1 %vm437_vm5, %v1521_v37 }
  0x86   :  { %v1173_v18 = vadd.f32 %v1148_v26, %v1096_v41  ;;  %v1174_v44 = vadd.f32 %v1147_v22, %v1097_v42  ;;  %2059 = vmatprep.mubr.msk.f32.mxu1 %vm2066_vm0, %v2065_v1 }
  0x87   :  { %2007 = vmatmul.mubr.msk.f32.gmra.mxu0 %vm437_vm5, %v1262_v43 }
  0x88   :  { %2009 = vmatprep.mubr.msk.f32.mxu0 %vm2066_vm0, %v2065_v1  ;;  %v1250_v46 = vadd.f32 %v1225_v10, %v1173_v18  ;;  %v1251_v15 = vadd.f32 %v1224_v25, %v1174_v44 }
  0x89   :  { %2060 = vmatmul.mubr.msk.f32.gmra.mxu1 %vm437_vm5, %v1520_v38 }
  0x8a   :  { %v1263_v47 = vadd.f32 %v2848_v45, %v1250_v46  ;;  %v1264_v48 = vadd.f32 %v2848_v45, %v1251_v15  ;;  %v2927_v45 = vld [vmem:[%s3152_s7] ss:$0 sm:$0xff] }
  0x8c   :  { %2010 = vmatmul.mubr.msk.f32.gmra.mxu0 %vm437_vm5, %v1263_v47 }
  0x8d   :  { %2012 = vmatprep.mubr.msk.f32.mxu0 %vm2066_vm0, %v2065_v1 }
  0x90   :  { %2013 = vmatmul.mubr.msk.f32.gmra.mxu0 %vm437_vm5, %v1264_v48 }
  0xcd   :  { %v799_v49 = vpop.f32.mrf.mxu1 }
  0xce   :  { %v800_v3 = vadd.f32 %v2932_v53, %v799_v49 }
  0xcf   :  { %v1931_v50 = vpop.f32.mrf.mxu1 }
  0xd5   :  { %v804_v52 = vpop.f32.mrf.mxu1 }
  0xd6   :  { %v805_v12 = vadd.f32 %v2932_v53, %v804_v52 }
  0xd7   :  { %v543_v54 = vpop.f32.mrf.mxu0  ;;  %v1934_v55 = vpop.f32.mrf.mxu1 }
  0xd8   :  { %v544_v56 = vadd.f32 %v2921_v51, %v543_v54 }
  0xd9   :  { %v1884_v1 = vpop.f32.mrf.mxu0  ;;  %v809_v2 = vpop.f32.mrf.mxu1 }
  0xda   :  { %v607_v23 = vmax.f32 %v544_v56, 0.0  ;;  %v810_v27 = vadd.f32 %v2932_v53, %v809_v2 }
  0xdb   :  { %v548_v28 = vpop.f32.mrf.mxu0  ;;  %v1937_v59 = vpop.f32.mrf.mxu1 }
  0xdc   :  { %v626_v60 = vmul.f32 %v2927_v45, %v607_v23  ;;  %v549_v57 = vadd.f32 %v2921_v51, %v548_v28 }
  0xdd   :  { %v1887_v62 = vpop.f32.mrf.mxu0 }
  0xde   :  { %v608_v63 = vmax.f32 %v549_v57, 0.0  ;;  %v645_v0 = vadd.f32 %v2937_v58, %v626_v60  ;;  %v814_v61 = vpop.f32.mrf.mxu1 }
  0xdf   :  { %v553_v6 = vpop.f32.mrf.mxu0  ;;  %v815_v21 = vadd.f32 %v2932_v53, %v814_v61 }
  0xe0   :  { %v627_v8 = vmul.f32 %v2927_v45, %v608_v63  ;;  %v863_v9 = vadd.f32 %v800_v3, %v645_v0  ;;  %v554_v11 = vadd.f32 %v2921_v51, %v553_v6  ;;  %v1940_v4 = vpop.f32.mrf.mxu1 }
  0xe1   :  { %v1890_v14 = vpop.f32.mrf.mxu0 }
  0xe2   :  { %v876_v16 = vmax.f32 %v863_v9, 0.0  ;;  %v609_v17 = vmax.f32 %v554_v11, 0.0  ;;  %v646_v13 = vadd.f32 %v2937_v58, %v627_v8 }
  0xe3   :  { %v819_v24 = vpop.f32.mrf.mxu1 }
  0xe4   :  { %890 = vst.msk [vmem:[%s3155_s9] sm:$0xff] %vm889_vm6, %v876_v16  ;;  %v628_v29 = vmul.f32 %v2927_v45, %v609_v17  ;;  %v864_v38 = vadd.f32 %v805_v12, %v646_v13  ;;  %v820_v18 = vadd.f32 %v2932_v53, %v819_v24 }
  0xe5   :  { %v558_v30 = vpop.f32.mrf.mxu0  ;;  %v1943_v31 = vpop.f32.mrf.mxu1 }
  0xe6   :  { %v877_v20 = vmax.f32 %v864_v38, 0.0  ;;  %v559_v7 = vadd.f32 %v2921_v51, %v558_v30  ;;  %v647_v32 = vadd.f32 %v2937_v58, %v628_v29 }
  0xe7   :  { %v1893_v5 = vpop.f32.mrf.mxu0 }
  0xe8   :  { %891 = vst.msk [vmem:[%s3155_s9 + $0x8] sm:$0xff] %vm889_vm6, %v877_v20  ;;  %v610_v33 = vmax.f32 %v559_v7, 0.0  ;;  %v865_v34 = vadd.f32 %v810_v27, %v647_v32 }
  0xea   :  { %v629_v35 = vmul.f32 %v2927_v45, %v610_v33  ;;  %v878_v36 = vmax.f32 %v865_v34, 0.0  ;;  %v563_v37 = vpop.f32.mrf.mxu0 }
  0xeb   :  { %v564_v22 = vadd.f32 %v2921_v51, %v563_v37  ;;  %v824_v25 = vpop.f32.mrf.mxu1 }
  0xec   :  { %892 = vst.msk [vmem:[%s3155_s9 + $0x10] sm:$0xff] %vm889_vm6, %v878_v36  ;;  %v648_v19 = vadd.f32 %v2937_v58, %v629_v35  ;;  %v1896_v39 = vpop.f32.mrf.mxu0  ;;  %v825_v55 = vadd.f32 %v2932_v53, %v824_v25 }
  0xed   :  { %v611_v40 = vmax.f32 %v564_v22, 0.0  ;;  %v1946_v41 = vpop.f32.mrf.mxu1 }
  0xee   :  { %v866_v26 = vadd.f32 %v815_v21, %v648_v19  ;;  %v568_v42 = vpop.f32.mrf.mxu0 }
  0xef   :  { %v630_v43 = vmul.f32 %v2927_v45, %v611_v40  ;;  %v569_v10 = vadd.f32 %v2921_v51, %v568_v42 }
  0xf0   :  { %v879_v44 = vmax.f32 %v866_v26, 0.0  ;;  %v1899_v46 = vpop.f32.mrf.mxu0  ;;  %v829_v15 = vpop.f32.mrf.mxu1 }
  0xf1   :  { %v612_v47 = vmax.f32 %v569_v10, 0.0  ;;  %v649_v48 = vadd.f32 %v2937_v58, %v630_v43  ;;  %v830_v62 = vadd.f32 %v2932_v53, %v829_v15 }
  0xf2   :  { %893 = vst.msk [vmem:[%s3155_s9 + $0x18] sm:$0xff] %vm889_vm6, %v879_v44  ;;  %v1949_v49 = vpop.f32.mrf.mxu1 }
  0xf3   :  { %v631_v50 = vmul.f32 %v2927_v45, %v612_v47  ;;  %v867_v52 = vadd.f32 %v820_v18, %v649_v48  ;;  %v573_v54 = vpop.f32.mrf.mxu0 }
  0xf4   :  { %v574_v56 = vadd.f32 %v2921_v51, %v573_v54  ;;  %v834_v1 = vpop.f32.mrf.mxu1 }
  0xf5   :  { %v880_v2 = vmax.f32 %v867_v52, 0.0  ;;  %v650_v23 = vadd.f32 %v2937_v58, %v631_v50  ;;  %v1902_v28 = vpop.f32.mrf.mxu0  ;;  %v835_v29 = vadd.f32 %v2932_v53, %v834_v1 }
  0xf6   :  { %v613_v59 = vmax.f32 %v574_v56, 0.0  ;;  %v1952_v60 = vpop.f32.mrf.mxu1 }
  0xf7   :  { %894 = vst.msk [vmem:[%s3155_s9 + $0x20] sm:$0xff] %vm889_vm6, %v880_v2  ;;  %v868_v57 = vadd.f32 %v825_v55, %v650_v23 }
  0xf8   :  { %v632_v3 = vmul.f32 %v2927_v45, %v613_v59  ;;  %v839_v63 = vpop.f32.mrf.mxu1 }
  0xf9   :  { %v881_v0 = vmax.f32 %v868_v57, 0.0  ;;  %v578_v61 = vpop.f32.mrf.mxu0  ;;  %v840_v5 = vadd.f32 %v2932_v53, %v839_v63 }
  0xfa   :  { %v579_v6 = vadd.f32 %v2921_v51, %v578_v61  ;;  %v651_v8 = vadd.f32 %v2937_v58, %v632_v3  ;;  %v1955_v9 = vpop.f32.mrf.mxu1 }
  0xfb   :  { %895 = vst.msk [vmem:[%s3155_s9 + $0x28] sm:$0xff] %vm889_vm6, %v881_v0  ;;  %v1905_v11 = vpop.f32.mrf.mxu0 }
  0xfc   :  { %v614_v12 = vmax.f32 %v579_v6, 0.0  ;;  %v869_v4 = vadd.f32 %v830_v62, %v651_v8  ;;  %v844_v14 = vpop.f32.mrf.mxu1 }
  0xfd   :  { %v583_v16 = vpop.f32.mrf.mxu0  ;;  %v845_v40 = vadd.f32 %v2932_v53, %v844_v14 }
  0xfe   :  { %v633_v17 = vmul.f32 %v2927_v45, %v614_v12  ;;  %v882_v13 = vmax.f32 %v869_v4, 0.0  ;;  %v584_v24 = vadd.f32 %v2921_v51, %v583_v16  ;;  %v1958_v38 = vpop.f32.mrf.mxu1 }
  0xff   :  { %v1908_v27 = vpop.f32.mrf.mxu0 }
 0x100   :  { %896 = vst.msk [vmem:[%s3155_s9 + $0x30] sm:$0xff] %vm889_vm6, %v882_v13  ;;  %v615_v30 = vmax.f32 %v584_v24, 0.0  ;;  %v652_v31 = vadd.f32 %v2937_v58, %v633_v17 }
 0x102   :  { %v634_v20 = vmul.f32 %v2927_v45, %v615_v30  ;;  %v870_v7 = vadd.f32 %v835_v29, %v652_v31  ;;  %v588_v32 = vpop.f32.mrf.mxu0 }
 0x103   :  { %v589_v33 = vadd.f32 %v2921_v51, %v588_v32  ;;  %v849_v34 = vpop.f32.mrf.mxu1 }
 0x104   :  { %v883_v35 = vmax.f32 %v870_v7, 0.0  ;;  %v653_v36 = vadd.f32 %v2937_v58, %v634_v20  ;;  %v1911_v37 = vpop.f32.mrf.mxu0  ;;  %v850_v49 = vadd.f32 %v2932_v53, %v849_v34 }
 0x105   :  { %v616_v21 = vmax.f32 %v589_v33, 0.0  ;;  %v1961_v22 = vpop.f32.mrf.mxu1 }
 0x106   :  { %897 = vst.msk [vmem:[%s3155_s9 + $0x38] sm:$0xff] %vm889_vm6, %v883_v35  ;;  %v871_v25 = vadd.f32 %v840_v5, %v653_v36 }
 0x107   :  { %v635_v19 = vmul.f32 %v2927_v45, %v616_v21  ;;  %v593_v39 = vpop.f32.mrf.mxu0  ;;  %v854_v41 = vpop.f32.mrf.mxu1 }
 0x108   :  { %v884_v26 = vmax.f32 %v871_v25, 0.0  ;;  %v594_v42 = vadd.f32 %v2921_v51, %v593_v39  ;;  %v855_v57 = vadd.f32 %v2932_v53, %v854_v41 }
 0x109   :  { %v654_v43 = vadd.f32 %v2937_v58, %v635_v19  ;;  %v1914_v10 = vpop.f32.mrf.mxu0  ;;  %v1964_v18 = vpop.f32.mrf.mxu1 }
 0x10a   :  { %898 = vst.msk [vmem:[%s3155_s9 + $0x40] sm:$0xff] %vm889_vm6, %v884_v26  ;;  %v617_v44 = vmax.f32 %v594_v42, 0.0 }
 0x10b   :  { %v872_v46 = vadd.f32 %v845_v40, %v654_v43  ;;  %v859_v15 = vpop.f32.mrf.mxu1 }
 0x10c   :  { %v636_v47 = vmul.f32 %v2927_v45, %v617_v44  ;;  %v598_v48 = vpop.f32.mrf.mxu0  ;;  %v860_v12 = vadd.f32 %v2932_v53, %v859_v15 }
 0x10d   :  { %v885_v50 = vmax.f32 %v872_v46, 0.0  ;;  %v599_v52 = vadd.f32 %v2921_v51, %v598_v48  ;;  %v1967_v54 = vpop.f32.mrf.mxu1 }
 0x10e   :  { %v655_v55 = vadd.f32 %v2937_v58, %v636_v47  ;;  %v1917_v56 = vpop.f32.mrf.mxu0 }
 0x10f   :  { %899 = vst.msk [vmem:[%s3155_s9 + $0x48] sm:$0xff] %vm889_vm6, %v885_v50  ;;  %v618_v1 = vmax.f32 %v599_v52, 0.0 }
 0x110   :  { %v873_v2 = vadd.f32 %v850_v49, %v655_v55  ;;  %v603_v23 = vpop.f32.mrf.mxu0  ;;  %v1614_v28 = vpop.f32.mrf.mxu1 }
 0x111   :  { %v637_v59 = vmul.f32 %v2927_v45, %v618_v1  ;;  %v604_v60 = vadd.f32 %v2921_v51, %v603_v23  ;;  %v1615_v27 = vadd.f32 %v2932_v53, %v1614_v28 }
 0x112   :  { %v886_v3 = vmax.f32 %v873_v2, 0.0  ;;  %v1920_v62 = vpop.f32.mrf.mxu0  ;;  %v2025_v63 = vpop.f32.mrf.mxu1 }
 0x113   :  { %v619_v0 = vmax.f32 %v604_v60, 0.0  ;;  %v656_v61 = vadd.f32 %v2937_v58, %v637_v59 }
 0x114   :  { %900 = vst.msk [vmem:[%s3155_s9 + $0x50] sm:$0xff] %vm889_vm6, %v886_v3  ;;  %v1370_v6 = vpop.f32.mrf.mxu0  ;;  %v1619_v8 = vpop.f32.mrf.mxu1 }
 0x115   :  { %v638_v9 = vmul.f32 %v2927_v45, %v619_v0  ;;  %v874_v11 = vadd.f32 %v855_v57, %v656_v61  ;;  %v1371_v4 = vadd.f32 %v2921_v51, %v1370_v6  ;;  %v1620_v22 = vadd.f32 %v2932_v53, %v1619_v8 }
 0x116   :  { %v1978_v14 = vpop.f32.mrf.mxu0  ;;  %v2028_v16 = vpop.f32.mrf.mxu1 }
 0x117   :  { %v887_v17 = vmax.f32 %v874_v11, 0.0  ;;  %v657_v13 = vadd.f32 %v2937_v58, %v638_v9  ;;  %v1434_v24 = vmax.f32 %v1371_v4, 0.0 }
 0x119   :  { %901 = vst.msk [vmem:[%s3155_s9 + $0x58] sm:$0xff] %vm889_vm6, %v887_v17  ;;  %v875_v29 = vadd.f32 %v860_v12, %v657_v13  ;;  %v1447_v38 = vmul.f32 %v2927_v45, %v1434_v24  ;;  %v1624_v30 = vpop.f32.mrf.mxu1 }
 0x11a   :  { %v1625_v15 = vadd.f32 %v2932_v53, %v1624_v30 }
 0x11b   :  { %v888_v31 = vmax.f32 %v875_v29, 0.0  ;;  %v1375_v20 = vpop.f32.mrf.mxu0  ;;  %v1460_v7 = vadd.f32 %v2937_v58, %v1447_v38  ;;  %v2031_v32 = vpop.f32.mrf.mxu1 }
 0x11c   :  { %v1376_v5 = vadd.f32 %v2921_v51, %v1375_v20 }
 0x11d   :  { %903 = vst.msk [vmem:[%s3155_s9 + $0x60] sm:$0xf] %vm902_vm7, %v888_v31  ;;  %v1678_v33 = vadd.f32 %v1615_v27, %v1460_v7  ;;  %v1981_v34 = vpop.f32.mrf.mxu0 }
 0x11e   :  { %v1435_v35 = vmax.f32 %v1376_v5, 0.0 }
 0x11f   :  { %v1691_v36 = vmax.f32 %v1678_v33, 0.0  ;;  %v1629_v37 = vpop.f32.mrf.mxu1 }
 0x120   :  { %v1448_v21 = vmul.f32 %v2927_v45, %v1435_v35  ;;  %v1630_v1 = vadd.f32 %v2932_v53, %v1629_v37 }
 0x121   :  { %1793 = vst.msk [vmem:[%s3155_s9 + $0x68] sm:$0xff] %vm889_vm6, %v1691_v36  ;;  %v1380_v25 = vpop.f32.mrf.mxu0  ;;  %v2034_v19 = vpop.f32.mrf.mxu1 }
 0x122   :  { %v1381_v39 = vadd.f32 %v2921_v51, %v1380_v25  ;;  %v1461_v40 = vadd.f32 %v2937_v58, %v1448_v21 }
 0x123   :  { %v1984_v41 = vpop.f32.mrf.mxu0 }
 0x124   :  { %v1436_v26 = vmax.f32 %v1381_v39, 0.0  ;;  %v1679_v42 = vadd.f32 %v1620_v22, %v1461_v40  ;;  %v1634_v43 = vpop.f32.mrf.mxu1 }
 0x125   :  { %v1385_v10 = vpop.f32.mrf.mxu0  ;;  %v1635_v63 = vadd.f32 %v2932_v53, %v1634_v43 }
 0x126   :  { %v1449_v18 = vmul.f32 %v2927_v45, %v1436_v26  ;;  %v1692_v44 = vmax.f32 %v1679_v42, 0.0  ;;  %v1386_v46 = vadd.f32 %v2921_v51, %v1385_v10  ;;  %v2037_v47 = vpop.f32.mrf.mxu1 }
 0x127   :  { %v1987_v48 = vpop.f32.mrf.mxu0 }
 0x128   :  { %1794 = vst.msk [vmem:[%s3155_s9 + $0x70] sm:$0xff] %vm889_vm6, %v1692_v44  ;;  %v1437_v49 = vmax.f32 %v1386_v46, 0.0  ;;  %v1462_v50 = vadd.f32 %v2937_v58, %v1449_v18 }
 0x129   :  { %v1390_v52 = vpop.f32.mrf.mxu0 }
 0x12a   :  { %v1450_v54 = vmul.f32 %v2927_v45, %v1437_v49  ;;  %v1680_v55 = vadd.f32 %v1625_v15, %v1462_v50  ;;  %v1391_v56 = vadd.f32 %v2921_v51, %v1390_v52  ;;  %v1639_v2 = vpop.f32.mrf.mxu1 }
 0x12b   :  { %v1990_v23 = vpop.f32.mrf.mxu0  ;;  %v1640_v38 = vadd.f32 %v2932_v53, %v1639_v2 }
 0x12c   :  { %v1693_v28 = vmax.f32 %v1680_v55, 0.0  ;;  %v1438_v59 = vmax.f32 %v1391_v56, 0.0  ;;  %v1463_v60 = vadd.f32 %v2937_v58, %v1450_v54  ;;  %v2040_v57 = vpop.f32.mrf.mxu1 }
 0x12e   :  { %1795 = vst.msk [vmem:[%s3155_s9 + $0x78] sm:$0xff] %vm889_vm6, %v1693_v28  ;;  %v1451_v3 = vmul.f32 %v2927_v45, %v1438_v59  ;;  %v1681_v62 = vadd.f32 %v1630_v1, %v1463_v60  ;;  %v1644_v0 = vpop.f32.mrf.mxu1 }
 0x12f   :  { %v1395_v61 = vpop.f32.mrf.mxu0  ;;  %v1645_v33 = vadd.f32 %v2932_v53, %v1644_v0 }
 0x130   :  { %v1694_v6 = vmax.f32 %v1681_v62, 0.0  ;;  %v1396_v8 = vadd.f32 %v2921_v51, %v1395_v61  ;;  %v1464_v9 = vadd.f32 %v2937_v58, %v1451_v3  ;;  %v2043_v11 = vpop.f32.mrf.mxu1 }
 0x131   :  { %v1993_v12 = vpop.f32.mrf.mxu0 }
 0x132   :  { %1796 = vst.msk [vmem:[%s3155_s9 + $0x80] sm:$0xff] %vm889_vm6, %v1694_v6  ;;  %v1439_v4 = vmax.f32 %v1396_v8, 0.0  ;;  %v1682_v14 = vadd.f32 %v1635_v63, %v1464_v9  ;;  %v1649_v16 = vpop.f32.mrf.mxu1 }
 0x133   :  { %v1400_v17 = vpop.f32.mrf.mxu0  ;;  %v1650_v41 = vadd.f32 %v2932_v53, %v1649_v16 }
 0x134   :  { %v1452_v13 = vmul.f32 %v2927_v45, %v1439_v4  ;;  %v1695_v24 = vmax.f32 %v1682_v14, 0.0  ;;  %v1401_v29 = vadd.f32 %v2921_v51, %v1400_v17  ;;  %v2046_v27 = vpop.f32.mrf.mxu1 }
 0x135   :  { %v1996_v30 = vpop.f32.mrf.mxu0 }
 0x136   :  { %1797 = vst.msk [vmem:[%s3155_s9 + $0x88] sm:$0xff] %vm889_vm6, %v1695_v24  ;;  %v1440_v31 = vmax.f32 %v1401_v29, 0.0  ;;  %v1465_v20 = vadd.f32 %v2937_v58, %v1452_v13 }
 0x138   :  { %v1453_v7 = vmul.f32 %v2927_v45, %v1440_v31  ;;  %v1683_v32 = vadd.f32 %v1640_v38, %v1465_v20  ;;  %v1405_v5 = vpop.f32.mrf.mxu0 }
 0x139   :  { %v1406_v34 = vadd.f32 %v2921_v51, %v1405_v5  ;;  %v1654_v35 = vpop.f32.mrf.mxu1 }
 0x13a   :  { %v1696_v36 = vmax.f32 %v1683_v32, 0.0  ;;  %v1466_v37 = vadd.f32 %v2937_v58, %v1453_v7  ;;  %v1999_v21 = vpop.f32.mrf.mxu0  ;;  %v1655_v52 = vadd.f32 %v2932_v53, %v1654_v35 }
 0x13b   :  { %v1441_v22 = vmax.f32 %v1406_v34, 0.0  ;;  %v2049_v25 = vpop.f32.mrf.mxu1 }
 0x13c   :  { %1798 = vst.msk [vmem:[%s3155_s9 + $0x90] sm:$0xff] %vm889_vm6, %v1696_v36  ;;  %v1684_v19 = vadd.f32 %v1645_v33, %v1466_v37 }
 0x13d   :  { %v1454_v39 = vmul.f32 %v2927_v45, %v1441_v22  ;;  %v1410_v40 = vpop.f32.mrf.mxu0  ;;  %v1659_v26 = vpop.f32.mrf.mxu1 }
 0x13e   :  { %v1697_v42 = vmax.f32 %v1684_v19, 0.0  ;;  %v1411_v43 = vadd.f32 %v2921_v51, %v1410_v40  ;;  %v1660_v60 = vadd.f32 %v2932_v53, %v1659_v26 }
 0x13f   :  { %v1467_v10 = vadd.f32 %v2937_v58, %v1454_v39  ;;  %v2002_v18 = vpop.f32.mrf.mxu0  ;;  %v2052_v44 = vpop.f32.mrf.mxu1 }
 0x140   :  { %1799 = vst.msk [vmem:[%s3155_s9 + $0x98] sm:$0xff] %vm889_vm6, %v1697_v42  ;;  %v1442_v46 = vmax.f32 %v1411_v43, 0.0 }
 0x141   :  { %v1685_v15 = vadd.f32 %v1650_v41, %v1467_v10  ;;  %v1415_v47 = vpop.f32.mrf.mxu0  ;;  %v1664_v48 = vpop.f32.mrf.mxu1 }
 0x142   :  { %v1455_v49 = vmul.f32 %v2927_v45, %v1442_v46  ;;  %v1416_v50 = vadd.f32 %v2921_v51, %v1415_v47  ;;  %v1665_v16 = vadd.f32 %v2932_v53, %v1664_v48 }
 0x143   :  { %v1698_v54 = vmax.f32 %v1685_v15, 0.0  ;;  %v2005_v55 = vpop.f32.mrf.mxu0  ;;  %v2055_v56 = vpop.f32.mrf.mxu1 }
 0x144   :  { %v1443_v1 = vmax.f32 %v1416_v50, 0.0  ;;  %v1468_v2 = vadd.f32 %v2937_v58, %v1455_v49 }
 0x145   :  { %1800 = vst.msk [vmem:[%s3155_s9 + $0xa0] sm:$0xff] %vm889_vm6, %v1698_v54  ;;  %v1669_v23 = vpop.f32.mrf.mxu1 }
 0x146   :  { %v1456_v28 = vmul.f32 %v2927_v45, %v1443_v1  ;;  %v1686_v59 = vadd.f32 %v1655_v52, %v1468_v2  ;;  %v1670_v20 = vadd.f32 %v2932_v53, %v1669_v23 }
 0x147   :  { %v1420_v57 = vpop.f32.mrf.mxu0  ;;  %v2058_v3 = vpop.f32.mrf.mxu1 }
 0x148   :  { %v1699_v62 = vmax.f32 %v1686_v59, 0.0  ;;  %v1421_v63 = vadd.f32 %v2921_v51, %v1420_v57  ;;  %v1469_v0 = vadd.f32 %v2937_v58, %v1456_v28 }
 0x149   :  { %v2008_v61 = vpop.f32.mrf.mxu0  ;;  %v1674_v6 = vpop.f32.mrf.mxu1 }
 0x14a   :  { %1801 = vst.msk [vmem:[%s3155_s9 + $0xa8] sm:$0xff] %vm889_vm6, %v1699_v62  ;;  %v1444_v8 = vmax.f32 %v1421_v63, 0.0  ;;  %v1687_v9 = vadd.f32 %v1660_v60, %v1469_v0  ;;  %v1675_v36 = vadd.f32 %v2932_v53, %v1674_v6 }
 0x14b   :  { %v2061_v11 = vpop.f32.mrf.mxu1 }
 0x14c   :  { %v1457_v12 = vmul.f32 %v2927_v45, %v1444_v8  ;;  %v1700_v4 = vmax.f32 %v1687_v9, 0.0  ;;  %v1425_v14 = vpop.f32.mrf.mxu0 }
 0x14d   :  { %v1426_v17 = vadd.f32 %v2921_v51, %v1425_v14 }
 0x14e   :  { %1802 = vst.msk [vmem:[%s3155_s9 + $0xb0] sm:$0xff] %vm889_vm6, %v1700_v4  ;;  %v1470_v13 = vadd.f32 %v2937_v58, %v1457_v12  ;;  %v2011_v24 = vpop.f32.mrf.mxu0 }
 0x14f   :  { %v1445_v29 = vmax.f32 %v1426_v17, 0.0 }
 0x150   :  { %v1688_v38 = vadd.f32 %v1665_v16, %v1470_v13  ;;  %v1430_v27 = vpop.f32.mrf.mxu0 }
 0x151   :  { %v1458_v30 = vmul.f32 %v2927_v45, %v1445_v29  ;;  %v1431_v31 = vadd.f32 %v2921_v51, %v1430_v27 }
 0x152   :  { %v1701_v7 = vmax.f32 %v1688_v38, 0.0  ;;  %v2014_v32 = vpop.f32.mrf.mxu0 }
 0x153   :  { %v1446_v5 = vmax.f32 %v1431_v31, 0.0  ;;  %v1471_v33 = vadd.f32 %v2937_v58, %v1458_v30 }
 0x154   :  { %1803 = vst.msk [vmem:[%s3155_s9 + $0xb8] sm:$0xff] %vm889_vm6, %v1701_v7 }
 0x155   :  { %v1459_v34 = vmul.f32 %v2927_v45, %v1446_v5  ;;  %v1689_v35 = vadd.f32 %v1670_v20, %v1471_v33 }
 0x157   :  { %v1702_v37 = vmax.f32 %v1689_v35, 0.0  ;;  %v1472_v51 = vadd.f32 %v2937_v58, %v1459_v34 }
 0x159   :  { %1804 = vst.msk [vmem:[%s3155_s9 + $0xc0] sm:$0xff] %vm889_vm6, %v1702_v37  ;;  %v1690_v21 = vadd.f32 %v1675_v36, %v1472_v51 }
 0x15b   :  { %v1703_v22 = vmax.f32 %v1690_v21, 0.0 }
 0x15d   :  { %1805 = vst.msk [vmem:[%s3155_s9 + $0xc8] sm:$0xf] %vm902_vm7, %v1703_v22 }

// kernel: _lambda_.13
= control target key start
LH: loop header
LB: loop body
LE: loop exit
PB: predicated region body
PF: predicated region fallthrough
CT: control target
= control target key end

     0   :  { %v58_v0 = vlaneseq  ;;  %v1804_v1 = vmov 0.0   ;;  %vm1805_vm0 = vmmov 0   ;;  %vm118_vm1 = vcmask 1045504   ;;  %s2797_s3 = inlined_call_operand.vmem [shape: f32[64,128], index: 3, kind: input, shape index: {}]   ;;  %s2798_s5 = inlined_call_operand.vmem [shape: f32[64,128], index: 5, kind: input, shape index: {}]   ;;  %s2799_s1 = inlined_call_operand.vmem [shape: f32[3,64], index: 1, kind: input, shape index: {}]   ;;  %s2800_s0 = inlined_call_operand.vmem [shape: f32[2,104,64], index: 0, kind: input, shape index: {}]   ;;  %s2801_s2 = inlined_call_operand.vmem [shape: f32[1,64], index: 2, kind: input, shape index: {}]   ;;  %s2802_s4 = inlined_call_operand.vmem [shape: f32[1,128], index: 4, kind: input, shape index: {}, may-alias: {4,6,8}]   ;;  %s2803_s7 = inlined_call_operand.vmem [shape: f32[1,128], index: 7, kind: input, shape index: {}]   ;;  %s2804_s6 = inlined_call_operand.vmem [shape: f32[1,128], index: 6, kind: input, shape index: {}, may-alias: {4,6,8}]   ;;  %s2805_s8 = inlined_call_operand.vmem [shape: f32[1,128], index: 8, kind: input, shape index: {}, may-alias: {4,6,8}]   ;;  %s2806_s9 = inlined_call_operand.vmem [shape: f32[2,100,128], index: 9, kind: output, shape index: {}]  }
   0x1   :  { %1582 = vmatprep.subr.mxu0 %v1804_v1  ;;  %v1860_v2 = vld [vmem:[%s2797_s3 + $0x38] sm:$0xff]  ;;  %v1865_v3 = vld [vmem:[%s2797_s3 + $0x30] sm:$0xff]  ;;  %1637 = vmatprep.subr.mxu1 %v1804_v1  ;;  %v1885_v7 = vld [vmem:[%s2797_s3 + $0x28] sm:$0xff]  ;;  %vm200_vm2 = vcmask 1043456   ;;  %vm277_vm3 = vcmask 523264  }
   0x2   :  { %1583 = vmatpush3.msra.mxu0 %v1860_v2  ;;  %v1872_v4 = vld [vmem:[%s2798_s5 + $0x38] sm:$0xff]  ;;  %v1877_v5 = vld [vmem:[%s2798_s5 + $0x30] sm:$0xff]  ;;  %1598 = vmatprep.mubr.msk.f32.mxu0 %vm1805_vm0, %v1804_v1  ;;  %v59_v6 = vshrl.u32 %v58_v0, 7  ;;  %v1893_v8 = vld [vmem:[%s2798_s5 + $0x28] sm:$0xff] }
   0x3   :  { %1584 = vmatprep.subr.mxu0 %v1804_v1  ;;  %1638 = vmatpush3.msra.mxu1 %v1872_v4  ;;  %v1899_v12 = vld [vmem:[%s2797_s3 + $0x20] sm:$0xff]  ;;  %v1920_v16 = vld [vmem:[%s2800_s0 + $0x8] sm:$0xff]  ;;  %v1932_v20 = vld [vmem:[%s2797_s3 + $0x18] sm:$0xff] }
   0x4   :  { %1585 = vmatpush3.msra.mxu0 %v1865_v3  ;;  %1639 = vmatprep.subr.mxu1 %v1804_v1  ;;  %v60_v9 = vsub.s32 0, %v59_v6  ;;  %v90_v10 = vsub.s32 1, %v59_v6  ;;  %v172_v11 = vsub.s32 2, %v59_v6  ;;  %v32_v13 = vld [vmem:[%s2799_s1] sm:$0x7]  ;;  %v1938_v21 = vld [vmem:[%s2800_s0 + $0x10] sm:$0xff] }
   0x5   :  { %1586 = vmatprep.subr.mxu0 %v1804_v1  ;;  %1640 = vmatpush3.msra.mxu1 %v1877_v5  ;;  %v1910_v14 = vld [vmem:[%s2798_s5 + $0x20] sm:$0xff]  ;;  %v1945_v22 = vld [vmem:[%s2798_s5 + $0x18] sm:$0xff]  ;;  %v1956_v26 = vld [vmem:[%s2797_s3 + $0x10] sm:$0xff]  ;;  %v527_v30 = vrot.slane %v1920_v16, 2  ;;  %v529_v51 = vrot.slane %v1938_v21, 2 }
   0x6   :  { %1587 = vmatpush3.msra.mxu0 %v1885_v7  ;;  %1641 = vmatprep.subr.mxu1 %v1804_v1  ;;  %v1915_v15 = vld [vmem:[%s2800_s0] sm:$0xff]  ;;  %v1922_v17 = vrot.slane %v32_v13, %v60_v9  ;;  %v1924_v18 = vrot.slane %v32_v13, %v90_v10  ;;  %v1926_v19 = vrot.slane %v32_v13, %v172_v11  ;;  %v1969_v31 = vld [vmem:[%s2800_s0 + $0x18] sm:$0xff]  ;;  %v1976_v32 = vld [vmem:[%s2798_s5 + $0x10] sm:$0xff] }
   0x7   :  { %1588 = vmatprep.subr.mxu0 %v1804_v1  ;;  %1642 = vmatpush3.msra.mxu1 %v1893_v8  ;;  %v526_v25 = vrot.slane %v1915_v15, 2  ;;  %v1986_v37 = vld [vmem:[%s2797_s3 + $0x8] sm:$0xff]  ;;  %v2007_v47 = vld [vmem:[%s2797_s3] sm:$0xff] }
   0x8   :  { %1589 = vmatpush3.msra.mxu0 %v1899_v12  ;;  %1643 = vmatprep.subr.mxu1 %v1804_v1  ;;  %v92_v23 = vmul.f32 %v1924_v18, %v1915_v15  ;;  %v93_v24 = vmul.f32 %v1924_v18, %v1920_v16  ;;  %v62_v27 = vmul.f32 %v1922_v17, %v1915_v15  ;;  %v1999_v43 = vld [vmem:[%s2798_s5 + $0x8] sm:$0xff]  ;;  %v2017_v52 = vld [vmem:[%s2800_s0 + $0x20] sm:$0xff] }
   0x9   :  { %1590 = vmatprep.subr.mxu0 %v1804_v1  ;;  %1644 = vmatpush3.msra.mxu1 %v1910_v14  ;;  %v174_v28 = vmul.f32 %v1926_v19, %v1915_v15  ;;  %v175_v29 = vmul.f32 %v1926_v19, %v1920_v16  ;;  %v94_v35 = vmul.f32 %v1924_v18, %v1938_v21  ;;  %v2023_v53 = vld [vmem:[%s2801_s2] ss:$0 sm:$0xff]  ;;  %v2053_v13 = vld [vmem:[%s2800_s0 + $0x28] sm:$0xff] }
   0xa   :  { %1591 = vmatpush3.msra.mxu0 %v1932_v20  ;;  %1645 = vmatprep.subr.mxu1 %v1804_v1  ;;  %v119_v33 = vrot.slane %v92_v23, 2  ;;  %v120_v34 = vrot.slane %v93_v24, 2  ;;  %v176_v36 = vmul.f32 %v1926_v19, %v1938_v21  ;;  %v63_v40 = vmul.f32 %v1922_v17, %v1920_v16  ;;  %v2029_v54 = vld [vmem:[%s2798_s5] sm:$0xff] }
   0xb   :  { %1592 = vmatprep.subr.mxu0 %v1804_v1  ;;  %1646 = vmatpush3.msra.mxu1 %v1945_v22  ;;  %v201_v38 = vrot.slane %v174_v28, 4  ;;  %v202_v39 = vrot.slane %v175_v29, 4  ;;  %v64_v41 = vmul.f32 %v1922_v17, %v1938_v21  ;;  %v122_v44 = vrot.slane %v94_v35, 2  ;;  %v2070_v29 = vld [vmem:[%s2800_s0 + $0x30] sm:$0xff]  ;;  %v2123_v21 = vld [vmem:[%s2800_s0 + $0x40] sm:$0xff] }
   0xc   :  { %1593 = vmatpush3.msra.mxu0 %v1956_v26  ;;  %1647 = vmatprep.subr.mxu1 %v1804_v1  ;;  %v121_v42 = vsel %vm118_vm1, %v119_v33, %v120_v34  ;;  %v204_v45 = vrot.slane %v176_v36, 4  ;;  %v95_v46 = vmul.f32 %v1924_v18, %v1969_v31  ;;  %v177_v50 = vmul.f32 %v1926_v19, %v1969_v31 }
   0xd   :  { %1594 = vmatprep.subr.mxu0 %v1804_v1  ;;  %1648 = vmatpush3.msra.mxu1 %v1976_v32  ;;  %v157_v48 = vadd.f32 %v121_v42, %v62_v27  ;;  %v203_v49 = vsel %vm200_vm2, %v201_v38, %v202_v39  ;;  %v123_v55 = vsel %vm118_vm1, %v120_v34, %v122_v44  ;;  %v531_v35 = vrot.slane %v1969_v31, 2 }
   0xe   :  { %1595 = vmatpush3.msra.mxu0 %v1986_v37  ;;  %1649 = vmatprep.subr.mxu1 %v1804_v1  ;;  %v205_v56 = vsel %vm200_vm2, %v202_v39, %v204_v45  ;;  %v528_v57 = vsel %vm118_vm1, %v526_v25, %v527_v30  ;;  %v124_v58 = vrot.slane %v95_v46, 2  ;;  %v158_v60 = vadd.f32 %v123_v55, %v63_v40 }
   0xf   :  { %1596 = vmatprep.subr.mxu0 %v1804_v1  ;;  %v239_v59 = vadd.f32 %v203_v49, %v157_v48  ;;  %1650 = vmatpush3.msra.mxu1 %v1999_v43  ;;  %v206_v61 = vrot.slane %v177_v50, 4  ;;  %v65_v62 = vmul.f32 %v1922_v17, %v1969_v31  ;;  %v96_v0 = vmul.f32 %v1924_v18, %v2017_v52  ;;  %v2090_v31 = vld [vmem:[%s2800_s0 + $0x38] sm:$0xff] }
  0x10   :  { %1597 = vmatpush3.msra.mxu0 %v2007_v47  ;;  %1651 = vmatprep.subr.mxu1 %v1804_v1  ;;  %v125_v63 = vsel %vm118_vm1, %v122_v44, %v124_v58  ;;  %v178_v6 = vmul.f32 %v1926_v19, %v2017_v52  ;;  %v240_v10 = vadd.f32 %v205_v56, %v158_v60  ;;  %v533_v38 = vrot.slane %v2017_v52, 2 }
  0x11   :  { %1692 = vmatprep.subr.mxu0 %v1804_v1  ;;  %v258_v9 = vadd.f32 %v2023_v53, %v239_v59  ;;  %1652 = vmatpush3.msra.mxu1 %v2029_v54  ;;  %v159_v11 = vadd.f32 %v125_v63, %v64_v41  ;;  %v207_v15 = vsel %vm200_vm2, %v204_v45, %v206_v61  ;;  %v126_v23 = vrot.slane %v96_v0, 2 }
  0x12   :  { %1653 = vmatprep.mubr.msk.f32.mxu1 %vm1805_vm0, %v1804_v1  ;;  %1747 = vmatprep.subr.mxu1 %v1804_v1  ;;  %v208_v24 = vrot.slane %v178_v6, 4  ;;  %v259_v25 = vadd.f32 %v2023_v53, %v240_v10  ;;  %v530_v28 = vsel %vm118_vm1, %v527_v30, %v529_v51  ;;  %v97_v16 = vmul.f32 %v1924_v18, %v2053_v13  ;;  %v2150_v10 = vld [vmem:[%s2800_s0 + $0x48] sm:$0xff] }
  0x13   :  { %1599 = vmatmul.mubr.msk.f32.vlgmr.msra.gmra.mxu0 %vm277_vm3, %v258_v9  ;;  %1654 = vmatmul.mubr.msk.f32.vlgmr.msra.gmra.mxu1 %vm277_vm3, %v528_v57  ;;  %v241_v27 = vadd.f32 %v207_v15, %v159_v11  ;;  %v127_v33 = vsel %vm118_vm1, %v124_v58, %v126_v23  ;;  %v179_v36 = vmul.f32 %v1926_v19, %v2053_v13  ;;  %v535_v41 = vrot.slane %v2053_v13, 2 }
  0x14   :  { %1693 = vmatpush3.msra.mxu0 %v1860_v2  ;;  %1601 = vmatprep.mubr.msk.f32.mxu0 %vm1805_vm0, %v1804_v1  ;;  %v209_v34 = vsel %vm200_vm2, %v206_v61, %v208_v24  ;;  %v160_v30 = vadd.f32 %v127_v33, %v65_v62  ;;  %v66_v2 = vmul.f32 %v1922_v17, %v2017_v52  ;;  %v128_v39 = vrot.slane %v97_v16, 2 }
  0x15   :  { %1694 = vmatprep.subr.mxu0 %v1804_v1  ;;  %1748 = vmatpush3.msra.mxu1 %v1872_v4  ;;  %v260_v4 = vadd.f32 %v2023_v53, %v241_v27  ;;  %v98_v40 = vmul.f32 %v1924_v18, %v2070_v29  ;;  %v210_v44 = vrot.slane %v179_v36, 4  ;;  %v67_v45 = vmul.f32 %v1922_v17, %v2053_v13 }
  0x16   :  { %1656 = vmatprep.mubr.msk.f32.mxu1 %vm1805_vm0, %v1804_v1  ;;  %1695 = vmatpush3.msra.mxu0 %v1865_v3  ;;  %v242_v42 = vadd.f32 %v209_v34, %v160_v30  ;;  %v180_v3 = vmul.f32 %v1926_v19, %v2070_v29  ;;  %v532_v46 = vsel %vm118_vm1, %v529_v51, %v531_v35 }
  0x17   :  { %1602 = vmatmul.mubr.msk.f32.gmra.mxu0 %vm277_vm3, %v259_v25  ;;  %1657 = vmatmul.mubr.msk.f32.gmra.mxu1 %vm277_vm3, %v530_v28  ;;  %v129_v48 = vsel %vm118_vm1, %v126_v23, %v128_v39  ;;  %v130_v49 = vrot.slane %v98_v40, 2  ;;  %v99_v50 = vmul.f32 %v1924_v18, %v2090_v31  ;;  %v211_v55 = vsel %vm200_vm2, %v208_v24, %v210_v44 }
  0x18   :  { %1604 = vmatprep.mubr.msk.f32.mxu0 %vm1805_vm0, %v1804_v1  ;;  %1659 = vmatprep.mubr.msk.f32.mxu1 %vm1805_vm0, %v1804_v1  ;;  %v161_v52 = vadd.f32 %v129_v48, %v66_v2  ;;  %v212_v56 = vrot.slane %v180_v3, 4  ;;  %v68_v57 = vmul.f32 %v1922_v17, %v2070_v29  ;;  %v261_v51 = vadd.f32 %v2023_v53, %v242_v42  ;;  %v2193_v42 = vld [vmem:[%s2800_s0 + $0x58] sm:$0xff] }
  0x19   :  { %1696 = vmatprep.subr.mxu0 %v1804_v1  ;;  %1749 = vmatprep.subr.mxu1 %v1804_v1  ;;  %v131_v58 = vsel %vm118_vm1, %v128_v39, %v130_v49  ;;  %v132_v59 = vrot.slane %v99_v50, 2  ;;  %v181_v60 = vmul.f32 %v1926_v19, %v2090_v31  ;;  %v100_v6 = vmul.f32 %v1924_v18, %v2123_v21  ;;  %v2219_v50 = vld [vmem:[%s2800_s0 + $0x60] sm:$0xff] }
  0x1a   :  { %1697 = vmatpush3.msra.mxu0 %v1885_v7  ;;  %1750 = vmatpush3.msra.mxu1 %v1877_v5  ;;  %v243_v61 = vadd.f32 %v211_v55, %v161_v52  ;;  %v162_v62 = vadd.f32 %v131_v58, %v67_v45  ;;  %v213_v63 = vsel %vm200_vm2, %v210_v44, %v212_v56  ;;  %v537_v28 = vrot.slane %v2070_v29, 2  ;;  %v2175_v29 = vld [vmem:[%s2800_s0 + $0x50] sm:$0xff] }
  0x1b   :  { %1605 = vmatmul.mubr.msk.f32.gmra.mxu0 %vm277_vm3, %v260_v4  ;;  %1660 = vmatmul.mubr.msk.f32.gmra.mxu1 %vm277_vm3, %v532_v46  ;;  %v534_v5 = vsel %vm118_vm1, %v531_v35, %v533_v38  ;;  %v133_v7 = vsel %vm118_vm1, %v130_v49, %v132_v59  ;;  %v214_v0 = vrot.slane %v181_v60, 4  ;;  %v536_v9 = vsel %vm118_vm1, %v533_v38, %v535_v41 }
  0x1c   :  { %1607 = vmatprep.mubr.msk.f32.mxu0 %vm1805_vm0, %v1804_v1  ;;  %1662 = vmatprep.mubr.msk.f32.mxu1 %vm1805_vm0, %v1804_v1  ;;  %v244_v11 = vadd.f32 %v213_v63, %v162_v62  ;;  %v163_v15 = vadd.f32 %v133_v7, %v68_v57  ;;  %v134_v23 = vrot.slane %v100_v6, 2  ;;  %v182_v24 = vmul.f32 %v1926_v19, %v2123_v21  ;;  %v2262_v6 = vld [vmem:[%s2800_s0 + $0x70] sm:$0xff] }
  0x1d   :  { %1751 = vmatprep.subr.mxu1 %v1804_v1  ;;  %1698 = vmatprep.subr.mxu0 %v1804_v1  ;;  %v262_v25 = vadd.f32 %v2023_v53, %v243_v61  ;;  %v215_v27 = vsel %vm200_vm2, %v212_v56, %v214_v0  ;;  %v101_v34 = vmul.f32 %v1924_v18, %v2150_v10  ;;  %v539_v44 = vrot.slane %v2090_v31, 2 }
  0x1e   :  { %1752 = vmatpush3.msra.mxu1 %v1893_v8  ;;  %1699 = vmatpush3.msra.mxu0 %v1899_v12  ;;  %v69_v8 = vmul.f32 %v1922_v17, %v2090_v31  ;;  %v135_v12 = vsel %vm118_vm1, %v132_v59, %v134_v23  ;;  %v216_v33 = vrot.slane %v182_v24, 4  ;;  %v183_v35 = vmul.f32 %v1926_v19, %v2150_v10 }
  0x1f   :  { %1608 = vmatmul.mubr.msk.f32.gmra.mxu0 %vm277_vm3, %v261_v51  ;;  %1663 = vmatmul.mubr.msk.f32.gmra.mxu1 %vm277_vm3, %v534_v5  ;;  %v70_v16 = vmul.f32 %v1922_v17, %v2123_v21  ;;  %v263_v30 = vadd.f32 %v2023_v53, %v244_v11  ;;  %v245_v2 = vadd.f32 %v215_v27, %v163_v15  ;;  %v136_v36 = vrot.slane %v101_v34, 2 }
  0x20   :  { %1610 = vmatprep.mubr.msk.f32.mxu0 %vm1805_vm0, %v1804_v1  ;;  %1665 = vmatprep.mubr.msk.f32.mxu1 %vm1805_vm0, %v1804_v1  ;;  %v218_v38 = vrot.slane %v183_v35, 4  ;;  %v164_v4 = vadd.f32 %v135_v12, %v69_v8  ;;  %v102_v39 = vmul.f32 %v1924_v18, %v2175_v29  ;;  %v184_v40 = vmul.f32 %v1926_v19, %v2175_v29  ;;  %v2283_v8 = vld [vmem:[%s2800_s0 + $0x78] sm:$0xff] }
  0x21   :  { %1700 = vmatprep.subr.mxu0 %v1804_v1  ;;  %1753 = vmatprep.subr.mxu1 %v1804_v1  ;;  %v137_v45 = vsel %vm118_vm1, %v134_v23, %v136_v36  ;;  %v71_v46 = vmul.f32 %v1922_v17, %v2150_v10  ;;  %v103_v31 = vmul.f32 %v1924_v18, %v2193_v42  ;;  %v541_v56 = vrot.slane %v2123_v21, 2 }
  0x22   :  { %1701 = vmatpush3.msra.mxu0 %v1932_v20  ;;  %1754 = vmatpush3.msra.mxu1 %v1910_v14  ;;  %v538_v14 = vsel %vm118_vm1, %v535_v41, %v537_v28  ;;  %v217_v20 = vsel %vm200_vm2, %v214_v0, %v216_v33  ;;  %v165_v3 = vadd.f32 %v137_v45, %v70_v16  ;;  %v138_v48 = vrot.slane %v102_v39, 2  ;;  %v2257_v0 = vld [vmem:[%s2800_s0 + $0x68] sm:$0xff]  ;;  %v2314_v39 = vld [vmem:[%s2800_s0 + $0x80] sm:$0xff] }
  0x23   :  { %1611 = vmatmul.mubr.msk.f32.gmra.mxu0 %vm277_vm3, %v262_v25  ;;  %1666 = vmatmul.mubr.msk.f32.gmra.mxu1 %vm277_vm3, %v536_v9  ;;  %v219_v49 = vsel %vm200_vm2, %v216_v33, %v218_v38  ;;  %v220_v13 = vrot.slane %v184_v40, 4  ;;  %v185_v41 = vmul.f32 %v1926_v19, %v2193_v42  ;;  %v264_v52 = vadd.f32 %v2023_v53, %v245_v2 }
  0x24   :  { %1613 = vmatprep.mubr.msk.f32.mxu0 %vm1805_vm0, %v1804_v1  ;;  %1668 = vmatprep.mubr.msk.f32.mxu1 %vm1805_vm0, %v1804_v1  ;;  %v540_v55 = vsel %vm118_vm1, %v537_v28, %v539_v44  ;;  %v140_v57 = vrot.slane %v103_v31, 2  ;;  %v247_v51 = vadd.f32 %v219_v49, %v165_v3  ;;  %v104_v59 = vmul.f32 %v1924_v18, %v2219_v50 }
  0x25   :  { %1755 = vmatprep.subr.mxu1 %v1804_v1  ;;  %1702 = vmatprep.subr.mxu0 %v1804_v1  ;;  %v221_v60 = vsel %vm200_vm2, %v218_v38, %v220_v13  ;;  %v72_v61 = vmul.f32 %v1922_v17, %v2175_v29  ;;  %v222_v21 = vrot.slane %v185_v41, 4  ;;  %v2246_v7 = vmul.f32 %v1926_v19, %v2219_v50  ;;  %v2335_v41 = vld [vmem:[%s2800_s0 + $0x88] sm:$0xff] }
  0x26   :  { %1756 = vmatpush3.msra.mxu1 %v1945_v22  ;;  %1703 = vmatpush3.msra.mxu0 %v1956_v26  ;;  %v246_v22 = vadd.f32 %v217_v20, %v164_v4  ;;  %v139_v26 = vsel %vm118_vm1, %v136_v36, %v138_v48  ;;  %v141_v63 = vsel %vm118_vm1, %v138_v48, %v140_v57  ;;  %v142_v5 = vrot.slane %v104_v59, 2 }
  0x27   :  { %1614 = vmatmul.mubr.msk.f32.gmra.mxu0 %vm277_vm3, %v263_v30  ;;  %1669 = vmatmul.mubr.msk.f32.gmra.mxu1 %vm277_vm3, %v538_v14  ;;  %v166_v58 = vadd.f32 %v139_v26, %v71_v46  ;;  %v266_v9 = vadd.f32 %v2023_v53, %v247_v51  ;;  %v167_v15 = vadd.f32 %v141_v63, %v72_v61  ;;  %v224_v24 = vrot.slane %v2246_v7, 4  ;;  %v2356_v61 = vld [vmem:[%s2800_s0 + $0x90] sm:$0xff] }
  0x28   :  { %1616 = vmatprep.mubr.msk.f32.mxu0 %vm1805_vm0, %v1804_v1  ;;  %1671 = vmatprep.mubr.msk.f32.mxu1 %vm1805_vm0, %v1804_v1  ;;  %v265_v62 = vadd.f32 %v2023_v53, %v246_v22  ;;  %v73_v23 = vmul.f32 %v1922_v17, %v2193_v42  ;;  %v143_v25 = vsel %vm118_vm1, %v140_v57, %v142_v5  ;;  %v547_v4 = vrot.slane %v2193_v42, 2 }
  0x29   :  { %1704 = vmatprep.subr.mxu0 %v1804_v1  ;;  %1757 = vmatprep.subr.mxu1 %v1804_v1  ;;  %v248_v11 = vadd.f32 %v221_v60, %v166_v58  ;;  %v786_v27 = vmul.f32 %v2257_v0, %v1924_v18  ;;  %v787_v28 = vmul.f32 %v2262_v6, %v1924_v18  ;;  %v549_v31 = vrot.slane %v2219_v50, 2 }
  0x2a   :  { %1705 = vmatpush3.msra.mxu0 %v1986_v37  ;;  %1758 = vmatpush3.msra.mxu1 %v1976_v32  ;;  %v542_v32 = vsel %vm118_vm1, %v539_v44, %v541_v56  ;;  %v543_v37 = vrot.slane %v2150_v10, 2  ;;  %v223_v10 = vsel %vm200_vm2, %v220_v13, %v222_v21  ;;  %v74_v33 = vmul.f32 %v1922_v17, %v2219_v50 }
  0x2b   :  { %1617 = vmatmul.mubr.msk.f32.gmra.mxu0 %vm277_vm3, %v264_v52  ;;  %1672 = vmatmul.mubr.msk.f32.gmra.mxu1 %vm277_vm3, %v540_v55  ;;  %v267_v12 = vadd.f32 %v2023_v53, %v248_v11  ;;  %v249_v34 = vadd.f32 %v223_v10, %v167_v15  ;;  %v168_v35 = vadd.f32 %v143_v25, %v73_v23  ;;  %v813_v2 = vrot.slane %v787_v28, 2 }
  0x2c   :  { %1619 = vmatprep.mubr.msk.f32.mxu0 %vm1805_vm0, %v1804_v1  ;;  %1674 = vmatprep.mubr.msk.f32.mxu1 %vm1805_vm0, %v1804_v1  ;;  %v225_v16 = vsel %vm200_vm2, %v222_v21, %v224_v24  ;;  %v788_v30 = vmul.f32 %v2283_v8, %v1924_v18  ;;  %v863_v36 = vmul.f32 %v2257_v0, %v1926_v19  ;;  %v1189_v10 = vrot.slane %v2257_v0, 2 }
  0x2d   :  { %1759 = vmatprep.subr.mxu1 %v1804_v1  ;;  %1706 = vmatprep.subr.mxu0 %v1804_v1  ;;  %v864_v38 = vmul.f32 %v2262_v6, %v1926_v19  ;;  %v169_v40 = vadd.f32 %v142_v5, %v74_v33  ;;  %v760_v14 = vmul.f32 %v2257_v0, %v1922_v17  ;;  %v1190_v23 = vrot.slane %v2262_v6, 2 }
  0x2e   :  { %1760 = vmatpush3.msra.mxu1 %v1999_v43  ;;  %1707 = vmatpush3.msra.mxu0 %v2007_v47  ;;  %v544_v43 = vsel %vm118_vm1, %v541_v56, %v543_v37  ;;  %v545_v47 = vrot.slane %v2175_v29, 2  ;;  %v812_v29 = vrot.slane %v786_v27, 2  ;;  %v268_v20 = vadd.f32 %v2023_v53, %v249_v34 }
  0x2f   :  { %1620 = vmatmul.mubr.msk.f32.gmra.mxu0 %vm277_vm3, %v265_v62  ;;  %1675 = vmatmul.mubr.msk.f32.gmra.mxu1 %vm277_vm3, %v542_v32  ;;  %v250_v44 = vadd.f32 %v225_v16, %v168_v35  ;;  %v815_v45 = vrot.slane %v788_v30, 2  ;;  %v865_v3 = vmul.f32 %v2283_v8, %v1926_v19  ;;  %v889_v46 = vrot.slane %v863_v36, 4  ;;  %v2400_v30 = vld [vmem:[%s2800_s0 + $0xa0] sm:$0xff] }
  0x30   :  { %1622 = vmatprep.mubr.msk.f32.mxu0 %vm1805_vm0, %v1804_v1  ;;  %1677 = vmatprep.mubr.msk.f32.mxu1 %vm1805_vm0, %v1804_v1  ;;  %v814_v42 = vsel %vm118_vm1, %v812_v29, %v813_v2  ;;  %v890_v48 = vrot.slane %v864_v38, 4  ;;  %v789_v49 = vmul.f32 %v2314_v39, %v1924_v18  ;;  %v548_v13 = vsel %vm118_vm1, %v545_v47, %v547_v4 }
  0x31   :  { %1761 = vmatprep.subr.mxu1 %v1804_v1  ;;  %v251_v52 = vadd.f32 %v224_v24, %v169_v40  ;;  %v761_v22 = vmul.f32 %v2262_v6, %v1922_v17  ;;  %v269_v26 = vadd.f32 %v2023_v53, %v250_v44  ;;  %v850_v55 = vadd.f32 %v814_v42, %v760_v14  ;;  %v2378_v24 = vld [vmem:[%s2800_s0 + $0x98] sm:$0xff] }
  0x32   :  { %1762 = vmatpush3.msra.mxu1 %v2029_v54  ;;  %v546_v54 = vsel %vm118_vm1, %v543_v37, %v545_v47  ;;  %v816_v56 = vsel %vm118_vm1, %v813_v2, %v815_v45  ;;  %v892_v57 = vrot.slane %v865_v3, 4  ;;  %v891_v50 = vsel %vm200_vm2, %v889_v46, %v890_v48  ;;  %v2422_v3 = vld [vmem:[%s2800_s0 + $0xa8] sm:$0xff] }
  0x33   :  { %1623 = vmatmul.mubr.msk.f32.gmra.mxu0 %vm277_vm3, %v266_v9  ;;  %1678 = vmatmul.mubr.msk.f32.gmra.mxu1 %vm277_vm3, %v544_v43  ;;  %v817_v51 = vrot.slane %v789_v49, 2  ;;  %v866_v58 = vmul.f32 %v2314_v39, %v1926_v19  ;;  %v790_v59 = vmul.f32 %v2335_v41, %v1924_v18  ;;  %v550_v60 = vsel %vm118_vm1, %v547_v4, %v549_v31 }
  0x34   :  { %1625 = vmatprep.mubr.msk.f32.mxu0 %vm1805_vm0, %v1804_v1  ;;  %1680 = vmatprep.mubr.msk.f32.mxu1 %vm1805_vm0, %v1804_v1  ;;  %v270_v21 = vadd.f32 %v2023_v53, %v251_v52  ;;  %v851_v62 = vadd.f32 %v816_v56, %v761_v22  ;;  %v927_v63 = vadd.f32 %v891_v50, %v850_v55  ;;  %v1192_v35 = vrot.slane %v2283_v8, 2 }
  0x35   :  { %v893_v5 = vsel %vm200_vm2, %v890_v48, %v892_v57  ;;  %v762_v7 = vmul.f32 %v2283_v8, %v1922_v17  ;;  %v867_v32 = vmul.f32 %v2335_v41, %v1926_v19  ;;  %v818_v37 = vsel %vm118_vm1, %v815_v45, %v817_v51 }
  0x36   :  { %v894_v9 = vrot.slane %v866_v58, 4  ;;  %v819_v11 = vrot.slane %v790_v59, 2  ;;  %v791_v15 = vmul.f32 %v2356_v61, %v1924_v18  ;;  %v928_v25 = vadd.f32 %v893_v5, %v851_v62 }
  0x37   :  { %1626 = vmatmul.mubr.msk.f32.gmra.mxu0 %vm277_vm3, %v267_v12  ;;  %1681 = vmatmul.mubr.msk.f32.gmra.mxu1 %vm277_vm3, %v546_v54  ;;  %v940_v27 = vadd.f32 %v2023_v53, %v927_v63  ;;  %v852_v28 = vadd.f32 %v818_v37, %v762_v7  ;;  %v763_v43 = vmul.f32 %v2314_v39, %v1922_v17  ;;  %v896_v47 = vrot.slane %v867_v32, 4  ;;  %v2466_v32 = vld [vmem:[%s2800_s0 + $0xb8] sm:$0xff] }
  0x38   :  { %1628 = vmatprep.mubr.msk.f32.mxu0 %vm1805_vm0, %v1804_v1  ;;  %1683 = vmatprep.mubr.msk.f32.mxu1 %vm1805_vm0, %v1804_v1  ;;  %v895_v0 = vsel %vm200_vm2, %v892_v57, %v894_v9  ;;  %v820_v6 = vsel %vm118_vm1, %v817_v51, %v819_v11  ;;  %v821_v12 = vrot.slane %v791_v15, 2  ;;  %v792_v33 = vmul.f32 %v2378_v24, %v1924_v18  ;;  %v2444_v57 = vld [vmem:[%s2800_s0 + $0xb0] sm:$0xff] }
  0x39   :  { %v1191_v34 = vsel %vm118_vm1, %v1189_v10, %v1190_v23  ;;  %v868_v16 = vmul.f32 %v2356_v61, %v1926_v19  ;;  %v941_v29 = vadd.f32 %v2023_v53, %v928_v25  ;;  %v929_v2 = vadd.f32 %v895_v0, %v852_v28  ;;  %v2488_v0 = vld [vmem:[%s2800_s0 + $0xc0] sm:$0xff] }
  0x3a   :  { %v853_v36 = vadd.f32 %v820_v6, %v763_v43  ;;  %v897_v38 = vsel %vm200_vm2, %v894_v9, %v896_v47  ;;  %v764_v54 = vmul.f32 %v2335_v41, %v1922_v17  ;;  %v822_v8 = vsel %vm118_vm1, %v819_v11, %v821_v12 }
  0x3b   :  { %1629 = vmatmul.mubr.msk.f32.gmra.mxu0 %vm277_vm3, %v268_v20  ;;  %1684 = vmatmul.mubr.msk.f32.gmra.mxu1 %vm277_vm3, %v548_v13  ;;  %v823_v4 = vrot.slane %v792_v33, 2  ;;  %v869_v40 = vmul.f32 %v2378_v24, %v1926_v19  ;;  %v793_v14 = vmul.f32 %v2400_v30, %v1924_v18  ;;  %v1193_v20 = vsel %vm118_vm1, %v1190_v23, %v1192_v35 }
  0x3c   :  { %1631 = vmatprep.mubr.msk.f32.mxu0 %vm1805_vm0, %v1804_v1  ;;  %1686 = vmatprep.mubr.msk.f32.mxu1 %vm1805_vm0, %v1804_v1  ;;  %v1194_v44 = vrot.slane %v2314_v39, 2  ;;  %v898_v45 = vrot.slane %v868_v16, 4  ;;  %v942_v42 = vadd.f32 %v2023_v53, %v929_v2  ;;  %v930_v46 = vadd.f32 %v897_v38, %v853_v36 }
  0x3d   :  { %v854_v48 = vadd.f32 %v822_v8, %v764_v54  ;;  %v765_v49 = vmul.f32 %v2356_v61, %v1922_v17  ;;  %v824_v13 = vsel %vm118_vm1, %v821_v12, %v823_v4  ;;  %v900_v39 = vrot.slane %v869_v40, 4  ;;  %v2510_v8 = vld [vmem:[%s2800_s0 + $0xc8] sm:$0xff] }
  0x3e   :  { %v870_v52 = vmul.f32 %v2400_v30, %v1926_v19  ;;  %v1195_v22 = vsel %vm118_vm1, %v1192_v35, %v1194_v44  ;;  %v1196_v55 = vrot.slane %v2335_v41, 2  ;;  %v794_v56 = vmul.f32 %v2422_v3, %v1924_v18 }
  0x3f   :  { %1632 = vmatmul.mubr.msk.f32.gmra.mxu0 %vm277_vm3, %v269_v26  ;;  %1687 = vmatmul.mubr.msk.f32.gmra.mxu1 %vm277_vm3, %v550_v60  ;;  %v899_v26 = vsel %vm200_vm2, %v896_v47, %v898_v45  ;;  %v943_v50 = vadd.f32 %v2023_v53, %v930_v46  ;;  %v855_v51 = vadd.f32 %v824_v13, %v765_v49  ;;  %v1198_v58 = vrot.slane %v2356_v61, 2 }
  0x40   :  { %1634 = vmatprep.mubr.msk.f32.mxu0 %vm1805_vm0, %v1804_v1  ;;  %1689 = vmatprep.mubr.msk.f32.mxu1 %vm1805_vm0, %v1804_v1  ;;  %v766_v59 = vmul.f32 %v2378_v24, %v1922_v17  ;;  %v931_v41 = vadd.f32 %v899_v26, %v854_v48  ;;  %v901_v60 = vsel %vm200_vm2, %v898_v45, %v900_v39  ;;  %v902_v62 = vrot.slane %v870_v52, 4 }
  0x41   :  { %v1197_v61 = vsel %vm118_vm1, %v1194_v44, %v1196_v55  ;;  %v827_v63 = vrot.slane %v794_v56, 2  ;;  %v871_v5 = vmul.f32 %v2422_v3, %v1926_v19  ;;  %v795_v7 = vmul.f32 %v2444_v57, %v1924_v18 }
  0x42   :  { %v1200_v37 = vrot.slane %v2378_v24, 2  ;;  %v932_v9 = vadd.f32 %v901_v60, %v855_v51  ;;  %v1199_v11 = vsel %vm118_vm1, %v1196_v55, %v1198_v58  ;;  %v767_v10 = vmul.f32 %v2400_v30, %v1922_v17 }
  0x43   :  { %1635 = vmatmul.mubr.msk.f32.gmra.mxu0 %vm277_vm3, %v270_v21  ;;  %1690 = vmatmul.mubr.msk.f32.gmra.mxu1 %vm277_vm3, %v549_v31  ;;  %v825_v31 = vrot.slane %v793_v14, 2  ;;  %v944_v23 = vadd.f32 %v2023_v53, %v931_v41  ;;  %v903_v25 = vsel %vm200_vm2, %v900_v39, %v902_v62  ;;  %v904_v28 = vrot.slane %v871_v5, 4 }
  0x44   :  { %1708 = vmatprep.mubr.msk.f32.mxu0 %vm1805_vm0, %v1804_v1  ;;  %1763 = vmatprep.mubr.msk.f32.mxu1 %vm1805_vm0, %v1804_v1  ;;  %v829_v43 = vrot.slane %v795_v7, 2  ;;  %v872_v47 = vmul.f32 %v2444_v57, %v1926_v19  ;;  %v945_v6 = vadd.f32 %v2023_v53, %v932_v9  ;;  %v1201_v33 = vsel %vm118_vm1, %v1198_v58, %v1200_v37 }
  0x45   :  { %v826_v21 = vsel %vm118_vm1, %v823_v4, %v825_v31  ;;  %v828_v24 = vsel %vm118_vm1, %v825_v31, %v827_v63  ;;  %v768_v16 = vmul.f32 %v2422_v3, %v1922_v17  ;;  %v873_v2 = vmul.f32 %v2466_v32, %v1926_v19 }
  0x46   :  { %v856_v15 = vadd.f32 %v826_v21, %v766_v59  ;;  %v857_v35 = vadd.f32 %v828_v24, %v767_v10  ;;  %v830_v36 = vsel %vm118_vm1, %v827_v63, %v829_v43  ;;  %v906_v38 = vrot.slane %v872_v47, 4 }
  0x47   :  { %1709 = vmatmul.mubr.msk.f32.vlgmr.msra.gmra.mxu0 %vm277_vm3, %v940_v27  ;;  %1764 = vmatmul.mubr.msk.f32.vlgmr.msra.gmra.mxu1 %vm277_vm3, %v1191_v34  ;;  %v796_v27 = vmul.f32 %v2466_v32, %v1924_v18  ;;  %v1202_v34 = vrot.slane %v2400_v30, 2  ;;  %v905_v30 = vsel %vm200_vm2, %v902_v62, %v904_v28  ;;  %v797_v54 = vmul.f32 %v2488_v0, %v1924_v18 }
  0x48   :  { %1711 = vmatprep.mubr.msk.f32.mxu0 %vm1805_vm0, %v1804_v1  ;;  %1766 = vmatprep.mubr.msk.f32.mxu1 %vm1805_vm0, %v1804_v1  ;;  %v933_v12 = vadd.f32 %v903_v25, %v856_v15  ;;  %v1204_v14 = vrot.slane %v2422_v3, 2  ;;  %v934_v44 = vadd.f32 %v905_v30, %v857_v35  ;;  %v858_v45 = vadd.f32 %v830_v36, %v768_v16 }
  0x49   :  { %v1203_v40 = vsel %vm118_vm1, %v1200_v37, %v1202_v34  ;;  %v908_v46 = vrot.slane %v873_v2, 4  ;;  %v907_v3 = vsel %vm200_vm2, %v904_v28, %v906_v38  ;;  %v833_v48 = vrot.slane %v797_v54, 2  ;;  %v2614_v2 = vld [vmem:[%s2805_s8] ss:$0 sm:$0xff] }
  0x4a   :  { %v946_v4 = vadd.f32 %v2023_v53, %v933_v12  ;;  %v874_v49 = vmul.f32 %v2488_v0, %v1926_v19  ;;  %v798_v13 = vmul.f32 %v2510_v8, %v1924_v18  ;;  %v1205_v39 = vsel %vm118_vm1, %v1202_v34, %v1204_v14 }
  0x4b   :  { %1712 = vmatmul.mubr.msk.f32.gmra.mxu0 %vm277_vm3, %v941_v29  ;;  %1767 = vmatmul.mubr.msk.f32.gmra.mxu1 %vm277_vm3, %v1193_v20  ;;  %v831_v29 = vrot.slane %v796_v27, 2  ;;  %v769_v20 = vmul.f32 %v2444_v57, %v1922_v17  ;;  %v770_v52 = vmul.f32 %v2466_v32, %v1922_v17  ;;  %v935_v26 = vadd.f32 %v907_v3, %v858_v45 }
  0x4c   :  { %1714 = vmatprep.mubr.msk.f32.mxu0 %vm1805_vm0, %v1804_v1  ;;  %1769 = vmatprep.mubr.msk.f32.mxu1 %vm1805_vm0, %v1804_v1  ;;  %v909_v55 = vsel %vm200_vm2, %v906_v38, %v908_v46  ;;  %v1206_v56 = vrot.slane %v2444_v57, 2  ;;  %v835_v51 = vrot.slane %v798_v13, 2  ;;  %v875_v58 = vmul.f32 %v2510_v8, %v1926_v19 }
  0x4d   :  { %v834_v18 = vsel %vm118_vm1, %v831_v29, %v833_v48  ;;  %v948_v41 = vadd.f32 %v2023_v53, %v935_v26  ;;  %v1208_v60 = vrot.slane %v2466_v32, 2  ;;  %v771_v21 = vmul.f32 %v2488_v0, %v1922_v17 }
  0x4e   :  { %v860_v57 = vadd.f32 %v834_v18, %v770_v52  ;;  %v1207_v19 = vsel %vm118_vm1, %v1204_v14, %v1206_v56  ;;  %v912_v63 = vrot.slane %v875_v58, 4  ;;  %v772_v37 = vmul.f32 %v2510_v8, %v1922_v17 }
  0x4f   :  { %1715 = vmatmul.mubr.msk.f32.gmra.mxu0 %vm277_vm3, %v942_v42  ;;  %1770 = vmatmul.mubr.msk.f32.gmra.mxu1 %vm277_vm3, %v1195_v22  ;;  %v832_v42 = vsel %vm118_vm1, %v829_v43, %v831_v29  ;;  %v947_v22 = vadd.f32 %v2023_v53, %v934_v44  ;;  %v1209_v9 = vsel %vm118_vm1, %v1206_v56, %v1208_v60  ;;  %v1210_v15 = vrot.slane %v2488_v0, 2  ;;  %v2598_v0 = vld [vmem:[%s2802_s4] ss:$0 sm:$0xff] }
  0x50   :  { %1717 = vmatprep.mubr.msk.f32.mxu0 %vm1805_vm0, %v1804_v1  ;;  %1772 = vmatprep.mubr.msk.f32.mxu1 %vm1805_vm0, %v1804_v1  ;;  %v859_v31 = vadd.f32 %v832_v42, %v769_v20  ;;  %v862_v17 = vadd.f32 %v835_v51, %v772_v37  ;;  %v1212_v27 = vrot.slane %v2510_v8, 2 }
  0x51   :  { %v1211_v25 = vsel %vm118_vm1, %v1208_v60, %v1210_v15 }
  0x52   :  { %v936_v59 = vadd.f32 %v909_v55, %v859_v31  ;;  %v939_v28 = vadd.f32 %v912_v63, %v862_v17  ;;  %v1213_v43 = vsel %vm118_vm1, %v1210_v15, %v1212_v27 }
  0x53   :  { %1718 = vmatmul.mubr.msk.f32.gmra.mxu0 %vm277_vm3, %v943_v50  ;;  %1773 = vmatmul.mubr.msk.f32.gmra.mxu1 %vm277_vm3, %v1197_v61  ;;  %v910_v50 = vrot.slane %v874_v49, 4  ;;  %v836_v61 = vsel %vm118_vm1, %v833_v48, %v835_v51 }
  0x54   :  { %1720 = vmatprep.mubr.msk.f32.mxu0 %vm1805_vm0, %v1804_v1  ;;  %1775 = vmatprep.mubr.msk.f32.mxu1 %vm1805_vm0, %v1804_v1  ;;  %v949_v5 = vadd.f32 %v2023_v53, %v936_v59  ;;  %v861_v32 = vadd.f32 %v836_v61, %v771_v21  ;;  %v952_v47 = vadd.f32 %v2023_v53, %v939_v28 }
  0x55   :  { %v911_v62 = vsel %vm200_vm2, %v908_v46, %v910_v50 }
  0x56   :  { %v937_v7 = vadd.f32 %v911_v62, %v860_v57 }
  0x57   :  { %1721 = vmatmul.mubr.msk.f32.gmra.mxu0 %vm277_vm3, %v944_v23  ;;  %1776 = vmatmul.mubr.msk.f32.gmra.mxu1 %vm277_vm3, %v1199_v11  ;;  %v913_v11 = vsel %vm200_vm2, %v910_v50, %v912_v63 }
  0x58   :  { %1723 = vmatprep.mubr.msk.f32.mxu0 %vm1805_vm0, %v1804_v1  ;;  %1778 = vmatprep.mubr.msk.f32.mxu1 %vm1805_vm0, %v1804_v1  ;;  %v950_v10 = vadd.f32 %v2023_v53, %v937_v7  ;;  %v938_v23 = vadd.f32 %v913_v11, %v861_v32 }
  0x5a   :  { %v951_v24 = vadd.f32 %v2023_v53, %v938_v23 }
  0x5b   :  { %1724 = vmatmul.mubr.msk.f32.gmra.mxu0 %vm277_vm3, %v945_v6  ;;  %1779 = vmatmul.mubr.msk.f32.gmra.mxu1 %vm277_vm3, %v1201_v33  ;;  %v2604_v33 = vld [vmem:[%s2803_s7] ss:$0 sm:$0xff] }
  0x5c   :  { %1726 = vmatprep.mubr.msk.f32.mxu0 %vm1805_vm0, %v1804_v1  ;;  %1781 = vmatprep.mubr.msk.f32.mxu1 %vm1805_vm0, %v1804_v1 }
  0x5f   :  { %1727 = vmatmul.mubr.msk.f32.gmra.mxu0 %vm277_vm3, %v946_v4  ;;  %1782 = vmatmul.mubr.msk.f32.gmra.mxu1 %vm277_vm3, %v1203_v40 }
  0x60   :  { %1729 = vmatprep.mubr.msk.f32.mxu0 %vm1805_vm0, %v1804_v1  ;;  %1784 = vmatprep.mubr.msk.f32.mxu1 %vm1805_vm0, %v1804_v1 }
  0x63   :  { %1730 = vmatmul.mubr.msk.f32.gmra.mxu0 %vm277_vm3, %v947_v22  ;;  %1785 = vmatmul.mubr.msk.f32.gmra.mxu1 %vm277_vm3, %v1205_v39 }
  0x64   :  { %1732 = vmatprep.mubr.msk.f32.mxu0 %vm1805_vm0, %v1804_v1  ;;  %1787 = vmatprep.mubr.msk.f32.mxu1 %vm1805_vm0, %v1804_v1 }
  0x67   :  { %1733 = vmatmul.mubr.msk.f32.gmra.mxu0 %vm277_vm3, %v948_v41  ;;  %1788 = vmatmul.mubr.msk.f32.gmra.mxu1 %vm277_vm3, %v1207_v19 }
  0x68   :  { %1735 = vmatprep.mubr.msk.f32.mxu0 %vm1805_vm0, %v1804_v1  ;;  %1790 = vmatprep.mubr.msk.f32.mxu1 %vm1805_vm0, %v1804_v1 }
  0x6b   :  { %1736 = vmatmul.mubr.msk.f32.gmra.mxu0 %vm277_vm3, %v949_v5  ;;  %1791 = vmatmul.mubr.msk.f32.gmra.mxu1 %vm277_vm3, %v1209_v9 }
  0x6c   :  { %1738 = vmatprep.mubr.msk.f32.mxu0 %vm1805_vm0, %v1804_v1  ;;  %1793 = vmatprep.mubr.msk.f32.mxu1 %vm1805_vm0, %v1804_v1 }
  0x6f   :  { %1739 = vmatmul.mubr.msk.f32.gmra.mxu0 %vm277_vm3, %v950_v10  ;;  %1794 = vmatmul.mubr.msk.f32.gmra.mxu1 %vm277_vm3, %v1211_v25 }
  0x70   :  { %1741 = vmatprep.mubr.msk.f32.mxu0 %vm1805_vm0, %v1804_v1  ;;  %1796 = vmatprep.mubr.msk.f32.mxu1 %vm1805_vm0, %v1804_v1 }
  0x73   :  { %1742 = vmatmul.mubr.msk.f32.gmra.mxu0 %vm277_vm3, %v951_v24  ;;  %1797 = vmatmul.mubr.msk.f32.gmra.mxu1 %vm277_vm3, %v1213_v43 }
  0x74   :  { %1744 = vmatprep.mubr.msk.f32.mxu0 %vm1805_vm0, %v1804_v1  ;;  %1799 = vmatprep.mubr.msk.f32.mxu1 %vm1805_vm0, %v1804_v1  ;;  %v2609_v1 = vld [vmem:[%s2804_s6] ss:$0 sm:$0xff] }
  0x77   :  { %1745 = vmatmul.mubr.msk.f32.gmra.mxu0 %vm277_vm3, %v952_v47  ;;  %1800 = vmatmul.mubr.msk.f32.gmra.mxu1 %vm277_vm3, %v1212_v27 }
  0xd3   :  { %v383_v6 = vpop.f32.mrf.mxu0  ;;  %v643_v12 = vpop.f32.mrf.mxu1 }
  0xd4   :  { %v384_v53 = vadd.f32 %v2598_v0, %v383_v6  ;;  %v644_v54 = vadd.f32 %v2609_v1, %v643_v12 }
  0xd5   :  { %v1600_v34 = vpop.f32.mrf.mxu0  ;;  %v1655_v35 = vpop.f32.mrf.mxu1 }
  0xd6   :  { %v447_v16 = vmax.f32 %v384_v53, 0.0 }
  0xd7   :  { %v388_v29 = vpop.f32.mrf.mxu0  ;;  %v648_v30 = vpop.f32.mrf.mxu1 }
  0xd8   :  { %v466_v36 = vmul.f32 %v2604_v33, %v447_v16  ;;  %v389_v38 = vadd.f32 %v2598_v0, %v388_v29  ;;  %v649_v3 = vadd.f32 %v2609_v1, %v648_v30 }
  0xd9   :  { %v1603_v8 = vpop.f32.mrf.mxu0  ;;  %v1658_v4 = vpop.f32.mrf.mxu1 }
  0xda   :  { %v448_v40 = vmax.f32 %v389_v38, 0.0  ;;  %v485_v14 = vadd.f32 %v2614_v2, %v466_v36 }
  0xdb   :  { %v393_v20 = vpop.f32.mrf.mxu0  ;;  %v653_v44 = vpop.f32.mrf.mxu1 }
  0xdc   :  { %v467_v45 = vmul.f32 %v2604_v33, %v448_v40  ;;  %v707_v42 = vadd.f32 %v644_v54, %v485_v14  ;;  %v394_v46 = vadd.f32 %v2598_v0, %v393_v20  ;;  %v654_v18 = vadd.f32 %v2609_v1, %v653_v44 }
  0xdd   :  { %v1606_v48 = vpop.f32.mrf.mxu0  ;;  %v1661_v49 = vpop.f32.mrf.mxu1 }
  0xde   :  { %v720_v13 = vmax.f32 %v707_v42, 0.0  ;;  %v449_v39 = vmax.f32 %v394_v46, 0.0  ;;  %v486_v31 = vadd.f32 %v2614_v2, %v467_v45 }
  0xdf   :  { %v398_v52 = vpop.f32.mrf.mxu0  ;;  %v658_v22 = vpop.f32.mrf.mxu1 }
  0xe0   :  { %733 = vst [vmem:[%s2806_s9] sm:$0xff] %v720_v13  ;;  %v468_v26 = vmul.f32 %v2604_v33, %v449_v39  ;;  %v708_v55 = vadd.f32 %v649_v3, %v486_v31  ;;  %v399_v56 = vadd.f32 %v2598_v0, %v398_v52  ;;  %v659_v61 = vadd.f32 %v2609_v1, %v658_v22 }
  0xe1   :  { %v1609_v50 = vpop.f32.mrf.mxu0  ;;  %v1664_v51 = vpop.f32.mrf.mxu1 }
  0xe2   :  { %v721_v58 = vmax.f32 %v708_v55, 0.0  ;;  %v450_v59 = vmax.f32 %v399_v56, 0.0  ;;  %v487_v41 = vadd.f32 %v2614_v2, %v468_v26 }
  0xe3   :  { %v403_v57 = vpop.f32.mrf.mxu0  ;;  %v663_v60 = vpop.f32.mrf.mxu1 }
  0xe4   :  { %734 = vst [vmem:[%s2806_s9 + $0x8] sm:$0xff] %v721_v58  ;;  %v469_v21 = vmul.f32 %v2604_v33, %v450_v59  ;;  %v709_v19 = vadd.f32 %v654_v18, %v487_v41  ;;  %v404_v62 = vadd.f32 %v2598_v0, %v403_v57  ;;  %v664_v17 = vadd.f32 %v2609_v1, %v663_v60 }
  0xe5   :  { %v1612_v63 = vpop.f32.mrf.mxu0  ;;  %v1667_v5 = vpop.f32.mrf.mxu1 }
  0xe6   :  { %v722_v7 = vmax.f32 %v709_v19, 0.0  ;;  %v451_v32 = vmax.f32 %v404_v62, 0.0  ;;  %v488_v37 = vadd.f32 %v2614_v2, %v469_v21 }
  0xe7   :  { %v408_v9 = vpop.f32.mrf.mxu0  ;;  %v668_v11 = vpop.f32.mrf.mxu1 }
  0xe8   :  { %735 = vst [vmem:[%s2806_s9 + $0x10] sm:$0xff] %v722_v7  ;;  %v470_v15 = vmul.f32 %v2604_v33, %v451_v32  ;;  %v710_v10 = vadd.f32 %v659_v61, %v488_v37  ;;  %v409_v23 = vadd.f32 %v2598_v0, %v408_v9  ;;  %v669_v35 = vadd.f32 %v2609_v1, %v668_v11 }
  0xe9   :  { %v1615_v25 = vpop.f32.mrf.mxu0  ;;  %v1670_v27 = vpop.f32.mrf.mxu1 }
  0xea   :  { %v723_v24 = vmax.f32 %v710_v10, 0.0  ;;  %v452_v28 = vmax.f32 %v409_v23, 0.0  ;;  %v489_v43 = vadd.f32 %v2614_v2, %v470_v15 }
  0xeb   :  { %v413_v47 = vpop.f32.mrf.mxu0  ;;  %v673_v6 = vpop.f32.mrf.mxu1 }
  0xec   :  { %736 = vst [vmem:[%s2806_s9 + $0x18] sm:$0xff] %v723_v24  ;;  %v471_v12 = vmul.f32 %v2604_v33, %v452_v28  ;;  %v711_v53 = vadd.f32 %v664_v17, %v489_v43  ;;  %v414_v34 = vadd.f32 %v2598_v0, %v413_v47  ;;  %v674_v20 = vadd.f32 %v2609_v1, %v673_v6 }
  0xed   :  { %v1618_v16 = vpop.f32.mrf.mxu0  ;;  %v1673_v29 = vpop.f32.mrf.mxu1 }
  0xee   :  { %v724_v30 = vmax.f32 %v711_v53, 0.0  ;;  %v453_v36 = vmax.f32 %v414_v34, 0.0  ;;  %v490_v38 = vadd.f32 %v2614_v2, %v471_v12 }
  0xef   :  { %v418_v54 = vpop.f32.mrf.mxu0  ;;  %v678_v8 = vpop.f32.mrf.mxu1 }
  0xf0   :  { %737 = vst [vmem:[%s2806_s9 + $0x20] sm:$0xff] %v724_v30  ;;  %v472_v4 = vmul.f32 %v2604_v33, %v453_v36  ;;  %v712_v40 = vadd.f32 %v669_v35, %v490_v38  ;;  %v419_v14 = vadd.f32 %v2598_v0, %v418_v54  ;;  %v679_v52 = vadd.f32 %v2609_v1, %v678_v8 }
  0xf1   :  { %v1621_v44 = vpop.f32.mrf.mxu0  ;;  %v1676_v45 = vpop.f32.mrf.mxu1 }
  0xf2   :  { %v725_v42 = vmax.f32 %v712_v40, 0.0  ;;  %v454_v46 = vmax.f32 %v419_v14, 0.0  ;;  %v491_v3 = vadd.f32 %v2614_v2, %v472_v4 }
  0xf3   :  { %v423_v48 = vpop.f32.mrf.mxu0  ;;  %v683_v49 = vpop.f32.mrf.mxu1 }
  0xf4   :  { %738 = vst [vmem:[%s2806_s9 + $0x28] sm:$0xff] %v725_v42  ;;  %v473_v13 = vmul.f32 %v2604_v33, %v454_v46  ;;  %v713_v39 = vadd.f32 %v674_v20, %v491_v3  ;;  %v424_v31 = vadd.f32 %v2598_v0, %v423_v48  ;;  %v684_v57 = vadd.f32 %v2609_v1, %v683_v49 }
  0xf5   :  { %v1624_v22 = vpop.f32.mrf.mxu0  ;;  %v1679_v26 = vpop.f32.mrf.mxu1 }
  0xf6   :  { %v726_v55 = vmax.f32 %v713_v39, 0.0  ;;  %v455_v56 = vmax.f32 %v424_v31, 0.0  ;;  %v492_v18 = vadd.f32 %v2614_v2, %v473_v13 }
  0xf7   :  { %v428_v50 = vpop.f32.mrf.mxu0  ;;  %v688_v51 = vpop.f32.mrf.mxu1 }
  0xf8   :  { %739 = vst [vmem:[%s2806_s9 + $0x30] sm:$0xff] %v726_v55  ;;  %v474_v58 = vmul.f32 %v2604_v33, %v455_v56  ;;  %v714_v59 = vadd.f32 %v679_v52, %v492_v18  ;;  %v429_v41 = vadd.f32 %v2598_v0, %v428_v50  ;;  %v689_v9 = vadd.f32 %v2609_v1, %v688_v51 }
  0xf9   :  { %v1627_v60 = vpop.f32.mrf.mxu0  ;;  %v1682_v21 = vpop.f32.mrf.mxu1 }
  0xfa   :  { %v727_v19 = vmax.f32 %v714_v59, 0.0  ;;  %v456_v62 = vmax.f32 %v429_v41, 0.0  ;;  %v493_v61 = vadd.f32 %v2614_v2, %v474_v58 }
  0xfb   :  { %v433_v63 = vpop.f32.mrf.mxu0  ;;  %v693_v5 = vpop.f32.mrf.mxu1 }
  0xfc   :  { %740 = vst [vmem:[%s2806_s9 + $0x38] sm:$0xff] %v727_v19  ;;  %v475_v7 = vmul.f32 %v2604_v33, %v456_v62  ;;  %v715_v32 = vadd.f32 %v684_v57, %v493_v61  ;;  %v434_v37 = vadd.f32 %v2598_v0, %v433_v63  ;;  %v694_v47 = vadd.f32 %v2609_v1, %v693_v5 }
  0xfd   :  { %v1630_v11 = vpop.f32.mrf.mxu0  ;;  %v1685_v15 = vpop.f32.mrf.mxu1 }
  0xfe   :  { %v728_v10 = vmax.f32 %v715_v32, 0.0  ;;  %v457_v23 = vmax.f32 %v434_v37, 0.0  ;;  %v494_v17 = vadd.f32 %v2614_v2, %v475_v7 }
  0xff   :  { %v438_v25 = vpop.f32.mrf.mxu0  ;;  %v698_v27 = vpop.f32.mrf.mxu1 }
 0x100   :  { %741 = vst [vmem:[%s2806_s9 + $0x40] sm:$0xff] %v728_v10  ;;  %v476_v24 = vmul.f32 %v2604_v33, %v457_v23  ;;  %v716_v28 = vadd.f32 %v689_v9, %v494_v17  ;;  %v439_v43 = vadd.f32 %v2598_v0, %v438_v25  ;;  %v699_v54 = vadd.f32 %v2609_v1, %v698_v27 }
 0x101   :  { %v1633_v6 = vpop.f32.mrf.mxu0  ;;  %v1688_v12 = vpop.f32.mrf.mxu1 }
 0x102   :  { %v729_v53 = vmax.f32 %v716_v28, 0.0  ;;  %v458_v34 = vmax.f32 %v439_v43, 0.0  ;;  %v495_v35 = vadd.f32 %v2614_v2, %v476_v24 }
 0x103   :  { %v443_v16 = vpop.f32.mrf.mxu0  ;;  %v703_v29 = vpop.f32.mrf.mxu1 }
 0x104   :  { %742 = vst [vmem:[%s2806_s9 + $0x48] sm:$0xff] %v729_v53  ;;  %v477_v30 = vmul.f32 %v2604_v33, %v458_v34  ;;  %v717_v36 = vadd.f32 %v694_v47, %v495_v35  ;;  %v444_v38 = vadd.f32 %v2598_v0, %v443_v16  ;;  %v704_v3 = vadd.f32 %v2609_v1, %v703_v29 }
 0x105   :  { %v1636_v8 = vpop.f32.mrf.mxu0  ;;  %v1691_v4 = vpop.f32.mrf.mxu1 }
 0x106   :  { %v730_v40 = vmax.f32 %v717_v36, 0.0  ;;  %v459_v14 = vmax.f32 %v444_v38, 0.0  ;;  %v496_v20 = vadd.f32 %v2614_v2, %v477_v30 }
 0x107   :  { %v1058_v44 = vpop.f32.mrf.mxu0  ;;  %v1306_v45 = vpop.f32.mrf.mxu1 }
 0x108   :  { %743 = vst [vmem:[%s2806_s9 + $0x50] sm:$0xff] %v730_v40  ;;  %v478_v42 = vmul.f32 %v2604_v33, %v459_v14  ;;  %v718_v46 = vadd.f32 %v699_v54, %v496_v20  ;;  %v1059_v48 = vadd.f32 %v2598_v0, %v1058_v44  ;;  %v1307_v50 = vadd.f32 %v2609_v1, %v1306_v45 }
 0x109   :  { %v1710_v49 = vpop.f32.mrf.mxu0  ;;  %v1765_v13 = vpop.f32.mrf.mxu1 }
 0x10a   :  { %v731_v39 = vmax.f32 %v718_v46, 0.0  ;;  %v497_v31 = vadd.f32 %v2614_v2, %v478_v42  ;;  %v1122_v52 = vmax.f32 %v1059_v48, 0.0 }
 0x10b   :  { %v1063_v22 = vpop.f32.mrf.mxu0  ;;  %v1311_v26 = vpop.f32.mrf.mxu1 }
 0x10c   :  { %744 = vst [vmem:[%s2806_s9 + $0x58] sm:$0xff] %v731_v39  ;;  %v719_v55 = vadd.f32 %v704_v3, %v497_v31  ;;  %v1135_v56 = vmul.f32 %v2604_v33, %v1122_v52  ;;  %v1064_v18 = vadd.f32 %v2598_v0, %v1063_v22  ;;  %v1312_v63 = vadd.f32 %v2609_v1, %v1311_v26 }
 0x10d   :  { %v1713_v51 = vpop.f32.mrf.mxu0  ;;  %v1768_v58 = vpop.f32.mrf.mxu1 }
 0x10e   :  { %v732_v59 = vmax.f32 %v719_v55, 0.0  ;;  %v1123_v41 = vmax.f32 %v1064_v18, 0.0  ;;  %v1148_v57 = vadd.f32 %v2614_v2, %v1135_v56 }
 0x10f   :  { %v1068_v60 = vpop.f32.mrf.mxu0  ;;  %v1316_v21 = vpop.f32.mrf.mxu1 }
 0x110   :  { %745 = vst [vmem:[%s2806_s9 + $0x60] sm:$0xf] %v732_v59  ;;  %v1136_v19 = vmul.f32 %v2604_v33, %v1123_v41  ;;  %v1370_v62 = vadd.f32 %v1307_v50, %v1148_v57  ;;  %v1069_v61 = vadd.f32 %v2598_v0, %v1068_v60  ;;  %v1317_v25 = vadd.f32 %v2609_v1, %v1316_v21 }
 0x111   :  { %v1716_v5 = vpop.f32.mrf.mxu0  ;;  %v1771_v7 = vpop.f32.mrf.mxu1 }
 0x112   :  { %v1383_v32 = vmax.f32 %v1370_v62, 0.0  ;;  %v1124_v37 = vmax.f32 %v1069_v61, 0.0  ;;  %v1149_v9 = vadd.f32 %v2614_v2, %v1136_v19 }
 0x113   :  { %v1073_v11 = vpop.f32.mrf.mxu0  ;;  %v1321_v15 = vpop.f32.mrf.mxu1 }
 0x114   :  { %1485 = vst [vmem:[%s2806_s9 + $0x68] sm:$0xff] %v1383_v32  ;;  %v1137_v10 = vmul.f32 %v2604_v33, %v1124_v37  ;;  %v1371_v23 = vadd.f32 %v1312_v63, %v1149_v9  ;;  %v1074_v17 = vadd.f32 %v2598_v0, %v1073_v11  ;;  %v1322_v16 = vadd.f32 %v2609_v1, %v1321_v15 }
 0x115   :  { %v1719_v27 = vpop.f32.mrf.mxu0  ;;  %v1774_v24 = vpop.f32.mrf.mxu1 }
 0x116   :  { %v1384_v28 = vmax.f32 %v1371_v23, 0.0  ;;  %v1125_v43 = vmax.f32 %v1074_v17, 0.0  ;;  %v1150_v47 = vadd.f32 %v2614_v2, %v1137_v10 }
 0x117   :  { %v1078_v6 = vpop.f32.mrf.mxu0  ;;  %v1326_v12 = vpop.f32.mrf.mxu1 }
 0x118   :  { %1486 = vst [vmem:[%s2806_s9 + $0x70] sm:$0xff] %v1384_v28  ;;  %v1138_v53 = vmul.f32 %v2604_v33, %v1125_v43  ;;  %v1372_v34 = vadd.f32 %v1317_v25, %v1150_v47  ;;  %v1079_v35 = vadd.f32 %v2598_v0, %v1078_v6  ;;  %v1327_v44 = vadd.f32 %v2609_v1, %v1326_v12 }
 0x119   :  { %v1722_v29 = vpop.f32.mrf.mxu0  ;;  %v1777_v30 = vpop.f32.mrf.mxu1 }
 0x11a   :  { %v1385_v36 = vmax.f32 %v1372_v34, 0.0  ;;  %v1126_v38 = vmax.f32 %v1079_v35, 0.0  ;;  %v1151_v54 = vadd.f32 %v2614_v2, %v1138_v53 }
 0x11b   :  { %v1083_v8 = vpop.f32.mrf.mxu0  ;;  %v1331_v4 = vpop.f32.mrf.mxu1 }
 0x11c   :  { %1487 = vst [vmem:[%s2806_s9 + $0x78] sm:$0xff] %v1385_v36  ;;  %v1139_v40 = vmul.f32 %v2604_v33, %v1126_v38  ;;  %v1373_v14 = vadd.f32 %v1322_v16, %v1151_v54  ;;  %v1084_v20 = vadd.f32 %v2598_v0, %v1083_v8  ;;  %v1332_v22 = vadd.f32 %v2609_v1, %v1331_v4 }
 0x11d   :  { %v1725_v45 = vpop.f32.mrf.mxu0  ;;  %v1780_v42 = vpop.f32.mrf.mxu1 }
 0x11e   :  { %v1386_v46 = vmax.f32 %v1373_v14, 0.0  ;;  %v1127_v3 = vmax.f32 %v1084_v20, 0.0  ;;  %v1152_v48 = vadd.f32 %v2614_v2, %v1139_v40 }
 0x11f   :  { %v1088_v49 = vpop.f32.mrf.mxu0  ;;  %v1336_v13 = vpop.f32.mrf.mxu1 }
 0x120   :  { %1488 = vst [vmem:[%s2806_s9 + $0x80] sm:$0xff] %v1386_v46  ;;  %v1140_v39 = vmul.f32 %v2604_v33, %v1127_v3  ;;  %v1374_v31 = vadd.f32 %v1327_v44, %v1152_v48  ;;  %v1089_v52 = vadd.f32 %v2598_v0, %v1088_v49  ;;  %v1337_v60 = vadd.f32 %v2609_v1, %v1336_v13 }
 0x121   :  { %v1728_v26 = vpop.f32.mrf.mxu0  ;;  %v1783_v55 = vpop.f32.mrf.mxu1 }
 0x122   :  { %v1387_v56 = vmax.f32 %v1374_v31, 0.0  ;;  %v1128_v18 = vmax.f32 %v1089_v52, 0.0  ;;  %v1153_v50 = vadd.f32 %v2614_v2, %v1140_v39 }
 0x123   :  { %v1093_v51 = vpop.f32.mrf.mxu0  ;;  %v1341_v58 = vpop.f32.mrf.mxu1 }
 0x124   :  { %1489 = vst [vmem:[%s2806_s9 + $0x88] sm:$0xff] %v1387_v56  ;;  %v1141_v59 = vmul.f32 %v2604_v33, %v1128_v18  ;;  %v1375_v41 = vadd.f32 %v1332_v22, %v1153_v50  ;;  %v1094_v57 = vadd.f32 %v2598_v0, %v1093_v51  ;;  %v1342_v11 = vadd.f32 %v2609_v1, %v1341_v58 }
 0x125   :  { %v1731_v21 = vpop.f32.mrf.mxu0  ;;  %v1786_v19 = vpop.f32.mrf.mxu1 }
 0x126   :  { %v1388_v62 = vmax.f32 %v1375_v41, 0.0  ;;  %v1129_v61 = vmax.f32 %v1094_v57, 0.0  ;;  %v1154_v63 = vadd.f32 %v2614_v2, %v1141_v59 }
 0x127   :  { %v1098_v5 = vpop.f32.mrf.mxu0  ;;  %v1346_v7 = vpop.f32.mrf.mxu1 }
 0x128   :  { %1490 = vst [vmem:[%s2806_s9 + $0x90] sm:$0xff] %v1388_v62  ;;  %v1142_v32 = vmul.f32 %v2604_v33, %v1129_v61  ;;  %v1376_v37 = vadd.f32 %v1337_v60, %v1154_v63  ;;  %v1099_v9 = vadd.f32 %v2598_v0, %v1098_v5  ;;  %v1347_v6 = vadd.f32 %v2609_v1, %v1346_v7 }
 0x129   :  { %v1734_v15 = vpop.f32.mrf.mxu0  ;;  %v1789_v10 = vpop.f32.mrf.mxu1 }
 0x12a   :  { %v1389_v23 = vmax.f32 %v1376_v37, 0.0  ;;  %v1130_v17 = vmax.f32 %v1099_v9, 0.0  ;;  %v1155_v25 = vadd.f32 %v2614_v2, %v1142_v32 }
 0x12b   :  { %v1103_v27 = vpop.f32.mrf.mxu0  ;;  %v1351_v24 = vpop.f32.mrf.mxu1 }
 0x12c   :  { %1491 = vst [vmem:[%s2806_s9 + $0x98] sm:$0xff] %v1389_v23  ;;  %v1143_v28 = vmul.f32 %v2604_v33, %v1130_v17  ;;  %v1377_v43 = vadd.f32 %v1342_v11, %v1155_v25  ;;  %v1104_v47 = vadd.f32 %v2598_v0, %v1103_v27  ;;  %v1352_v8 = vadd.f32 %v2609_v1, %v1351_v24 }
 0x12d   :  { %v1737_v12 = vpop.f32.mrf.mxu0  ;;  %v1792_v53 = vpop.f32.mrf.mxu1 }
 0x12e   :  { %v1390_v34 = vmax.f32 %v1377_v43, 0.0  ;;  %v1131_v35 = vmax.f32 %v1104_v47, 0.0  ;;  %v1156_v16 = vadd.f32 %v2614_v2, %v1143_v28 }
 0x12f   :  { %v1108_v29 = vpop.f32.mrf.mxu0  ;;  %v1356_v30 = vpop.f32.mrf.mxu1 }
 0x130   :  { %1492 = vst [vmem:[%s2806_s9 + $0xa0] sm:$0xff] %v1390_v34  ;;  %v1144_v36 = vmul.f32 %v2604_v33, %v1131_v35  ;;  %v1378_v38 = vadd.f32 %v1347_v6, %v1156_v16  ;;  %v1109_v54 = vadd.f32 %v2598_v0, %v1108_v29  ;;  %v1357_v49 = vadd.f32 %v2609_v1, %v1356_v30 }
 0x131   :  { %v1740_v4 = vpop.f32.mrf.mxu0  ;;  %v1795_v40 = vpop.f32.mrf.mxu1 }
 0x132   :  { %v1391_v14 = vmax.f32 %v1378_v38, 0.0  ;;  %v1132_v20 = vmax.f32 %v1109_v54, 0.0  ;;  %v1157_v44 = vadd.f32 %v2614_v2, %v1144_v36 }
 0x133   :  { %v1113_v45 = vpop.f32.mrf.mxu0  ;;  %v1361_v42 = vpop.f32.mrf.mxu1 }
 0x134   :  { %1493 = vst [vmem:[%s2806_s9 + $0xa8] sm:$0xff] %v1391_v14  ;;  %v1145_v46 = vmul.f32 %v2604_v33, %v1132_v20  ;;  %v1379_v3 = vadd.f32 %v1352_v8, %v1157_v44  ;;  %v1114_v48 = vadd.f32 %v2598_v0, %v1113_v45  ;;  %v1362_v51 = vadd.f32 %v2609_v1, %v1361_v42 }
 0x135   :  { %v1743_v13 = vpop.f32.mrf.mxu0  ;;  %v1798_v39 = vpop.f32.mrf.mxu1 }
 0x136   :  { %v1392_v31 = vmax.f32 %v1379_v3, 0.0  ;;  %v1133_v52 = vmax.f32 %v1114_v48, 0.0  ;;  %v1158_v22 = vadd.f32 %v2614_v2, %v1145_v46 }
 0x137   :  { %v1118_v26 = vpop.f32.mrf.mxu0  ;;  %v1366_v55 = vpop.f32.mrf.mxu1 }
 0x138   :  { %1494 = vst [vmem:[%s2806_s9 + $0xb0] sm:$0xff] %v1392_v31  ;;  %v1146_v56 = vmul.f32 %v2604_v33, %v1133_v52  ;;  %v1380_v18 = vadd.f32 %v1357_v49, %v1158_v22  ;;  %v1119_v50 = vadd.f32 %v2598_v0, %v1118_v26  ;;  %v1367_v62 = vadd.f32 %v2609_v1, %v1366_v55 }
 0x139   :  { %v1746_v58 = vpop.f32.mrf.mxu0  ;;  %v1801_v59 = vpop.f32.mrf.mxu1 }
 0x13a   :  { %v1393_v41 = vmax.f32 %v1380_v18, 0.0  ;;  %v1134_v57 = vmax.f32 %v1119_v50, 0.0  ;;  %v1159_v60 = vadd.f32 %v2614_v2, %v1146_v56 }
 0x13c   :  { %1495 = vst [vmem:[%s2806_s9 + $0xb8] sm:$0xff] %v1393_v41  ;;  %v1147_v21 = vmul.f32 %v2604_v33, %v1134_v57  ;;  %v1381_v19 = vadd.f32 %v1362_v51, %v1159_v60 }
 0x13e   :  { %v1394_v61 = vmax.f32 %v1381_v19, 0.0  ;;  %v1160_v0 = vadd.f32 %v2614_v2, %v1147_v21 }
 0x140   :  { %1496 = vst [vmem:[%s2806_s9 + $0xc0] sm:$0xff] %v1394_v61  ;;  %v1382_v63 = vadd.f32 %v1367_v62, %v1160_v0 }
 0x142   :  { %v1395_v5 = vmax.f32 %v1382_v63, 0.0 }
 0x144   :  { %1497 = vst [vmem:[%s2806_s9 + $0xc8] sm:$0xf] %v1395_v5 }

// kernel: _lambda_.14
= control target key start
LH: loop header
LB: loop body
LE: loop exit
PB: predicated region body
PF: predicated region fallthrough
CT: control target
= control target key end

     0   :  { %v3102_v3 = vmov 0.0   ;;  %v83_v21 = vlaneseq  ;;  %vm143_vm0 = vcmask 1044480   ;;  %vm227_vm1 = vcmask 1041408   ;;  %s3092_s3 = inlined_call_operand.vmem [shape: f32[128,256], index: 3, kind: input, shape index: {}]   ;;  %s3093_s5 = inlined_call_operand.vmem [shape: f32[128,256], index: 5, kind: input, shape index: {}]   ;;  %s3094_s1 = inlined_call_operand.vmem [shape: f32[3,128], index: 1, kind: input, shape index: {}]   ;;  %s3095_s0 = inlined_call_operand.vmem [shape: f32[2,106,128], index: 0, kind: input, shape index: {}]   ;;  %s3096_s2 = inlined_call_operand.vmem [shape: f32[1,128], index: 2, kind: input, shape index: {}]   ;;  %s3097_s4 = inlined_call_operand.vmem [shape: f32[1,256], index: 4, kind: input, shape index: {}, may-alias: {4,6,8}]   ;;  %s3098_s7 = inlined_call_operand.vmem [shape: f32[1,256], index: 7, kind: input, shape index: {}]   ;;  %s3099_s6 = inlined_call_operand.vmem [shape: f32[1,256], index: 6, kind: input, shape index: {}, may-alias: {4,6,8}]   ;;  %s3100_s8 = inlined_call_operand.vmem [shape: f32[1,256], index: 8, kind: input, shape index: {}, may-alias: {4,6,8}]   ;;  %s3101_s9 = inlined_call_operand.vmem [shape: f32[2,100,256], index: 9, kind: output, shape index: {}]  }
   0x1   :  { %v1720_v0 = vld [vmem:[%s3092_s3 + $0xf8] sm:$0xff]  ;;  %v1725_v1 = vld [vmem:[%s3092_s3 + $0xf0] sm:$0xff]  ;;  %v1730_v2 = vld [vmem:[%s3092_s3 + $0xe8] sm:$0xff]  ;;  %375 = vmatprep.mubr.f32.mxu0 %v3102_v3  ;;  %713 = vmatprep.mubr.f32.mxu1 %v3102_v3 }
   0x2   :  { %311 = vmatprep.subr.mxu0 %v1720_v0  ;;  %v1738_v4 = vld [vmem:[%s3092_s3 + $0xe0] sm:$0xff]  ;;  %v1744_v5 = vld [vmem:[%s3092_s3 + $0xd8] sm:$0xff]  ;;  %v1754_v7 = vld [vmem:[%s3093_s5 + $0xf0] sm:$0xff]  ;;  %v84_v30 = vshrl.u32 %v83_v21, 7 }
   0x3   :  { %312 = vmatpush1.msra.mxu0 %v1725_v1  ;;  %v1749_v6 = vld [vmem:[%s3093_s5 + $0xf8] sm:$0xff]  ;;  %v1760_v8 = vld [vmem:[%s3092_s3 + $0xd0] sm:$0xff]  ;;  %v1766_v9 = vld [vmem:[%s3093_s5 + $0xe8] sm:$0xff] }
   0x4   :  { %313 = vmatprep.subr.mxu0 %v1730_v2  ;;  %649 = vmatprep.subr.mxu1 %v1749_v6  ;;  %v1772_v10 = vld [vmem:[%s3092_s3 + $0xc8] sm:$0xff]  ;;  %v1778_v11 = vld [vmem:[%s3093_s5 + $0xe0] sm:$0xff]  ;;  %v1783_v12 = vld [vmem:[%s3093_s5 + $0xd8] sm:$0xff]  ;;  %v1929_v39 = vsub.s32 0, %v84_v30  ;;  %v1931_v40 = vsub.s32 1, %v84_v30  ;;  %v197_v41 = vsub.s32 2, %v84_v30 }
   0x5   :  { %314 = vmatpush1.msra.mxu0 %v1738_v4  ;;  %650 = vmatpush1.msra.mxu1 %v1754_v7  ;;  %v1789_v13 = vld [vmem:[%s3092_s3 + $0xc0] sm:$0xff]  ;;  %v1795_v14 = vld [vmem:[%s3093_s5 + $0xd0] sm:$0xff]  ;;  %v1801_v15 = vld [vmem:[%s3092_s3 + $0xb8] sm:$0xff] }
   0x6   :  { %315 = vmatprep.subr.mxu0 %v1744_v5  ;;  %651 = vmatprep.subr.mxu1 %v1766_v9  ;;  %v1807_v16 = vld [vmem:[%s3093_s5 + $0xc8] sm:$0xff]  ;;  %v1813_v17 = vld [vmem:[%s3092_s3 + $0xb0] sm:$0xff]  ;;  %v1819_v18 = vld [vmem:[%s3093_s5 + $0xc0] sm:$0xff]  ;;  %3138 = vst [vmem:[#allocation6_spill] sm:$0xff] %v1929_v39 }
   0x7   :  { %316 = vmatpush1.msra.mxu0 %v1760_v8  ;;  %652 = vmatpush1.msra.mxu1 %v1778_v11  ;;  %v1825_v19 = vld [vmem:[%s3092_s3 + $0xa8] sm:$0xff]  ;;  %v1831_v20 = vld [vmem:[%s3093_s5 + $0xb8] sm:$0xff]  ;;  %v1837_v22 = vld [vmem:[%s3092_s3 + $0xa0] sm:$0xff]  ;;  %3139 = vst [vmem:[#allocation7_spill] sm:$0xff] %v1931_v40 }
   0x8   :  { %317 = vmatprep.subr.mxu0 %v1772_v10  ;;  %653 = vmatprep.subr.mxu1 %v1783_v12  ;;  %v1843_v23 = vld [vmem:[%s3093_s5 + $0xb0] sm:$0xff]  ;;  %v1849_v24 = vld [vmem:[%s3092_s3 + $0x98] sm:$0xff]  ;;  %v1855_v25 = vld [vmem:[%s3093_s5 + $0xa8] sm:$0xff] }
   0x9   :  { %318 = vmatpush1.msra.mxu0 %v1789_v13  ;;  %654 = vmatpush1.msra.mxu1 %v1795_v14  ;;  %v1861_v26 = vld [vmem:[%s3092_s3 + $0x90] sm:$0xff]  ;;  %v1867_v27 = vld [vmem:[%s3093_s5 + $0xa0] sm:$0xff]  ;;  %v1873_v28 = vld [vmem:[%s3092_s3 + $0x88] sm:$0xff] }
   0xa   :  { %319 = vmatprep.subr.mxu0 %v1801_v15  ;;  %655 = vmatprep.subr.mxu1 %v1807_v16  ;;  %v1879_v29 = vld [vmem:[%s3093_s5 + $0x98] sm:$0xff]  ;;  %v1885_v31 = vld [vmem:[%s3092_s3 + $0x80] sm:$0xff]  ;;  %v1891_v32 = vld [vmem:[%s3093_s5 + $0x90] sm:$0xff] }
   0xb   :  { %320 = vmatpush1.msra.mxu0 %v1813_v17  ;;  %656 = vmatpush1.msra.mxu1 %v1819_v18  ;;  %v1897_v33 = vld [vmem:[%s3092_s3 + $0x78] sm:$0xff]  ;;  %v1903_v34 = vld [vmem:[%s3093_s5 + $0x88] sm:$0xff]  ;;  %v1909_v35 = vld [vmem:[%s3092_s3 + $0x70] sm:$0xff] }
   0xc   :  { %321 = vmatprep.subr.mxu0 %v1825_v19  ;;  %657 = vmatprep.subr.mxu1 %v1831_v20  ;;  %3134 = vst [vmem:[#allocation2_spill] sm:$0xff] %v1903_v34  ;;  %v1915_v36 = vld [vmem:[%s3093_s5 + $0x80] sm:$0xff]  ;;  %v1921_v37 = vld [vmem:[%s3092_s3 + $0x68] sm:$0xff]  ;;  %v1927_v38 = vld [vmem:[%s3093_s5 + $0x78] sm:$0xff] }
   0xd   :  { %322 = vmatpush1.msra.mxu0 %v1837_v22  ;;  %658 = vmatpush1.msra.mxu1 %v1843_v23  ;;  %3135 = vst [vmem:[#allocation3_spill] sm:$0xff] %v1915_v36  ;;  %3136 = vst [vmem:[#allocation4_spill] sm:$0xff] %v1921_v37  ;;  %v1937_v42 = vld [vmem:[%s3092_s3 + $0x60] sm:$0xff]  ;;  %v1943_v43 = vld [vmem:[%s3093_s5 + $0x70] sm:$0xff] }
   0xe   :  { %323 = vmatprep.subr.mxu0 %v1849_v24  ;;  %659 = vmatprep.subr.mxu1 %v1855_v25  ;;  %3137 = vst [vmem:[#allocation5_spill] sm:$0xff] %v1927_v38  ;;  %3140 = vst [vmem:[#allocation8_spill] sm:$0xff] %v1937_v42  ;;  %v1949_v44 = vld [vmem:[%s3092_s3 + $0x58] sm:$0xff]  ;;  %v1955_v45 = vld [vmem:[%s3092_s3 + $0x50] sm:$0xff] }
   0xf   :  { %324 = vmatpush1.msra.mxu0 %v1861_v26  ;;  %660 = vmatpush1.msra.mxu1 %v1867_v27  ;;  %3141 = vst [vmem:[#allocation9_spill] sm:$0xff] %v1943_v43  ;;  %3142 = vst [vmem:[#allocation10_spill] sm:$0xff] %v1949_v44  ;;  %v1960_v46 = vld [vmem:[%s3093_s5 + $0x68] sm:$0xff]  ;;  %v1972_v48 = vld [vmem:[%s3093_s5 + $0x60] sm:$0xff] }
  0x10   :  { %325 = vmatprep.subr.mxu0 %v1873_v28  ;;  %661 = vmatprep.subr.mxu1 %v1879_v29  ;;  %3143 = vst [vmem:[#allocation11_spill] sm:$0xff] %v1955_v45  ;;  %3144 = vst [vmem:[#allocation12_spill] sm:$0xff] %v1960_v46  ;;  %v1967_v47 = vld [vmem:[%s3092_s3 + $0x48] sm:$0xff]  ;;  %v32_v49 = vld [vmem:[%s3094_s1] sm:$0x7] }
  0x11   :  { %326 = vmatpush1.msra.mxu0 %v1885_v31  ;;  %662 = vmatpush1.msra.mxu1 %v1891_v32  ;;  %3145 = vst [vmem:[#allocation13_spill] sm:$0xff] %v1967_v47  ;;  %3146 = vst [vmem:[#allocation14_spill] sm:$0xff] %v1972_v48  ;;  %v1982_v50 = vld [vmem:[%s3093_s5 + $0x58] sm:$0xff]  ;;  %v1987_v51 = vld [vmem:[%s3095_s0] sm:$0xff]  ;;  %v1995_v53 = vrot.slane %v32_v49, %v1929_v39  ;;  %v1998_v54 = vrot.slane %v32_v49, %v1931_v40 }
  0x12   :  { %327 = vmatprep.subr.mxu0 %v1897_v33  ;;  %663 = vmatprep.subr.mxu1 %v1903_v34  ;;  %3147 = vst [vmem:[#allocation15_spill] sm:$0xff] %v1982_v50  ;;  %v1992_v52 = vld [vmem:[%s3095_s0 + $0x8] sm:$0xff]  ;;  %v2000_v55 = vrot.slane %v32_v49, %v197_v41  ;;  %v2006_v56 = vld [vmem:[%s3092_s3 + $0x40] sm:$0xff]  ;;  %v2012_v57 = vld [vmem:[%s3093_s5 + $0x50] sm:$0xff] }
  0x13   :  { %328 = vmatpush1.msra.mxu0 %v1909_v35  ;;  %664 = vmatpush1.msra.mxu1 %v1915_v36  ;;  %3148 = vst [vmem:[#allocation16_spill] sm:$0xff] %v2006_v56  ;;  %3149 = vst [vmem:[#allocation17_spill] sm:$0xff] %v2012_v57  ;;  %v2018_v58 = vld [vmem:[%s3092_s3 + $0x38] sm:$0xff]  ;;  %v2024_v59 = vld [vmem:[%s3093_s5 + $0x48] sm:$0xff]  ;;  %v117_v60 = vmul.f32 %v1998_v54, %v1987_v51  ;;  %v118_v61 = vmul.f32 %v1998_v54, %v1992_v52 }
  0x14   :  { %329 = vmatprep.subr.mxu0 %v1921_v37  ;;  %665 = vmatprep.subr.mxu1 %v1927_v38  ;;  %3150 = vst [vmem:[#allocation18_spill] sm:$0xff] %v2018_v58  ;;  %3151 = vst [vmem:[#allocation19_spill] sm:$0xff] %v2024_v59  ;;  %v2033_v62 = vld [vmem:[%s3095_s0 + $0x10] sm:$0xff]  ;;  %v2045_v21 = vld [vmem:[%s3093_s5 + $0x40] sm:$0xff]  ;;  %v87_v30 = vmul.f32 %v1995_v53, %v1987_v51  ;;  %v199_v41 = vmul.f32 %v2000_v55, %v1987_v51 }
  0x15   :  { %330 = vmatpush1.msra.mxu0 %v1937_v42  ;;  %666 = vmatpush1.msra.mxu1 %v1943_v43  ;;  %v2039_v63 = vld [vmem:[%s3092_s3 + $0x30] sm:$0xff]  ;;  %3153 = vst [vmem:[#allocation21_spill] sm:$0xff] %v2045_v21  ;;  %v200_v49 = vmul.f32 %v2000_v55, %v1992_v52  ;;  %v2056_v3 = vld [vmem:[%s3095_s0 + $0x18] sm:$0xff]  ;;  %v2062_v40 = vld [vmem:[%s3092_s3 + $0x28] sm:$0xff] }
  0x16   :  { %331 = vmatprep.subr.mxu0 %v1949_v44  ;;  %667 = vmatprep.subr.mxu1 %v1960_v46  ;;  %3152 = vst [vmem:[#allocation20_spill] sm:$0xff] %v2039_v63  ;;  %3154 = vst [vmem:[#allocation22_spill] sm:$0xff] %v2062_v40  ;;  %v2068_v39 = vld [vmem:[%s3093_s5 + $0x38] sm:$0xff]  ;;  %v119_v46 = vmul.f32 %v1998_v54, %v2033_v62  ;;  %v120_v38 = vmul.f32 %v1998_v54, %v2056_v3  ;;  %v2156_v34 = vld [vmem:[%s3093_s5 + $0x10] sm:$0xff] }
  0x17   :  { %332 = vmatpush1.msra.mxu0 %v1955_v45  ;;  %668 = vmatpush1.msra.mxu1 %v1972_v48  ;;  %3155 = vst [vmem:[#allocation23_spill] sm:$0xff] %v2068_v39  ;;  %v145_v48 = vrot.slane %v118_v61, 3  ;;  %v228_v61 = vrot.slane %v199_v41, 6  ;;  %v88_v45 = vmul.f32 %v1995_v53, %v1992_v52  ;;  %v2094_v43 = vld [vmem:[%s3092_s3 + $0x18] sm:$0xff]  ;;  %v2100_v41 = vld [vmem:[%s3093_s5 + $0x28] sm:$0xff]  ;;  %3161 = vst [vmem:[#allocation29_spill] sm:$0xff] %v2156_v34 }
  0x18   :  { %333 = vmatprep.subr.mxu0 %v1967_v47  ;;  %669 = vmatprep.subr.mxu1 %v1982_v50  ;;  %v144_v50 = vrot.slane %v117_v60, 3  ;;  %v2078_v47 = vld [vmem:[%s3092_s3 + $0x20] sm:$0xff]  ;;  %v2084_v60 = vld [vmem:[%s3093_s5 + $0x30] sm:$0xff]  ;;  %3158 = vst [vmem:[#allocation26_spill] sm:$0xff] %v2100_v41  ;;  %v149_v36 = vrot.slane %v120_v38, 3  ;;  %v90_v38 = vmul.f32 %v1995_v53, %v2056_v3 }
  0x19   :  { %334 = vmatpush1.msra.mxu0 %v2006_v56  ;;  %670 = vmatpush1.msra.mxu1 %v2012_v57  ;;  %v201_v56 = vmul.f32 %v2000_v55, %v2033_v62  ;;  %3156 = vst [vmem:[#allocation24_spill] sm:$0xff] %v2078_v47  ;;  %3157 = vst [vmem:[#allocation25_spill] sm:$0xff] %v2084_v60  ;;  %v229_v57 = vrot.slane %v200_v49, 6 }
  0x1a   :  { %335 = vmatprep.subr.mxu0 %v2018_v58  ;;  %671 = vmatprep.subr.mxu1 %v2024_v59  ;;  %v89_v58 = vmul.f32 %v1995_v53, %v2033_v62  ;;  %v146_v49 = vsel %vm143_vm0, %v144_v50, %v145_v48  ;;  %v147_v59 = vrot.slane %v119_v46, 3  ;;  %v2116_v46 = vld [vmem:[%s3093_s5 + $0x20] sm:$0xff]  ;;  %v611_v50 = vrot.slane %v1987_v51, 3 }
  0x1b   :  { %336 = vmatpush1.msra.mxu0 %v2039_v63  ;;  %672 = vmatpush1.msra.mxu1 %v2045_v21  ;;  %v231_v44 = vrot.slane %v201_v56, 6  ;;  %v2109_v63 = vld [vmem:[%s3092_s3 + $0x10] sm:$0xff]  ;;  %v182_v21 = vadd.f32 %v146_v49, %v87_v30  ;;  %v230_v42 = vsel %vm227_vm1, %v228_v61, %v229_v57  ;;  %3159 = vst [vmem:[#allocation27_spill] sm:$0xff] %v2116_v46  ;;  %v2130_v30 = vld [vmem:[%s3092_s3 + $0x8] sm:$0xff]  ;;  %v2136_v51 = vld [vmem:[%s3096_s2] ss:$0 sm:$0xff] }
  0x1c   :  { %337 = vmatprep.subr.mxu0 %v2062_v40  ;;  %673 = vmatprep.subr.mxu1 %v2068_v39  ;;  %v202_v56 = vmul.f32 %v2000_v55, %v2056_v3  ;;  %v2124_v40 = vld [vmem:[%s3095_s0 + $0x20] sm:$0xff]  ;;  %v2141_v61 = vld [vmem:[%s3093_s5 + $0x18] sm:$0xff]  ;;  %v148_v49 = vsel %vm143_vm0, %v145_v48, %v147_v59 }
  0x1d   :  { %338 = vmatpush1.msra.mxu0 %v2078_v47  ;;  %674 = vmatpush1.msra.mxu1 %v2084_v60  ;;  %3160 = vst [vmem:[#allocation28_spill] sm:$0xff] %v2141_v61  ;;  %v232_v39 = vsel %vm227_vm1, %v229_v57, %v231_v44  ;;  %v612_v47 = vrot.slane %v1992_v52, 3  ;;  %v2150_v60 = vld [vmem:[%s3092_s3] sm:$0xff]  ;;  %v268_v37 = vadd.f32 %v230_v42, %v182_v21 }
  0x1e   :  { %339 = vmatprep.subr.mxu0 %v2094_v43  ;;  %675 = vmatprep.subr.mxu1 %v2100_v41  ;;  %v183_v48 = vadd.f32 %v148_v49, %v88_v45  ;;  %v233_v57 = vrot.slane %v202_v56, 6  ;;  %v150_v52 = vsel %vm143_vm0, %v147_v59, %v149_v36  ;;  %v121_v41 = vmul.f32 %v1998_v54, %v2124_v40  ;;  %v2173_v49 = vld [vmem:[%s3095_s0 + $0x28] sm:$0xff] }
  0x1f   :  { %340 = vmatpush1.msra.mxu0 %v2109_v63  ;;  %676 = vmatpush1.msra.mxu1 %v2116_v46  ;;  %v203_v42 = vmul.f32 %v2000_v55, %v2124_v40  ;;  %v287_v45 = vadd.f32 %v2136_v51, %v268_v37  ;;  %v184_v56 = vadd.f32 %v150_v52, %v89_v58  ;;  %v2180_v59 = vld [vmem:[%s3093_s5 + $0x8] sm:$0xff]  ;;  %v2188_v58 = vld [vmem:[%s3093_s5] sm:$0xff] }
  0x20   :  { %341 = vmatprep.subr.mxu0 %v2130_v30  ;;  %677 = vmatprep.subr.mxu1 %v2141_v61  ;;  %v269_v21 = vadd.f32 %v232_v39, %v183_v48  ;;  %v234_v37 = vsel %vm227_vm1, %v231_v44, %v233_v57  ;;  %v151_v46 = vrot.slane %v121_v41, 3  ;;  %v613_v48 = vsel %vm143_vm0, %v611_v50, %v612_v47 }
  0x21   :  { %342 = vmatpush1.msra.mxu0 %v2150_v60  ;;  %678 = vmatpush1.msra.mxu1 %v2156_v34  ;;  %v235_v61 = vrot.slane %v203_v42, 6  ;;  %v270_v52 = vadd.f32 %v234_v37, %v184_v56  ;;  %v2194_v34 = vld [vmem:[%s3095_s0 + $0x30] sm:$0xff]  ;;  %v3162_v44 = vmov 0.0  }
  0x22   :  { %376 = vmatmul.mubr.f32.vlgmr.msra.gmra.mxu0 %v287_v45  ;;  %1082 = vmatprep.subr.mxu0 %v1720_v0  ;;  %v288_v39 = vadd.f32 %v2136_v51, %v269_v21  ;;  %v614_v0 = vrot.slane %v2033_v62, 3  ;;  %v152_v41 = vsel %vm143_vm0, %v149_v36, %v151_v46  ;;  %v122_v45 = vmul.f32 %v1998_v54, %v2173_v49  ;;  %v2213_v36 = vld [vmem:[%s3095_s0 + $0x38] sm:$0xff] }
  0x23   :  { %1083 = vmatpush1.msra.mxu0 %v1725_v1  ;;  %381 = vmatprep.mubr.f32.mxu0 %v3162_v44  ;;  %v236_v42 = vsel %vm227_vm1, %v233_v57, %v235_v61  ;;  %v185_v50 = vadd.f32 %v152_v41, %v90_v38  ;;  %v91_v1 = vmul.f32 %v1995_v53, %v2124_v40 }
  0x24   :  { %679 = vmatprep.subr.mxu1 %v2180_v59  ;;  %1084 = vmatprep.subr.mxu0 %v1730_v2  ;;  %v204_v62 = vmul.f32 %v2000_v55, %v2173_v49  ;;  %v289_v2 = vadd.f32 %v2136_v51, %v270_v52  ;;  %v153_v57 = vrot.slane %v122_v45, 3  ;;  %v123_v38 = vmul.f32 %v1998_v54, %v2194_v34 }
  0x25   :  { %680 = vmatpush1.msra.mxu1 %v2188_v58  ;;  %1085 = vmatpush1.msra.mxu0 %v1738_v4  ;;  %v271_v56 = vadd.f32 %v236_v42, %v185_v50  ;;  %v92_v41 = vmul.f32 %v1995_v53, %v2173_v49  ;;  %v205_v21 = vmul.f32 %v2000_v55, %v2194_v34 }
  0x26   :  { %382 = vmatmul.mubr.f32.gmra.mxu0 %v288_v39  ;;  %714 = vmatmul.mubr.f32.vlgmr.msra.gmra.mxu1 %v613_v48  ;;  %v237_v37 = vrot.slane %v204_v62, 6  ;;  %v615_v4 = vsel %vm143_vm0, %v612_v47, %v614_v0  ;;  %v154_v52 = vsel %vm143_vm0, %v151_v46, %v153_v57  ;;  %v155_v45 = vrot.slane %v123_v38, 3  ;;  %v2239_v47 = vld [vmem:[%s3095_s0 + $0x40] sm:$0xff] }
  0x27   :  { %1398 = vmatprep.subr.mxu1 %v1749_v6  ;;  %387 = vmatprep.mubr.f32.mxu0 %v3162_v44  ;;  %v124_v39 = vmul.f32 %v1998_v54, %v2213_v36  ;;  %v3163_v48 = vrot.slane %v2056_v3, 3  ;;  %v186_v50 = vadd.f32 %v154_v52, %v91_v1  ;;  %v239_v62 = vrot.slane %v205_v21, 6 }
  0x28   :  { %1086 = vmatprep.subr.mxu0 %v1744_v5  ;;  %1399 = vmatpush1.msra.mxu1 %v1754_v7  ;;  %v238_v6 = vsel %vm227_vm1, %v235_v61, %v237_v37  ;;  %v156_v5 = vsel %vm143_vm0, %v153_v57, %v155_v45  ;;  %v93_v7 = vmul.f32 %v1995_v53, %v2194_v34 }
  0x29   :  { %v617_v42 = vsel %vm143_vm0, %v614_v0, %v3163_v48  ;;  %719 = vmatprep.mubr.f32.mxu1 %v3162_v44  ;;  %1087 = vmatpush1.msra.mxu0 %v1760_v8  ;;  %v157_v46 = vrot.slane %v124_v39, 3  ;;  %v206_v0 = vmul.f32 %v2000_v55, %v2213_v36  ;;  %v290_v61 = vadd.f32 %v2136_v51, %v271_v56  ;;  %v2279_v39 = vld [vmem:[%s3095_s0 + $0x50] sm:$0xff] }
  0x2a   :  { %388 = vmatmul.mubr.f32.gmra.mxu0 %v289_v2  ;;  %720 = vmatmul.mubr.f32.gmra.mxu1 %v615_v4  ;;  %v272_v21 = vadd.f32 %v238_v6, %v186_v50  ;;  %v187_v1 = vadd.f32 %v156_v5, %v92_v41  ;;  %v240_v8 = vsel %vm227_vm1, %v237_v37, %v239_v62  ;;  %v618_v2 = vrot.slane %v2124_v40, 3  ;;  %v2298_v6 = vld [vmem:[%s3095_s0 + $0x58] sm:$0xff] }
  0x2b   :  { %1088 = vmatprep.subr.mxu0 %v1772_v10  ;;  %1400 = vmatprep.subr.mxu1 %v1766_v9  ;;  %v158_v57 = vsel %vm143_vm0, %v155_v45, %v157_v46  ;;  %v241_v38 = vrot.slane %v206_v0, 6  ;;  %v125_v52 = vmul.f32 %v1998_v54, %v2239_v47  ;;  %v2261_v10 = vld [vmem:[%s3095_s0 + $0x48] sm:$0xff]  ;;  %v207_v56 = vmul.f32 %v2000_v55, %v2239_v47 }
  0x2c   :  { %393 = vmatprep.mubr.f32.mxu0 %v3162_v44  ;;  %1089 = vmatpush1.msra.mxu0 %v1789_v13  ;;  %v291_v37 = vadd.f32 %v2136_v51, %v272_v21  ;;  %v273_v13 = vadd.f32 %v240_v8, %v187_v1  ;;  %v188_v41 = vadd.f32 %v158_v57, %v93_v7  ;;  %v620_v40 = vrot.slane %v2173_v49, 3  ;;  %v2324_v1 = vld [vmem:[%s3095_s0 + $0x60] sm:$0xff] }
  0x2d   :  { %1401 = vmatpush1.msra.mxu1 %v1778_v11  ;;  %725 = vmatprep.mubr.f32.mxu1 %v3162_v44  ;;  %v159_v9 = vrot.slane %v125_v52, 3  ;;  %v242_v11 = vsel %vm227_vm1, %v239_v62, %v241_v38  ;;  %v94_v4 = vmul.f32 %v1995_v53, %v2213_v36  ;;  %v126_v45 = vmul.f32 %v1998_v54, %v2261_v10 }
  0x2e   :  { %394 = vmatmul.mubr.f32.gmra.mxu0 %v290_v61  ;;  %726 = vmatmul.mubr.f32.gmra.mxu1 %v617_v42  ;;  %v208_v42 = vmul.f32 %v2000_v55, %v2261_v10  ;;  %v127_v3 = vmul.f32 %v1998_v54, %v2279_v39  ;;  %v95_v7 = vmul.f32 %v1995_v53, %v2239_v47  ;;  %v622_v21 = vrot.slane %v2194_v34, 3 }
  0x2f   :  { %1090 = vmatprep.subr.mxu0 %v1801_v15  ;;  %1402 = vmatprep.subr.mxu1 %v1783_v12  ;;  %v3164_v12 = vmov %v3163_v48  ;;  %v160_v49 = vsel %vm143_vm0, %v157_v46, %v159_v9  ;;  %v243_v48 = vrot.slane %v207_v56, 6  ;;  %v161_v50 = vrot.slane %v126_v45, 3  ;;  %v3165_v45 = vld [vmem:[#allocation2_spill] sm:$0xff] }
  0x30   :  { %1091 = vmatpush1.msra.mxu0 %v1813_v17  ;;  %1403 = vmatpush1.msra.mxu1 %v1795_v14  ;;  %v619_v15 = vsel %vm143_vm0, %v3164_v12, %v618_v2  ;;  %v292_v14 = vadd.f32 %v2136_v51, %v273_v13  ;;  %v274_v17 = vadd.f32 %v242_v11, %v188_v41  ;;  %v245_v46 = vrot.slane %v208_v42, 6 }
  0x31   :  { %399 = vmatprep.mubr.f32.mxu0 %v3162_v44  ;;  %731 = vmatprep.mubr.f32.mxu1 %v3162_v44  ;;  %v189_v62 = vadd.f32 %v160_v49, %v94_v4  ;;  %v244_v5 = vsel %vm227_vm1, %v241_v38, %v243_v48  ;;  %v162_v0 = vsel %vm143_vm0, %v159_v9, %v161_v50  ;;  %v626_v56 = vrot.slane %v2239_v47, 3  ;;  %v2371_v4 = vld [vmem:[%s3095_s0 + $0x70] sm:$0xff] }
  0x32   :  { %400 = vmatmul.mubr.f32.gmra.mxu0 %v291_v37  ;;  %1404 = vmatprep.subr.mxu1 %v1807_v16  ;;  %v621_v16 = vsel %vm143_vm0, %v618_v2, %v620_v40  ;;  %v293_v61 = vadd.f32 %v2136_v51, %v274_v17  ;;  %v190_v8 = vadd.f32 %v162_v0, %v95_v7  ;;  %v624_v2 = vrot.slane %v2213_v36, 3  ;;  %v3166_v49 = vld [vmem:[#allocation4_spill] sm:$0xff]  ;;  %v3167_v17 = vld [vmem:[#allocation3_spill] sm:$0xff]  ;;  %v3169_v0 = vld [vmem:[#allocation5_spill] sm:$0xff] }
  0x33   :  { %732 = vmatmul.mubr.f32.gmra.mxu1 %v619_v15  ;;  %1092 = vmatprep.subr.mxu0 %v1825_v19  ;;  %v163_v19 = vrot.slane %v127_v3, 3  ;;  %v246_v57 = vsel %vm227_vm1, %v243_v48, %v245_v46  ;;  %v96_v38 = vmul.f32 %v1995_v53, %v2261_v10  ;;  %v210_v52 = vmul.f32 %v2000_v55, %v2298_v6  ;;  %v3168_v7 = vld [vmem:[#allocation8_spill] sm:$0xff] }
  0x34   :  { %1405 = vmatpush1.msra.mxu1 %v1819_v18  ;;  %1093 = vmatpush1.msra.mxu0 %v1837_v22  ;;  %v209_v18 = vmul.f32 %v2000_v55, %v2279_v39  ;;  %v2314_v22 = vmul.f32 %v1998_v54, %v2298_v6  ;;  %v2341_v9 = vmul.f32 %v1998_v54, %v2324_v1  ;;  %v628_v11 = vrot.slane %v2261_v10, 3 }
  0x35   :  { %405 = vmatprep.mubr.f32.mxu0 %v3162_v44  ;;  %1406 = vmatprep.subr.mxu1 %v1831_v20  ;;  %v275_v20 = vadd.f32 %v244_v5, %v189_v62  ;;  %v97_v36 = vmul.f32 %v1995_v53, %v2279_v39  ;;  %v249_v41 = vrot.slane %v210_v52, 6  ;;  %v2356_v47 = vmul.f32 %v2000_v55, %v2324_v1  ;;  %v2397_v5 = vld [vmem:[%s3095_s0 + $0x80] sm:$0xff] }
  0x36   :  { %406 = vmatmul.mubr.f32.gmra.mxu0 %v292_v14  ;;  %737 = vmatprep.mubr.f32.mxu1 %v3162_v44  ;;  %v165_v34 = vrot.slane %v2314_v22, 3  ;;  %v98_v42 = vmul.f32 %v1995_v53, %v2298_v6  ;;  %v911_v62 = vmul.f32 %v2371_v4, %v1998_v54  ;;  %v99_v22 = vmul.f32 %v1995_v53, %v2324_v1 }
  0x37   :  { %1094 = vmatprep.subr.mxu0 %v1849_v24  ;;  %1407 = vmatpush1.msra.mxu1 %v1843_v23  ;;  %v164_v23 = vsel %vm143_vm0, %v161_v50, %v163_v19  ;;  %v247_v24 = vrot.slane %v209_v18, 6  ;;  %v251_v50 = vrot.slane %v2356_v47, 6  ;;  %v988_v52 = vmul.f32 %v2371_v4, %v2000_v55 }
  0x38   :  { %738 = vmatmul.mubr.f32.gmra.mxu1 %v621_v16  ;;  %1095 = vmatpush1.msra.mxu0 %v1861_v26  ;;  %v623_v26 = vsel %vm143_vm0, %v620_v40, %v622_v21  ;;  %v191_v37 = vadd.f32 %v164_v23, %v96_v38  ;;  %v627_v40 = vsel %vm143_vm0, %v624_v2, %v626_v56  ;;  %v3171_v38 = vld [vmem:[#allocation9_spill] sm:$0xff]  ;;  %v3172_v23 = vld [vmem:[#allocation11_spill] sm:$0xff] }
  0x39   :  { %411 = vmatprep.mubr.f32.mxu0 %v3162_v44  ;;  %1096 = vmatprep.subr.mxu0 %v1873_v28  ;;  %v294_v28 = vadd.f32 %v2136_v51, %v275_v20  ;;  %v248_v13 = vsel %vm227_vm1, %v245_v46, %v247_v24  ;;  %v250_v48 = vsel %vm227_vm1, %v247_v24, %v249_v41  ;;  %v937_v24 = vrot.slane %v911_v62, 3 }
  0x3a   :  { %1408 = vmatprep.subr.mxu1 %v1855_v25  ;;  %412 = vmatmul.mubr.f32.gmra.mxu0 %v293_v61  ;;  %v276_v25 = vadd.f32 %v246_v57, %v190_v8  ;;  %v277_v12 = vadd.f32 %v248_v13, %v191_v37  ;;  %v629_v46 = vsel %vm143_vm0, %v626_v56, %v628_v11  ;;  %v3170_v61 = vld [vmem:[#allocation10_spill] sm:$0xff]  ;;  %v630_v56 = vrot.slane %v2279_v39, 3 }
  0x3b   :  { %743 = vmatprep.mubr.f32.mxu1 %v3162_v44  ;;  %1097 = vmatpush1.msra.mxu0 %v1885_v31  ;;  %v166_v31 = vsel %vm143_vm0, %v163_v19, %v165_v34  ;;  %v252_v20 = vsel %vm227_vm1, %v249_v41, %v251_v50  ;;  %v2412_v57 = vmul.f32 %v2397_v5, %v1998_v54 }
  0x3c   :  { %1409 = vmatpush1.msra.mxu1 %v1867_v27  ;;  %1098 = vmatprep.subr.mxu0 %v1897_v33  ;;  %v625_v27 = vsel %vm143_vm0, %v622_v21, %v624_v2  ;;  %v167_v33 = vrot.slane %v2341_v9, 3  ;;  %v192_v15 = vadd.f32 %v166_v31, %v97_v36  ;;  %v296_v19 = vadd.f32 %v2136_v51, %v277_v12  ;;  %v2425_v2 = vld [vmem:[%s3095_s0 + $0x88] sm:$0xff]  ;;  %v3173_v9 = vld [vmem:[#allocation13_spill] sm:$0xff]  ;;  %v3174_v36 = vld [vmem:[#allocation12_spill] sm:$0xff] }
  0x3d   :  { %744 = vmatmul.mubr.f32.gmra.mxu1 %v623_v26  ;;  %1410 = vmatprep.subr.mxu1 %v1879_v29  ;;  %v82_v29 = vld [vmem:[%s3095_s0 + $0x68] sm:$0x3]  ;;  %v885_v37 = vmul.f32 %v2371_v4, %v1995_v53  ;;  %v940_v41 = vrot.slane %v2412_v57, 3  ;;  %v2437_v47 = vmul.f32 %v2397_v5, %v2000_v55  ;;  %v632_v12 = vrot.slane %v2298_v6, 3 }
  0x3e   :  { %417 = vmatprep.mubr.f32.mxu0 %v3162_v44  ;;  %1099 = vmatpush1.msra.mxu0 %v1909_v35  ;;  %v2376_v35 = vld [vmem:[%s3095_s0 + $0x78] sm:$0xff]  ;;  %v212_v14 = vmul.f32 %v2000_v55, %v82_v29  ;;  %v168_v3 = vsel %vm143_vm0, %v165_v34, %v167_v33  ;;  %v278_v18 = vadd.f32 %v250_v48, %v192_v15  ;;  %v3176_v29 = vld [vmem:[#allocation14_spill] sm:$0xff]  ;;  %v2450_v15 = vld [vmem:[%s3095_s0 + $0x90] sm:$0xff] }
  0x3f   :  { %1411 = vmatpush1.msra.mxu1 %v1891_v32  ;;  %418 = vmatmul.mubr.f32.gmra.mxu0 %v294_v28  ;;  %v295_v32 = vadd.f32 %v2136_v51, %v276_v25  ;;  %v912_v16 = vmul.f32 %v2376_v35, %v1998_v54  ;;  %v193_v21 = vadd.f32 %v168_v3, %v98_v42  ;;  %v1019_v62 = vrot.slane %v2437_v47, 6 }
  0x40   :  { %749 = vmatprep.mubr.f32.mxu1 %v3162_v44  ;;  %1412 = vmatprep.subr.mxu1 %v3165_v45  ;;  %v253_v8 = vrot.slane %v212_v14, 6  ;;  %v989_v26 = vmul.f32 %v2376_v35, %v2000_v55  ;;  %v297_v28 = vadd.f32 %v2136_v51, %v278_v18  ;;  %v194_v25 = vadd.f32 %v167_v33, %v99_v22  ;;  %v3179_v14 = vld [vmem:[#allocation20_spill] sm:$0xff]  ;;  %v2475_v18 = vld [vmem:[%s3095_s0 + $0x98] sm:$0xff]  ;;  %v3182_v22 = vld [vmem:[#allocation22_spill] sm:$0xff] }
  0x41   :  { %750 = vmatmul.mubr.f32.gmra.mxu1 %v625_v27  ;;  %1100 = vmatprep.subr.mxu0 %v3166_v49  ;;  %v938_v34 = vrot.slane %v912_v16, 3  ;;  %v279_v13 = vadd.f32 %v252_v20, %v193_v21  ;;  %v3175_v27 = vld [vmem:[#allocation16_spill] sm:$0xff]  ;;  %v1016_v33 = vrot.slane %v988_v52, 6  ;;  %v914_v45 = vmul.f32 %v2425_v2, %v1998_v54  ;;  %v3178_v49 = vld [vmem:[#allocation15_spill] sm:$0xff]  ;;  %v3180_v16 = vld [vmem:[#allocation17_spill] sm:$0xff] }
  0x42   :  { %1413 = vmatpush1.msra.mxu1 %v3167_v17  ;;  %423 = vmatprep.mubr.f32.mxu0 %v3162_v44  ;;  %v254_v31 = vsel %vm227_vm1, %v251_v50, %v253_v8  ;;  %v631_v48 = vsel %vm143_vm0, %v628_v11, %v630_v56  ;;  %v886_v50 = vmul.f32 %v2376_v35, %v1995_v53  ;;  %v634_v20 = vrot.slane %v2324_v1, 3  ;;  %v3185_v52 = vld [vmem:[#allocation23_spill] sm:$0xff] }
  0x43   :  { %1101 = vmatpush1.msra.mxu0 %v3168_v7  ;;  %755 = vmatprep.mubr.f32.mxu1 %v3162_v44  ;;  %v939_v39 = vsel %vm143_vm0, %v937_v24, %v938_v34  ;;  %v280_v42 = vadd.f32 %v254_v31, %v194_v25  ;;  %v298_v6 = vadd.f32 %v2136_v51, %v279_v13  ;;  %v942_v11 = vrot.slane %v914_v45, 3  ;;  %v3186_v25 = vld [vmem:[#allocation25_spill] sm:$0xff] }
  0x44   :  { %424 = vmatmul.mubr.f32.gmra.mxu0 %v295_v32  ;;  %1414 = vmatprep.subr.mxu1 %v3169_v0  ;;  %v3177_v32 = vld [vmem:[#allocation18_spill] sm:$0xff]  ;;  %v975_v17 = vadd.f32 %v939_v39, %v885_v37  ;;  %v941_v3 = vsel %vm143_vm0, %v938_v34, %v940_v41  ;;  %v991_v7 = vmul.f32 %v2425_v2, %v2000_v55  ;;  %v3181_v0 = vld [vmem:[#allocation19_spill] sm:$0xff]  ;;  %v3184_v34 = vld [vmem:[#allocation24_spill] sm:$0xff] }
  0x45   :  { %756 = vmatmul.mubr.f32.gmra.mxu1 %v627_v40  ;;  %1102 = vmatprep.subr.mxu0 %v3170_v61  ;;  %v1017_v40 = vrot.slane %v989_v26, 6  ;;  %v3183_v61 = vld [vmem:[#allocation21_spill] sm:$0xff]  ;;  %v299_v21 = vadd.f32 %v2136_v51, %v280_v42  ;;  %v976_v8 = vadd.f32 %v941_v3, %v886_v50  ;;  %v887_v57 = vmul.f32 %v2397_v5, %v1995_v53  ;;  %v3187_v39 = vld [vmem:[#allocation26_spill] sm:$0xff] }
  0x46   :  { %1415 = vmatpush1.msra.mxu1 %v3171_v38  ;;  %1103 = vmatpush1.msra.mxu0 %v3172_v23  ;;  %v2487_v24 = vmul.f32 %v2450_v15, %v2000_v55  ;;  %v943_v1 = vsel %vm143_vm0, %v940_v41, %v942_v11  ;;  %v1021_v26 = vrot.slane %v991_v7, 6  ;;  %v635_v37 = vsel %vm143_vm0, %v632_v12, %v634_v20  ;;  %v3190_v3 = vld [vmem:[#allocation29_spill] sm:$0xff] }
  0x47   :  { %429 = vmatprep.mubr.f32.mxu0 %v3162_v44  ;;  %761 = vmatprep.mubr.f32.mxu1 %v3162_v44  ;;  %v1018_v10 = vsel %vm227_vm1, %v1016_v33, %v1017_v40  ;;  %v1020_v23 = vsel %vm227_vm1, %v1017_v40, %v1019_v62  ;;  %v977_v31 = vadd.f32 %v943_v1, %v887_v57  ;;  %v2520_v40 = vld [vmem:[%s3095_s0 + $0xa8] sm:$0xff] }
  0x48   :  { %430 = vmatmul.mubr.f32.gmra.mxu0 %v296_v19  ;;  %1104 = vmatprep.subr.mxu0 %v3173_v9  ;;  %v633_v19 = vsel %vm143_vm0, %v630_v56, %v632_v12  ;;  %v1056_v38 = vadd.f32 %v1018_v10, %v975_v17  ;;  %v2498_v56 = vld [vmem:[%s3095_s0 + $0xa0] sm:$0xff]  ;;  %v1023_v41 = vrot.slane %v2487_v24, 6  ;;  %v1022_v47 = vsel %vm227_vm1, %v1019_v62, %v1021_v26  ;;  %v2546_v10 = vld [vmem:[%s3095_s0 + $0xb0] sm:$0xff] }
  0x49   :  { %1416 = vmatprep.subr.mxu1 %v3174_v36  ;;  %762 = vmatmul.mubr.f32.gmra.mxu1 %v629_v46  ;;  %v915_v46 = vmul.f32 %v2450_v15, %v1998_v54  ;;  %v1057_v36 = vadd.f32 %v1020_v23, %v976_v8  ;;  %v993_v33 = vmul.f32 %v2475_v18, %v2000_v55  ;;  %v1361_v12 = vrot.slane %v2376_v35, 3  ;;  %v2566_v8 = vld [vmem:[%s3095_s0 + $0xb8] sm:$0xff] }
  0x4a   :  { %1105 = vmatpush1.msra.mxu0 %v3175_v27  ;;  %1417 = vmatpush1.msra.mxu1 %v3176_v29  ;;  %v1069_v13 = vadd.f32 %v2136_v51, %v1056_v38  ;;  %v1024_v50 = vsel %vm227_vm1, %v1021_v26, %v1023_v41  ;;  %v918_v35 = vmul.f32 %v2520_v40, %v1998_v54 }
  0x4b   :  { %435 = vmatprep.mubr.f32.mxu0 %v3162_v44  ;;  %1106 = vmatprep.subr.mxu0 %v3177_v32  ;;  %v944_v9 = vrot.slane %v915_v46, 3  ;;  %v1070_v45 = vadd.f32 %v2136_v51, %v1057_v36  ;;  %v1360_v32 = vrot.slane %v2371_v4, 3  ;;  %v994_v4 = vmul.f32 %v2498_v56, %v2000_v55 }
  0x4c   :  { %1418 = vmatprep.subr.mxu1 %v3178_v49  ;;  %436 = vmatmul.mubr.f32.gmra.mxu0 %v297_v28  ;;  %v916_v28 = vmul.f32 %v2475_v18, %v1998_v54  ;;  %v889_v49 = vmul.f32 %v2450_v15, %v1995_v53  ;;  %v1025_v17 = vrot.slane %v993_v33, 6  ;;  %v891_v23 = vmul.f32 %v2498_v56, %v1995_v53 }
  0x4d   :  { %767 = vmatprep.mubr.f32.mxu1 %v3162_v44  ;;  %1107 = vmatpush1.msra.mxu0 %v3179_v14  ;;  %v945_v27 = vsel %vm143_vm0, %v942_v11, %v944_v9  ;;  %v1362_v62 = vsel %vm143_vm0, %v1360_v32, %v1361_v12  ;;  %v996_v26 = vmul.f32 %v2546_v10, %v2000_v55  ;;  %v1369_v33 = vrot.slane %v2475_v18, 3 }
  0x4e   :  { %1419 = vmatpush1.msra.mxu1 %v3180_v16  ;;  %441 = vmatprep.mubr.f32.mxu0 %v3162_v44  ;;  %v946_v29 = vrot.slane %v916_v28, 3  ;;  %v1363_v16 = vrot.slane %v2397_v5, 3  ;;  %v1027_v5 = vrot.slane %v994_v4, 6  ;;  %v1371_v4 = vrot.slane %v2498_v56, 3 }
  0x4f   :  { %768 = vmatmul.mubr.f32.gmra.mxu1 %v631_v48  ;;  %1420 = vmatprep.subr.mxu1 %v3181_v0  ;;  %v1058_v48 = vadd.f32 %v1022_v47, %v977_v31  ;;  %v890_v0 = vmul.f32 %v2475_v18, %v1995_v53  ;;  %v997_v47 = vmul.f32 %v2566_v8, %v2000_v55 }
  0x50   :  { %1108 = vmatprep.subr.mxu0 %v3182_v22  ;;  %1421 = vmatpush1.msra.mxu1 %v3183_v61  ;;  %v947_v14 = vsel %vm143_vm0, %v944_v9, %v946_v29  ;;  %v950_v22 = vrot.slane %v918_v35, 3  ;;  %v995_v61 = vmul.f32 %v2520_v40, %v2000_v55  ;;  %v920_v9 = vmul.f32 %v2566_v8, %v1998_v54  ;;  %v2620_v35 = vld [vmem:[%s3095_s0 + $0xd0] sm:$0xff] }
  0x51   :  { %442 = vmatmul.mubr.f32.gmra.mxu0 %v298_v6  ;;  %773 = vmatprep.mubr.f32.mxu1 %v3162_v44  ;;  %v1071_v11 = vadd.f32 %v2136_v51, %v1058_v48  ;;  %v979_v46 = vadd.f32 %v947_v14, %v889_v49  ;;  %v893_v49 = vmul.f32 %v2546_v10, %v1995_v53  ;;  %v1033_v48 = vrot.slane %v997_v47, 6 }
  0x52   :  { %1109 = vmatpush1.msra.mxu0 %v3184_v34  ;;  %1422 = vmatprep.subr.mxu1 %v3185_v52  ;;  %v1028_v34 = vsel %vm227_vm1, %v1025_v17, %v1027_v5  ;;  %v1029_v1 = vrot.slane %v995_v61, 6  ;;  %v897_v47 = vmul.f32 %v2620_v35, %v1995_v53 }
  0x53   :  { %774 = vmatmul.mubr.f32.gmra.mxu1 %v633_v19  ;;  %1110 = vmatprep.subr.mxu0 %v2094_v43  ;;  %v888_v43 = vmul.f32 %v2425_v2, %v1995_v53 }
  0x54   :  { %1423 = vmatpush1.msra.mxu1 %v3186_v25  ;;  %447 = vmatprep.mubr.f32.mxu0 %v3162_v44  ;;  %v1367_v25 = vrot.slane %v2450_v15, 3 }
  0x55   :  { %1111 = vmatpush1.msra.mxu0 %v2109_v63  ;;  %779 = vmatprep.mubr.f32.mxu1 %v3162_v44  ;;  %v917_v63 = vmul.f32 %v2498_v56, %v1998_v54  ;;  %v978_v42 = vadd.f32 %v945_v27, %v888_v43  ;;  %v1030_v43 = vsel %vm227_vm1, %v1027_v5, %v1029_v1  ;;  %v1031_v27 = vrot.slane %v996_v26, 6 }
  0x56   :  { %448 = vmatmul.mubr.f32.gmra.mxu0 %v299_v21  ;;  %1112 = vmatprep.subr.mxu0 %v2130_v30  ;;  %v3188_v30 = vld [vmem:[#allocation27_spill] sm:$0xff]  ;;  %v919_v21 = vmul.f32 %v2546_v10, %v1998_v54  ;;  %v1372_v5 = vsel %vm143_vm0, %v1369_v33, %v1371_v4 }
  0x57   :  { %780 = vmatmul.mubr.f32.gmra.mxu1 %v635_v37  ;;  %1424 = vmatprep.subr.mxu1 %v3187_v39  ;;  %v948_v6 = vrot.slane %v917_v63, 3  ;;  %v1059_v7 = vadd.f32 %v1024_v50, %v978_v42  ;;  %v2584_v37 = vld [vmem:[%s3095_s0 + $0xc0] sm:$0xff]  ;;  %v1032_v18 = vsel %vm227_vm1, %v1029_v1, %v1031_v27 }
  0x58   :  { %1113 = vmatpush1.msra.mxu0 %v2150_v60  ;;  %1425 = vmatpush1.msra.mxu1 %v3188_v30  ;;  %v3189_v60 = vld [vmem:[#allocation28_spill] sm:$0xff]  ;;  %v921_v63 = vmul.f32 %v2584_v37, %v1998_v54  ;;  %v2602_v30 = vld [vmem:[%s3095_s0 + $0xc8] sm:$0xff]  ;;  %v998_v42 = vmul.f32 %v2584_v37, %v2000_v55  ;;  %v895_v61 = vmul.f32 %v2584_v37, %v1995_v53 }
  0x59   :  { %1146 = vmatprep.mubr.f32.mxu0 %v3162_v44  ;;  %785 = vmatprep.mubr.f32.mxu1 %v3162_v44  ;;  %v949_v19 = vsel %vm143_vm0, %v946_v29, %v948_v6  ;;  %v1072_v57 = vadd.f32 %v2136_v51, %v1059_v7  ;;  %v951_v52 = vsel %vm143_vm0, %v948_v6, %v950_v22  ;;  %v954_v29 = vrot.slane %v920_v9, 3 }
  0x5a   :  { %1147 = vmatmul.mubr.f32.vlgmr.msra.gmra.mxu0 %v1069_v13  ;;  %1426 = vmatprep.subr.mxu1 %v3189_v60  ;;  %v980_v38 = vadd.f32 %v949_v19, %v890_v0  ;;  %v981_v13 = vadd.f32 %v951_v52, %v891_v23  ;;  %v956_v60 = vrot.slane %v921_v63, 3  ;;  %v922_v14 = vmul.f32 %v2602_v30, %v1998_v54 }
  0x5b   :  { %786 = vmatmul.mubr.f32.gmra.mxu1 %v634_v20  ;;  %1152 = vmatprep.mubr.f32.mxu0 %v3162_v44  ;;  %v1364_v20 = vsel %vm143_vm0, %v1361_v12, %v1363_v16  ;;  %v1370_v6 = vsel %vm143_vm0, %v1367_v25, %v1369_v33  ;;  %v1035_v7 = vrot.slane %v998_v42, 6  ;;  %v999_v0 = vmul.f32 %v2602_v30, %v2000_v55  ;;  %v66_v42 = vld [vmem:[%s3097_s4] sm:$0x3] }
  0x5c   :  { %1427 = vmatpush1.msra.mxu1 %v3190_v3  ;;  %1462 = vmatprep.mubr.f32.mxu1 %v3162_v44  ;;  %v1061_v36 = vadd.f32 %v1028_v34, %v980_v38  ;;  %v1062_v32 = vadd.f32 %v1030_v43, %v981_v13  ;;  %v894_v3 = vmul.f32 %v2566_v8, %v1995_v53  ;;  %v1638_v34 = vld [vmem:[%s3095_s0 + $0xd8] sm:$0x3]  ;;  %v1377_v13 = vrot.slane %v2566_v8, 3 }
  0x5d   :  { %1428 = vmatprep.subr.mxu1 %v2180_v59  ;;  %v1026_v59 = vsel %vm227_vm1, %v1023_v41, %v1025_v17  ;;  %v892_v41 = vmul.f32 %v2520_v40, %v1995_v53  ;;  %v957_v56 = vsel %vm143_vm0, %v954_v29, %v956_v60  ;;  %v923_v19 = vmul.f32 %v2620_v35, %v1998_v54 }
  0x5e   :  { %1153 = vmatmul.mubr.f32.gmra.mxu0 %v1070_v45  ;;  %1429 = vmatpush1.msra.mxu1 %v2188_v58  ;;  %v1365_v58 = vrot.slane %v2425_v2, 3  ;;  %v1060_v24 = vadd.f32 %v1026_v59, %v979_v46  ;;  %v952_v2 = vrot.slane %v919_v21, 3  ;;  %v1074_v45 = vadd.f32 %v2136_v51, %v1061_v36 }
  0x5f   :  { %1463 = vmatmul.mubr.f32.vlgmr.msra.gmra.mxu1 %v1362_v62  ;;  %1158 = vmatprep.mubr.f32.mxu0 %v3162_v44  ;;  %v1075_v17 = vadd.f32 %v2136_v51, %v1062_v32  ;;  %v958_v46 = vrot.slane %v922_v14, 3  ;;  %v960_v38 = vrot.slane %v923_v19, 3  ;;  %v896_v26 = vmul.f32 %v2602_v30, %v1995_v53  ;;  %v3192_v14 = vld [vmem:[#allocation7_spill] sm:$0xff] }
  0x60   :  { %1468 = vmatprep.mubr.f32.mxu1 %v3162_v44  ;;  %v1366_v28 = vsel %vm143_vm0, %v1363_v16, %v1365_v58  ;;  %v1073_v31 = vadd.f32 %v2136_v51, %v1060_v24  ;;  %v953_v15 = vsel %vm143_vm0, %v950_v22, %v952_v2  ;;  %v1368_v39 = vsel %vm143_vm0, %v1365_v58, %v1367_v25 }
  0x61   :  { %v982_v12 = vadd.f32 %v953_v15, %v892_v41  ;;  %v955_v50 = vsel %vm143_vm0, %v952_v2, %v954_v29  ;;  %v1373_v22 = vrot.slane %v2520_v40, 3  ;;  %v1036_v58 = vsel %vm227_vm1, %v1033_v48, %v1035_v7 }
  0x62   :  { %1159 = vmatmul.mubr.f32.gmra.mxu0 %v1071_v11  ;;  %v983_v16 = vadd.f32 %v955_v50, %v893_v49  ;;  %v1034_v11 = vsel %vm227_vm1, %v1031_v27, %v1033_v48  ;;  %v959_v54 = vsel %vm143_vm0, %v956_v60, %v958_v46  ;;  %v1000_v40 = vmul.f32 %v2620_v35, %v2000_v55  ;;  %v586_v60 = vld [vmem:[%s3099_s6] sm:$0x3] }
  0x63   :  { %1469 = vmatmul.mubr.f32.gmra.mxu1 %v1364_v20  ;;  %1164 = vmatprep.mubr.f32.mxu0 %v3162_v44  ;;  %v1063_v62 = vadd.f32 %v1032_v18, %v982_v12  ;;  %v984_v20 = vadd.f32 %v957_v56, %v894_v3  ;;  %v1374_v23 = vsel %vm143_vm0, %v1371_v4, %v1373_v22  ;;  %v1375_v24 = vrot.slane %v2546_v10, 3  ;;  %v3191_v18 = vld [vmem:[#allocation6_spill] sm:$0xff] }
  0x64   :  { %1474 = vmatprep.mubr.f32.mxu1 %v3162_v44  ;;  %v1064_v21 = vadd.f32 %v1034_v11, %v983_v16  ;;  %v985_v2 = vadd.f32 %v959_v54, %v895_v61  ;;  %v1039_v10 = vrot.slane %v1000_v40, 6  ;;  %v1001_v25 = vmul.f32 %v1638_v34, %v2000_v55  ;;  %v68_v4 = vld [vmem:[%s3100_s8] sm:$0x3] }
  0x65   :  { %v1076_v59 = vadd.f32 %v2136_v51, %v1063_v62  ;;  %v1065_v1 = vadd.f32 %v1036_v58, %v984_v20  ;;  %v1376_v36 = vsel %vm143_vm0, %v1373_v22, %v1375_v24  ;;  %v1378_v27 = vsel %vm143_vm0, %v1375_v24, %v1377_v13 }
  0x66   :  { %1165 = vmatmul.mubr.f32.gmra.mxu0 %v1072_v57  ;;  %v1037_v57 = vrot.slane %v999_v0, 6  ;;  %v1077_v52 = vadd.f32 %v2136_v51, %v1064_v21  ;;  %v1041_v55 = vrot.slane %v1001_v25, 6  ;;  %v1379_v8 = vrot.slane %v2584_v37, 3 }
  0x67   :  { %1475 = vmatmul.mubr.f32.gmra.mxu1 %v1366_v28  ;;  %1170 = vmatprep.mubr.f32.mxu0 %v3162_v44  ;;  %v961_v28 = vsel %vm143_vm0, %v958_v46, %v960_v38  ;;  %v1383_v49 = vrot.slane %v2620_v35, 3  ;;  %v2687_v50 = vrot.slane %v66_v42, %v3191_v18  ;;  %v2706_v3 = vrot.slane %v586_v60, %v3191_v18 }
  0x68   :  { %1480 = vmatprep.mubr.f32.mxu1 %v3162_v44  ;;  %v1038_v9 = vsel %vm227_vm1, %v1035_v7, %v1037_v57  ;;  %v986_v41 = vadd.f32 %v961_v28, %v896_v26  ;;  %v1040_v15 = vsel %vm227_vm1, %v1037_v57, %v1039_v10  ;;  %v1042_v53 = vsel %vm227_vm1, %v1039_v10, %v1041_v55 }
  0x69   :  { %v1066_v43 = vadd.f32 %v1038_v9, %v985_v2  ;;  %v1380_v33 = vsel %vm143_vm0, %v1377_v13, %v1379_v8  ;;  %v2713_v56 = vrot.slane %v68_v4, %v3191_v18  ;;  %v2716_v19 = vrot.slane %v68_v4, %v3192_v14 }
  0x6a   :  { %1171 = vmatmul.mubr.f32.gmra.mxu0 %v1073_v31  ;;  %v1078_v31 = vadd.f32 %v2136_v51, %v1065_v1  ;;  %v1067_v63 = vadd.f32 %v1040_v15, %v986_v41 }
  0x6b   :  { %1481 = vmatmul.mubr.f32.gmra.mxu1 %v1368_v39  ;;  %1176 = vmatprep.mubr.f32.mxu0 %v3162_v44  ;;  %v1079_v29 = vadd.f32 %v2136_v51, %v1066_v43  ;;  %v987_v39 = vadd.f32 %v960_v38, %v897_v47 }
  0x6c   :  { %1486 = vmatprep.mubr.f32.mxu1 %v3162_v44  ;;  %v1080_v32 = vadd.f32 %v2136_v51, %v1067_v63 }
  0x6d   :  { %v1068_v37 = vadd.f32 %v1042_v53, %v987_v39 }
  0x6e   :  { %1177 = vmatmul.mubr.f32.gmra.mxu0 %v1074_v45  ;;  %v1381_v45 = vrot.slane %v2602_v30, 3 }
  0x6f   :  { %1487 = vmatmul.mubr.f32.gmra.mxu1 %v1370_v6  ;;  %1182 = vmatprep.mubr.f32.mxu0 %v3162_v44  ;;  %v1081_v48 = vadd.f32 %v2136_v51, %v1068_v37  ;;  %v67_v51 = vld [vmem:[%s3098_s7] sm:$0x3]  ;;  %v2696_v6 = vrot.slane %v66_v42, %v3192_v14 }
  0x70   :  { %1492 = vmatprep.mubr.f32.mxu1 %v3162_v44  ;;  %v1382_v12 = vsel %vm143_vm0, %v1379_v8, %v1381_v45  ;;  %v1384_v30 = vsel %vm143_vm0, %v1381_v45, %v1383_v49  ;;  %v2710_v7 = vrot.slane %v67_v51, %v3192_v14 }
  0x72   :  { %1183 = vmatmul.mubr.f32.gmra.mxu0 %v1075_v17  ;;  %v2703_v17 = vrot.slane %v67_v51, %v3191_v18 }
  0x73   :  { %1493 = vmatmul.mubr.f32.gmra.mxu1 %v1372_v5  ;;  %1188 = vmatprep.mubr.f32.mxu0 %v3162_v44  ;;  %v2719_v5 = vrot.slane %v586_v60, %v3192_v14 }
  0x74   :  { %1498 = vmatprep.mubr.f32.mxu1 %v3162_v44 }
  0x76   :  { %1189 = vmatmul.mubr.f32.gmra.mxu0 %v1076_v59 }
  0x77   :  { %1499 = vmatmul.mubr.f32.gmra.mxu1 %v1374_v23  ;;  %1194 = vmatprep.mubr.f32.mxu0 %v3162_v44 }
  0x78   :  { %1504 = vmatprep.mubr.f32.mxu1 %v3162_v44 }
  0x7a   :  { %1195 = vmatmul.mubr.f32.gmra.mxu0 %v1077_v52 }
  0x7b   :  { %1505 = vmatmul.mubr.f32.gmra.mxu1 %v1376_v36  ;;  %1200 = vmatprep.mubr.f32.mxu0 %v3162_v44 }
  0x7c   :  { %1510 = vmatprep.mubr.f32.mxu1 %v3162_v44 }
  0x7e   :  { %1201 = vmatmul.mubr.f32.gmra.mxu0 %v1078_v31 }
  0x7f   :  { %1511 = vmatmul.mubr.f32.gmra.mxu1 %v1378_v27  ;;  %1206 = vmatprep.mubr.f32.mxu0 %v3162_v44 }
  0x80   :  { %1516 = vmatprep.mubr.f32.mxu1 %v3162_v44 }
  0x82   :  { %1207 = vmatmul.mubr.f32.gmra.mxu0 %v1079_v29 }
  0x83   :  { %1517 = vmatmul.mubr.f32.gmra.mxu1 %v1380_v33  ;;  %1212 = vmatprep.mubr.f32.mxu0 %v3162_v44 }
  0x84   :  { %1522 = vmatprep.mubr.f32.mxu1 %v3162_v44 }
  0x86   :  { %1213 = vmatmul.mubr.f32.gmra.mxu0 %v1080_v32 }
  0x87   :  { %1523 = vmatmul.mubr.f32.gmra.mxu1 %v1382_v12  ;;  %1218 = vmatprep.mubr.f32.mxu0 %v3162_v44 }
  0x88   :  { %1528 = vmatprep.mubr.f32.mxu1 %v3162_v44 }
  0x8a   :  { %1219 = vmatmul.mubr.f32.gmra.mxu0 %v1081_v48 }
  0x8b   :  { %1529 = vmatmul.mubr.f32.gmra.mxu1 %v1384_v30 }
  0x8c   :  { %1534 = vmatprep.mubr.f32.mxu1 %v3162_v44 }
  0x8f   :  { %1535 = vmatmul.mubr.f32.gmra.mxu1 %v1383_v49 }
  0xe2   :  { %v377_v44 = vpop.f32.mrf.mxu0 }
  0xe3   :  { %v378_v35 = vadd.f32 %v377_v44, %v2687_v50 }
  0xe4   :  { %v379_v62 = vpop.f32.mrf.mxu0 }
  0xe5   :  { %v454_v16 = vmax.f32 %v378_v35, 0.0  ;;  %v380_v11 = vadd.f32 %v379_v62, %v2696_v6 }
  0xe6   :  { %v383_v46 = vpop.f32.mrf.mxu0  ;;  %v715_v0 = vpop.f32.mrf.mxu1 }
  0xe7   :  { %v491_v22 = vmul.f32 %v2703_v17, %v454_v16  ;;  %v455_v61 = vmax.f32 %v380_v11, 0.0  ;;  %v384_v59 = vadd.f32 %v383_v46, %v2687_v50  ;;  %v716_v21 = vadd.f32 %v715_v0, %v2706_v3 }
  0xe8   :  { %v385_v20 = vpop.f32.mrf.mxu0  ;;  %v717_v58 = vpop.f32.mrf.mxu1 }
  0xe9   :  { %v492_v54 = vmul.f32 %v2710_v7, %v455_v61  ;;  %v456_v57 = vmax.f32 %v384_v59, 0.0  ;;  %v528_v38 = vadd.f32 %v2713_v56, %v491_v22  ;;  %v386_v40 = vadd.f32 %v385_v20, %v2696_v6 }
  0xea   :  { %v718_v23 = vadd.f32 %v717_v58, %v2719_v5  ;;  %v389_v24 = vpop.f32.mrf.mxu0  ;;  %v721_v34 = vpop.f32.mrf.mxu1 }
  0xeb   :  { %v493_v52 = vmul.f32 %v2703_v17, %v456_v57  ;;  %v792_v1 = vadd.f32 %v716_v21, %v528_v38  ;;  %v457_v2 = vmax.f32 %v386_v40, 0.0  ;;  %v529_v26 = vadd.f32 %v2716_v19, %v492_v54 }
  0xec   :  { %v390_v9 = vadd.f32 %v389_v24, %v2687_v50  ;;  %v722_v28 = vadd.f32 %v721_v34, %v2706_v3  ;;  %v391_v10 = vpop.f32.mrf.mxu0  ;;  %v723_v25 = vpop.f32.mrf.mxu1 }
  0xed   :  { %v818_v36 = vmax.f32 %v792_v1, 0.0  ;;  %v494_v13 = vmul.f32 %v2710_v7, %v457_v2  ;;  %v793_v31 = vadd.f32 %v718_v23, %v529_v26  ;;  %v530_v43 = vadd.f32 %v2713_v56, %v493_v52 }
  0xee   :  { %v458_v41 = vmax.f32 %v390_v9, 0.0  ;;  %v392_v47 = vadd.f32 %v391_v10, %v2696_v6  ;;  %v724_v15 = vadd.f32 %v723_v25, %v2719_v5  ;;  %v395_v55 = vpop.f32.mrf.mxu0  ;;  %v727_v27 = vpop.f32.mrf.mxu1 }
  0xef   :  { %844 = vst [vmem:[%s3101_s9] sm:$0xff] %v818_v36  ;;  %v819_v8 = vmax.f32 %v793_v31, 0.0  ;;  %v794_v29 = vadd.f32 %v722_v28, %v530_v43  ;;  %v531_v63 = vadd.f32 %v2716_v19, %v494_v13  ;;  %v396_v39 = vadd.f32 %v395_v55, %v2687_v50 }
  0xf0   :  { %v495_v53 = vmul.f32 %v2703_v17, %v458_v41  ;;  %v459_v33 = vmax.f32 %v392_v47, 0.0  ;;  %v728_v45 = vadd.f32 %v727_v27, %v2706_v3  ;;  %v397_v32 = vpop.f32.mrf.mxu0  ;;  %v729_v37 = vpop.f32.mrf.mxu1 }
  0xf1   :  { %845 = vst [vmem:[%s3101_s9 + $0x8] sm:$0xff] %v819_v8  ;;  %v820_v12 = vmax.f32 %v794_v29, 0.0  ;;  %v795_v49 = vadd.f32 %v724_v15, %v531_v63  ;;  %v460_v48 = vmax.f32 %v396_v39, 0.0  ;;  %v398_v30 = vadd.f32 %v397_v32, %v2696_v6 }
  0xf2   :  { %v496_v42 = vmul.f32 %v2710_v7, %v459_v33  ;;  %v532_v51 = vadd.f32 %v2713_v56, %v495_v53  ;;  %v401_v60 = vpop.f32.mrf.mxu0  ;;  %v730_v0 = vadd.f32 %v729_v37, %v2719_v5 }
  0xf3   :  { %846 = vst [vmem:[%s3101_s9 + $0x10] sm:$0xff] %v820_v12  ;;  %v821_v44 = vmax.f32 %v795_v49, 0.0  ;;  %v497_v4 = vmul.f32 %v2703_v17, %v460_v48  ;;  %v461_v35 = vmax.f32 %v398_v30, 0.0  ;;  %v402_v62 = vadd.f32 %v401_v60, %v2687_v50  ;;  %v733_v16 = vpop.f32.mrf.mxu1 }
  0xf4   :  { %v796_v11 = vadd.f32 %v728_v45, %v532_v51  ;;  %v533_v46 = vadd.f32 %v2716_v19, %v496_v42  ;;  %v734_v22 = vadd.f32 %v733_v16, %v2706_v3  ;;  %v403_v61 = vpop.f32.mrf.mxu0 }
  0xf5   :  { %847 = vst [vmem:[%s3101_s9 + $0x18] sm:$0xff] %v821_v44  ;;  %v498_v59 = vmul.f32 %v2710_v7, %v461_v35  ;;  %v462_v21 = vmax.f32 %v402_v62, 0.0  ;;  %v534_v20 = vadd.f32 %v2713_v56, %v497_v4  ;;  %v404_v58 = vadd.f32 %v403_v61, %v2696_v6  ;;  %v735_v54 = vpop.f32.mrf.mxu1 }
  0xf6   :  { %v822_v57 = vmax.f32 %v796_v11, 0.0  ;;  %v797_v38 = vadd.f32 %v730_v0, %v533_v46  ;;  %v736_v40 = vadd.f32 %v735_v54, %v2719_v5  ;;  %v407_v23 = vpop.f32.mrf.mxu0 }
  0xf7   :  { %v499_v24 = vmul.f32 %v2703_v17, %v462_v21  ;;  %v798_v34 = vadd.f32 %v734_v22, %v534_v20  ;;  %v463_v52 = vmax.f32 %v404_v58, 0.0  ;;  %v535_v1 = vadd.f32 %v2716_v19, %v498_v59 }
  0xf8   :  { %848 = vst [vmem:[%s3101_s9 + $0x20] sm:$0xff] %v822_v57  ;;  %v823_v2 = vmax.f32 %v797_v38, 0.0  ;;  %v408_v26 = vadd.f32 %v407_v23, %v2687_v50  ;;  %v739_v9 = vpop.f32.mrf.mxu1  ;;  %v409_v28 = vpop.f32.mrf.mxu0 }
  0xf9   :  { %v824_v10 = vmax.f32 %v798_v34, 0.0  ;;  %v500_v25 = vmul.f32 %v2710_v7, %v463_v52  ;;  %v799_v36 = vadd.f32 %v736_v40, %v535_v1  ;;  %v536_v13 = vadd.f32 %v2713_v56, %v499_v24 }
  0xfa   :  { %849 = vst [vmem:[%s3101_s9 + $0x28] sm:$0xff] %v823_v2  ;;  %v464_v31 = vmax.f32 %v408_v26, 0.0  ;;  %v740_v43 = vadd.f32 %v739_v9, %v2706_v3  ;;  %v410_v41 = vadd.f32 %v409_v28, %v2696_v6  ;;  %v741_v47 = vpop.f32.mrf.mxu1  ;;  %v413_v15 = vpop.f32.mrf.mxu0 }
  0xfb   :  { %850 = vst [vmem:[%s3101_s9 + $0x30] sm:$0xff] %v824_v10  ;;  %v825_v55 = vmax.f32 %v799_v36, 0.0  ;;  %v537_v27 = vadd.f32 %v2716_v19, %v500_v25  ;;  %v742_v8 = vadd.f32 %v741_v47, %v2719_v5  ;;  %v414_v29 = vadd.f32 %v413_v15, %v2687_v50 }
  0xfc   :  { %v501_v63 = vmul.f32 %v2703_v17, %v464_v31  ;;  %v800_v39 = vadd.f32 %v740_v43, %v536_v13  ;;  %v465_v53 = vmax.f32 %v410_v41, 0.0  ;;  %v415_v33 = vpop.f32.mrf.mxu0 }
  0xfd   :  { %851 = vst [vmem:[%s3101_s9 + $0x38] sm:$0xff] %v825_v55  ;;  %v801_v45 = vadd.f32 %v742_v8, %v537_v27  ;;  %v466_v32 = vmax.f32 %v414_v29, 0.0  ;;  %v745_v37 = vpop.f32.mrf.mxu1  ;;  %v416_v12 = vadd.f32 %v415_v33, %v2696_v6 }
  0xfe   :  { %v826_v49 = vmax.f32 %v800_v39, 0.0  ;;  %v502_v48 = vmul.f32 %v2710_v7, %v465_v53  ;;  %v538_v30 = vadd.f32 %v2713_v56, %v501_v63  ;;  %v746_v42 = vadd.f32 %v745_v37, %v2706_v3 }
  0xff   :  { %v827_v51 = vmax.f32 %v801_v45, 0.0  ;;  %v503_v60 = vmul.f32 %v2703_v17, %v466_v32  ;;  %v467_v44 = vmax.f32 %v416_v12, 0.0  ;;  %v747_v4 = vpop.f32.mrf.mxu1  ;;  %v419_v35 = vpop.f32.mrf.mxu0 }
 0x100   :  { %852 = vst [vmem:[%s3101_s9 + $0x40] sm:$0xff] %v826_v49  ;;  %v802_v62 = vadd.f32 %v746_v42, %v538_v30  ;;  %v539_v16 = vadd.f32 %v2716_v19, %v502_v48  ;;  %v748_v11 = vadd.f32 %v747_v4, %v2719_v5  ;;  %v420_v46 = vadd.f32 %v419_v35, %v2687_v50 }
 0x101   :  { %853 = vst [vmem:[%s3101_s9 + $0x48] sm:$0xff] %v827_v51  ;;  %v504_v0 = vmul.f32 %v2710_v7, %v467_v44  ;;  %v540_v22 = vadd.f32 %v2713_v56, %v503_v60  ;;  %v751_v61 = vpop.f32.mrf.mxu1  ;;  %v421_v59 = vpop.f32.mrf.mxu0 }
 0x102   :  { %v828_v21 = vmax.f32 %v802_v62, 0.0  ;;  %v803_v20 = vadd.f32 %v748_v11, %v539_v16  ;;  %v468_v58 = vmax.f32 %v420_v46, 0.0  ;;  %v752_v54 = vadd.f32 %v751_v61, %v2706_v3 }
 0x103   :  { %v422_v57 = vadd.f32 %v421_v59, %v2696_v6  ;;  %v541_v38 = vadd.f32 %v2716_v19, %v504_v0  ;;  %v753_v40 = vpop.f32.mrf.mxu1 }
 0x104   :  { %854 = vst [vmem:[%s3101_s9 + $0x50] sm:$0xff] %v828_v21  ;;  %v829_v23 = vmax.f32 %v803_v20, 0.0  ;;  %v505_v24 = vmul.f32 %v2703_v17, %v468_v58  ;;  %v804_v34 = vadd.f32 %v752_v54, %v540_v22  ;;  %v754_v52 = vadd.f32 %v753_v40, %v2719_v5  ;;  %v425_v1 = vpop.f32.mrf.mxu0 }
 0x105   :  { %v469_v2 = vmax.f32 %v422_v57, 0.0  ;;  %v426_v26 = vadd.f32 %v425_v1, %v2687_v50  ;;  %v757_v9 = vpop.f32.mrf.mxu1 }
 0x106   :  { %855 = vst [vmem:[%s3101_s9 + $0x58] sm:$0xff] %v829_v23  ;;  %v830_v28 = vmax.f32 %v804_v34, 0.0  ;;  %v805_v10 = vadd.f32 %v754_v52, %v541_v38  ;;  %v542_v25 = vadd.f32 %v2713_v56, %v505_v24  ;;  %v758_v36 = vadd.f32 %v757_v9, %v2706_v3  ;;  %v427_v13 = vpop.f32.mrf.mxu0 }
 0x107   :  { %v506_v31 = vmul.f32 %v2710_v7, %v469_v2  ;;  %v470_v43 = vmax.f32 %v426_v26, 0.0  ;;  %v428_v41 = vadd.f32 %v427_v13, %v2696_v6  ;;  %v759_v47 = vpop.f32.mrf.mxu1 }
 0x108   :  { %856 = vst [vmem:[%s3101_s9 + $0x60] sm:$0xff] %v830_v28  ;;  %v831_v15 = vmax.f32 %v805_v10, 0.0  ;;  %v806_v55 = vadd.f32 %v758_v36, %v542_v25  ;;  %v760_v27 = vadd.f32 %v759_v47, %v2719_v5  ;;  %v431_v8 = vpop.f32.mrf.mxu0 }
 0x109   :  { %v507_v29 = vmul.f32 %v2703_v17, %v470_v43  ;;  %v471_v63 = vmax.f32 %v428_v41, 0.0  ;;  %v543_v39 = vadd.f32 %v2716_v19, %v506_v31  ;;  %v432_v53 = vadd.f32 %v431_v8, %v2687_v50  ;;  %v763_v33 = vpop.f32.mrf.mxu1 }
 0x10a   :  { %857 = vst [vmem:[%s3101_s9 + $0x68] sm:$0xff] %v831_v15  ;;  %v832_v45 = vmax.f32 %v806_v55, 0.0  ;;  %v764_v32 = vadd.f32 %v763_v33, %v2706_v3  ;;  %v433_v37 = vpop.f32.mrf.mxu0 }
 0x10b   :  { %v508_v12 = vmul.f32 %v2710_v7, %v471_v63  ;;  %v807_v49 = vadd.f32 %v760_v27, %v543_v39  ;;  %v472_v48 = vmax.f32 %v432_v53, 0.0  ;;  %v544_v30 = vadd.f32 %v2713_v56, %v507_v29  ;;  %v765_v42 = vpop.f32.mrf.mxu1 }
 0x10c   :  { %858 = vst [vmem:[%s3101_s9 + $0x70] sm:$0xff] %v832_v45  ;;  %v434_v51 = vadd.f32 %v433_v37, %v2696_v6  ;;  %v766_v60 = vadd.f32 %v765_v42, %v2719_v5  ;;  %v437_v44 = vpop.f32.mrf.mxu0 }
 0x10d   :  { %v833_v4 = vmax.f32 %v807_v49, 0.0  ;;  %v509_v35 = vmul.f32 %v2703_v17, %v472_v48  ;;  %v808_v62 = vadd.f32 %v764_v32, %v544_v30  ;;  %v545_v16 = vadd.f32 %v2716_v19, %v508_v12 }
 0x10e   :  { %v473_v11 = vmax.f32 %v434_v51, 0.0  ;;  %v438_v46 = vadd.f32 %v437_v44, %v2687_v50  ;;  %v439_v0 = vpop.f32.mrf.mxu0 }
 0x10f   :  { %859 = vst [vmem:[%s3101_s9 + $0x78] sm:$0xff] %v833_v4  ;;  %v834_v22 = vmax.f32 %v808_v62, 0.0  ;;  %v809_v61 = vadd.f32 %v766_v60, %v545_v16  ;;  %v546_v59 = vadd.f32 %v2713_v56, %v509_v35  ;;  %v769_v21 = vpop.f32.mrf.mxu1  ;;  %v440_v20 = vadd.f32 %v439_v0, %v2696_v6  ;;  %v1335_v60 = vld [vmem:[%s3099_s6] sm:$0x3] }
 0x110   :  { %v510_v58 = vmul.f32 %v2710_v7, %v473_v11  ;;  %v474_v54 = vmax.f32 %v438_v46, 0.0  ;;  %v770_v57 = vadd.f32 %v769_v21, %v2706_v3  ;;  %v2890_v21 = vrot.slane %v1335_v60, %v3191_v18 }
 0x111   :  { %860 = vst [vmem:[%s3101_s9 + $0x80] sm:$0xff] %v834_v22  ;;  %v835_v38 = vmax.f32 %v809_v61, 0.0  ;;  %v475_v40 = vmax.f32 %v440_v20, 0.0  ;;  %v771_v23 = vpop.f32.mrf.mxu1  ;;  %v443_v24 = vpop.f32.mrf.mxu0 }
 0x112   :  { %v511_v34 = vmul.f32 %v2703_v17, %v474_v54  ;;  %v810_v52 = vadd.f32 %v770_v57, %v546_v59  ;;  %v547_v1 = vadd.f32 %v2716_v19, %v510_v58  ;;  %v772_v2 = vadd.f32 %v771_v23, %v2719_v5 }
 0x113   :  { %861 = vst [vmem:[%s3101_s9 + $0x88] sm:$0xff] %v835_v38  ;;  %v512_v26 = vmul.f32 %v2710_v7, %v475_v40  ;;  %v444_v9 = vadd.f32 %v443_v24, %v2687_v50  ;;  %v775_v28 = vpop.f32.mrf.mxu1  ;;  %v445_v10 = vpop.f32.mrf.mxu0 }
 0x114   :  { %v836_v25 = vmax.f32 %v810_v52, 0.0  ;;  %v811_v36 = vadd.f32 %v772_v2, %v547_v1  ;;  %v548_v13 = vadd.f32 %v2713_v56, %v511_v34  ;;  %v776_v31 = vadd.f32 %v775_v28, %v2706_v3 }
 0x115   :  { %v476_v43 = vmax.f32 %v444_v9, 0.0  ;;  %v446_v41 = vadd.f32 %v445_v10, %v2696_v6  ;;  %v549_v47 = vadd.f32 %v2716_v19, %v512_v26  ;;  %v777_v15 = vpop.f32.mrf.mxu1 }
 0x116   :  { %862 = vst [vmem:[%s3101_s9 + $0x90] sm:$0xff] %v836_v25  ;;  %v837_v55 = vmax.f32 %v811_v36, 0.0  ;;  %v812_v27 = vadd.f32 %v776_v31, %v548_v13  ;;  %v778_v8 = vadd.f32 %v777_v15, %v2719_v5  ;;  %v449_v29 = vpop.f32.mrf.mxu0 }
 0x117   :  { %v513_v63 = vmul.f32 %v2703_v17, %v476_v43  ;;  %v477_v39 = vmax.f32 %v446_v41, 0.0  ;;  %v450_v53 = vadd.f32 %v449_v29, %v2687_v50  ;;  %v781_v33 = vpop.f32.mrf.mxu1 }
 0x118   :  { %863 = vst [vmem:[%s3101_s9 + $0x98] sm:$0xff] %v837_v55  ;;  %v838_v45 = vmax.f32 %v812_v27, 0.0  ;;  %v813_v32 = vadd.f32 %v778_v8, %v549_v47  ;;  %v782_v37 = vadd.f32 %v781_v33, %v2706_v3  ;;  %v451_v12 = vpop.f32.mrf.mxu0 }
 0x119   :  { %v514_v49 = vmul.f32 %v2710_v7, %v477_v39  ;;  %v478_v48 = vmax.f32 %v450_v53, 0.0  ;;  %v550_v30 = vadd.f32 %v2713_v56, %v513_v63  ;;  %v452_v42 = vadd.f32 %v451_v12, %v2696_v6  ;;  %v783_v51 = vpop.f32.mrf.mxu1 }
 0x11a   :  { %864 = vst [vmem:[%s3101_s9 + $0xa0] sm:$0xff] %v838_v45  ;;  %v839_v44 = vmax.f32 %v813_v32, 0.0  ;;  %v784_v4 = vadd.f32 %v783_v51, %v2719_v5  ;;  %v1148_v35 = vpop.f32.mrf.mxu0 }
 0x11b   :  { %v515_v62 = vmul.f32 %v2703_v17, %v478_v48  ;;  %v814_v16 = vadd.f32 %v782_v37, %v550_v30  ;;  %v479_v11 = vmax.f32 %v452_v42, 0.0  ;;  %v551_v46 = vadd.f32 %v2716_v19, %v514_v49  ;;  %v787_v0 = vpop.f32.mrf.mxu1 }
 0x11c   :  { %865 = vst [vmem:[%s3101_s9 + $0xa8] sm:$0xff] %v839_v44  ;;  %v1149_v22 = vadd.f32 %v1148_v35, %v2687_v50  ;;  %v788_v61 = vadd.f32 %v787_v0, %v2706_v3  ;;  %v1150_v59 = vpop.f32.mrf.mxu0 }
 0x11d   :  { %v840_v20 = vmax.f32 %v814_v16, 0.0  ;;  %v516_v58 = vmul.f32 %v2710_v7, %v479_v11  ;;  %v815_v54 = vadd.f32 %v784_v4, %v551_v46  ;;  %v552_v57 = vadd.f32 %v2713_v56, %v515_v62  ;;  %v789_v38 = vpop.f32.mrf.mxu1 }
 0x11e   :  { %v1225_v40 = vmax.f32 %v1149_v22, 0.0  ;;  %v1151_v23 = vadd.f32 %v1150_v59, %v2696_v6  ;;  %v790_v24 = vadd.f32 %v789_v38, %v2719_v5  ;;  %v1154_v34 = vpop.f32.mrf.mxu0  ;;  %v2904_v5 = vrot.slane %v1335_v60, %v3192_v14 }
 0x11f   :  { %866 = vst [vmem:[%s3101_s9 + $0xb0] sm:$0xff] %v840_v20  ;;  %v841_v3 = vmax.f32 %v815_v54, 0.0  ;;  %v816_v18 = vadd.f32 %v788_v61, %v552_v57  ;;  %v553_v52 = vadd.f32 %v2716_v19, %v516_v58  ;;  %v1155_v1 = vadd.f32 %v1154_v34, %v2687_v50  ;;  %v1464_v2 = vpop.f32.mrf.mxu1 }
 0x120   :  { %v1251_v26 = vmul.f32 %v1225_v40, %v2703_v17  ;;  %v1226_v9 = vmax.f32 %v1151_v23, 0.0  ;;  %v1465_v28 = vadd.f32 %v1464_v2, %v2890_v21  ;;  %v1156_v10 = vpop.f32.mrf.mxu0 }
 0x121   :  { %867 = vst [vmem:[%s3101_s9 + $0xb8] sm:$0xff] %v841_v3  ;;  %v842_v25 = vmax.f32 %v816_v18, 0.0  ;;  %v817_v36 = vadd.f32 %v790_v24, %v553_v52  ;;  %v1227_v13 = vmax.f32 %v1155_v1, 0.0  ;;  %v1157_v31 = vadd.f32 %v1156_v10, %v2696_v6  ;;  %v1466_v43 = vpop.f32.mrf.mxu1 }
 0x122   :  { %v1252_v41 = vmul.f32 %v1226_v9, %v2710_v7  ;;  %v1277_v47 = vadd.f32 %v1251_v26, %v2713_v56  ;;  %v1160_v15 = vpop.f32.mrf.mxu0  ;;  %v1467_v53 = vadd.f32 %v1466_v43, %v2904_v5 }
 0x123   :  { %868 = vst [vmem:[%s3101_s9 + $0xc0] sm:$0xf] %v842_v25  ;;  %v843_v14 = vmax.f32 %v817_v36, 0.0  ;;  %v1253_v55 = vmul.f32 %v1227_v13, %v2703_v17  ;;  %v1228_v27 = vmax.f32 %v1157_v31, 0.0  ;;  %v1161_v8 = vadd.f32 %v1160_v15, %v2687_v50  ;;  %v1470_v29 = vpop.f32.mrf.mxu1 }
 0x124   :  { %v1541_v63 = vadd.f32 %v1465_v28, %v1277_v47  ;;  %v1278_v39 = vadd.f32 %v1252_v41, %v2716_v19  ;;  %v1471_v33 = vadd.f32 %v1470_v29, %v2890_v21  ;;  %v1162_v45 = vpop.f32.mrf.mxu0 }
 0x125   :  { %869 = vst [vmem:[%s3101_s9 + $0xc8] sm:$0xf] %v843_v14  ;;  %v1254_v32 = vmul.f32 %v1228_v27, %v2710_v7  ;;  %v1229_v37 = vmax.f32 %v1161_v8, 0.0  ;;  %v1279_v12 = vadd.f32 %v1253_v55, %v2713_v56  ;;  %v1163_v49 = vadd.f32 %v1162_v45, %v2696_v6  ;;  %v1472_v48 = vpop.f32.mrf.mxu1 }
 0x126   :  { %v1567_v30 = vmax.f32 %v1541_v63, 0.0  ;;  %v1542_v42 = vadd.f32 %v1467_v53, %v1278_v39  ;;  %v1473_v51 = vadd.f32 %v1472_v48, %v2904_v5  ;;  %v1166_v60 = vpop.f32.mrf.mxu0 }
 0x127   :  { %v1255_v44 = vmul.f32 %v1229_v37, %v2703_v17  ;;  %v1543_v4 = vadd.f32 %v1471_v33, %v1279_v12  ;;  %v1230_v35 = vmax.f32 %v1163_v49, 0.0  ;;  %v1280_v62 = vadd.f32 %v1254_v32, %v2716_v19  ;;  %v1476_v16 = vpop.f32.mrf.mxu1 }
 0x128   :  { %1639 = vst [vmem:[%s3101_s9 + $0xd0] sm:$0xff] %v1567_v30  ;;  %v1568_v11 = vmax.f32 %v1542_v42, 0.0  ;;  %v1167_v46 = vadd.f32 %v1166_v60, %v2687_v50  ;;  %v1477_v0 = vadd.f32 %v1476_v16, %v2890_v21  ;;  %v1168_v22 = vpop.f32.mrf.mxu0 }
 0x129   :  { %v1569_v61 = vmax.f32 %v1543_v4, 0.0  ;;  %v1256_v59 = vmul.f32 %v1230_v35, %v2710_v7  ;;  %v1544_v20 = vadd.f32 %v1473_v51, %v1280_v62  ;;  %v1281_v58 = vadd.f32 %v1255_v44, %v2713_v56  ;;  %v1478_v54 = vpop.f32.mrf.mxu1 }
 0x12a   :  { %1640 = vst [vmem:[%s3101_s9 + $0xd8] sm:$0xff] %v1568_v11  ;;  %v1231_v57 = vmax.f32 %v1167_v46, 0.0  ;;  %v1169_v38 = vadd.f32 %v1168_v22, %v2696_v6  ;;  %v1479_v40 = vadd.f32 %v1478_v54, %v2904_v5  ;;  %v1172_v23 = vpop.f32.mrf.mxu0 }
 0x12b   :  { %1641 = vst [vmem:[%s3101_s9 + $0xe0] sm:$0xff] %v1569_v61  ;;  %v1570_v24 = vmax.f32 %v1544_v20, 0.0  ;;  %v1545_v34 = vadd.f32 %v1477_v0, %v1281_v58  ;;  %v1282_v3 = vadd.f32 %v1256_v59, %v2716_v19  ;;  %v1173_v18 = vadd.f32 %v1172_v23, %v2687_v50  ;;  %v1482_v52 = vpop.f32.mrf.mxu1 }
 0x12c   :  { %v1257_v1 = vmul.f32 %v1231_v57, %v2703_v17  ;;  %v1232_v2 = vmax.f32 %v1169_v38, 0.0  ;;  %v1483_v26 = vadd.f32 %v1482_v52, %v2890_v21  ;;  %v1174_v9 = vpop.f32.mrf.mxu0 }
 0x12d   :  { %1642 = vst [vmem:[%s3101_s9 + $0xe8] sm:$0xff] %v1570_v24  ;;  %v1571_v28 = vmax.f32 %v1545_v34, 0.0  ;;  %v1546_v10 = vadd.f32 %v1479_v40, %v1282_v3  ;;  %v1233_v25 = vmax.f32 %v1173_v18, 0.0  ;;  %v1175_v36 = vadd.f32 %v1174_v9, %v2696_v6  ;;  %v1484_v13 = vpop.f32.mrf.mxu1 }
 0x12e   :  { %v1258_v31 = vmul.f32 %v1232_v2, %v2710_v7  ;;  %v1283_v43 = vadd.f32 %v1257_v1, %v2713_v56  ;;  %v1178_v41 = vpop.f32.mrf.mxu0  ;;  %v1485_v63 = vadd.f32 %v1484_v13, %v2904_v5 }
 0x12f   :  { %1643 = vst [vmem:[%s3101_s9 + $0xf0] sm:$0xff] %v1571_v28  ;;  %v1572_v47 = vmax.f32 %v1546_v10, 0.0  ;;  %v1259_v15 = vmul.f32 %v1233_v25, %v2703_v17  ;;  %v1234_v14 = vmax.f32 %v1175_v36, 0.0  ;;  %v1179_v55 = vadd.f32 %v1178_v41, %v2687_v50  ;;  %v1488_v27 = vpop.f32.mrf.mxu1 }
 0x130   :  { %v1547_v8 = vadd.f32 %v1483_v26, %v1283_v43  ;;  %v1284_v29 = vadd.f32 %v1258_v31, %v2716_v19  ;;  %v1489_v39 = vadd.f32 %v1488_v27, %v2890_v21  ;;  %v1180_v53 = vpop.f32.mrf.mxu0 }
 0x131   :  { %1644 = vst [vmem:[%s3101_s9 + $0xf8] sm:$0xff] %v1572_v47  ;;  %v1260_v33 = vmul.f32 %v1234_v14, %v2710_v7  ;;  %v1235_v45 = vmax.f32 %v1179_v55, 0.0  ;;  %v1285_v32 = vadd.f32 %v1259_v15, %v2713_v56  ;;  %v1181_v37 = vadd.f32 %v1180_v53, %v2696_v6  ;;  %v1490_v12 = vpop.f32.mrf.mxu1 }
 0x132   :  { %v1573_v49 = vmax.f32 %v1547_v8, 0.0  ;;  %v1548_v48 = vadd.f32 %v1485_v63, %v1284_v29  ;;  %v1491_v30 = vadd.f32 %v1490_v12, %v2904_v5  ;;  %v1184_v42 = vpop.f32.mrf.mxu0 }
 0x133   :  { %v1261_v51 = vmul.f32 %v1235_v45, %v2703_v17  ;;  %v1549_v60 = vadd.f32 %v1489_v39, %v1285_v32  ;;  %v1236_v44 = vmax.f32 %v1181_v37, 0.0  ;;  %v1286_v4 = vadd.f32 %v1260_v33, %v2716_v19  ;;  %v1494_v35 = vpop.f32.mrf.mxu1 }
 0x134   :  { %1645 = vst [vmem:[%s3101_s9 + $0x100] sm:$0xff] %v1573_v49  ;;  %v1574_v62 = vmax.f32 %v1548_v48, 0.0  ;;  %v1185_v16 = vadd.f32 %v1184_v42, %v2687_v50  ;;  %v1495_v11 = vadd.f32 %v1494_v35, %v2890_v21  ;;  %v1186_v46 = vpop.f32.mrf.mxu0 }
 0x135   :  { %v1575_v0 = vmax.f32 %v1549_v60, 0.0  ;;  %v1262_v22 = vmul.f32 %v1236_v44, %v2710_v7  ;;  %v1550_v61 = vadd.f32 %v1491_v30, %v1286_v4  ;;  %v1287_v59 = vadd.f32 %v1261_v51, %v2713_v56  ;;  %v1496_v20 = vpop.f32.mrf.mxu1 }
 0x136   :  { %1646 = vst [vmem:[%s3101_s9 + $0x108] sm:$0xff] %v1574_v62  ;;  %v1237_v58 = vmax.f32 %v1185_v16, 0.0  ;;  %v1187_v54 = vadd.f32 %v1186_v46, %v2696_v6  ;;  %v1497_v57 = vadd.f32 %v1496_v20, %v2904_v5  ;;  %v1190_v38 = vpop.f32.mrf.mxu0 }
 0x137   :  { %1647 = vst [vmem:[%s3101_s9 + $0x110] sm:$0xff] %v1575_v0  ;;  %v1576_v40 = vmax.f32 %v1550_v61, 0.0  ;;  %v1551_v23 = vadd.f32 %v1495_v11, %v1287_v59  ;;  %v1288_v24 = vadd.f32 %v1262_v22, %v2716_v19  ;;  %v1191_v34 = vadd.f32 %v1190_v38, %v2687_v50  ;;  %v1500_v3 = vpop.f32.mrf.mxu1 }
 0x138   :  { %v1263_v18 = vmul.f32 %v1237_v58, %v2703_v17  ;;  %v1238_v52 = vmax.f32 %v1187_v54, 0.0  ;;  %v1501_v1 = vadd.f32 %v1500_v3, %v2890_v21  ;;  %v1192_v2 = vpop.f32.mrf.mxu0 }
 0x139   :  { %1648 = vst [vmem:[%s3101_s9 + $0x118] sm:$0xff] %v1576_v40  ;;  %v1577_v26 = vmax.f32 %v1551_v23, 0.0  ;;  %v1552_v9 = vadd.f32 %v1497_v57, %v1288_v24  ;;  %v1239_v28 = vmax.f32 %v1191_v34, 0.0  ;;  %v1193_v10 = vadd.f32 %v1192_v2, %v2696_v6  ;;  %v1502_v25 = vpop.f32.mrf.mxu1 }
 0x13a   :  { %v1264_v36 = vmul.f32 %v1238_v52, %v2710_v7  ;;  %v1289_v13 = vadd.f32 %v1263_v18, %v2713_v56  ;;  %v1196_v31 = vpop.f32.mrf.mxu0  ;;  %v1503_v8 = vadd.f32 %v1502_v25, %v2904_v5 }
 0x13b   :  { %1649 = vst [vmem:[%s3101_s9 + $0x120] sm:$0xff] %v1577_v26  ;;  %v1578_v43 = vmax.f32 %v1552_v9, 0.0  ;;  %v1265_v41 = vmul.f32 %v1239_v28, %v2703_v17  ;;  %v1240_v47 = vmax.f32 %v1193_v10, 0.0  ;;  %v1197_v15 = vadd.f32 %v1196_v31, %v2687_v50  ;;  %v1506_v14 = vpop.f32.mrf.mxu1 }
 0x13c   :  { %v1553_v55 = vadd.f32 %v1501_v1, %v1289_v13  ;;  %v1290_v27 = vadd.f32 %v1264_v36, %v2716_v19  ;;  %v1507_v29 = vadd.f32 %v1506_v14, %v2890_v21  ;;  %v1198_v63 = vpop.f32.mrf.mxu0 }
 0x13d   :  { %1650 = vst [vmem:[%s3101_s9 + $0x128] sm:$0xff] %v1578_v43  ;;  %v1266_v39 = vmul.f32 %v1240_v47, %v2710_v7  ;;  %v1241_v53 = vmax.f32 %v1197_v15, 0.0  ;;  %v1291_v33 = vadd.f32 %v1265_v41, %v2713_v56  ;;  %v1199_v45 = vadd.f32 %v1198_v63, %v2696_v6  ;;  %v1508_v32 = vpop.f32.mrf.mxu1 }
 0x13e   :  { %v1579_v37 = vmax.f32 %v1553_v55, 0.0  ;;  %v1554_v12 = vadd.f32 %v1503_v8, %v1290_v27  ;;  %v1509_v49 = vadd.f32 %v1508_v32, %v2904_v5  ;;  %v1202_v48 = vpop.f32.mrf.mxu0 }
 0x13f   :  { %v1267_v30 = vmul.f32 %v1241_v53, %v2703_v17  ;;  %v1555_v42 = vadd.f32 %v1507_v29, %v1291_v33  ;;  %v1242_v51 = vmax.f32 %v1199_v45, 0.0  ;;  %v1292_v60 = vadd.f32 %v1266_v39, %v2716_v19  ;;  %v1512_v44 = vpop.f32.mrf.mxu1 }
 0x140   :  { %1651 = vst [vmem:[%s3101_s9 + $0x130] sm:$0xff] %v1579_v37  ;;  %v1580_v4 = vmax.f32 %v1554_v12, 0.0  ;;  %v1203_v35 = vadd.f32 %v1202_v48, %v2687_v50  ;;  %v1513_v62 = vadd.f32 %v1512_v44, %v2890_v21  ;;  %v1204_v16 = vpop.f32.mrf.mxu0 }
 0x141   :  { %v1581_v11 = vmax.f32 %v1555_v42, 0.0  ;;  %v1268_v46 = vmul.f32 %v1242_v51, %v2710_v7  ;;  %v1556_v0 = vadd.f32 %v1509_v49, %v1292_v60  ;;  %v1293_v22 = vadd.f32 %v1267_v30, %v2713_v56  ;;  %v1514_v61 = vpop.f32.mrf.mxu1 }
 0x142   :  { %1652 = vst [vmem:[%s3101_s9 + $0x138] sm:$0xff] %v1580_v4  ;;  %v1243_v59 = vmax.f32 %v1203_v35, 0.0  ;;  %v1205_v20 = vadd.f32 %v1204_v16, %v2696_v6  ;;  %v1515_v58 = vadd.f32 %v1514_v61, %v2904_v5  ;;  %v1208_v54 = vpop.f32.mrf.mxu0 }
 0x143   :  { %1653 = vst [vmem:[%s3101_s9 + $0x140] sm:$0xff] %v1581_v11  ;;  %v1582_v57 = vmax.f32 %v1556_v0, 0.0  ;;  %v1557_v38 = vadd.f32 %v1513_v62, %v1293_v22  ;;  %v1294_v40 = vadd.f32 %v1268_v46, %v2716_v19  ;;  %v1209_v23 = vadd.f32 %v1208_v54, %v2687_v50  ;;  %v1518_v24 = vpop.f32.mrf.mxu1 }
 0x144   :  { %v1269_v34 = vmul.f32 %v1243_v59, %v2703_v17  ;;  %v1244_v3 = vmax.f32 %v1205_v20, 0.0  ;;  %v1519_v18 = vadd.f32 %v1518_v24, %v2890_v21  ;;  %v1210_v52 = vpop.f32.mrf.mxu0 }
 0x145   :  { %1654 = vst [vmem:[%s3101_s9 + $0x148] sm:$0xff] %v1582_v57  ;;  %v1583_v1 = vmax.f32 %v1557_v38, 0.0  ;;  %v1558_v2 = vadd.f32 %v1515_v58, %v1294_v40  ;;  %v1245_v26 = vmax.f32 %v1209_v23, 0.0  ;;  %v1211_v9 = vadd.f32 %v1210_v52, %v2696_v6  ;;  %v1520_v28 = vpop.f32.mrf.mxu1 }
 0x146   :  { %v1270_v10 = vmul.f32 %v1244_v3, %v2710_v7  ;;  %v1295_v25 = vadd.f32 %v1269_v34, %v2713_v56  ;;  %v1214_v36 = vpop.f32.mrf.mxu0  ;;  %v1521_v55 = vadd.f32 %v1520_v28, %v2904_v5 }
 0x147   :  { %1655 = vst [vmem:[%s3101_s9 + $0x150] sm:$0xff] %v1583_v1  ;;  %v1584_v13 = vmax.f32 %v1558_v2, 0.0  ;;  %v1271_v31 = vmul.f32 %v1245_v26, %v2703_v17  ;;  %v1246_v43 = vmax.f32 %v1211_v9, 0.0  ;;  %v1215_v41 = vadd.f32 %v1214_v36, %v2687_v50  ;;  %v1524_v47 = vpop.f32.mrf.mxu1 }
 0x148   :  { %v1559_v15 = vadd.f32 %v1519_v18, %v1295_v25  ;;  %v1296_v14 = vadd.f32 %v1270_v10, %v2716_v19  ;;  %v1525_v27 = vadd.f32 %v1524_v47, %v2890_v21  ;;  %v1216_v8 = vpop.f32.mrf.mxu0 }
 0x149   :  { %1656 = vst [vmem:[%s3101_s9 + $0x158] sm:$0xff] %v1584_v13  ;;  %v1272_v29 = vmul.f32 %v1246_v43, %v2710_v7  ;;  %v1247_v63 = vmax.f32 %v1215_v41, 0.0  ;;  %v1297_v39 = vadd.f32 %v1271_v31, %v2713_v56  ;;  %v1217_v53 = vadd.f32 %v1216_v8, %v2696_v6  ;;  %v1526_v33 = vpop.f32.mrf.mxu1 }
 0x14a   :  { %v1585_v45 = vmax.f32 %v1559_v15, 0.0  ;;  %v1560_v32 = vadd.f32 %v1521_v55, %v1296_v14  ;;  %v1527_v37 = vadd.f32 %v1526_v33, %v2904_v5  ;;  %v1220_v12 = vpop.f32.mrf.mxu0 }
 0x14b   :  { %v1273_v49 = vmul.f32 %v1247_v63, %v2703_v17  ;;  %v1561_v48 = vadd.f32 %v1525_v27, %v1297_v39  ;;  %v1248_v30 = vmax.f32 %v1217_v53, 0.0  ;;  %v1298_v42 = vadd.f32 %v1272_v29, %v2716_v19  ;;  %v1530_v51 = vpop.f32.mrf.mxu1 }
 0x14c   :  { %1657 = vst [vmem:[%s3101_s9 + $0x160] sm:$0xff] %v1585_v45  ;;  %v1586_v60 = vmax.f32 %v1560_v32, 0.0  ;;  %v1221_v44 = vadd.f32 %v1220_v12, %v2687_v50  ;;  %v1531_v4 = vadd.f32 %v1530_v51, %v2890_v21  ;;  %v1222_v35 = vpop.f32.mrf.mxu0 }
 0x14d   :  { %v1587_v62 = vmax.f32 %v1561_v48, 0.0  ;;  %v1274_v16 = vmul.f32 %v1248_v30, %v2710_v7  ;;  %v1562_v11 = vadd.f32 %v1527_v37, %v1298_v42  ;;  %v1299_v46 = vadd.f32 %v1273_v49, %v2713_v56  ;;  %v1532_v0 = vpop.f32.mrf.mxu1 }
 0x14e   :  { %1658 = vst [vmem:[%s3101_s9 + $0x168] sm:$0xff] %v1586_v60  ;;  %v1249_v22 = vmax.f32 %v1221_v44, 0.0  ;;  %v1223_v61 = vadd.f32 %v1222_v35, %v2696_v6  ;;  %v1533_v58 = vadd.f32 %v1532_v0, %v2904_v5 }
 0x14f   :  { %1659 = vst [vmem:[%s3101_s9 + $0x170] sm:$0xff] %v1587_v62  ;;  %v1588_v50 = vmax.f32 %v1562_v11, 0.0  ;;  %v1563_v59 = vadd.f32 %v1531_v4, %v1299_v46  ;;  %v1300_v20 = vadd.f32 %v1274_v16, %v2716_v19  ;;  %v1536_v54 = vpop.f32.mrf.mxu1 }
 0x150   :  { %v1275_v57 = vmul.f32 %v1249_v22, %v2703_v17  ;;  %v1250_v38 = vmax.f32 %v1223_v61, 0.0  ;;  %v1537_v40 = vadd.f32 %v1536_v54, %v2890_v21 }
 0x151   :  { %1660 = vst [vmem:[%s3101_s9 + $0x178] sm:$0xff] %v1588_v50  ;;  %v1589_v6 = vmax.f32 %v1563_v59, 0.0  ;;  %v1564_v23 = vadd.f32 %v1533_v58, %v1300_v20  ;;  %v1538_v24 = vpop.f32.mrf.mxu1 }
 0x152   :  { %v1276_v34 = vmul.f32 %v1250_v38, %v2710_v7  ;;  %v1301_v3 = vadd.f32 %v1275_v57, %v2713_v56  ;;  %v1539_v21 = vadd.f32 %v1538_v24, %v2904_v5 }
 0x153   :  { %1661 = vst [vmem:[%s3101_s9 + $0x180] sm:$0xff] %v1589_v6  ;;  %v1590_v18 = vmax.f32 %v1564_v23, 0.0 }
 0x154   :  { %v1565_v17 = vadd.f32 %v1537_v40, %v1301_v3  ;;  %v1302_v52 = vadd.f32 %v1276_v34, %v2716_v19 }
 0x155   :  { %1662 = vst [vmem:[%s3101_s9 + $0x188] sm:$0xff] %v1590_v18 }
 0x156   :  { %v1591_v1 = vmax.f32 %v1565_v17, 0.0  ;;  %v1566_v2 = vadd.f32 %v1539_v21, %v1302_v52 }
 0x158   :  { %1663 = vst [vmem:[%s3101_s9 + $0x190] sm:$0xf] %v1591_v1  ;;  %v1592_v7 = vmax.f32 %v1566_v2, 0.0 }
 0x15a   :  { %1664 = vst [vmem:[%s3101_s9 + $0x198] sm:$0xf] %v1592_v7 }

// kernel: _lambda_.15
= control target key start
LH: loop header
LB: loop body
LE: loop exit
PB: predicated region body
PF: predicated region fallthrough
CT: control target
= control target key end

     0   :  { %vm209_vm0 = vcmask 261120   ;;  %vm222_vm1 = vcmask 257024   ;;  %s595_s1 = inlined_call_operand.vmem [shape: f32[256,32], index: 1, kind: input, shape index: {}]   ;;  %s596_s0 = inlined_call_operand.vmem [shape: f32[100,256], index: 0, kind: input, shape index: {}]   ;;  %s597_s2 = inlined_call_operand.vmem [shape: f32[1,32], index: 2, kind: input, shape index: {}]   ;;  %s598_s3 = inlined_call_operand.vmem [shape: f32[100,32], index: 3, kind: output, shape index: {}]  }
   0x1   :  { %v71_v0 = vld [vmem:[%s595_s1 + $0xf8] sm:$0xff]  ;;  %v70_v2 = vld [vmem:[%s595_s1 + $0xf0] sm:$0xff]  ;;  %v69_v4 = vld [vmem:[%s595_s1 + $0xe8] sm:$0xff] }
   0x2   :  { %v55_v1 = vld [vmem:[%s595_s1 + $0x78] sm:$0xff]  ;;  %229 = vmatprep.subr.mxu0 %v71_v0  ;;  %300 = vmatprep.subr.mxu1 %v71_v0  ;;  %v54_v3 = vld [vmem:[%s595_s1 + $0x70] sm:$0xff]  ;;  %v53_v5 = vld [vmem:[%s595_s1 + $0x68] sm:$0xff] }
   0x3   :  { %230 = vmatpush3.msra.mxu0 %v55_v1  ;;  %316 = vmatpush3.msra.mxu1 %v55_v1  ;;  %v68_v6 = vld [vmem:[%s595_s1 + $0xe0] sm:$0xff]  ;;  %v67_v8 = vld [vmem:[%s595_s1 + $0xd8] sm:$0xff]  ;;  %v66_v10 = vld [vmem:[%s595_s1 + $0xd0] sm:$0xff] }
   0x4   :  { %231 = vmatprep.subr.mxu0 %v70_v2  ;;  %301 = vmatprep.subr.mxu1 %v70_v2  ;;  %v52_v7 = vld [vmem:[%s595_s1 + $0x60] sm:$0xff]  ;;  %v51_v9 = vld [vmem:[%s595_s1 + $0x58] sm:$0xff]  ;;  %v50_v11 = vld [vmem:[%s595_s1 + $0x50] sm:$0xff] }
   0x5   :  { %232 = vmatpush3.msra.mxu0 %v54_v3  ;;  %317 = vmatpush3.msra.mxu1 %v54_v3  ;;  %v65_v12 = vld [vmem:[%s595_s1 + $0xc8] sm:$0xff]  ;;  %v64_v14 = vld [vmem:[%s595_s1 + $0xc0] sm:$0xff]  ;;  %v63_v16 = vld [vmem:[%s595_s1 + $0xb8] sm:$0xff] }
   0x6   :  { %233 = vmatprep.subr.mxu0 %v69_v4  ;;  %302 = vmatprep.subr.mxu1 %v69_v4  ;;  %v49_v13 = vld [vmem:[%s595_s1 + $0x48] sm:$0xff]  ;;  %v48_v15 = vld [vmem:[%s595_s1 + $0x40] sm:$0xff]  ;;  %v47_v17 = vld [vmem:[%s595_s1 + $0x38] sm:$0xff] }
   0x7   :  { %234 = vmatpush3.msra.mxu0 %v53_v5  ;;  %318 = vmatpush3.msra.mxu1 %v53_v5  ;;  %v62_v18 = vld [vmem:[%s595_s1 + $0xb0] sm:$0xff]  ;;  %v61_v20 = vld [vmem:[%s595_s1 + $0xa8] sm:$0xff]  ;;  %v60_v22 = vld [vmem:[%s595_s1 + $0xa0] sm:$0xff] }
   0x8   :  { %235 = vmatprep.subr.mxu0 %v68_v6  ;;  %303 = vmatprep.subr.mxu1 %v68_v6  ;;  %v46_v19 = vld [vmem:[%s595_s1 + $0x30] sm:$0xff]  ;;  %v45_v21 = vld [vmem:[%s595_s1 + $0x28] sm:$0xff]  ;;  %v44_v23 = vld [vmem:[%s595_s1 + $0x20] sm:$0xff] }
   0x9   :  { %236 = vmatpush3.msra.mxu0 %v52_v7  ;;  %319 = vmatpush3.msra.mxu1 %v52_v7  ;;  %v59_v24 = vld [vmem:[%s595_s1 + $0x98] sm:$0xff]  ;;  %v58_v26 = vld [vmem:[%s595_s1 + $0x90] sm:$0xff]  ;;  %v57_v28 = vld [vmem:[%s595_s1 + $0x88] sm:$0xff] }
   0xa   :  { %237 = vmatprep.subr.mxu0 %v67_v8  ;;  %304 = vmatprep.subr.mxu1 %v67_v8  ;;  %v43_v25 = vld [vmem:[%s595_s1 + $0x18] sm:$0xff]  ;;  %v42_v27 = vld [vmem:[%s595_s1 + $0x10] sm:$0xff]  ;;  %v41_v29 = vld [vmem:[%s595_s1 + $0x8] sm:$0xff] }
   0xb   :  { %238 = vmatpush3.msra.mxu0 %v51_v9  ;;  %320 = vmatpush3.msra.mxu1 %v51_v9  ;;  %v56_v30 = vld [vmem:[%s595_s1 + $0x80] sm:$0xff]  ;;  %v15_v31 = vld [vmem:[%s596_s0 + $0x8] sm:$0xff]  ;;  %v29_v34 = vld [vmem:[%s596_s0 + $0x78] sm:$0xff] }
   0xc   :  { %239 = vmatprep.subr.mxu0 %v66_v10  ;;  %305 = vmatprep.subr.mxu1 %v66_v10  ;;  %v40_v32 = vld [vmem:[%s595_s1] sm:$0xff]  ;;  %v17_v35 = vld [vmem:[%s596_s0 + $0x18] sm:$0xff]  ;;  %v28_v36 = vld [vmem:[%s596_s0 + $0x70] sm:$0xff] }
   0xd   :  { %240 = vmatpush3.msra.mxu0 %v50_v11  ;;  %321 = vmatpush3.msra.mxu1 %v50_v11  ;;  %v14_v33 = vld [vmem:[%s596_s0] sm:$0xff]  ;;  %v31_v37 = vld [vmem:[%s596_s0 + $0x88] sm:$0xff]  ;;  %v16_v38 = vld [vmem:[%s596_s0 + $0x10] sm:$0xff] }
   0xe   :  { %241 = vmatprep.subr.mxu0 %v65_v12  ;;  %306 = vmatprep.subr.mxu1 %v65_v12  ;;  %v19_v39 = vld [vmem:[%s596_s0 + $0x28] sm:$0xff]  ;;  %v30_v40 = vld [vmem:[%s596_s0 + $0x80] sm:$0xff]  ;;  %v33_v41 = vld [vmem:[%s596_s0 + $0x98] sm:$0xff] }
   0xf   :  { %242 = vmatpush3.msra.mxu0 %v49_v13  ;;  %322 = vmatpush3.msra.mxu1 %v49_v13  ;;  %v18_v42 = vld [vmem:[%s596_s0 + $0x20] sm:$0xff]  ;;  %v21_v43 = vld [vmem:[%s596_s0 + $0x38] sm:$0xff]  ;;  %v32_v44 = vld [vmem:[%s596_s0 + $0x90] sm:$0xff] }
  0x10   :  { %243 = vmatprep.subr.mxu0 %v64_v14  ;;  %307 = vmatprep.subr.mxu1 %v64_v14  ;;  %v35_v45 = vld [vmem:[%s596_s0 + $0xa8] sm:$0xff]  ;;  %v20_v46 = vld [vmem:[%s596_s0 + $0x30] sm:$0xff]  ;;  %v34_v48 = vld [vmem:[%s596_s0 + $0xa0] sm:$0xff] }
  0x11   :  { %244 = vmatpush3.msra.mxu0 %v48_v15  ;;  %323 = vmatpush3.msra.mxu1 %v48_v15  ;;  %v23_v47 = vld [vmem:[%s596_s0 + $0x48] sm:$0xff]  ;;  %v37_v49 = vld [vmem:[%s596_s0 + $0xb8] sm:$0xff]  ;;  %v22_v50 = vld [vmem:[%s596_s0 + $0x40] sm:$0xff] }
  0x12   :  { %245 = vmatprep.subr.mxu0 %v63_v16  ;;  %308 = vmatprep.subr.mxu1 %v63_v16  ;;  %v25_v51 = vld [vmem:[%s596_s0 + $0x58] sm:$0xff]  ;;  %v36_v52 = vld [vmem:[%s596_s0 + $0xb0] sm:$0xff]  ;;  %v39_v53 = vld [vmem:[%s596_s0 + $0xc8] sm:$0xf] }
  0x13   :  { %246 = vmatpush3.msra.mxu0 %v47_v17  ;;  %324 = vmatpush3.msra.mxu1 %v47_v17  ;;  %v24_v54 = vld [vmem:[%s596_s0 + $0x50] sm:$0xff]  ;;  %v27_v55 = vld [vmem:[%s596_s0 + $0x68] sm:$0xff]  ;;  %v38_v56 = vld [vmem:[%s596_s0 + $0xc0] sm:$0xf] }
  0x14   :  { %247 = vmatprep.subr.mxu0 %v62_v18  ;;  %309 = vmatprep.subr.mxu1 %v62_v18  ;;  %v26_v57 = vld [vmem:[%s596_s0 + $0x60] sm:$0xff] }
  0x15   :  { %248 = vmatpush3.msra.mxu0 %v46_v19  ;;  %325 = vmatpush3.msra.mxu1 %v46_v19  ;;  %v529_v59 = vld [vmem:[%s597_s2] ss:$0 sm:$0xff] }
  0x16   :  { %249 = vmatprep.subr.mxu0 %v61_v20  ;;  %310 = vmatprep.subr.mxu1 %v61_v20 }
  0x17   :  { %250 = vmatpush3.msra.mxu0 %v45_v21  ;;  %326 = vmatpush3.msra.mxu1 %v45_v21 }
  0x18   :  { %251 = vmatprep.subr.mxu0 %v60_v22  ;;  %311 = vmatprep.subr.mxu1 %v60_v22 }
  0x19   :  { %252 = vmatpush3.msra.mxu0 %v44_v23  ;;  %327 = vmatpush3.msra.mxu1 %v44_v23 }
  0x1a   :  { %253 = vmatprep.subr.mxu0 %v59_v24  ;;  %312 = vmatprep.subr.mxu1 %v59_v24 }
  0x1b   :  { %254 = vmatpush3.msra.mxu0 %v43_v25  ;;  %328 = vmatpush3.msra.mxu1 %v43_v25 }
  0x1c   :  { %255 = vmatprep.subr.mxu0 %v58_v26  ;;  %313 = vmatprep.subr.mxu1 %v58_v26 }
  0x1d   :  { %256 = vmatpush3.msra.mxu0 %v42_v27  ;;  %329 = vmatpush3.msra.mxu1 %v42_v27 }
  0x1e   :  { %257 = vmatprep.subr.mxu0 %v57_v28  ;;  %314 = vmatprep.subr.mxu1 %v57_v28 }
  0x1f   :  { %258 = vmatpush3.msra.mxu0 %v41_v29  ;;  %330 = vmatpush3.msra.mxu1 %v41_v29 }
  0x20   :  { %259 = vmatprep.subr.mxu0 %v56_v30  ;;  %143 = vmatprep.mubr.f32.mxu0 %v15_v31 }
  0x21   :  { %260 = vmatpush3.msra.mxu0 %v40_v32  ;;  %315 = vmatprep.subr.mxu1 %v56_v30 }
  0x22   :  { %144 = vmatmul.mubr.f32.vlgmr.msra.gmra.mxu0 %v14_v33  ;;  %331 = vmatpush3.msra.mxu1 %v40_v32 }
  0x23   :  { %178 = vmatprep.mubr.f32.mxu1 %v29_v34  ;;  %148 = vmatprep.mubr.f32.mxu0 %v17_v35 }
  0x24   :  { %179 = vmatmul.mubr.f32.vlgmr.msra.gmra.mxu1 %v28_v36 }
  0x25   :  { %183 = vmatprep.mubr.f32.mxu1 %v31_v37 }
  0x26   :  { %149 = vmatmul.mubr.f32.gmra.mxu0 %v16_v38 }
  0x27   :  { %153 = vmatprep.mubr.f32.mxu0 %v19_v39 }
  0x28   :  { %184 = vmatmul.mubr.f32.gmra.mxu1 %v30_v40 }
  0x29   :  { %188 = vmatprep.mubr.f32.mxu1 %v33_v41 }
  0x2a   :  { %154 = vmatmul.mubr.f32.gmra.mxu0 %v18_v42 }
  0x2b   :  { %158 = vmatprep.mubr.f32.mxu0 %v21_v43 }
  0x2c   :  { %189 = vmatmul.mubr.f32.gmra.mxu1 %v32_v44 }
  0x2d   :  { %193 = vmatprep.mubr.f32.mxu1 %v35_v45 }
  0x2e   :  { %159 = vmatmul.mubr.f32.gmra.mxu0 %v20_v46 }
  0x2f   :  { %163 = vmatprep.mubr.f32.mxu0 %v23_v47 }
  0x30   :  { %194 = vmatmul.mubr.f32.gmra.mxu1 %v34_v48 }
  0x31   :  { %198 = vmatprep.mubr.f32.mxu1 %v37_v49 }
  0x32   :  { %164 = vmatmul.mubr.f32.gmra.mxu0 %v22_v50 }
  0x33   :  { %168 = vmatprep.mubr.f32.mxu0 %v25_v51 }
  0x34   :  { %199 = vmatmul.mubr.f32.gmra.mxu1 %v36_v52 }
  0x35   :  { %203 = vmatprep.mubr.f32.mxu1 %v39_v53 }
  0x36   :  { %169 = vmatmul.mubr.f32.gmra.mxu0 %v24_v54 }
  0x37   :  { %173 = vmatprep.mubr.f32.mxu0 %v27_v55 }
  0x38   :  { %204 = vmatmul.mubr.f32.gmra.mxu1 %v38_v56 }
  0x3a   :  { %174 = vmatmul.mubr.f32.gmra.mxu0 %v26_v57 }
  0xe2   :  { %v261_v58 = vpop.f32.mrf.mxu0 }
  0xe4   :  { %v262_v60 = vpop.f32.mrf.mxu0  ;;  %v282_v61 = vpop.f32.mrf.mxu1 }
  0xe5   :  { %v263_v62 = vadd.f32 %v262_v60, %v261_v58 }
  0xe6   :  { %v264_v63 = vpop.f32.mrf.mxu0  ;;  %v283_v0 = vpop.f32.mrf.mxu1 }
  0xe7   :  { %v146_v1 = vadd.f32 %v263_v62, %v529_v59  ;;  %v284_v2 = vadd.f32 %v283_v0, %v282_v61 }
  0xe8   :  { %v265_v3 = vpop.f32.mrf.mxu0  ;;  %v285_v4 = vpop.f32.mrf.mxu1 }
  0xe9   :  { %210 = vst.msk [vmem:[%s598_s3] sm:$0xff] %vm209_vm0, %v146_v1  ;;  %v181_v5 = vadd.f32 %v284_v2, %v529_v59  ;;  %v266_v6 = vadd.f32 %v265_v3, %v264_v63 }
  0xea   :  { %v267_v7 = vpop.f32.mrf.mxu0  ;;  %v286_v8 = vpop.f32.mrf.mxu1 }
  0xeb   :  { %217 = vst.msk [vmem:[%s598_s3 + $0x38] sm:$0xff] %vm209_vm0, %v181_v5  ;;  %v151_v9 = vadd.f32 %v266_v6, %v529_v59  ;;  %v287_v10 = vadd.f32 %v286_v8, %v285_v4 }
  0xec   :  { %v268_v11 = vpop.f32.mrf.mxu0  ;;  %v288_v12 = vpop.f32.mrf.mxu1 }
  0xed   :  { %211 = vst.msk [vmem:[%s598_s3 + $0x8] sm:$0xff] %vm209_vm0, %v151_v9  ;;  %v186_v13 = vadd.f32 %v287_v10, %v529_v59  ;;  %v269_v14 = vadd.f32 %v268_v11, %v267_v7 }
  0xee   :  { %v270_v15 = vpop.f32.mrf.mxu0  ;;  %v289_v16 = vpop.f32.mrf.mxu1 }
  0xef   :  { %218 = vst.msk [vmem:[%s598_s3 + $0x40] sm:$0xff] %vm209_vm0, %v186_v13  ;;  %v156_v17 = vadd.f32 %v269_v14, %v529_v59  ;;  %v290_v18 = vadd.f32 %v289_v16, %v288_v12 }
  0xf0   :  { %v271_v19 = vpop.f32.mrf.mxu0  ;;  %v291_v20 = vpop.f32.mrf.mxu1 }
  0xf1   :  { %212 = vst.msk [vmem:[%s598_s3 + $0x10] sm:$0xff] %vm209_vm0, %v156_v17  ;;  %v191_v21 = vadd.f32 %v290_v18, %v529_v59  ;;  %v272_v22 = vadd.f32 %v271_v19, %v270_v15 }
  0xf2   :  { %v273_v23 = vpop.f32.mrf.mxu0  ;;  %v292_v24 = vpop.f32.mrf.mxu1 }
  0xf3   :  { %219 = vst.msk [vmem:[%s598_s3 + $0x48] sm:$0xff] %vm209_vm0, %v191_v21  ;;  %v161_v25 = vadd.f32 %v272_v22, %v529_v59  ;;  %v293_v26 = vadd.f32 %v292_v24, %v291_v20 }
  0xf4   :  { %v274_v27 = vpop.f32.mrf.mxu0  ;;  %v294_v28 = vpop.f32.mrf.mxu1 }
  0xf5   :  { %213 = vst.msk [vmem:[%s598_s3 + $0x18] sm:$0xff] %vm209_vm0, %v161_v25  ;;  %v196_v29 = vadd.f32 %v293_v26, %v529_v59  ;;  %v275_v30 = vadd.f32 %v274_v27, %v273_v23 }
  0xf6   :  { %v276_v31 = vpop.f32.mrf.mxu0  ;;  %v295_v32 = vpop.f32.mrf.mxu1 }
  0xf7   :  { %220 = vst.msk [vmem:[%s598_s3 + $0x50] sm:$0xff] %vm209_vm0, %v196_v29  ;;  %v166_v33 = vadd.f32 %v275_v30, %v529_v59  ;;  %v296_v34 = vadd.f32 %v295_v32, %v294_v28 }
  0xf8   :  { %v277_v35 = vpop.f32.mrf.mxu0  ;;  %v297_v36 = vpop.f32.mrf.mxu1 }
  0xf9   :  { %214 = vst.msk [vmem:[%s598_s3 + $0x20] sm:$0xff] %vm209_vm0, %v166_v33  ;;  %v201_v37 = vadd.f32 %v296_v34, %v529_v59  ;;  %v278_v38 = vadd.f32 %v277_v35, %v276_v31 }
  0xfa   :  { %v279_v39 = vpop.f32.mrf.mxu0  ;;  %v298_v40 = vpop.f32.mrf.mxu1 }
  0xfb   :  { %221 = vst.msk [vmem:[%s598_s3 + $0x58] sm:$0xff] %vm209_vm0, %v201_v37  ;;  %v171_v41 = vadd.f32 %v278_v38, %v529_v59  ;;  %v299_v42 = vadd.f32 %v298_v40, %v297_v36 }
  0xfc   :  { %v280_v43 = vpop.f32.mrf.mxu0 }
  0xfd   :  { %215 = vst.msk [vmem:[%s598_s3 + $0x28] sm:$0xff] %vm209_vm0, %v171_v41  ;;  %v206_v44 = vadd.f32 %v299_v42, %v529_v59  ;;  %v281_v45 = vadd.f32 %v280_v43, %v279_v39 }
  0xff   :  { %223 = vst.msk [vmem:[%s598_s3 + $0x60] sm:$0xf] %vm222_vm1, %v206_v44  ;;  %v176_v46 = vadd.f32 %v281_v45, %v529_v59 }
 0x101   :  { %216 = vst.msk [vmem:[%s598_s3 + $0x30] sm:$0xff] %vm209_vm0, %v176_v46 }

// kernel: _lambda_.16
= control target key start
LH: loop header
LB: loop body
LE: loop exit
PB: predicated region body
PF: predicated region fallthrough
CT: control target
= control target key end

     0   :  { %v284_v3 = vmov 0.0   ;;  %vm47_vm0 = vcmask 261120   ;;  %v37_v22 = vlaneseq  ;;  %vm231_vm1 = vcmask 523264   ;;  %s504_s1 = inlined_call_operand.vmem [shape: f32[32,192], index: 1, kind: input, shape index: {}]   ;;  %s505_s0 = inlined_call_operand.vmem [shape: f32[100,32], index: 0, kind: input, shape index: {}]   ;;  %s506_s2 = inlined_call_operand.vmem [shape: f32[1,192], index: 2, kind: input, shape index: {}]   ;;  %s507_s3 = inlined_call_operand.vmem [shape: f32[100,192], index: 3, kind: output, shape index: {}]  }
   0x1   :  { %v34_v0 = vld [vmem:[%s504_s1 + $0x38] sm:$0xff]  ;;  %v33_v1 = vld [vmem:[%s504_s1 + $0x30] sm:$0xff]  ;;  %v32_v2 = vld [vmem:[%s504_s1 + $0x28] sm:$0xff]  ;;  %151 = vmatprep.mubr.f32.mxu0 %v284_v3  ;;  %193 = vmatprep.mubr.f32.mxu1 %v284_v3  ;;  %vm256_vm2 = vcmask 519168  }
   0x2   :  { %111 = vmatprep.subr.mxu0 %v34_v0  ;;  %275 = vmatprep.subr.mxu1 %v34_v0  ;;  %v31_v4 = vld [vmem:[%s504_s1 + $0x20] sm:$0xff]  ;;  %v30_v5 = vld [vmem:[%s504_s1 + $0x18] sm:$0xff]  ;;  %v29_v6 = vld [vmem:[%s504_s1 + $0x10] sm:$0xff]  ;;  %v38_v23 = vshrl.u32 %v37_v22, 7 }
   0x3   :  { %112 = vmatpush1.msra.mxu0 %v33_v1  ;;  %279 = vmatpush1.msra.mxu1 %v33_v1  ;;  %v28_v7 = vld [vmem:[%s504_s1 + $0x8] sm:$0xff]  ;;  %v27_v8 = vld [vmem:[%s504_s1] sm:$0xff]  ;;  %v21_v10 = vld [vmem:[%s505_s0 + $0x38] sm:$0xff] }
   0x4   :  { %113 = vmatprep.subr.mxu0 %v32_v2  ;;  %276 = vmatprep.subr.mxu1 %v32_v2  ;;  %v14_v9 = vld [vmem:[%s505_s0] sm:$0xff]  ;;  %v15_v11 = vld [vmem:[%s505_s0 + $0x8] sm:$0xff]  ;;  %v16_v13 = vld [vmem:[%s505_s0 + $0x10] sm:$0xff]  ;;  %v39_v24 = vsub.s32 0, %v38_v23  ;;  %v43_v26 = vsub.s32 1, %v38_v23 }
   0x5   :  { %114 = vmatpush1.msra.mxu0 %v31_v4  ;;  %280 = vmatpush1.msra.mxu1 %v31_v4  ;;  %v22_v12 = vld [vmem:[%s505_s0 + $0x40] sm:$0xff]  ;;  %v23_v14 = vld [vmem:[%s505_s0 + $0x48] sm:$0xff]  ;;  %v17_v15 = vld [vmem:[%s505_s0 + $0x18] sm:$0xff] }
   0x6   :  { %115 = vmatprep.subr.mxu0 %v30_v5  ;;  %277 = vmatprep.subr.mxu1 %v30_v5  ;;  %v24_v16 = vld [vmem:[%s505_s0 + $0x50] sm:$0xff]  ;;  %v18_v17 = vld [vmem:[%s505_s0 + $0x20] sm:$0xff]  ;;  %v25_v18 = vld [vmem:[%s505_s0 + $0x58] sm:$0xff] }
   0x7   :  { %116 = vmatpush1.msra.mxu0 %v29_v6  ;;  %281 = vmatpush1.msra.mxu1 %v29_v6  ;;  %v19_v19 = vld [vmem:[%s505_s0 + $0x28] sm:$0xff]  ;;  %v26_v20 = vld [vmem:[%s505_s0 + $0x60] sm:$0xf]  ;;  %v20_v21 = vld [vmem:[%s505_s0 + $0x30] sm:$0xff] }
   0x8   :  { %117 = vmatprep.subr.mxu0 %v28_v7  ;;  %278 = vmatprep.subr.mxu1 %v28_v7  ;;  %v35_v25 = vld [vmem:[%s506_s2] sm:$0x3] }
   0x9   :  { %118 = vmatpush1.msra.mxu0 %v27_v8  ;;  %282 = vmatpush1.msra.mxu1 %v27_v8  ;;  %v384_v27 = vrot.slane %v35_v25, %v39_v24  ;;  %v386_v28 = vrot.slane %v35_v25, %v43_v26 }
   0xa   :  { %262 = vmatmul.mubr.msk.f32.vlgmr.msra.gmra.mxu0 %vm47_vm0, %v14_v9  ;;  %269 = vmatmul.mubr.msk.f32.vlgmr.msra.gmra.mxu1 %vm47_vm0, %v21_v10 }
   0xb   :  { %157 = vmatprep.mubr.f32.mxu0 %v284_v3  ;;  %199 = vmatprep.mubr.f32.mxu1 %v284_v3 }
   0xe   :  { %263 = vmatmul.mubr.msk.f32.gmra.mxu0 %vm47_vm0, %v15_v11  ;;  %270 = vmatmul.mubr.msk.f32.gmra.mxu1 %vm47_vm0, %v22_v12 }
   0xf   :  { %163 = vmatprep.mubr.f32.mxu0 %v284_v3  ;;  %205 = vmatprep.mubr.f32.mxu1 %v284_v3 }
  0x12   :  { %264 = vmatmul.mubr.msk.f32.gmra.mxu0 %vm47_vm0, %v16_v13  ;;  %271 = vmatmul.mubr.msk.f32.gmra.mxu1 %vm47_vm0, %v23_v14 }
  0x13   :  { %169 = vmatprep.mubr.f32.mxu0 %v284_v3  ;;  %211 = vmatprep.mubr.f32.mxu1 %v284_v3 }
  0x16   :  { %265 = vmatmul.mubr.msk.f32.gmra.mxu0 %vm47_vm0, %v17_v15  ;;  %272 = vmatmul.mubr.msk.f32.gmra.mxu1 %vm47_vm0, %v24_v16 }
  0x17   :  { %175 = vmatprep.mubr.f32.mxu0 %v284_v3  ;;  %217 = vmatprep.mubr.f32.mxu1 %v284_v3 }
  0x1a   :  { %266 = vmatmul.mubr.msk.f32.gmra.mxu0 %vm47_vm0, %v18_v17  ;;  %273 = vmatmul.mubr.msk.f32.gmra.mxu1 %vm47_vm0, %v25_v18 }
  0x1b   :  { %181 = vmatprep.mubr.f32.mxu0 %v284_v3  ;;  %223 = vmatprep.mubr.f32.mxu1 %v284_v3 }
  0x1e   :  { %267 = vmatmul.mubr.msk.f32.gmra.mxu0 %vm47_vm0, %v19_v19  ;;  %274 = vmatmul.mubr.msk.f32.gmra.mxu1 %vm47_vm0, %v26_v20 }
  0x1f   :  { %187 = vmatprep.mubr.f32.mxu0 %v284_v3 }
  0x22   :  { %268 = vmatmul.mubr.msk.f32.gmra.mxu0 %vm47_vm0, %v20_v21 }
  0xca   :  { %v153_v29 = vpop.f32.mrf.mxu0  ;;  %v195_v30 = vpop.f32.mrf.mxu1 }
  0xcb   :  { %v154_v31 = vadd.f32 %v153_v29, %v384_v27  ;;  %v196_v32 = vadd.f32 %v195_v30, %v384_v27 }
  0xcc   :  { %v155_v33 = vpop.f32.mrf.mxu0  ;;  %v197_v34 = vpop.f32.mrf.mxu1 }
  0xcd   :  { %230 = vst [vmem:[%s507_s3] sm:$0xff] %v154_v31  ;;  %v156_v35 = vadd.f32 %v155_v33, %v386_v28  ;;  %245 = vst [vmem:[%s507_s3 + $0x70] sm:$0xff] %v196_v32  ;;  %v198_v36 = vadd.f32 %v197_v34, %v386_v28 }
  0xce   :  { %v159_v37 = vpop.f32.mrf.mxu0  ;;  %v201_v38 = vpop.f32.mrf.mxu1 }
  0xcf   :  { %232 = vst.msk [vmem:[%s507_s3 + $0x8] sm:$0xff] %vm231_vm1, %v156_v35  ;;  %v160_v39 = vadd.f32 %v159_v37, %v384_v27  ;;  %246 = vst.msk [vmem:[%s507_s3 + $0x78] sm:$0xff] %vm231_vm1, %v198_v36  ;;  %v202_v40 = vadd.f32 %v201_v38, %v384_v27 }
  0xd0   :  { %v161_v41 = vpop.f32.mrf.mxu0  ;;  %v203_v42 = vpop.f32.mrf.mxu1 }
  0xd1   :  { %233 = vst [vmem:[%s507_s3 + $0x10] sm:$0xff] %v160_v39  ;;  %v162_v43 = vadd.f32 %v161_v41, %v386_v28  ;;  %247 = vst [vmem:[%s507_s3 + $0x80] sm:$0xff] %v202_v40  ;;  %v204_v44 = vadd.f32 %v203_v42, %v386_v28 }
  0xd2   :  { %v165_v45 = vpop.f32.mrf.mxu0  ;;  %v207_v46 = vpop.f32.mrf.mxu1 }
  0xd3   :  { %234 = vst.msk [vmem:[%s507_s3 + $0x18] sm:$0xff] %vm231_vm1, %v162_v43  ;;  %v166_v47 = vadd.f32 %v165_v45, %v384_v27  ;;  %248 = vst.msk [vmem:[%s507_s3 + $0x88] sm:$0xff] %vm231_vm1, %v204_v44  ;;  %v208_v48 = vadd.f32 %v207_v46, %v384_v27 }
  0xd4   :  { %v167_v49 = vpop.f32.mrf.mxu0  ;;  %v209_v50 = vpop.f32.mrf.mxu1 }
  0xd5   :  { %235 = vst [vmem:[%s507_s3 + $0x20] sm:$0xff] %v166_v47  ;;  %v168_v51 = vadd.f32 %v167_v49, %v386_v28  ;;  %249 = vst [vmem:[%s507_s3 + $0x90] sm:$0xff] %v208_v48  ;;  %v210_v52 = vadd.f32 %v209_v50, %v386_v28 }
  0xd6   :  { %v171_v53 = vpop.f32.mrf.mxu0  ;;  %v213_v54 = vpop.f32.mrf.mxu1 }
  0xd7   :  { %236 = vst.msk [vmem:[%s507_s3 + $0x28] sm:$0xff] %vm231_vm1, %v168_v51  ;;  %v172_v55 = vadd.f32 %v171_v53, %v384_v27  ;;  %250 = vst.msk [vmem:[%s507_s3 + $0x98] sm:$0xff] %vm231_vm1, %v210_v52  ;;  %v214_v56 = vadd.f32 %v213_v54, %v384_v27 }
  0xd8   :  { %v173_v57 = vpop.f32.mrf.mxu0  ;;  %v215_v58 = vpop.f32.mrf.mxu1 }
  0xd9   :  { %237 = vst [vmem:[%s507_s3 + $0x30] sm:$0xff] %v172_v55  ;;  %v174_v59 = vadd.f32 %v173_v57, %v386_v28  ;;  %251 = vst [vmem:[%s507_s3 + $0xa0] sm:$0xff] %v214_v56  ;;  %v216_v60 = vadd.f32 %v215_v58, %v386_v28 }
  0xda   :  { %v177_v61 = vpop.f32.mrf.mxu0  ;;  %v219_v62 = vpop.f32.mrf.mxu1 }
  0xdb   :  { %238 = vst.msk [vmem:[%s507_s3 + $0x38] sm:$0xff] %vm231_vm1, %v174_v59  ;;  %v178_v63 = vadd.f32 %v177_v61, %v384_v27  ;;  %252 = vst.msk [vmem:[%s507_s3 + $0xa8] sm:$0xff] %vm231_vm1, %v216_v60  ;;  %v220_v0 = vadd.f32 %v219_v62, %v384_v27 }
  0xdc   :  { %v179_v1 = vpop.f32.mrf.mxu0  ;;  %v221_v2 = vpop.f32.mrf.mxu1 }
  0xdd   :  { %239 = vst [vmem:[%s507_s3 + $0x40] sm:$0xff] %v178_v63  ;;  %v180_v3 = vadd.f32 %v179_v1, %v386_v28  ;;  %253 = vst [vmem:[%s507_s3 + $0xb0] sm:$0xff] %v220_v0  ;;  %v222_v4 = vadd.f32 %v221_v2, %v386_v28 }
  0xde   :  { %v183_v5 = vpop.f32.mrf.mxu0  ;;  %v225_v6 = vpop.f32.mrf.mxu1 }
  0xdf   :  { %240 = vst.msk [vmem:[%s507_s3 + $0x48] sm:$0xff] %vm231_vm1, %v180_v3  ;;  %v184_v7 = vadd.f32 %v183_v5, %v384_v27  ;;  %254 = vst.msk [vmem:[%s507_s3 + $0xb8] sm:$0xff] %vm231_vm1, %v222_v4  ;;  %v226_v8 = vadd.f32 %v225_v6, %v384_v27 }
  0xe0   :  { %v185_v9 = vpop.f32.mrf.mxu0  ;;  %v227_v10 = vpop.f32.mrf.mxu1 }
  0xe1   :  { %241 = vst [vmem:[%s507_s3 + $0x50] sm:$0xff] %v184_v7  ;;  %v186_v11 = vadd.f32 %v185_v9, %v386_v28  ;;  %255 = vst [vmem:[%s507_s3 + $0xc0] sm:$0xf] %v226_v8  ;;  %v228_v12 = vadd.f32 %v227_v10, %v386_v28 }
  0xe2   :  { %v189_v13 = vpop.f32.mrf.mxu0 }
  0xe3   :  { %242 = vst.msk [vmem:[%s507_s3 + $0x58] sm:$0xff] %vm231_vm1, %v186_v11  ;;  %v190_v14 = vadd.f32 %v189_v13, %v384_v27 }
  0xe4   :  { %257 = vst.msk [vmem:[%s507_s3 + $0xc8] sm:$0xf] %vm256_vm2, %v228_v12  ;;  %v191_v15 = vpop.f32.mrf.mxu0 }
  0xe5   :  { %243 = vst [vmem:[%s507_s3 + $0x60] sm:$0xff] %v190_v14  ;;  %v192_v16 = vadd.f32 %v191_v15, %v386_v28 }
  0xe7   :  { %244 = vst.msk [vmem:[%s507_s3 + $0x68] sm:$0xff] %vm231_vm1, %v192_v16 }

// kernel: _lambda_.17
= control target key start
LH: loop header
LB: loop body
LE: loop exit
PB: predicated region body
PF: predicated region fallthrough
CT: control target
= control target key end

     0   :  { %s541_s12 = smov 0   ;;  %s603_s0 = inlined_call_operand.vmem [shape: f32[2,50,2,96], index: 0, kind: input, shape index: {}]   ;;  %s604_s1 = inlined_call_operand.vmem [shape: f32[2,32,96], index: 1, kind: input, shape index: {}]   ;;  %s605_s2 = inlined_call_operand.vmem [shape: f32[2,1,96], index: 2, kind: input, shape index: {}]   ;;  %s606_s3 = inlined_call_operand.vmem [shape: f32[2,50,2,32], index: 3, kind: output, shape index: {}]  }
   0x1 LB: > { %s547_s13 = sadd.s32 4294967295, %s507_s12   ;;  %p430_p0 = scmp.ge.s32.totalorder %s507_s12, 1  ;;  %s507_s12 = sphi %s541_s12, %s13_s12  }
   0x2   : > { %p155_p1 = scmp.lt.s32.totalorder %s507_s12, 3 }
   0x4   : > { %p156_p2 = pnand %p430_p0, %p155_p1 }
   0x5   : > { %p187_p3 = scmp.lt.s32.totalorder (!%p156_p2), %s547_s13, 1  ;;  %s579_s29 = smov (!%p156_p2), 0  }
   0x6   : > { %159 = sbr.rel (%p156_p2) target bundleno = 812 (0x32c), region = 32 }
   0xb   : > { %s188_s14 = scalar_select %p187_p3, %s547_s13, 1  ;;  %v509_v5 = vmov 0.0  }
   0xd   : > { %s458_s15 = smul.u32 100, %s188_s14  ;;  %s441_s16 = sshll.u32 %s188_s14, 5 }
   0xe   : > { %s196_s19 = scalar_lea.vmem %s604_s1, %s441_s16  ;;  %s199_s22 = scalar_lea.vmem %s605_s2, %s188_s14 }
   0xf   : > { %s562_s25 = scalar_lea.vmem %s603_s0, %s458_s15  ;;  %s567_s28 = scalar_lea.vmem %s606_s3, %s458_s15  ;;  %v569_v0 = vld [vmem:[%s196_s19] sm:$0xff]  ;;  %v571_v1 = vld [vmem:[%s196_s19 + $0x8] sm:$0xff]  ;;  %v573_v2 = vld [vmem:[%s196_s19 + $0x10] sm:$0xff] }
  0x10   : > { %v575_v3 = vld [vmem:[%s196_s19 + $0x18] sm:$0xff]  ;;  %v577_v4 = vld [vmem:[%s199_s22] ss:$0 sm:$0xff] }
  0x11 LB: >> { %v517_v6 = vmov 0.0   ;;  %vm518_vm0 = vmmov 0   ;;  %s519_s30 = smov 96   ;;  %vm232_vm1 = vcmask 261120   ;;  %s520_s4 = smov 64   ;;  %vm336_vm2 = vcmask 254976   ;;  %s515_s29 = sphi %s579_s29, %s215_s29   ;;  %v511_v5 = vphi %v509_v5, %v330_v5  }
  0x12   : >> { %447 = vmatprep.subr.mxu0 %v517_v6  ;;  %455 = vmatprep.mubr.msk.f32.mxu0 %vm518_vm0, %v517_v6  ;;  %p217_p4 = scmp.eq.s32.totalorder %s547_s13, 0  ;;  %s218_s5 = ssub.s32 49, %s515_s29 }
  0x13   : >> { %230 = vrot.lane.b32.xlu0 %v511_v5, %s519_s30  ;;  %448 = vmatpush3.msra.mxu0 %v575_v3 }
  0x14   : >> { %449 = vmatprep.subr.mxu0 %v517_v6  ;;  %s219_s6 = scalar_select %p217_p4, %s515_s29, %s218_s5 }
  0x15   : >> { %450 = vmatpush3.msra.mxu0 %v573_v2  ;;  %s215_s29 = sadd.s32 1, %s515_s29  }
  0x16   : >> { %451 = vmatprep.subr.mxu0 %v517_v6  ;;  %s435_s7 = sshll.u32 %s219_s6, 1  ;;  %p212_p5 = scmp.ge.s32.totalorder %s215_s29, 50  }
  0x17   : >> { %452 = vmatpush3.msra.mxu0 %v571_v1  ;;  %s221_s8 = scalar_lea.vmem %s562_s25, %s435_s7  ;;  %s335_s9 = scalar_lea.vmem %s567_s28, %s435_s7 }
  0x18   : >> { %453 = vmatprep.subr.mxu0 %v517_v6  ;;  %v222_v11 = vld [vmem:[%s221_s8] sm:$0x3] }
  0x19   : >> { %454 = vmatpush3.msra.mxu0 %v569_v0 }
  0x85   : >> { %v231_v7 = vpop.permute.xlu0 %230 }
  0x86   : >> { %456 = vmatmul.mubr.msk.f32.vlgmr.msra.gmra.mxu0 %vm232_vm1, %v231_v7 }
 0x146   : >> { %v301_v8 = vpop.f32.mrf.mxu0 }
 0x147   : >> { %v302_v9 = vadd.f32 %v577_v4, %v301_v8 }
 0x148   : >> { %v457_v10 = vpop.f32.mrf.mxu0 }
 0x149   : >> { %313 = vrot.lane.b32.xlu0 %v302_v9, %s520_s4  ;;  %v305_v12 = vadd.f32 %v302_v9, %v222_v11 }
 0x14b   : >> { %v438_v13 = vmul.f32 -1.442695, %v305_v12 }
 0x14d   : >> { %487 = vpow2.f32 %v438_v13 }
 0x15a   : >> { %v488_v14 = vpop.eup %487 }
 0x15b   : >> { %v309_v15 = vadd.f32 1.0, %v488_v14 }
 0x15d   : >> { %489 = vrcp.f32 %v309_v15 }
 0x16a   : >> { %v490_v16 = vpop.eup %489 }
 0x16b   : >> { %v323_v22 = vsub.f32 1.0, %v490_v16  ;;  %v329_v24 = vmul.f32 %v511_v5, %v490_v16 }
 0x1bb   : >> { %v314_v17 = vpop.permute.xlu0 %313 }
 0x1bc   : >> { %v316_v18 = vmul.f32 %v490_v16, %v314_v17 }
 0x1be   : >> { %318 = vrot.lane.b32.xlu1 %v316_v18, %s520_s4 }
 0x230   : >> { %v319_v19 = vpop.permute.xlu1 %318 }
 0x231   : >> { %v321_v20 = vadd.f32 %v319_v19, %v222_v11 }
 0x233   : >> { %491 = vtanh.f32 %v321_v20 }
 0x240   : >> { %v492_v21 = vpop.eup %491 }
 0x241   : >> { %325 = vrot.lane.b32.xlu1 %v492_v21, %s519_s30 }
 0x2b3   : >> { %v326_v23 = vpop.permute.xlu1 %325 }
 0x2b4   : >> { %v328_v25 = vmul.f32 %v326_v23, %v323_v22 }
 0x2b6   : >> { %v330_v5 = vadd.f32 %v329_v24, %v328_v25  }
 0x2b8   : >> { %332 = vrot.lane.b32.xlu0 %v330_v5, %s519_s30 }
 0x327   : > { %214 = sbr.rel (!%p212_p5) target bundleno = 17 (0x11), region = 77 }
 0x32a   : >> { %v333_v26 = vpop.permute.xlu0 %332 }
 0x32b   : >> { %337 = vst.msk [vmem:[%s335_s9] sm:$0x3] %vm336_vm2, %v333_v26 }
 0x32c PF: > { %s13_s12 = sadd.s32 1, %s507_s12  }
 0x32d   : > { %p10_p6 = scmp.ge.s32.totalorder %s13_s12, 4  }
 0x32f   :  { %12 = sbr.rel (!%p10_p6) target bundleno = 1 (0x1), region = 88 }

// kernel: _lambda_.18
= control target key start
LH: loop header
LB: loop body
LE: loop exit
PB: predicated region body
PF: predicated region fallthrough
CT: control target
= control target key end

     0   :  { %v299_v3 = vmov 0.0   ;;  %vm55_vm0 = vcmask 523264   ;;  %v45_v30 = vlaneseq  ;;  %vm263_vm1 = vcmask 519168   ;;  %s556_s1 = inlined_call_operand.vmem [shape: f32[64,192], index: 1, kind: input, shape index: {}]   ;;  %s557_s0 = inlined_call_operand.vmem [shape: f32[100,64], index: 0, kind: input, shape index: {}]   ;;  %s558_s2 = inlined_call_operand.vmem [shape: f32[1,192], index: 2, kind: input, shape index: {}]   ;;  %s559_s3 = inlined_call_operand.vmem [shape: f32[100,192], index: 3, kind: output, shape index: {}]  }
   0x1   :  { %v42_v0 = vld [vmem:[%s556_s1 + $0x78] sm:$0xff]  ;;  %v41_v1 = vld [vmem:[%s556_s1 + $0x70] sm:$0xff]  ;;  %v40_v2 = vld [vmem:[%s556_s1 + $0x68] sm:$0xff]  ;;  %159 = vmatprep.mubr.f32.mxu0 %v299_v3  ;;  %201 = vmatprep.mubr.f32.mxu1 %v299_v3 }
   0x2   :  { %111 = vmatprep.subr.mxu0 %v42_v0  ;;  %282 = vmatprep.subr.mxu1 %v42_v0  ;;  %v39_v4 = vld [vmem:[%s556_s1 + $0x60] sm:$0xff]  ;;  %v38_v5 = vld [vmem:[%s556_s1 + $0x58] sm:$0xff]  ;;  %v37_v6 = vld [vmem:[%s556_s1 + $0x50] sm:$0xff]  ;;  %v46_v31 = vshrl.u32 %v45_v30, 7 }
   0x3   :  { %112 = vmatpush1.msra.mxu0 %v41_v1  ;;  %290 = vmatpush1.msra.mxu1 %v41_v1  ;;  %v36_v7 = vld [vmem:[%s556_s1 + $0x48] sm:$0xff]  ;;  %v35_v8 = vld [vmem:[%s556_s1 + $0x40] sm:$0xff]  ;;  %v34_v9 = vld [vmem:[%s556_s1 + $0x38] sm:$0xff] }
   0x4   :  { %113 = vmatprep.subr.mxu0 %v40_v2  ;;  %283 = vmatprep.subr.mxu1 %v40_v2  ;;  %v33_v10 = vld [vmem:[%s556_s1 + $0x30] sm:$0xff]  ;;  %v32_v11 = vld [vmem:[%s556_s1 + $0x28] sm:$0xff]  ;;  %v31_v12 = vld [vmem:[%s556_s1 + $0x20] sm:$0xff]  ;;  %v47_v32 = vsub.s32 0, %v46_v31  ;;  %v51_v34 = vsub.s32 1, %v46_v31 }
   0x5   :  { %114 = vmatpush1.msra.mxu0 %v39_v4  ;;  %291 = vmatpush1.msra.mxu1 %v39_v4  ;;  %v30_v13 = vld [vmem:[%s556_s1 + $0x18] sm:$0xff]  ;;  %v29_v14 = vld [vmem:[%s556_s1 + $0x10] sm:$0xff]  ;;  %v28_v15 = vld [vmem:[%s556_s1 + $0x8] sm:$0xff] }
   0x6   :  { %115 = vmatprep.subr.mxu0 %v38_v5  ;;  %284 = vmatprep.subr.mxu1 %v38_v5  ;;  %v27_v16 = vld [vmem:[%s556_s1] sm:$0xff]  ;;  %v21_v18 = vld [vmem:[%s557_s0 + $0x38] sm:$0xff]  ;;  %v15_v19 = vld [vmem:[%s557_s0 + $0x8] sm:$0xff] }
   0x7   :  { %116 = vmatpush1.msra.mxu0 %v37_v6  ;;  %292 = vmatpush1.msra.mxu1 %v37_v6  ;;  %v14_v17 = vld [vmem:[%s557_s0] sm:$0xff]  ;;  %v16_v21 = vld [vmem:[%s557_s0 + $0x10] sm:$0xff]  ;;  %v23_v22 = vld [vmem:[%s557_s0 + $0x48] sm:$0xff] }
   0x8   :  { %117 = vmatprep.subr.mxu0 %v36_v7  ;;  %285 = vmatprep.subr.mxu1 %v36_v7  ;;  %v22_v20 = vld [vmem:[%s557_s0 + $0x40] sm:$0xff]  ;;  %v17_v23 = vld [vmem:[%s557_s0 + $0x18] sm:$0xff]  ;;  %v24_v24 = vld [vmem:[%s557_s0 + $0x50] sm:$0xff] }
   0x9   :  { %118 = vmatpush1.msra.mxu0 %v35_v8  ;;  %293 = vmatpush1.msra.mxu1 %v35_v8  ;;  %v18_v25 = vld [vmem:[%s557_s0 + $0x20] sm:$0xff]  ;;  %v25_v26 = vld [vmem:[%s557_s0 + $0x58] sm:$0xff]  ;;  %v19_v27 = vld [vmem:[%s557_s0 + $0x28] sm:$0xff] }
   0xa   :  { %119 = vmatprep.subr.mxu0 %v34_v9  ;;  %286 = vmatprep.subr.mxu1 %v34_v9  ;;  %v26_v28 = vld [vmem:[%s557_s0 + $0x60] sm:$0xf]  ;;  %v20_v29 = vld [vmem:[%s557_s0 + $0x30] sm:$0xff] }
   0xb   :  { %120 = vmatpush1.msra.mxu0 %v33_v10  ;;  %294 = vmatpush1.msra.mxu1 %v33_v10  ;;  %v43_v33 = vld [vmem:[%s558_s2] sm:$0x3] }
   0xc   :  { %121 = vmatprep.subr.mxu0 %v32_v11  ;;  %287 = vmatprep.subr.mxu1 %v32_v11  ;;  %v436_v35 = vrot.slane %v43_v33, %v47_v32  ;;  %v438_v36 = vrot.slane %v43_v33, %v51_v34 }
   0xd   :  { %122 = vmatpush1.msra.mxu0 %v31_v12  ;;  %295 = vmatpush1.msra.mxu1 %v31_v12 }
   0xe   :  { %123 = vmatprep.subr.mxu0 %v30_v13  ;;  %288 = vmatprep.subr.mxu1 %v30_v13 }
   0xf   :  { %124 = vmatpush1.msra.mxu0 %v29_v14  ;;  %296 = vmatpush1.msra.mxu1 %v29_v14 }
  0x10   :  { %125 = vmatprep.subr.mxu0 %v28_v15  ;;  %289 = vmatprep.subr.mxu1 %v28_v15 }
  0x11   :  { %126 = vmatpush1.msra.mxu0 %v27_v16  ;;  %297 = vmatpush1.msra.mxu1 %v27_v16 }
  0x12   :  { %269 = vmatmul.mubr.msk.f32.vlgmr.msra.gmra.mxu0 %vm55_vm0, %v14_v17  ;;  %276 = vmatmul.mubr.msk.f32.vlgmr.msra.gmra.mxu1 %vm55_vm0, %v21_v18 }
  0x13   :  { %165 = vmatprep.mubr.f32.mxu0 %v299_v3  ;;  %207 = vmatprep.mubr.f32.mxu1 %v299_v3 }
  0x16   :  { %270 = vmatmul.mubr.msk.f32.gmra.mxu0 %vm55_vm0, %v15_v19  ;;  %277 = vmatmul.mubr.msk.f32.gmra.mxu1 %vm55_vm0, %v22_v20 }
  0x17   :  { %171 = vmatprep.mubr.f32.mxu0 %v299_v3  ;;  %213 = vmatprep.mubr.f32.mxu1 %v299_v3 }
  0x1a   :  { %271 = vmatmul.mubr.msk.f32.gmra.mxu0 %vm55_vm0, %v16_v21  ;;  %278 = vmatmul.mubr.msk.f32.gmra.mxu1 %vm55_vm0, %v23_v22 }
  0x1b   :  { %177 = vmatprep.mubr.f32.mxu0 %v299_v3  ;;  %219 = vmatprep.mubr.f32.mxu1 %v299_v3 }
  0x1e   :  { %272 = vmatmul.mubr.msk.f32.gmra.mxu0 %vm55_vm0, %v17_v23  ;;  %279 = vmatmul.mubr.msk.f32.gmra.mxu1 %vm55_vm0, %v24_v24 }
  0x1f   :  { %183 = vmatprep.mubr.f32.mxu0 %v299_v3  ;;  %225 = vmatprep.mubr.f32.mxu1 %v299_v3 }
  0x22   :  { %273 = vmatmul.mubr.msk.f32.gmra.mxu0 %vm55_vm0, %v18_v25  ;;  %280 = vmatmul.mubr.msk.f32.gmra.mxu1 %vm55_vm0, %v25_v26 }
  0x23   :  { %189 = vmatprep.mubr.f32.mxu0 %v299_v3  ;;  %231 = vmatprep.mubr.f32.mxu1 %v299_v3 }
  0x26   :  { %274 = vmatmul.mubr.msk.f32.gmra.mxu0 %vm55_vm0, %v19_v27  ;;  %281 = vmatmul.mubr.msk.f32.gmra.mxu1 %vm55_vm0, %v26_v28 }
  0x27   :  { %195 = vmatprep.mubr.f32.mxu0 %v299_v3 }
  0x2a   :  { %275 = vmatmul.mubr.msk.f32.gmra.mxu0 %vm55_vm0, %v20_v29 }
  0xd2   :  { %v161_v37 = vpop.f32.mrf.mxu0  ;;  %v203_v38 = vpop.f32.mrf.mxu1 }
  0xd3   :  { %v162_v39 = vadd.f32 %v161_v37, %v436_v35  ;;  %v204_v40 = vadd.f32 %v203_v38, %v436_v35 }
  0xd4   :  { %v163_v41 = vpop.f32.mrf.mxu0  ;;  %v205_v42 = vpop.f32.mrf.mxu1 }
  0xd5   :  { %238 = vst [vmem:[%s559_s3] sm:$0xff] %v162_v39  ;;  %v164_v43 = vadd.f32 %v163_v41, %v438_v36  ;;  %252 = vst [vmem:[%s559_s3 + $0x70] sm:$0xff] %v204_v40  ;;  %v206_v44 = vadd.f32 %v205_v42, %v438_v36 }
  0xd6   :  { %v167_v45 = vpop.f32.mrf.mxu0  ;;  %v209_v46 = vpop.f32.mrf.mxu1 }
  0xd7   :  { %239 = vst.msk [vmem:[%s559_s3 + $0x8] sm:$0xff] %vm55_vm0, %v164_v43  ;;  %v168_v47 = vadd.f32 %v167_v45, %v436_v35  ;;  %253 = vst.msk [vmem:[%s559_s3 + $0x78] sm:$0xff] %vm55_vm0, %v206_v44  ;;  %v210_v48 = vadd.f32 %v209_v46, %v436_v35 }
  0xd8   :  { %v169_v49 = vpop.f32.mrf.mxu0  ;;  %v211_v50 = vpop.f32.mrf.mxu1 }
  0xd9   :  { %240 = vst [vmem:[%s559_s3 + $0x10] sm:$0xff] %v168_v47  ;;  %v170_v51 = vadd.f32 %v169_v49, %v438_v36  ;;  %254 = vst [vmem:[%s559_s3 + $0x80] sm:$0xff] %v210_v48  ;;  %v212_v52 = vadd.f32 %v211_v50, %v438_v36 }
  0xda   :  { %v173_v53 = vpop.f32.mrf.mxu0  ;;  %v215_v54 = vpop.f32.mrf.mxu1 }
  0xdb   :  { %241 = vst.msk [vmem:[%s559_s3 + $0x18] sm:$0xff] %vm55_vm0, %v170_v51  ;;  %v174_v55 = vadd.f32 %v173_v53, %v436_v35  ;;  %255 = vst.msk [vmem:[%s559_s3 + $0x88] sm:$0xff] %vm55_vm0, %v212_v52  ;;  %v216_v56 = vadd.f32 %v215_v54, %v436_v35 }
  0xdc   :  { %v175_v57 = vpop.f32.mrf.mxu0  ;;  %v217_v58 = vpop.f32.mrf.mxu1 }
  0xdd   :  { %242 = vst [vmem:[%s559_s3 + $0x20] sm:$0xff] %v174_v55  ;;  %v176_v59 = vadd.f32 %v175_v57, %v438_v36  ;;  %256 = vst [vmem:[%s559_s3 + $0x90] sm:$0xff] %v216_v56  ;;  %v218_v60 = vadd.f32 %v217_v58, %v438_v36 }
  0xde   :  { %v179_v61 = vpop.f32.mrf.mxu0  ;;  %v221_v62 = vpop.f32.mrf.mxu1 }
  0xdf   :  { %243 = vst.msk [vmem:[%s559_s3 + $0x28] sm:$0xff] %vm55_vm0, %v176_v59  ;;  %v180_v63 = vadd.f32 %v179_v61, %v436_v35  ;;  %257 = vst.msk [vmem:[%s559_s3 + $0x98] sm:$0xff] %vm55_vm0, %v218_v60  ;;  %v222_v0 = vadd.f32 %v221_v62, %v436_v35 }
  0xe0   :  { %v181_v1 = vpop.f32.mrf.mxu0  ;;  %v223_v2 = vpop.f32.mrf.mxu1 }
  0xe1   :  { %244 = vst [vmem:[%s559_s3 + $0x30] sm:$0xff] %v180_v63  ;;  %v182_v3 = vadd.f32 %v181_v1, %v438_v36  ;;  %258 = vst [vmem:[%s559_s3 + $0xa0] sm:$0xff] %v222_v0  ;;  %v224_v4 = vadd.f32 %v223_v2, %v438_v36 }
  0xe2   :  { %v185_v5 = vpop.f32.mrf.mxu0  ;;  %v227_v6 = vpop.f32.mrf.mxu1 }
  0xe3   :  { %245 = vst.msk [vmem:[%s559_s3 + $0x38] sm:$0xff] %vm55_vm0, %v182_v3  ;;  %v186_v7 = vadd.f32 %v185_v5, %v436_v35  ;;  %259 = vst.msk [vmem:[%s559_s3 + $0xa8] sm:$0xff] %vm55_vm0, %v224_v4  ;;  %v228_v8 = vadd.f32 %v227_v6, %v436_v35 }
  0xe4   :  { %v187_v9 = vpop.f32.mrf.mxu0  ;;  %v229_v10 = vpop.f32.mrf.mxu1 }
  0xe5   :  { %246 = vst [vmem:[%s559_s3 + $0x40] sm:$0xff] %v186_v7  ;;  %v188_v11 = vadd.f32 %v187_v9, %v438_v36  ;;  %260 = vst [vmem:[%s559_s3 + $0xb0] sm:$0xff] %v228_v8  ;;  %v230_v12 = vadd.f32 %v229_v10, %v438_v36 }
  0xe6   :  { %v191_v13 = vpop.f32.mrf.mxu0  ;;  %v233_v14 = vpop.f32.mrf.mxu1 }
  0xe7   :  { %247 = vst.msk [vmem:[%s559_s3 + $0x48] sm:$0xff] %vm55_vm0, %v188_v11  ;;  %v192_v15 = vadd.f32 %v191_v13, %v436_v35  ;;  %261 = vst.msk [vmem:[%s559_s3 + $0xb8] sm:$0xff] %vm55_vm0, %v230_v12  ;;  %v234_v16 = vadd.f32 %v233_v14, %v436_v35 }
  0xe8   :  { %v193_v17 = vpop.f32.mrf.mxu0  ;;  %v235_v18 = vpop.f32.mrf.mxu1 }
  0xe9   :  { %248 = vst [vmem:[%s559_s3 + $0x50] sm:$0xff] %v192_v15  ;;  %v194_v19 = vadd.f32 %v193_v17, %v438_v36  ;;  %262 = vst [vmem:[%s559_s3 + $0xc0] sm:$0xf] %v234_v16  ;;  %v236_v20 = vadd.f32 %v235_v18, %v438_v36 }
  0xea   :  { %v197_v21 = vpop.f32.mrf.mxu0 }
  0xeb   :  { %249 = vst.msk [vmem:[%s559_s3 + $0x58] sm:$0xff] %vm55_vm0, %v194_v19  ;;  %v198_v22 = vadd.f32 %v197_v21, %v436_v35 }
  0xec   :  { %264 = vst.msk [vmem:[%s559_s3 + $0xc8] sm:$0xf] %vm263_vm1, %v236_v20  ;;  %v199_v23 = vpop.f32.mrf.mxu0 }
  0xed   :  { %250 = vst [vmem:[%s559_s3 + $0x60] sm:$0xff] %v198_v22  ;;  %v200_v24 = vadd.f32 %v199_v23, %v438_v36 }
  0xef   :  { %251 = vst.msk [vmem:[%s559_s3 + $0x68] sm:$0xff] %vm55_vm0, %v200_v24 }

// kernel: _lambda_.21
= control target key start
LH: loop header
LB: loop body
LE: loop exit
PB: predicated region body
PF: predicated region fallthrough
CT: control target
= control target key end

     0   :  { %vm53_vm0 = vcmask 523264   ;;  %v568_v1 = vmov 0.0   ;;  %vm569_vm1 = vmmov 0   ;;  %vm65_vm2 = vcmask 517120   ;;  %s788_s0 = inlined_call_operand.vmem [shape: f32[2,50,64], index: 0, kind: input, shape index: {}]   ;;  %s789_s1 = inlined_call_operand.vmem [shape: f32[64,32], index: 1, kind: input, shape index: {}]   ;;  %s790_s2 = inlined_call_operand.vmem [shape: f32[1,32], index: 2, kind: input, shape index: {}, may-alias: {2,4}]   ;;  %s791_s3 = inlined_call_operand.vmem [shape: f32[1,32], index: 3, kind: input, shape index: {}]   ;;  %s792_s4 = inlined_call_operand.vmem [shape: f32[1,32], index: 4, kind: input, shape index: {}, may-alias: {2,4}]   ;;  %s793_s5 = inlined_call_operand.vmem [shape: f32[32,16], index: 5, kind: input, shape index: {}]   ;;  %s794_s6 = inlined_call_operand.vmem [shape: f32[1,16], index: 6, kind: input, shape index: {}, may-alias: {6,8}]   ;;  %s795_s7 = inlined_call_operand.vmem [shape: f32[1,16], index: 7, kind: input, shape index: {}]   ;;  %s796_s8 = inlined_call_operand.vmem [shape: f32[1,16], index: 8, kind: input, shape index: {}, may-alias: {6,8}]   ;;  %s797_s9 = inlined_call_operand.vmem [shape: f32[16,10], index: 9, kind: input, shape index: {}]   ;;  %s798_s10 = inlined_call_operand.vmem [shape: f32[1,10], index: 10, kind: input, shape index: {}]   ;;  %s799_s11 = inlined_call_operand.hbm [shape: f32[2,10], index: 11, kind: output, shape index: {}]  }
   0x1   :  { %v143_v0 = vld [vmem:[%s789_s1 + $0x38] sm:$0xff]  ;;  %502 = vmatprep.subr.mxu0 %v568_v1  ;;  %v142_v2 = vld [vmem:[%s789_s1 + $0x30] sm:$0xff]  ;;  %518 = vmatprep.mubr.msk.f32.mxu0 %vm569_vm1, %v568_v1  ;;  %v141_v3 = vld [vmem:[%s789_s1 + $0x28] sm:$0xff] }
   0x2   :  { %503 = vmatpush3.msra.mxu0 %v143_v0  ;;  %v39_v4 = vld [vmem:[%s788_s0] sm:$0xff]  ;;  %521 = vmatprep.subr.mxu1 %v568_v1  ;;  %v40_v6 = vld [vmem:[%s788_s0 + $0x8] sm:$0xff]  ;;  %v41_v7 = vld [vmem:[%s788_s0 + $0x10] sm:$0xff] }
   0x3   :  { %504 = vmatprep.subr.mxu0 %v568_v1  ;;  %v140_v5 = vld [vmem:[%s789_s1 + $0x20] sm:$0xff]  ;;  %v42_v8 = vld [vmem:[%s788_s0 + $0x18] sm:$0xff]  ;;  %v54_v9 = vsel %vm53_vm0, %v39_v4, 0.0  ;;  %v96_v10 = vsel %vm53_vm0, %v39_v4, -inf  ;;  %529 = vmatprep.mubr.msk.f32.mxu1 %vm569_vm1, %v568_v1  ;;  %v44_v12 = vld [vmem:[%s788_s0 + $0x28] sm:$0xff]  ;;  %v55_v14 = vsel %vm53_vm0, %v40_v6, 0.0 }
   0x4   :  { %505 = vmatpush3.msra.mxu0 %v142_v2  ;;  %v43_v11 = vld [vmem:[%s788_s0 + $0x20] sm:$0xff]  ;;  %v45_v13 = vld [vmem:[%s788_s0 + $0x30] sm:$0x3]  ;;  %v57_v15 = vsel %vm53_vm0, %v41_v7, 0.0  ;;  %v46_v16 = vld [vmem:[%s788_s0 + $0x38] sm:$0xff]  ;;  %v56_v19 = vadd.f32 %v55_v14, %v54_v9  ;;  %v59_v20 = vsel %vm53_vm0, %v42_v8, 0.0 }
   0x5   :  { %506 = vmatprep.subr.mxu0 %v568_v1  ;;  %v47_v17 = vld [vmem:[%s788_s0 + $0x40] sm:$0xff]  ;;  %v48_v18 = vld [vmem:[%s788_s0 + $0x48] sm:$0xff]  ;;  %v61_v21 = vsel %vm53_vm0, %v43_v11, 0.0  ;;  %v63_v22 = vsel %vm53_vm0, %v44_v12, 0.0  ;;  %v49_v23 = vld [vmem:[%s788_s0 + $0x50] sm:$0xff]  ;;  %v66_v26 = vsel %vm65_vm2, %v45_v13, 0.0 }
   0x6   :  { %507 = vmatpush3.msra.mxu0 %v141_v3  ;;  %v50_v24 = vld [vmem:[%s788_s0 + $0x58] sm:$0xff]  ;;  %v51_v25 = vld [vmem:[%s788_s0 + $0x60] sm:$0xff]  ;;  %v74_v27 = vsel %vm53_vm0, %v46_v16, 0.0  ;;  %v75_v28 = vsel %vm53_vm0, %v47_v17, 0.0  ;;  %v52_v30 = vld [vmem:[%s788_s0 + $0x68] sm:$0x3]  ;;  %v58_v31 = vadd.f32 %v57_v15, %v56_v19 }
   0x7   :  { %508 = vmatprep.subr.mxu0 %v568_v1  ;;  %v139_v29 = vld [vmem:[%s789_s1 + $0x18] sm:$0xff]  ;;  %v76_v32 = vadd.f32 %v75_v28, %v74_v27  ;;  %v77_v33 = vsel %vm53_vm0, %v48_v18, 0.0  ;;  %v79_v34 = vsel %vm53_vm0, %v49_v23, 0.0  ;;  %v81_v35 = vsel %vm53_vm0, %v50_v24, 0.0 }
   0x8   :  { %509 = vmatpush3.msra.mxu0 %v140_v5  ;;  %v83_v36 = vsel %vm53_vm0, %v51_v25, 0.0  ;;  %v85_v37 = vsel %vm65_vm2, %v52_v30, 0.0  ;;  %v97_v38 = vsel %vm53_vm0, %v40_v6, -inf }
   0x9   :  { %16 = vsyncpa [#allocation3], 0  ;;  %510 = vmatprep.subr.mxu0 %v568_v1  ;;  %v138_v39 = vld [vmem:[%s789_s1 + $0x10] sm:$0xff]  ;;  %v60_v40 = vadd.f32 %v59_v20, %v58_v31  ;;  %v78_v41 = vadd.f32 %v77_v33, %v76_v32  ;;  %v98_v42 = vsel %vm53_vm0, %v41_v7, -inf  ;;  %v100_v43 = vsel %vm53_vm0, %v42_v8, -inf  ;;  %v137_v48 = vld [vmem:[%s789_s1 + $0x8] sm:$0xff] }
   0xa   :  { %511 = vmatpush3.msra.mxu0 %v139_v29  ;;  %v99_v44 = vmax.f32 %v96_v10, %v98_v42  ;;  %v101_v45 = vmax.f32 %v97_v38, %v100_v43  ;;  %v102_v46 = vsel %vm53_vm0, %v43_v11, -inf  ;;  %v104_v47 = vsel %vm53_vm0, %v44_v12, -inf  ;;  %v136_v57 = vld [vmem:[%s789_s1] sm:$0xff]  ;;  %s570_s21 = smov [#allocation2]  }
   0xb   :  { %512 = vmatprep.subr.mxu0 %v568_v1  ;;  %v62_v49 = vadd.f32 %v61_v21, %v60_v40  ;;  %v80_v50 = vadd.f32 %v79_v34, %v78_v41  ;;  %v106_v51 = vsel %vm65_vm2, %v45_v13, -inf  ;;  %v115_v52 = vsel %vm53_vm0, %v46_v16, -inf  ;;  %v475_v41 = vld [vmem:[%s790_s2] ss:$0 sm:$0xff]  ;;  %s467_s1 = sshll.u32 %s570_s21, 4  ;;  %s468_s1 = int_to_ptr.vmem [resolvable:$true] %s467_s1 }
   0xc   :  { %513 = vmatpush3.msra.mxu0 %v138_v39  ;;  %v103_v53 = vmax.f32 %v99_v44, %v102_v46  ;;  %v105_v54 = vmax.f32 %v101_v45, %v104_v47  ;;  %v116_v55 = vsel %vm53_vm0, %v47_v17, -inf  ;;  %v117_v56 = vsel %vm53_vm0, %v48_v18, -inf  ;;  %p551_p1 = scmp.lt.s32.totalorder %s468_s1, %s468_s1 }
   0xd   :  { %514 = vmatprep.subr.mxu0 %v568_v1  ;;  %v64_v58 = vadd.f32 %v63_v22, %v62_v49  ;;  %v82_v59 = vadd.f32 %v81_v35, %v80_v50  ;;  %v118_v60 = vmax.f32 %v115_v52, %v117_v56  ;;  %v119_v61 = vsel %vm53_vm0, %v49_v23, -inf  ;;  %v261_v52 = vld [vmem:[%s793_s5 + $0x10] sm:$0xff] }
   0xe   :  { %515 = vmatpush3.msra.mxu0 %v137_v48  ;;  %v107_v62 = vmax.f32 %v103_v53, %v106_v51  ;;  %v120_v63 = vmax.f32 %v116_v55, %v119_v61  ;;  %v121_v0 = vsel %vm53_vm0, %v50_v24, -inf  ;;  %v123_v2 = vsel %vm53_vm0, %v51_v25, -inf  ;;  %v262_v51 = vld [vmem:[%s793_s5 + $0x18] sm:$0xff]  ;;  %v260_v53 = vld [vmem:[%s793_s5 + $0x8] sm:$0xff]  ;;  %v478_v61 = vld [vmem:[%s792_s4] ss:$0 sm:$0xff] }
   0xf   :  { %516 = vmatprep.subr.mxu0 %v568_v1  ;;  %v67_v3 = vadd.f32 %v66_v26, %v64_v58  ;;  %v84_v4 = vadd.f32 %v83_v36, %v82_v59  ;;  %v122_v5 = vmax.f32 %v118_v60, %v121_v0  ;;  %v125_v6 = vsel %vm65_vm2, %v52_v30, -inf  ;;  %522 = vmatpush3.msra.mxu1 %v262_v51  ;;  %v477_v59 = vld [vmem:[%s791_s3] ss:$0 sm:$0xff] }
  0x10   :  { %517 = vmatpush3.msra.mxu0 %v136_v57  ;;  %v108_v7 = vmax.f32 %v107_v62, %v105_v54  ;;  %v124_v8 = vmax.f32 %v120_v63, %v123_v2  ;;  %vm153_vm3 = vcmask 1041409   ;;  %vm229_vm4 = vcmask 254976   ;;  %523 = vmatprep.subr.mxu1 %v568_v1  ;;  %v259_v54 = vld [vmem:[%s793_s5] sm:$0xff] }
  0x11   :  { %v68_v9 = vrot.slane %v67_v3, 4  ;;  %v86_v10 = vadd.f32 %v85_v37, %v84_v4  ;;  %v126_v11 = vmax.f32 %v122_v5, %v125_v6  ;;  %524 = vmatpush3.msra.mxu1 %v261_v52  ;;  %vm270_vm5 = vcmask 261120   ;;  %v479_v2 = vld [vmem:[%s794_s6] ss:$0 sm:$0xff] }
  0x12   :  { %v109_v12 = vrot.slane %v108_v7, 4  ;;  %525 = vmatprep.subr.mxu1 %v568_v1  ;;  %vm346_vm6 = vcmask 123904   ;;  %vm385_vm7 = vcmask 130048   ;;  %vm459_vm8 = vcmask 74752  }
  0x13   :  { %v69_v13 = vadd.f32 %v68_v9, %v67_v3  ;;  %v87_v14 = vrot.slane %v86_v10, 4  ;;  %v127_v15 = vmax.f32 %v126_v11, %v124_v8  ;;  %526 = vmatpush3.msra.mxu1 %v260_v53 }
  0x14   :  { %v110_v16 = vmax.f32 %v108_v7, %v109_v12  ;;  %527 = vmatprep.subr.mxu1 %v568_v1  ;;  %v377_v12 = vld [vmem:[%s797_s9 + $0x8] sm:$0xff] }
  0x15   :  { %v70_v17 = vrot.slane %v69_v13, 2  ;;  %v88_v18 = vadd.f32 %v87_v14, %v86_v10  ;;  %v128_v19 = vrot.slane %v127_v15, 4  ;;  %528 = vmatpush3.msra.mxu1 %v259_v54 }
  0x16   :  { %v111_v20 = vrot.slane %v110_v16, 2  ;;  %532 = vmatprep.subr.mxu1 %v568_v1 }
  0x17   :  { %v71_v21 = vadd.f32 %v70_v17, %v69_v13  ;;  %v89_v22 = vrot.slane %v88_v18, 2  ;;  %v129_v23 = vmax.f32 %v127_v15, %v128_v19  ;;  %v376_v13 = vld [vmem:[%s797_s9] sm:$0xff] }
  0x18   :  { %v112_v24 = vmax.f32 %v110_v16, %v111_v20  ;;  %v482_v20 = vld [vmem:[%s796_s8] ss:$0 sm:$0xff] }
  0x19   :  { %v72_v25 = vrot.slane %v71_v21, 1  ;;  %v90_v26 = vadd.f32 %v89_v22, %v88_v18  ;;  %v130_v27 = vrot.slane %v129_v23, 2  ;;  %v481_v18 = vld [vmem:[%s795_s7] ss:$0 sm:$0xff]  ;;  %s546_s7 = scalar_lea.vmem %s468_s1, 32 }
  0x1a   :  { %v113_v28 = vrot.slane %v112_v24, 1  ;;  %p547_p0 = scmp.ne.s32.totalorder %s468_s1, %s546_s7  ;;  %p552_p2 = scmp.lt.s32.totalorder %s546_s7, %s546_s7 }
  0x1b   :  { %v73_v29 = vadd.f32 %v72_v25, %v71_v21  ;;  %v91_v30 = vrot.slane %v90_v26, 1  ;;  %v131_v31 = vmax.f32 %v129_v23, %v130_v27 }
  0x1c   :  { %v114_v32 = vmax.f32 %v112_v24, %v113_v28  ;;  %p553_p3 = por %p552_p2, %p551_p1 }
  0x1d   :  { %v92_v33 = vadd.f32 %v91_v30, %v90_v26  ;;  %v94_v34 = vmul.f32 0.02, %v73_v29  ;;  %v132_v35 = vrot.slane %v131_v31, 1 }
  0x1e   :  { %p554_p4 = pnand %p553_p3, %p547_p0 }
  0x1f   :  { %v95_v36 = vmul.f32 0.02, %v92_v33  ;;  %v133_v37 = vmax.f32 %v131_v31, %v132_v35  ;;  %v134_v38 = vadd.f32 %v114_v32, %v94_v34 }
  0x21   :  { %v135_v39 = vadd.f32 %v133_v37, %v95_v36 }
  0x23   :  { %v154_v40 = vsel %vm153_vm3, %v135_v39, %v134_v38 }
  0x24   :  { %519 = vmatmul.mubr.msk.f32.vlgmr.msra.gmra.mxu0 %vm53_vm0, %v154_v40 }
  0xe4   :  { %v223_v42 = vpop.f32.mrf.mxu0 }
  0xe5   :  { %v224_v43 = vadd.f32 %v475_v41, %v223_v42 }
  0xe6   :  { %v520_v44 = vpop.f32.mrf.mxu0 }
  0xe7   :  { %v230_v45 = vsel %vm229_vm4, %v224_v43, 0.0 }
  0xe8   :  { %231 = vadd.xlane.f32.xlu0 %v230_v45 }
 0x171   :  { %v232_v46 = vpop.xlane.xlu0 %231 }
 0x172   :  { %v234_v47 = vmul.f32 0.03125, %v232_v46 }
 0x174   :  { %v235_v48 = vsub.f32 %v224_v43, %v234_v47 }
 0x176   :  { %v236_v49 = vmul.f32 %v235_v48, %v235_v48 }
 0x178   :  { %v237_v50 = vsel %vm229_vm4, %v236_v49, 0.0 }
 0x179   :  { %238 = vadd.xlane.f32.xlu0 %v237_v50 }
 0x202   :  { %v239_v55 = vpop.xlane.xlu0 %238 }
 0x203   :  { %v240_v56 = vmul.f32 0.03125, %v239_v55 }
 0x205   :  { %v241_v57 = vadd.f32 1e-05, %v240_v56 }
 0x207   :  { %542 = vrsqrt.f32 %v241_v57 }
 0x214   :  { %v543_v58 = vpop.eup %542 }
 0x215   :  { %v243_v60 = vmul.f32 %v543_v58, %v235_v48 }
 0x217   :  { %v250_v62 = vmul.f32 %v477_v59, %v243_v60 }
 0x219   :  { %v257_v63 = vadd.f32 %v478_v61, %v250_v62 }
 0x21b   :  { %v258_v0 = vmax.f32 %v257_v63, 0.0 }
 0x21d   :  { %530 = vmatmul.mubr.msk.f32.vlgmr.msra.gmra.mxu1 %vm270_vm5, %v258_v0 }
 0x21e   :  { %536 = vmatprep.mubr.msk.f32.mxu1 %vm569_vm1, %v568_v1  ;;  %533 = vmatpush3.msra.mxu1 %v377_v12 }
 0x21f   :  { %534 = vmatprep.subr.mxu1 %v568_v1  ;;  %v483_v1 = vld [vmem:[%s798_s10] ss:$0 sm:$0xff] }
 0x220   :  { %535 = vmatpush3.msra.mxu1 %v376_v13 }
 0x2dd   :  { %v340_v3 = vpop.f32.mrf.mxu1 }
 0x2de   :  { %v341_v4 = vadd.f32 %v479_v2, %v340_v3 }
 0x2df   :  { %v531_v5 = vpop.f32.mrf.mxu1 }
 0x2e0   :  { %v347_v6 = vsel %vm346_vm6, %v341_v4, 0.0 }
 0x2e1   :  { %348 = vadd.xlane.f32.xlu1 %v347_v6 }
 0x36a   :  { %v349_v7 = vpop.xlane.xlu1 %348 }
 0x36b   :  { %v351_v8 = vmul.f32 0.0625, %v349_v7 }
 0x36d   :  { %v352_v9 = vsub.f32 %v341_v4, %v351_v8 }
 0x36f   :  { %v353_v10 = vmul.f32 %v352_v9, %v352_v9 }
 0x371   :  { %v354_v11 = vsel %vm346_vm6, %v353_v10, 0.0 }
 0x372   :  { %355 = vadd.xlane.f32.xlu1 %v354_v11 }
 0x3fb   :  { %v356_v14 = vpop.xlane.xlu1 %355 }
 0x3fc   :  { %v357_v15 = vmul.f32 0.0625, %v356_v14 }
 0x3fe   :  { %v358_v16 = vadd.f32 1e-05, %v357_v15 }
 0x400   :  { %544 = vrsqrt.f32 %v358_v16 }
 0x40d   :  { %v545_v17 = vpop.eup %544 }
 0x40e   :  { %v360_v19 = vmul.f32 %v545_v17, %v352_v9 }
 0x410   :  { %v367_v21 = vmul.f32 %v481_v18, %v360_v19 }
 0x412   :  { %v374_v22 = vadd.f32 %v482_v20, %v367_v21 }
 0x414   :  { %v375_v23 = vmax.f32 %v374_v22, 0.0 }
 0x416   :  { %537 = vmatmul.mubr.msk.f32.vlgmr.msra.gmra.mxu1 %vm385_vm7, %v375_v23 }
 0x4d6   :  { %v455_v24 = vpop.f32.mrf.mxu1 }
 0x4d7   :  { %v456_v25 = vadd.f32 %v483_v1, %v455_v24 }
 0x4d8   :  { %v538_v26 = vpop.f32.mrf.mxu1 }
 0x4d9   :  { %460 = vst.msk [vmem:[#allocation2] sm:$0x3] %vm459_vm8, %v456_v25 }
 0x4da   :  { %557 = shalt.err (!%p554_p4)
}
 0x4db   :  { %470 = dma.vmem_to_hbm [thread:$0]  %s468_s1, 32, %s799_s11, [#allocation3]  }
 0x4dc   :  { %566 = dma.done.wait [#allocation3], 32  }
 0x4dd   :  { %567 = vsyncadd [#allocation3], 4294967264 }
 0x4de   :  { %474 = vsyncpa [#allocation3], 1 }

// kernel: _lambda_.20
= control target key start
LH: loop header
LB: loop body
LE: loop exit
PB: predicated region body
PF: predicated region fallthrough
CT: control target
= control target key end

     0   :  { %s2960_s18 = smov 0   ;;  %s3957_s0 = inlined_call_operand.vmem [shape: f32[2,50,64], index: 0, kind: input, shape index: {}]   ;;  %s3958_s1 = inlined_call_operand.vmem [shape: f32[64,192], index: 1, kind: input, shape index: {}]   ;;  %s3959_s2 = inlined_call_operand.vmem [shape: f32[1,192], index: 2, kind: input, shape index: {}]   ;;  %s3960_s3 = inlined_call_operand.vmem [shape: f32[64,64], index: 3, kind: input, shape index: {}]   ;;  %s3961_s4 = inlined_call_operand.vmem [shape: f32[1,64], index: 4, kind: input, shape index: {}]   ;;  %s3962_s5 = inlined_call_operand.vmem [shape: f32[2,50,64], index: 5, kind: output, shape index: {}]  }
   0x1 LB: > { %s2211_s19 = sadd.s32 4294967295, %s2919_s18   ;;  %p2215_p0 = scmp.ge.s32.totalorder %s2919_s18, 1  ;;  %s2919_s18 = sphi %s2960_s18, %s15_s18  }
   0x2   : > { %p187_p1 = scmp.lt.s32.totalorder %s2919_s18, 3 }
   0x4   : > { %p188_p2 = pnand %p2215_p0, %p187_p1 }
   0x6   : > { %191 = sbr.rel (%p188_p2) target bundleno = 1596 (0x63c), region = 40 }
   0xb   : > { %v247_v0 = vld [vmem:[%s3958_s1 + $0x78] sm:$0xff]  ;;  %v246_v1 = vld [vmem:[%s3958_s1 + $0x70] sm:$0xff]  ;;  %v245_v2 = vld [vmem:[%s3958_s1 + $0x68] sm:$0xff]  ;;  %p215_p3 = scmp.lt.s32.totalorder %s2211_s19, 1  ;;  %v3963_v4 = vmov 0.0   ;;  %vm260_vm0 = vcmask 523264   ;;  %v250_v26 = vlaneseq }
   0xc   : > { %298 = vmatprep.subr.mxu0 %v247_v0  ;;  %v244_v3 = vld [vmem:[%s3958_s1 + $0x60] sm:$0xff]  ;;  %346 = vmatprep.mubr.f32.mxu0 %v3963_v4  ;;  %v243_v5 = vld [vmem:[%s3958_s1 + $0x58] sm:$0xff]  ;;  %v242_v6 = vld [vmem:[%s3958_s1 + $0x50] sm:$0xff]  ;;  %s2922_s10 = smov 64   ;;  %vm646_vm1 = vcmask 1041408   ;;  %s2923_s11 = smov 48  }
   0xd   : > { %299 = vmatpush1.msra.mxu0 %v246_v1  ;;  %2450 = vmatprep.subr.mxu1 %v3963_v4  ;;  %s3969_s19 = smov (!%p215_p3, %s2211_s19), 1  ;;  %v241_v7 = vld [vmem:[%s3958_s1 + $0x48] sm:$0xff]  ;;  %v240_v8 = vld [vmem:[%s3958_s1 + $0x40] sm:$0xff]  ;;  %v239_v9 = vld [vmem:[%s3958_s1 + $0x38] sm:$0xff]  ;;  %v251_v29 = vshrl.u32 %v250_v26, 7  ;;  %vm2924_vm2 = vmmov 0  }
   0xe   : > { %300 = vmatprep.subr.mxu0 %v245_v2  ;;  %v238_v10 = vld [vmem:[%s3958_s1 + $0x30] sm:$0xff]  ;;  %s2783_s15 = smul.u32 56, %s3969_s19  ;;  %v237_v11 = vld [vmem:[%s3958_s1 + $0x28] sm:$0xff]  ;;  %v236_v12 = vld [vmem:[%s3958_s1 + $0x20] sm:$0xff]  ;;  %2464 = vmatprep.mubr.msk.f32.mxu1 %vm2924_vm2, %v3963_v4  ;;  %s2925_s12 = smov 32   ;;  %vm410_vm3 = vcmask 130048  }
   0xf   : > { %301 = vmatpush1.msra.mxu0 %v244_v3  ;;  %v235_v13 = vld [vmem:[%s3958_s1 + $0x18] sm:$0xff]  ;;  %v234_v14 = vld [vmem:[%s3958_s1 + $0x10] sm:$0xff]  ;;  %v233_v15 = vld [vmem:[%s3958_s1 + $0x8] sm:$0xff]  ;;  %v252_v32 = vsub.s32 0, %v251_v29  ;;  %v256_v41 = vsub.s32 1, %v251_v29  ;;  %s2926_s13 = smov 112  }
  0x10   : > { %302 = vmatprep.subr.mxu0 %v243_v5  ;;  %s219_s28 = scalar_lea.vmem %s3957_s0, %s2783_s15  ;;  %v232_v16 = vld [vmem:[%s3958_s1] sm:$0xff]  ;;  %s2927_s14 = smov 16   ;;  %vm546_vm4 = vcmask 408576   ;;  %vm565_vm5 = vcmask 402432   ;;  %vm1996_vm6 = vcmask 261120   ;;  %vm2004_vm7 = vcmask 392192  }
  0x11   : > { %303 = vmatpush1.msra.mxu0 %v242_v6  ;;  %v225_v17 = vld [vmem:[%s219_s28] sm:$0xff]  ;;  %v226_v18 = vld [vmem:[%s219_s28 + $0x8] sm:$0xff]  ;;  %v227_v19 = vld [vmem:[%s219_s28 + $0x10] sm:$0xff]  ;;  %s2928_s16 = smov 96   ;;  %s2929_s17 = smov 80   ;;  %vm2154_vm8 = vcmask 517120  }
  0x12   : > { %304 = vmatprep.subr.mxu0 %v241_v7  ;;  %v228_v20 = vld [vmem:[%s219_s28 + $0x18] sm:$0xff]  ;;  %v229_v21 = vld [vmem:[%s219_s28 + $0x20] sm:$0xff]  ;;  %v230_v22 = vld [vmem:[%s219_s28 + $0x28] sm:$0xff] }
  0x13   : > { %305 = vmatpush1.msra.mxu0 %v240_v8  ;;  %v231_v23 = vld [vmem:[%s219_s28 + $0x30] sm:$0x3]  ;;  %v248_v33 = vld [vmem:[%s3959_s2] sm:$0x3] }
  0x14   : > { %306 = vmatprep.subr.mxu0 %v239_v9  ;;  %v253_v36 = vrot.slane %v248_v33, %v252_v32  ;;  %v257_v45 = vrot.slane %v248_v33, %v256_v41 }
  0x15   : > { %307 = vmatpush1.msra.mxu0 %v238_v10 }
  0x16   : > { %308 = vmatprep.subr.mxu0 %v237_v11 }
  0x17   : > { %309 = vmatpush1.msra.mxu0 %v236_v12 }
  0x18   : > { %310 = vmatprep.subr.mxu0 %v235_v13 }
  0x19   : > { %311 = vmatpush1.msra.mxu0 %v234_v14 }
  0x1a   : > { %312 = vmatprep.subr.mxu0 %v233_v15 }
  0x1b   : > { %313 = vmatpush1.msra.mxu0 %v232_v16 }
  0x1c   : > { %2218 = vmatmul.mubr.msk.f32.vlgmr.msra.gmra.mxu0 %vm260_vm0, %v225_v17  ;;  %2485 = vmatprep.subr.mxu0 %v3963_v4 }
  0x1d   : > { %352 = vmatprep.mubr.f32.mxu0 %v3963_v4 }
  0x20   : > { %2219 = vmatmul.mubr.msk.f32.gmra.mxu0 %vm260_vm0, %v226_v18 }
  0x21   : > { %358 = vmatprep.mubr.f32.mxu0 %v3963_v4 }
  0x24   : > { %2220 = vmatmul.mubr.msk.f32.gmra.mxu0 %vm260_vm0, %v227_v19 }
  0x25   : > { %364 = vmatprep.mubr.f32.mxu0 %v3963_v4 }
  0x28   : > { %2221 = vmatmul.mubr.msk.f32.gmra.mxu0 %vm260_vm0, %v228_v20 }
  0x29   : > { %370 = vmatprep.mubr.f32.mxu0 %v3963_v4 }
  0x2c   : > { %2222 = vmatmul.mubr.msk.f32.gmra.mxu0 %vm260_vm0, %v229_v21 }
  0x2d   : > { %376 = vmatprep.mubr.f32.mxu0 %v3963_v4 }
  0x30   : > { %2223 = vmatmul.mubr.msk.f32.gmra.mxu0 %vm260_vm0, %v230_v22 }
  0x31   : > { %382 = vmatprep.mubr.f32.mxu0 %v3963_v4 }
  0x34   : > { %2224 = vmatmul.mubr.msk.f32.gmra.mxu0 %vm260_vm0, %v231_v23 }
  0x35   : > { %2499 = vmatprep.mubr.msk.f32.mxu0 %vm2924_vm2, %v3963_v4 }
  0xdc   : > { %v348_v24 = vpop.f32.mrf.mxu0 }
  0xdd   : > { %v3090_v56 = vadd.f32 %v348_v24, %v253_v36 }
  0xde   : > { %v350_v25 = vpop.f32.mrf.mxu0 }
  0xdf   : > { %v3096_v58 = vadd.f32 %v350_v25, %v257_v45 }
  0xe0   : > { %v354_v27 = vpop.f32.mrf.mxu0 }
  0xe1   : > { %v3051_v46 = vadd.f32 %v354_v27, %v253_v36 }
  0xe2   : > { %v356_v28 = vpop.f32.mrf.mxu0 }
  0xe3   : > { %v3092_v57 = vadd.f32 %v356_v28, %v257_v45 }
  0xe4   : > { %v360_v30 = vpop.f32.mrf.mxu0 }
  0xe5   : > { %v3076_v53 = vadd.f32 %v360_v30, %v253_v36 }
  0xe6   : > { %v362_v31 = vpop.f32.mrf.mxu0 }
  0xe7   : > { %v3082_v55 = vadd.f32 %v362_v31, %v257_v45 }
  0xe8   : > { %v366_v34 = vpop.f32.mrf.mxu0 }
  0xe9   : > { %v3047_v42 = vadd.f32 %v366_v34, %v253_v36 }
  0xea   : > { %v368_v35 = vpop.f32.mrf.mxu0 }
  0xeb   : > { %v3078_v54 = vadd.f32 %v368_v35, %v257_v45 }
  0xec   : > { %v372_v37 = vpop.f32.mrf.mxu0 }
  0xed   : > { %v3043_v38 = vadd.f32 %v372_v37, %v253_v36 }
  0xee   : > { %v374_v39 = vpop.f32.mrf.mxu0 }
  0xef   : > { %404 = vrot.lane.b32.xlu1 %v3043_v38, %s2922_s10  ;;  %v3068_v52 = vadd.f32 %v374_v39, %v257_v45 }
  0xf0   : > { %v378_v40 = vpop.f32.mrf.mxu0 }
  0xf1   : > { %v3061_v50 = vadd.f32 %v378_v40, %v253_v36 }
  0xf2   : > { %v380_v43 = vpop.f32.mrf.mxu0 }
  0xf3   : > { %402 = vrot.lane.b32.xlu1 %v3047_v42, %s2922_s10  ;;  %v3063_v51 = vadd.f32 %v380_v43, %v257_v45 }
  0xf4   : > { %v384_v44 = vpop.f32.mrf.mxu0 }
  0xf5   : > { %v3053_v47 = vadd.f32 %v384_v44, %v253_v36 }
  0xf6   : > { %v386_v48 = vpop.f32.mrf.mxu0 }
  0xf7   : > { %v3055_v49 = vadd.f32 %v386_v48, %v257_v45  ;;  %408 = vrot.lane.b32.xlu0 %v3053_v47, %s2922_s10  ;;  %398 = vrot.lane.b32.xlu1 %v3051_v46, %s2922_s10 }
  0xf9   : > { %2486 = vmatpush3.msk.msra.mxu0 %vm646_vm1, %v3055_v49 }
  0xfa   : > { %2487 = vmatprep.subr.mxu0 %v3963_v4 }
  0xfb   : > { %2488 = vmatpush3.msra.mxu0 %v3063_v51  ;;  %406 = vrot.lane.b32.xlu0 %v3061_v50, %s2922_s10 }
  0xfc   : > { %776 = vrot.lane.b32.xlu1 %v3053_v47, %s2923_s11  ;;  %2489 = vmatprep.subr.mxu0 %v3963_v4 }
  0xfd   : > { %2490 = vmatpush3.msra.mxu0 %v3068_v52 }
  0xfe   : > { %2491 = vmatprep.subr.mxu0 %v3963_v4 }
  0xff   : > { %2492 = vmatpush3.msra.mxu0 %v3078_v54  ;;  %400 = vrot.lane.b32.xlu0 %v3076_v53, %s2922_s10 }
 0x100   : > { %772 = vrot.lane.b32.xlu1 %v3043_v38, %s2923_s11  ;;  %2493 = vmatprep.subr.mxu0 %v3963_v4 }
 0x101   : > { %2494 = vmatpush3.msra.mxu0 %v3082_v55 }
 0x102   : > { %2495 = vmatprep.subr.mxu0 %v3963_v4 }
 0x103   : > { %2496 = vmatpush3.msra.mxu0 %v3092_v57  ;;  %396 = vrot.lane.b32.xlu0 %v3090_v56, %s2922_s10 }
 0x104   : > { %768 = vrot.lane.b32.xlu1 %v3076_v53, %s2923_s11  ;;  %2497 = vmatprep.subr.mxu0 %v3963_v4 }
 0x105   : > { %2498 = vmatpush3.msra.mxu0 %v3096_v58 }
 0x106   : > { %2555 = vmatprep.subr.mxu0 %v3963_v4 }
 0x107   : > { %774 = vrot.lane.b32.xlu0 %v3061_v50, %s2923_s11 }
 0x108   : > { %764 = vrot.lane.b32.xlu1 %v3090_v56, %s2923_s11 }
 0x10b   : > { %770 = vrot.lane.b32.xlu0 %v3047_v42, %s2923_s11 }
 0x10c   : > { %1165 = vrot.lane.b32.xlu1 %v3053_v47, %s2925_s12 }
 0x10f   : > { %766 = vrot.lane.b32.xlu0 %v3051_v46, %s2923_s11 }
 0x110   : > { %1163 = vrot.lane.b32.xlu1 %v3061_v50, %s2925_s12 }
 0x113   : > { %750 = vrot.lane.b32.xlu0 %v3090_v56, %s2926_s13 }
 0x114   : > { %1161 = vrot.lane.b32.xlu1 %v3043_v38, %s2925_s12 }
 0x117   : > { %752 = vrot.lane.b32.xlu0 %v3051_v46, %s2926_s13 }
 0x118   : > { %1159 = vrot.lane.b32.xlu1 %v3047_v42, %s2925_s12 }
 0x11b   : > { %754 = vrot.lane.b32.xlu0 %v3076_v53, %s2926_s13 }
 0x11c   : > { %1157 = vrot.lane.b32.xlu1 %v3076_v53, %s2925_s12 }
 0x11f   : > { %756 = vrot.lane.b32.xlu0 %v3047_v42, %s2926_s13 }
 0x120   : > { %1155 = vrot.lane.b32.xlu1 %v3051_v46, %s2925_s12 }
 0x123   : > { %758 = vrot.lane.b32.xlu0 %v3043_v38, %s2926_s13 }
 0x124   : > { %1153 = vrot.lane.b32.xlu1 %v3090_v56, %s2925_s12 }
 0x127   : > { %760 = vrot.lane.b32.xlu0 %v3061_v50, %s2926_s13 }
 0x128   : > { %1548 = vrot.lane.b32.xlu1 %v3053_v47, %s2927_s14 }
 0x12b   : > { %762 = vrot.lane.b32.xlu0 %v3053_v47, %s2926_s13 }
 0x12c   : > { %1546 = vrot.lane.b32.xlu1 %v3061_v50, %s2927_s14 }
 0x12f   : > { %1139 = vrot.lane.b32.xlu0 %v3090_v56, %s2928_s16 }
 0x130   : > { %1544 = vrot.lane.b32.xlu1 %v3043_v38, %s2927_s14 }
 0x133   : > { %1141 = vrot.lane.b32.xlu0 %v3051_v46, %s2928_s16 }
 0x134   : > { %1542 = vrot.lane.b32.xlu1 %v3047_v42, %s2927_s14 }
 0x137   : > { %1143 = vrot.lane.b32.xlu0 %v3076_v53, %s2928_s16 }
 0x138   : > { %1540 = vrot.lane.b32.xlu1 %v3076_v53, %s2927_s14 }
 0x13b   : > { %1145 = vrot.lane.b32.xlu0 %v3047_v42, %s2928_s16 }
 0x13c   : > { %1538 = vrot.lane.b32.xlu1 %v3051_v46, %s2927_s14 }
 0x13f   : > { %1147 = vrot.lane.b32.xlu0 %v3043_v38, %s2928_s16 }
 0x140   : > { %1536 = vrot.lane.b32.xlu1 %v3090_v56, %s2927_s14 }
 0x143   : > { %1149 = vrot.lane.b32.xlu0 %v3061_v50, %s2928_s16 }
 0x144   : > { %1524 = vrot.lane.b32.xlu1 %v3051_v46, %s2929_s17 }
 0x147   : > { %1151 = vrot.lane.b32.xlu0 %v3053_v47, %s2928_s16 }
 0x148   : > { %1528 = vrot.lane.b32.xlu1 %v3047_v42, %s2929_s17 }
 0x14b   : > { %1522 = vrot.lane.b32.xlu0 %v3090_v56, %s2929_s17 }
 0x14c   : > { %1532 = vrot.lane.b32.xlu1 %v3061_v50, %s2929_s17 }
 0x14f   : > { %1526 = vrot.lane.b32.xlu0 %v3076_v53, %s2929_s17 }
 0x150   : > { %1004 = vrot.lane.b32.xlu1 %v3068_v52, %s2926_s13 }
 0x153   : > { %1530 = vrot.lane.b32.xlu0 %v3043_v38, %s2929_s17 }
 0x154   : > { %998 = vrot.lane.b32.xlu1 %v3092_v57, %s2926_s13 }
 0x157   : > { %1534 = vrot.lane.b32.xlu0 %v3053_v47, %s2929_s17 }
 0x158   : > { %1387 = vrot.lane.b32.xlu1 %v3068_v52, %s2928_s16 }
 0x15b   : > { %1006 = vrot.lane.b32.xlu0 %v3063_v51, %s2926_s13 }
 0x15c   : > { %1381 = vrot.lane.b32.xlu1 %v3092_v57, %s2928_s16 }
 0x15f   : > { %1002 = vrot.lane.b32.xlu0 %v3078_v54, %s2926_s13 }
 0x160   : > { %1008 = vrot.lane.b32.xlu1 %v3055_v49, %s2926_s13 }
 0x161   : > { %v405_v59 = vpop.permute.xlu1 %404 }
 0x163   : > { %1000 = vrot.lane.b32.xlu0 %v3082_v55, %s2926_s13 }
 0x164   : > { %1391 = vrot.lane.b32.xlu1 %v3055_v49, %s2928_s16 }
 0x165   : > { %v403_v60 = vpop.permute.xlu1 %402 }
 0x167   : > { %996 = vrot.lane.b32.xlu0 %v3096_v58, %s2926_s13 }
 0x169   : > { %v409_v61 = vpop.permute.xlu0 %408  ;;  %v399_v62 = vpop.permute.xlu1 %398 }
 0x16a   : > { %2451 = vmatpush3.xpose.msk.msra.mxu1 %vm410_vm3, %v409_v61 }
 0x16b   : > { %1389 = vrot.lane.b32.xlu0 %v3063_v51, %s2928_s16  ;;  %2452 = vmatprep.subr.mxu1 %v3963_v4 }
 0x16d   : > { %v407_v63 = vpop.permute.xlu0 %406 }
 0x16e   : > { %2453 = vmatpush3.xpose.msk.msra.mxu1 %vm410_vm3, %v407_v63  ;;  %v777_v0 = vpop.permute.xlu1 %776 }
 0x16f   : > { %1385 = vrot.lane.b32.xlu0 %v3078_v54, %s2928_s16  ;;  %2454 = vmatprep.subr.mxu1 %v3963_v4 }
 0x171   : > { %v401_v1 = vpop.permute.xlu0 %400 }
 0x172   : > { %2455 = vmatpush3.xpose.msk.msra.mxu1 %vm410_vm3, %v405_v59  ;;  %v773_v2 = vpop.permute.xlu1 %772 }
 0x173   : > { %1383 = vrot.lane.b32.xlu0 %v3082_v55, %s2928_s16  ;;  %2456 = vmatprep.subr.mxu1 %v3963_v4 }
 0x175   : > { %v397_v3 = vpop.permute.xlu0 %396 }
 0x176   : > { %2457 = vmatpush3.xpose.msk.msra.mxu1 %vm410_vm3, %v403_v60  ;;  %v769_v6 = vpop.permute.xlu1 %768 }
 0x177   : > { %1379 = vrot.lane.b32.xlu0 %v3096_v58, %s2928_s16  ;;  %2458 = vmatprep.subr.mxu1 %v3963_v4  ;;  %s224_s16 = scalar_lea.vmem %s3962_s5, %s2783_s15 }
 0x179   : > { %v775_v5 = vpop.permute.xlu0 %774 }
 0x17a   : > { %2459 = vmatpush3.xpose.msk.msra.mxu1 %vm410_vm3, %v401_v1  ;;  %v765_v8 = vpop.permute.xlu1 %764 }
 0x17b   : > { %1772 = vrot.lane.b32.xlu0 %v3063_v51, %s2929_s17  ;;  %2460 = vmatprep.subr.mxu1 %v3963_v4 }
 0x17d   : > { %v771_v7 = vpop.permute.xlu0 %770 }
 0x17e   : > { %2461 = vmatpush3.xpose.msk.msra.mxu1 %vm410_vm3, %v399_v62  ;;  %v1166_v11 = vpop.permute.xlu1 %1165 }
 0x17f   : > { %2462 = vmatprep.subr.mxu1 %v3963_v4 }
 0x181   : > { %v767_v9 = vpop.permute.xlu0 %766 }
 0x182   : > { %2463 = vmatpush3.xpose.msk.msra.mxu1 %vm410_vm3, %v397_v3  ;;  %v1164_v13 = vpop.permute.xlu1 %1163 }
 0x183   : > { %2520 = vmatprep.subr.mxu1 %v3963_v4 }
 0x185   : > { %2465 = vmatmul.mubr.msk.f32.vlgmr.msra.gmra.mxu1 %vm410_vm3, %v3090_v56  ;;  %v751_v10 = vpop.permute.xlu0 %750 }
 0x186   : > { %2521 = vmatpush3.xpose.msk.msra.mxu1 %vm410_vm3, %v777_v0  ;;  %2467 = vmatprep.mubr.msk.f32.mxu1 %vm2924_vm2, %v3963_v4  ;;  %v1162_v15 = vpop.permute.xlu1 %1161 }
 0x187   : > { %2522 = vmatprep.subr.mxu1 %v3963_v4 }
 0x189   : > { %2468 = vmatmul.mubr.msk.f32.gmra.mxu1 %vm410_vm3, %v3051_v46  ;;  %v753_v12 = vpop.permute.xlu0 %752 }
 0x18a   : > { %2523 = vmatpush3.xpose.msk.msra.mxu1 %vm410_vm3, %v775_v5  ;;  %2470 = vmatprep.mubr.msk.f32.mxu1 %vm2924_vm2, %v3963_v4  ;;  %v1160_v17 = vpop.permute.xlu1 %1159 }
 0x18b   : > { %2524 = vmatprep.subr.mxu1 %v3963_v4 }
 0x18d   : > { %2471 = vmatmul.mubr.msk.f32.gmra.mxu1 %vm410_vm3, %v3076_v53  ;;  %v755_v14 = vpop.permute.xlu0 %754 }
 0x18e   : > { %2525 = vmatpush3.xpose.msk.msra.mxu1 %vm410_vm3, %v773_v2  ;;  %2473 = vmatprep.mubr.msk.f32.mxu1 %vm2924_vm2, %v3963_v4  ;;  %v1158_v19 = vpop.permute.xlu1 %1157 }
 0x18f   : > { %2526 = vmatprep.subr.mxu1 %v3963_v4 }
 0x191   : > { %2474 = vmatmul.mubr.msk.f32.gmra.mxu1 %vm410_vm3, %v3047_v42  ;;  %v757_v16 = vpop.permute.xlu0 %756 }
 0x192   : > { %2527 = vmatpush3.xpose.msk.msra.mxu1 %vm410_vm3, %v771_v7  ;;  %2476 = vmatprep.mubr.msk.f32.mxu1 %vm2924_vm2, %v3963_v4  ;;  %v1156_v21 = vpop.permute.xlu1 %1155 }
 0x193   : > { %2528 = vmatprep.subr.mxu1 %v3963_v4 }
 0x195   : > { %2477 = vmatmul.mubr.msk.f32.gmra.mxu1 %vm410_vm3, %v3043_v38  ;;  %v759_v18 = vpop.permute.xlu0 %758 }
 0x196   : > { %2529 = vmatpush3.xpose.msk.msra.mxu1 %vm410_vm3, %v769_v6  ;;  %2479 = vmatprep.mubr.msk.f32.mxu1 %vm2924_vm2, %v3963_v4  ;;  %v1154_v23 = vpop.permute.xlu1 %1153 }
 0x197   : > { %2530 = vmatprep.subr.mxu1 %v3963_v4 }
 0x199   : > { %2480 = vmatmul.mubr.msk.f32.gmra.mxu1 %vm410_vm3, %v3061_v50  ;;  %v761_v20 = vpop.permute.xlu0 %760 }
 0x19a   : > { %2531 = vmatpush3.xpose.msk.msra.mxu1 %vm410_vm3, %v767_v9  ;;  %2482 = vmatprep.mubr.msk.f32.mxu1 %vm2924_vm2, %v3963_v4  ;;  %v1549_v25 = vpop.permute.xlu1 %1548 }
 0x19b   : > { %2532 = vmatprep.subr.mxu1 %v3963_v4 }
 0x19d   : > { %2483 = vmatmul.mubr.msk.f32.gmra.mxu1 %vm410_vm3, %v3053_v47  ;;  %v763_v22 = vpop.permute.xlu0 %762 }
 0x19e   : > { %2533 = vmatpush3.xpose.msk.msra.mxu1 %vm410_vm3, %v765_v8  ;;  %2534 = vmatprep.mubr.msk.f32.mxu1 %vm2924_vm2, %v3963_v4  ;;  %v1547_v27 = vpop.permute.xlu1 %1546 }
 0x19f   : > { %2590 = vmatprep.subr.mxu1 %v3963_v4 }
 0x1a1   : > { %2535 = vmatmul.mubr.msk.f32.vlgmr.msra.gmra.mxu1 %vm410_vm3, %v751_v10  ;;  %v1140_v24 = vpop.permute.xlu0 %1139 }
 0x1a2   : > { %2591 = vmatpush3.xpose.msk.msra.mxu1 %vm410_vm3, %v1166_v11  ;;  %2537 = vmatprep.mubr.msk.f32.mxu1 %vm2924_vm2, %v3963_v4  ;;  %v1545_v29 = vpop.permute.xlu1 %1544 }
 0x1a3   : > { %2592 = vmatprep.subr.mxu1 %v3963_v4 }
 0x1a5   : > { %2538 = vmatmul.mubr.msk.f32.gmra.mxu1 %vm410_vm3, %v753_v12  ;;  %v1142_v26 = vpop.permute.xlu0 %1141 }
 0x1a6   : > { %2593 = vmatpush3.xpose.msk.msra.mxu1 %vm410_vm3, %v1164_v13  ;;  %2540 = vmatprep.mubr.msk.f32.mxu1 %vm2924_vm2, %v3963_v4  ;;  %v1543_v31 = vpop.permute.xlu1 %1542 }
 0x1a7   : > { %2594 = vmatprep.subr.mxu1 %v3963_v4 }
 0x1a9   : > { %2541 = vmatmul.mubr.msk.f32.gmra.mxu1 %vm410_vm3, %v755_v14  ;;  %v1144_v28 = vpop.permute.xlu0 %1143 }
 0x1aa   : > { %2595 = vmatpush3.xpose.msk.msra.mxu1 %vm410_vm3, %v1162_v15  ;;  %2543 = vmatprep.mubr.msk.f32.mxu1 %vm2924_vm2, %v3963_v4  ;;  %v1541_v33 = vpop.permute.xlu1 %1540 }
 0x1ab   : > { %2596 = vmatprep.subr.mxu1 %v3963_v4 }
 0x1ad   : > { %2544 = vmatmul.mubr.msk.f32.gmra.mxu1 %vm410_vm3, %v757_v16  ;;  %v1146_v30 = vpop.permute.xlu0 %1145 }
 0x1ae   : > { %2597 = vmatpush3.xpose.msk.msra.mxu1 %vm410_vm3, %v1160_v17  ;;  %2546 = vmatprep.mubr.msk.f32.mxu1 %vm2924_vm2, %v3963_v4  ;;  %v1539_v35 = vpop.permute.xlu1 %1538 }
 0x1af   : > { %2598 = vmatprep.subr.mxu1 %v3963_v4 }
 0x1b1   : > { %2547 = vmatmul.mubr.msk.f32.gmra.mxu1 %vm410_vm3, %v759_v18  ;;  %v1148_v32 = vpop.permute.xlu0 %1147 }
 0x1b2   : > { %2599 = vmatpush3.xpose.msk.msra.mxu1 %vm410_vm3, %v1158_v19  ;;  %2549 = vmatprep.mubr.msk.f32.mxu1 %vm2924_vm2, %v3963_v4  ;;  %v1537_v37 = vpop.permute.xlu1 %1536 }
 0x1b3   : > { %2600 = vmatprep.subr.mxu1 %v3963_v4 }
 0x1b5   : > { %2550 = vmatmul.mubr.msk.f32.gmra.mxu1 %vm410_vm3, %v761_v20  ;;  %v1150_v34 = vpop.permute.xlu0 %1149 }
 0x1b6   : > { %2601 = vmatpush3.xpose.msk.msra.mxu1 %vm410_vm3, %v1156_v21  ;;  %2552 = vmatprep.mubr.msk.f32.mxu1 %vm2924_vm2, %v3963_v4  ;;  %v1525_v39 = vpop.permute.xlu1 %1524 }
 0x1b7   : > { %2602 = vmatprep.subr.mxu1 %v3963_v4 }
 0x1b9   : > { %2553 = vmatmul.mubr.msk.f32.gmra.mxu1 %vm410_vm3, %v763_v22  ;;  %v1152_v36 = vpop.permute.xlu0 %1151 }
 0x1ba   : > { %2603 = vmatpush3.xpose.msk.msra.mxu1 %vm410_vm3, %v1154_v23  ;;  %2604 = vmatprep.mubr.msk.f32.mxu1 %vm2924_vm2, %v3963_v4  ;;  %v1529_v41 = vpop.permute.xlu1 %1528 }
 0x1bb   : > { %2660 = vmatprep.subr.mxu1 %v3963_v4 }
 0x1bd   : > { %2605 = vmatmul.mubr.msk.f32.vlgmr.msra.gmra.mxu1 %vm410_vm3, %v1140_v24  ;;  %v1523_v38 = vpop.permute.xlu0 %1522 }
 0x1be   : > { %2661 = vmatpush3.xpose.msk.msra.mxu1 %vm410_vm3, %v1549_v25  ;;  %2607 = vmatprep.mubr.msk.f32.mxu1 %vm2924_vm2, %v3963_v4  ;;  %v1533_v43 = vpop.permute.xlu1 %1532 }
 0x1bf   : > { %2662 = vmatprep.subr.mxu1 %v3963_v4 }
 0x1c1   : > { %2608 = vmatmul.mubr.msk.f32.gmra.mxu1 %vm410_vm3, %v1142_v26  ;;  %v1527_v40 = vpop.permute.xlu0 %1526 }
 0x1c2   : > { %2663 = vmatpush3.xpose.msk.msra.mxu1 %vm410_vm3, %v1547_v27  ;;  %2610 = vmatprep.mubr.msk.f32.mxu1 %vm2924_vm2, %v3963_v4 }
 0x1c3   : > { %2664 = vmatprep.subr.mxu1 %v3963_v4 }
 0x1c5   : > { %2611 = vmatmul.mubr.msk.f32.gmra.mxu1 %vm410_vm3, %v1144_v28  ;;  %v1531_v42 = vpop.permute.xlu0 %1530 }
 0x1c6   : > { %2665 = vmatpush3.xpose.msk.msra.mxu1 %vm410_vm3, %v1545_v29  ;;  %2613 = vmatprep.mubr.msk.f32.mxu1 %vm2924_vm2, %v3963_v4 }
 0x1c7   : > { %2666 = vmatprep.subr.mxu1 %v3963_v4 }
 0x1c9   : > { %2614 = vmatmul.mubr.msk.f32.gmra.mxu1 %vm410_vm3, %v1146_v30  ;;  %v1535_v44 = vpop.permute.xlu0 %1534 }
 0x1ca   : > { %2667 = vmatpush3.xpose.msk.msra.mxu1 %vm410_vm3, %v1543_v31  ;;  %2616 = vmatprep.mubr.msk.f32.mxu1 %vm2924_vm2, %v3963_v4 }
 0x1cb   : > { %2668 = vmatprep.subr.mxu1 %v3963_v4 }
 0x1cd   : > { %2617 = vmatmul.mubr.msk.f32.gmra.mxu1 %vm410_vm3, %v1148_v32 }
 0x1ce   : > { %2669 = vmatpush3.xpose.msk.msra.mxu1 %vm410_vm3, %v1541_v33  ;;  %2619 = vmatprep.mubr.msk.f32.mxu1 %vm2924_vm2, %v3963_v4 }
 0x1cf   : > { %2670 = vmatprep.subr.mxu1 %v3963_v4 }
 0x1d1   : > { %2620 = vmatmul.mubr.msk.f32.gmra.mxu1 %vm410_vm3, %v1150_v34 }
 0x1d2   : > { %2671 = vmatpush3.xpose.msk.msra.mxu1 %vm410_vm3, %v1539_v35  ;;  %2622 = vmatprep.mubr.msk.f32.mxu1 %vm2924_vm2, %v3963_v4 }
 0x1d3   : > { %2672 = vmatprep.subr.mxu1 %v3963_v4 }
 0x1d5   : > { %2623 = vmatmul.mubr.msk.f32.gmra.mxu1 %vm410_vm3, %v1152_v36 }
 0x1d6   : > { %2673 = vmatpush3.xpose.msk.msra.mxu1 %vm410_vm3, %v1537_v37  ;;  %2674 = vmatprep.mubr.msk.f32.mxu1 %vm2924_vm2, %v3963_v4 }
 0x1d7   : > { %2767 = vmatprep.subr.mxu1 %v3963_v4 }
 0x1d9   : > { %2675 = vmatmul.mubr.msk.f32.vlgmr.msra.gmra.mxu1 %vm410_vm3, %v1523_v38 }
 0x1da   : > { %2677 = vmatprep.mubr.msk.f32.mxu1 %vm2924_vm2, %v3963_v4 }
 0x1dd   : > { %2678 = vmatmul.mubr.msk.f32.gmra.mxu1 %vm410_vm3, %v1525_v39 }
 0x1de   : > { %2680 = vmatprep.mubr.msk.f32.mxu1 %vm2924_vm2, %v3963_v4 }
 0x1e1   : > { %2681 = vmatmul.mubr.msk.f32.gmra.mxu1 %vm410_vm3, %v1527_v40 }
 0x1e2   : > { %2683 = vmatprep.mubr.msk.f32.mxu1 %vm2924_vm2, %v3963_v4 }
 0x1e5   : > { %2684 = vmatmul.mubr.msk.f32.gmra.mxu1 %vm410_vm3, %v1529_v41 }
 0x1e6   : > { %2686 = vmatprep.mubr.msk.f32.mxu1 %vm2924_vm2, %v3963_v4 }
 0x1e9   : > { %2687 = vmatmul.mubr.msk.f32.gmra.mxu1 %vm410_vm3, %v1531_v42 }
 0x1ea   : > { %2689 = vmatprep.mubr.msk.f32.mxu1 %vm2924_vm2, %v3963_v4 }
 0x1ed   : > { %2690 = vmatmul.mubr.msk.f32.gmra.mxu1 %vm410_vm3, %v1533_v43 }
 0x1ee   : > { %2692 = vmatprep.mubr.msk.f32.mxu1 %vm2924_vm2, %v3963_v4 }
 0x1f1   : > { %2693 = vmatmul.mubr.msk.f32.gmra.mxu1 %vm410_vm3, %v1535_v44 }
 0x1f2   : > { %2749 = vmatprep.mubr.msk.f32.mxu1 %vm2924_vm2, %v3963_v4 }
 0x245   : > { %v505_v45 = vpop.f32.mrf.mxu1 }
 0x246   : > { %v3365_v46 = vmul.f32 0.25, %v505_v45 }
 0x247   : > { %v2466_v47 = vpop.f32.mrf.mxu1 }
 0x248   : > { %v547_v48 = vsel %vm546_vm4, %v3365_v46, -inf }
 0x249   : > { %548 = vmax.xlane.f32.xlu1 %v547_v48  ;;  %v510_v50 = vpop.f32.mrf.mxu1 }
 0x24a   : > { %v3369_v51 = vmul.f32 0.25, %v510_v50 }
 0x24b   : > { %v2469_v53 = vpop.f32.mrf.mxu1 }
 0x24c   : > { %v550_v56 = vsel %vm546_vm4, %v3369_v51, -inf }
 0x24d   : > { %551 = vmax.xlane.f32.xlu0 %v550_v56  ;;  %v515_v59 = vpop.f32.mrf.mxu1 }
 0x24e   : > { %v3373_v60 = vmul.f32 0.25, %v515_v59 }
 0x24f   : > { %v2472_v61 = vpop.f32.mrf.mxu1 }
 0x250   : > { %v553_v62 = vsel %vm546_vm4, %v3373_v60, -inf }
 0x251   : > { %554 = vmax.xlane.f32.xlu0 %v553_v62  ;;  %v520_v63 = vpop.f32.mrf.mxu1 }
 0x252   : > { %v3399_v29 = vmul.f32 0.25, %v520_v63 }
 0x253   : > { %v2475_v0 = vpop.f32.mrf.mxu1 }
 0x254   : > { %v556_v34 = vsel %vm546_vm4, %v3399_v29, -inf }
 0x255   : > { %v525_v1 = vpop.f32.mrf.mxu1 }
 0x256   : > { %v3377_v2 = vmul.f32 0.25, %v525_v1 }
 0x257   : > { %v2478_v3 = vpop.f32.mrf.mxu1 }
 0x258   : > { %v559_v5 = vsel %vm546_vm4, %v3377_v2, -inf }
 0x259   : > { %560 = vmax.xlane.f32.xlu0 %v559_v5  ;;  %v530_v6 = vpop.f32.mrf.mxu1 }
 0x25a   : > { %1774 = vrot.lane.b32.xlu1 %v3055_v49, %s2929_s17  ;;  %v3401_v32 = vmul.f32 0.25, %v530_v6 }
 0x25b   : > { %v2481_v7 = vpop.f32.mrf.mxu1 }
 0x25c   : > { %v562_v40 = vsel %vm546_vm4, %v3401_v32, -inf }
 0x25d   : > { %v535_v8 = vpop.f32.mrf.mxu1 }
 0x25e   : > { %v3383_v9 = vmul.f32 0.25, %v535_v8 }
 0x25f   : > { %v2484_v10 = vpop.f32.mrf.mxu1 }
 0x260   : > { %v566_v11 = vsel %vm565_vm5, %v3383_v9, -inf }
 0x261   : > { %567 = vmax.xlane.f32.xlu0 %v566_v11  ;;  %v872_v12 = vpop.f32.mrf.mxu1 }
 0x262   : > { %v3409_v38 = vmul.f32 0.25, %v872_v12 }
 0x263   : > { %v2536_v13 = vpop.f32.mrf.mxu1 }
 0x264   : > { %v913_v44 = vsel %vm546_vm4, %v3409_v38, -inf }
 0x265   : > { %v877_v14 = vpop.f32.mrf.mxu1 }
 0x266   : > { %v3387_v15 = vmul.f32 0.25, %v877_v14 }
 0x267   : > { %v2539_v16 = vpop.f32.mrf.mxu1 }
 0x268   : > { %v916_v17 = vsel %vm546_vm4, %v3387_v15, -inf }
 0x269   : > { %917 = vmax.xlane.f32.xlu0 %v916_v17  ;;  %v882_v49 = vpop.f32.mrf.mxu1 }
 0x26a   : > { %v3413_v42 = vmul.f32 0.25, %v882_v49 }
 0x26b   : > { %v2542_v18 = vpop.f32.mrf.mxu1 }
 0x26c   : > { %v919_v56 = vsel %vm546_vm4, %v3413_v42, -inf }
 0x26d   : > { %v887_v19 = vpop.f32.mrf.mxu1 }
 0x26e   : > { %v3391_v20 = vmul.f32 0.25, %v887_v19 }
 0x26f   : > { %v2545_v21 = vpop.f32.mrf.mxu1 }
 0x270   : > { %v922_v22 = vsel %vm546_vm4, %v3391_v20, -inf }
 0x271   : > { %923 = vmax.xlane.f32.xlu0 %v922_v22  ;;  %v892_v23 = vpop.f32.mrf.mxu1 }
 0x272   : > { %v3421_v50 = vmul.f32 0.25, %v892_v23 }
 0x273   : > { %v2548_v24 = vpop.f32.mrf.mxu1 }
 0x274   : > { %v925_v63 = vsel %vm546_vm4, %v3421_v50, -inf }
 0x275   : > { %v897_v25 = vpop.f32.mrf.mxu1 }
 0x276   : > { %v3395_v26 = vmul.f32 0.25, %v897_v25 }
 0x277   : > { %v2551_v27 = vpop.f32.mrf.mxu1 }
 0x278   : > { %v928_v28 = vsel %vm546_vm4, %v3395_v26, -inf }
 0x279   : > { %929 = vmax.xlane.f32.xlu0 %v928_v28  ;;  %v902_v30 = vpop.f32.mrf.mxu1 }
 0x27a   : > { %v3425_v61 = vmul.f32 0.25, %v902_v30 }
 0x27b   : > { %v2554_v31 = vpop.f32.mrf.mxu1 }
 0x27c   : > { %v931_v7 = vsel %vm565_vm5, %v3425_v61, -inf  ;;  %v3459_v31 = vpop.permute.xlu0 %1006 }
 0x27d   : > { %v1261_v33 = vpop.f32.mrf.mxu1 }
 0x27e   : > { %v3405_v35 = vmul.f32 0.25, %v1261_v33  ;;  %557 = vmax.xlane.f32.xlu1 %v556_v34 }
 0x27f   : > { %v2606_v36 = vpop.f32.mrf.mxu1 }
 0x280   : > { %v1302_v37 = vsel %vm546_vm4, %v3405_v35, -inf }
 0x281   : > { %1303 = vmax.xlane.f32.xlu0 %v1302_v37  ;;  %v1266_v39 = vpop.f32.mrf.mxu1 }
 0x282   : > { %563 = vmax.xlane.f32.xlu1 %v562_v40  ;;  %v3433_v5 = vmul.f32 0.25, %v1266_v39 }
 0x283   : > { %v2609_v41 = vpop.f32.mrf.mxu1 }
 0x284   : > { %v1305_v12 = vsel %vm546_vm4, %v3433_v5, -inf  ;;  %v3467_v41 = vpop.permute.xlu0 %1002 }
 0x285   : > { %v1271_v43 = vpop.f32.mrf.mxu1 }
 0x286   : > { %v3417_v45 = vmul.f32 0.25, %v1271_v43  ;;  %914 = vmax.xlane.f32.xlu1 %v913_v44 }
 0x287   : > { %v2612_v47 = vpop.f32.mrf.mxu1 }
 0x288   : > { %v1308_v48 = vsel %vm546_vm4, %v3417_v45, -inf }
 0x289   : > { %1309 = vmax.xlane.f32.xlu0 %v1308_v48  ;;  %v1276_v53 = vpop.f32.mrf.mxu1 }
 0x28a   : > { %920 = vmax.xlane.f32.xlu1 %v919_v56  ;;  %v3437_v10 = vmul.f32 0.25, %v1276_v53 }
 0x28b   : > { %v2615_v59 = vpop.f32.mrf.mxu1 }
 0x28c   : > { %v1311_v18 = vsel %vm546_vm4, %v3437_v10, -inf  ;;  %v3475_v59 = vpop.permute.xlu0 %1000 }
 0x28d   : > { %v1281_v62 = vpop.f32.mrf.mxu1 }
 0x28e   : > { %v3429_v0 = vmul.f32 0.25, %v1281_v62  ;;  %926 = vmax.xlane.f32.xlu1 %v925_v63 }
 0x28f   : > { %v2618_v1 = vpop.f32.mrf.mxu1 }
 0x290   : > { %v1314_v3 = vsel %vm546_vm4, %v3429_v0, -inf  ;;  %v3479_v1 = vpop.permute.xlu1 %1004 }
 0x291   : > { %1315 = vmax.xlane.f32.xlu0 %v1314_v3  ;;  %v1286_v6 = vpop.f32.mrf.mxu1 }
 0x292   : > { %932 = vmax.xlane.f32.xlu1 %v931_v7  ;;  %v3445_v17 = vmul.f32 0.25, %v1286_v6 }
 0x293   : > { %v2621_v8 = vpop.f32.mrf.mxu1 }
 0x294   : > { %v1317_v23 = vsel %vm546_vm4, %v3445_v17, -inf }
 0x295   : > { %v1291_v11 = vpop.f32.mrf.mxu1 }
 0x296   : > { %v3441_v13 = vmul.f32 0.25, %v1291_v11  ;;  %1306 = vmax.xlane.f32.xlu1 %v1305_v12  ;;  %v3485_v11 = vpop.permute.xlu0 %996 }
 0x297   : > { %v2624_v14 = vpop.f32.mrf.mxu1 }
 0x298   : > { %v1320_v16 = vsel %vm565_vm5, %v3441_v13, -inf  ;;  %v3489_v14 = vpop.permute.xlu1 %998 }
 0x299   : > { %1321 = vmax.xlane.f32.xlu0 %v1320_v16  ;;  %v1644_v49 = vpop.f32.mrf.mxu1 }
 0x29a   : > { %1312 = vmax.xlane.f32.xlu1 %v1311_v18  ;;  %v3449_v21 = vmul.f32 0.25, %v1644_v49  ;;  %v3491_v16 = vpop.permute.xlu0 %1389 }
 0x29b   : > { %v2676_v19 = vpop.f32.mrf.mxu1 }
 0x29c   : > { %v1685_v30 = vsel %vm546_vm4, %v3449_v21, -inf  ;;  %v3493_v49 = vpop.permute.xlu1 %1387 }
 0x29d   : > { %v1649_v22 = vpop.f32.mrf.mxu1 }
 0x29e   : > { %v3453_v24 = vmul.f32 0.25, %v1649_v22  ;;  %1318 = vmax.xlane.f32.xlu1 %v1317_v23  ;;  %v3495_v18 = vpop.permute.xlu0 %1385 }
 0x29f   : > { %v2679_v25 = vpop.f32.mrf.mxu1 }
 0x2a0   : > { %v1688_v27 = vsel %vm546_vm4, %v3453_v24, -inf  ;;  %v3497_v19 = vpop.permute.xlu1 %1381 }
 0x2a1   : > { %1689 = vmax.xlane.f32.xlu0 %v1688_v27  ;;  %v1654_v28 = vpop.f32.mrf.mxu1 }
 0x2a2   : > { %v3461_v33 = vmul.f32 0.25, %v1654_v28  ;;  %1686 = vmax.xlane.f32.xlu1 %v1685_v30  ;;  %v3499_v22 = vpop.permute.xlu0 %1383 }
 0x2a3   : > { %v2682_v34 = vpop.f32.mrf.mxu1 }
 0x2a4   : > { %v1691_v36 = vsel %vm546_vm4, %v3461_v33, -inf  ;;  %v3501_v23 = vpop.permute.xlu1 %1008 }
 0x2a5   : > { %1692 = vmax.xlane.f32.xlu0 %v1691_v36  ;;  %v1659_v37 = vpop.f32.mrf.mxu1 }
 0x2a6   : > { %v3465_v39 = vmul.f32 0.25, %v1659_v37  ;;  %v3503_v25 = vpop.permute.xlu0 %1379 }
 0x2a7   : > { %v2685_v40 = vpop.f32.mrf.mxu1 }
 0x2a8   : > { %v1694_v43 = vsel %vm546_vm4, %v3465_v39, -inf  ;;  %v3505_v27 = vpop.permute.xlu1 %1391 }
 0x2a9   : > { %1695 = vmax.xlane.f32.xlu0 %v1694_v43  ;;  %v1664_v44 = vpop.f32.mrf.mxu1 }
 0x2aa   : > { %v3471_v47 = vmul.f32 0.25, %v1664_v44  ;;  %v3507_v28 = vpop.permute.xlu0 %1772 }
 0x2ab   : > { %v2688_v48 = vpop.f32.mrf.mxu1  ;;  %3965 = vst [vmem:[#allocation2_spill] sm:$0xff] %v3507_v28 }
 0x2ac   : > { %v1697_v53 = vsel %vm546_vm4, %v3471_v47, -inf }
 0x2ad   : > { %1698 = vmax.xlane.f32.xlu0 %v1697_v53  ;;  %v1669_v56 = vpop.f32.mrf.mxu1 }
 0x2ae   : > { %v3477_v62 = vmul.f32 0.25, %v1669_v56 }
 0x2af   : > { %v2691_v63 = vpop.f32.mrf.mxu1 }
 0x2b0   : > { %v1700_v3 = vsel %vm546_vm4, %v3477_v62, -inf }
 0x2b1   : > { %1701 = vmax.xlane.f32.xlu0 %v1700_v3  ;;  %v1674_v6 = vpop.f32.mrf.mxu1 }
 0x2b2   : > { %v3483_v7 = vmul.f32 0.25, %v1674_v6 }
 0x2b3   : > { %v2694_v8 = vpop.f32.mrf.mxu1 }
 0x2b4   : > { %v1703_v12 = vsel %vm565_vm5, %v3483_v7, -inf }
 0x2b5   : > { %1704 = vmax.xlane.f32.xlu0 %v1703_v12 }
 0x2d2   : > { %v549_v30 = vpop.xlane.xlu1 %548 }
 0x2d3   : > { %v569_v34 = vsub.f32 %v3365_v46, %v549_v30 }
 0x2d5   : > { %v576_v36 = vmul.f32 1.442695, %v569_v34 }
 0x2d6   : > { %v552_v37 = vpop.xlane.xlu0 %551 }
 0x2d7   : > { %2801 = vpow2.f32 %v576_v36  ;;  %v570_v40 = vsub.f32 %v3369_v51, %v552_v37 }
 0x2d9   : > { %v578_v43 = vmul.f32 1.442695, %v570_v40 }
 0x2da   : > { %v555_v44 = vpop.xlane.xlu0 %554 }
 0x2db   : > { %2803 = vpow2.f32 %v578_v43  ;;  %v571_v48 = vsub.f32 %v3373_v60, %v555_v44 }
 0x2dd   : > { %v580_v53 = vmul.f32 1.442695, %v571_v48 }
 0x2df   : > { %2805 = vpow2.f32 %v580_v53 }
 0x2e2   : > { %v561_v3 = vpop.xlane.xlu0 %560 }
 0x2e3   : > { %v573_v53 = vsub.f32 %v3377_v2, %v561_v3 }
 0x2e4   : > { %v3512_v56 = vpop.eup %2801 }
 0x2e5   : > { %v590_v63 = vsel %vm546_vm4, %v3512_v56, 0.0 }
 0x2e6   : > { %591 = vadd.xlane.f32.xlu1 %v590_v63 }
 0x2e8   : > { %v3516_v46 = vpop.eup %2803 }
 0x2e9   : > { %v593_v6 = vsel %vm546_vm4, %v3516_v46, 0.0 }
 0x2ea   : > { %594 = vadd.xlane.f32.xlu1 %v593_v6  ;;  %v568_v51 = vpop.xlane.xlu0 %567  ;;  %v584_v6 = vmul.f32 1.442695, %v573_v53 }
 0x2eb   : > { %v575_v8 = vsub.f32 %v3383_v9, %v568_v51  ;;  %v3530_v9 = vpop.permute.xlu1 %1774 }
 0x2ec   : > { %v3521_v12 = vpop.eup %2805 }
 0x2ed   : > { %v588_v60 = vmul.f32 1.442695, %v575_v8  ;;  %v596_v30 = vsel %vm546_vm4, %v3521_v12, 0.0 }
 0x2ee   : > { %597 = vadd.xlane.f32.xlu1 %v596_v30 }
 0x2ef   : > { %2807 = vpow2.f32 %v588_v60 }
 0x2f2   : > { %v918_v34 = vpop.xlane.xlu0 %917 }
 0x2f3   : > { %v935_v36 = vsub.f32 %v3387_v15, %v918_v34 }
 0x2f5   : > { %v943_v37 = vmul.f32 1.442695, %v935_v36 }
 0x2f7   : > { %2809 = vpow2.f32 %v943_v37 }
 0x2fc   : > { %v3526_v40 = vpop.eup %2807 }
 0x2fd   : > { %v608_v43 = vsel %vm565_vm5, %v3526_v40, 0.0 }
 0x2fe   : > { %609 = vadd.xlane.f32.xlu0 %v608_v43 }
 0x304   : > { %v3532_v44 = vpop.eup %2809 }
 0x305   : > { %v958_v48 = vsel %vm546_vm4, %v3532_v44, 0.0 }
 0x306   : > { %959 = vadd.xlane.f32.xlu0 %v958_v48 }
 0x307   : > { %v558_v63 = vpop.xlane.xlu1 %557 }
 0x308   : > { %v572_v15 = vsub.f32 %v3399_v29, %v558_v63 }
 0x30a   : > { %v582_v51 = vmul.f32 1.442695, %v572_v15 }
 0x30b   : > { %v564_v8 = vpop.xlane.xlu1 %563 }
 0x30c   : > { %2811 = vpow2.f32 %v582_v51  ;;  %v574_v60 = vsub.f32 %v3401_v32, %v564_v8 }
 0x30d   : > { %2813 = vpow2.f32 %v584_v6 }
 0x30e   : > { %v586_v30 = vmul.f32 1.442695, %v574_v60 }
 0x30f   : > { %v915_v34 = vpop.xlane.xlu1 %914 }
 0x310   : > { %v934_v36 = vsub.f32 %v3409_v38, %v915_v34  ;;  %2815 = vpow2.f32 %v586_v30 }
 0x312   : > { %v941_v37 = vmul.f32 1.442695, %v934_v36 }
 0x313   : > { %v921_v43 = vpop.xlane.xlu1 %920 }
 0x314   : > { %v936_v2 = vsub.f32 %v3413_v42, %v921_v43  ;;  %2817 = vpow2.f32 %v941_v37  ;;  %v924_v42 = vpop.xlane.xlu0 %923 }
 0x315   : > { %v937_v15 = vsub.f32 %v3391_v20, %v924_v42 }
 0x316   : > { %v945_v3 = vmul.f32 1.442695, %v936_v2 }
 0x317   : > { %v927_v63 = vpop.xlane.xlu1 %926  ;;  %v947_v8 = vmul.f32 1.442695, %v937_v15 }
 0x318   : > { %2819 = vpow2.f32 %v945_v3  ;;  %v938_v60 = vsub.f32 %v3421_v50, %v927_v63  ;;  %v930_v50 = vpop.xlane.xlu0 %929 }
 0x319   : > { %v3541_v48 = vpop.eup %2811  ;;  %2821 = vpow2.f32 %v947_v8 }
 0x31a   : > { %v599_v29 = vsel %vm546_vm4, %v3541_v48, 0.0  ;;  %v3545_v53 = vpop.eup %2813  ;;  %v949_v36 = vmul.f32 1.442695, %v938_v60  ;;  %v939_v60 = vsub.f32 %v3395_v26, %v930_v50 }
 0x31b   : > { %600 = vadd.xlane.f32.xlu1 %v599_v29  ;;  %v602_v32 = vsel %vm546_vm4, %v3545_v53, 0.0  ;;  %v933_v34 = vpop.xlane.xlu1 %932 }
 0x31c   : > { %1768 = vrot.lane.b32.xlu0 %v3078_v54, %s2929_s17  ;;  %v940_v20 = vsub.f32 %v3425_v61, %v933_v34  ;;  %2823 = vpow2.f32 %v949_v36  ;;  %v951_v34 = vmul.f32 1.442695, %v939_v60 }
 0x31d   : > { %v3551_v38 = vpop.eup %2815 }
 0x31e   : > { %v605_v6 = vsel %vm546_vm4, %v3551_v38, 0.0  ;;  %v953_v43 = vmul.f32 1.442695, %v940_v20 }
 0x31f   : > { %603 = vadd.xlane.f32.xlu1 %v602_v32  ;;  %v1304_v32 = vpop.xlane.xlu0 %1303  ;;  %v1307_v8 = vpop.xlane.xlu1 %1306 }
 0x320   : > { %2825 = vpow2.f32 %v953_v43  ;;  %v1323_v36 = vsub.f32 %v3405_v35, %v1304_v32 }
 0x321   : > { %v3556_v51 = vpop.eup %2817  ;;  %2827 = vpow2.f32 %v951_v34 }
 0x322   : > { %v955_v54 = vsel %vm546_vm4, %v3556_v51, 0.0 }
 0x323   : > { %606 = vadd.xlane.f32.xlu1 %v605_v6  ;;  %v1310_v63 = vpop.xlane.xlu0 %1309 }
 0x324   : > { %v1325_v43 = vsub.f32 %v3417_v45, %v1310_v63  ;;  %v1324_v63 = vsub.f32 %v3433_v5, %v1307_v8 }
 0x325   : > { %v3561_v30 = vpop.eup %2819 }
 0x326   : > { %v961_v37 = vsel %vm546_vm4, %v3561_v30, 0.0  ;;  %v3566_v2 = vpop.eup %2821  ;;  %v1334_v4 = vmul.f32 1.442695, %v1325_v43 }
 0x327   : > { %956 = vadd.xlane.f32.xlu1 %v955_v54  ;;  %v964_v3 = vsel %vm546_vm4, %v3566_v2, 0.0  ;;  %v1316_v6 = vpop.xlane.xlu0 %1315 }
 0x329   : > { %v3570_v29 = vpop.eup %2823 }
 0x32a   : > { %v967_v61 = vsel %vm546_vm4, %v3570_v29, 0.0 }
 0x32b   : > { %962 = vadd.xlane.f32.xlu1 %v961_v37  ;;  %v1322_v54 = vpop.xlane.xlu0 %1321  ;;  %v1330_v37 = vmul.f32 1.442695, %v1323_v36 }
 0x32c   : > { %v1329_v43 = vsub.f32 %v3441_v13, %v1322_v54 }
 0x32d   : > { %v3576_v42 = vpop.eup %2825  ;;  %2829 = vpow2.f32 %v1330_v37 }
 0x32e   : > { %v973_v15 = vsel %vm565_vm5, %v3576_v42, 0.0  ;;  %2831 = vpow2.f32 %v1334_v4  ;;  %v3588_v45 = vpop.eup %2827 }
 0x32f   : > { %v1690_v20 = vpop.xlane.xlu0 %1689 }
 0x33a   : > { %v3594_v36 = vpop.eup %2829 }
 0x33b   : > { %965 = vadd.xlane.f32.xlu0 %v964_v3  ;;  %v1344_v5 = vsel %vm546_vm4, %v3594_v36, 0.0  ;;  %v3600_v8 = vpop.eup %2831 }
 0x33c   : > { %1770 = vrot.lane.b32.xlu1 %v3068_v52, %s2929_s17  ;;  %v1313_v52 = vpop.xlane.xlu1 %1312 }
 0x33f   : > { %968 = vadd.xlane.f32.xlu0 %v967_v61  ;;  %v1693_v61 = vpop.xlane.xlu0 %1692 }
 0x340   : > { %v1319_v3 = vpop.xlane.xlu1 %1318  ;;  %v1708_v4 = vsub.f32 %v3461_v33, %v1693_v61 }
 0x341   : > { %v1328_v26 = vsub.f32 %v3445_v17, %v1319_v3  ;;  %v970_v17 = vsel %vm546_vm4, %v3588_v45, 0.0 }
 0x343   : > { %974 = vadd.xlane.f32.xlu0 %v973_v15  ;;  %v1326_v15 = vsub.f32 %v3437_v10, %v1313_v52  ;;  %v1696_v60 = vpop.xlane.xlu0 %1695  ;;  %v1340_v35 = vmul.f32 1.442695, %v1328_v26 }
 0x344   : > { %v1687_v50 = vpop.xlane.xlu1 %1686  ;;  %v1709_v52 = vsub.f32 %v3465_v39, %v1696_v60  ;;  %v1342_v39 = vmul.f32 1.442695, %v1329_v43 }
 0x345   : > { %v1336_v28 = vmul.f32 1.442695, %v1326_v15  ;;  %v1706_v32 = vsub.f32 %v3449_v21, %v1687_v50  ;;  %v1717_v21 = vmul.f32 1.442695, %v1708_v4  ;;  %v1707_v15 = vsub.f32 %v3453_v24, %v1690_v20 }
 0x346   : > { %v1719_v3 = vmul.f32 1.442695, %v1709_v52 }
 0x347   : > { %2833 = vpow2.f32 %v1336_v28  ;;  %v1699_v34 = vpop.xlane.xlu0 %1698  ;;  %v1713_v10 = vmul.f32 1.442695, %v1706_v32  ;;  %v1332_v28 = vmul.f32 1.442695, %v1324_v63 }
 0x348   : > { %2835 = vpow2.f32 %v1340_v35  ;;  %v1710_v54 = vsub.f32 %v3471_v47, %v1699_v34 }
 0x349   : > { %2837 = vpow2.f32 %v1713_v10 }
 0x34a   : > { %2839 = vpow2.f32 %v1332_v28  ;;  %v1721_v63 = vmul.f32 1.442695, %v1710_v54 }
 0x34b   : > { %v1702_v37 = vpop.xlane.xlu0 %1701  ;;  %2841 = vpow2.f32 %v1717_v21 }
 0x34f   : > { %v1705_v24 = vpop.xlane.xlu0 %1704 }
 0x350   : > { %v1712_v47 = vsub.f32 %v3483_v7, %v1705_v24 }
 0x354   : > { %v3606_v61 = vpop.eup %2833 }
 0x355   : > { %v1353_v50 = vsel %vm546_vm4, %v3606_v61, 0.0  ;;  %v3611_v13 = vpop.eup %2835 }
 0x356   : > { %v1359_v35 = vsel %vm546_vm4, %v3611_v13, 0.0  ;;  %v3616_v32 = vpop.eup %2837 }
 0x357   : > { %v3618_v20 = vpop.eup %2839  ;;  %v1727_v4 = vsel %vm546_vm4, %v3616_v32, 0.0 }
 0x358   : > { %v1347_v28 = vsel %vm546_vm4, %v3618_v20, 0.0 }
 0x359   : > { %1766 = vrot.lane.b32.xlu0 %v3082_v55, %s2929_s17  ;;  %v1327_v55 = vsub.f32 %v3429_v0, %v1316_v6  ;;  %v1711_v0 = vsub.f32 %v3477_v62, %v1702_v37  ;;  %v1350_v6 = vsel %vm546_vm4, %v3600_v8, 0.0  ;;  %v1715_v62 = vmul.f32 1.442695, %v1707_v15 }
 0x35b   : > { %v1338_v33 = vmul.f32 1.442695, %v1327_v55  ;;  %v1723_v26 = vmul.f32 1.442695, %v1711_v0 }
 0x35d   : > { %2843 = vpow2.f32 %v1338_v33 }
 0x35e   : > { %2845 = vpow2.f32 %v1719_v3 }
 0x35f   : > { %2847 = vpow2.f32 %v1342_v39 }
 0x360   : > { %971 = vadd.xlane.f32.xlu1 %v970_v17  ;;  %2849 = vpow2.f32 %v1723_v26  ;;  %v3622_v17 = vpop.eup %2841 }
 0x361   : > { %v1733_v21 = vsel %vm546_vm4, %v3622_v17, 0.0 }
 0x364   : > { %1345 = vadd.xlane.f32.xlu1 %v1344_v5  ;;  %v1725_v5 = vmul.f32 1.442695, %v1712_v47 }
 0x368   : > { %1351 = vadd.xlane.f32.xlu1 %v1350_v6 }
 0x36a   : > { %v3625_v34 = vpop.eup %2843 }
 0x36b   : > { %v3631_v52 = vpop.eup %2845  ;;  %v1356_v7 = vsel %vm546_vm4, %v3625_v34, 0.0 }
 0x36c   : > { %1354 = vadd.xlane.f32.xlu1 %v1353_v50  ;;  %v3633_v37 = vpop.eup %2847  ;;  %v1736_v33 = vsel %vm546_vm4, %v3631_v52, 0.0  ;;  %v3966_v50 = vmov 0.0  }
 0x36d   : > { %v3639_v43 = vpop.eup %2849  ;;  %v1362_v6 = vsel %vm565_vm5, %v3633_v37, 0.0 }
 0x36e   : > { %v1742_v15 = vsel %vm546_vm4, %v3639_v43, 0.0 }
 0x36f   : > { %v592_v60 = vpop.xlane.xlu1 %591 }
 0x370   : > { %2851 = vrcp.f32 %v592_v60  ;;  %1360 = vadd.xlane.f32.xlu1 %v1359_v35 }
 0x371   : > { %2853 = vpow2.f32 %v1715_v62 }
 0x373   : > { %v595_v10 = vpop.xlane.xlu1 %594 }
 0x374   : > { %2855 = vrcp.f32 %v595_v10  ;;  %1728 = vadd.xlane.f32.xlu1 %v1727_v4 }
 0x375   : > { %2857 = vpow2.f32 %v1721_v63 }
 0x377   : > { %v598_v55 = vpop.xlane.xlu1 %597 }
 0x378   : > { %2859 = vrcp.f32 %v598_v55  ;;  %1348 = vadd.xlane.f32.xlu0 %v1347_v28  ;;  %1734 = vadd.xlane.f32.xlu1 %v1733_v21 }
 0x379   : > { %2861 = vpow2.f32 %v1725_v5 }
 0x37c   : > { %1357 = vadd.xlane.f32.xlu0 %v1356_v7  ;;  %1737 = vadd.xlane.f32.xlu1 %v1736_v33 }
 0x37d   : > { %v2852_v3 = vpop.eup %2851 }
 0x37e   : > { %v612_v0 = vmul.f32 %v2852_v3, %v3512_v56  ;;  %v3644_v39 = vpop.eup %2853 }
 0x37f   : > { %v1730_v54 = vsel %vm546_vm4, %v3644_v39, 0.0 }
 0x380   : > { %2500 = vmatmul.mubr.msk.f32.vlgmr.msra.gmra.mxu0 %vm546_vm4, %v612_v0  ;;  %1363 = vadd.xlane.f32.xlu0 %v1362_v6 }
 0x381   : > { %v2856_v26 = vpop.eup %2855  ;;  %2556 = vmatpush3.msk.msra.mxu0 %vm646_vm1, %v3501_v23  ;;  %1743 = vadd.xlane.f32.xlu1 %v1742_v15 }
 0x382   : > { %2557 = vmatprep.subr.mxu0 %v3966_v50  ;;  %2502 = vmatprep.mubr.msk.f32.mxu0 %vm2924_vm2, %v3966_v50  ;;  %v614_v56 = vmul.f32 %v2856_v26, %v3516_v46  ;;  %v3656_v62 = vpop.eup %2857 }
 0x383   : > { %2558 = vmatpush3.msra.mxu0 %v3459_v31  ;;  %v1739_v46 = vsel %vm546_vm4, %v3656_v62, 0.0 }
 0x384   : > { %2559 = vmatprep.subr.mxu0 %v3966_v50  ;;  %2503 = vmatmul.mubr.msk.f32.gmra.mxu0 %vm546_vm4, %v614_v56 }
 0x385   : > { %v2860_v23 = vpop.eup %2859  ;;  %2560 = vmatpush3.msra.mxu0 %v3479_v1  ;;  %1731 = vadd.xlane.f32.xlu0 %v1730_v54 }
 0x386   : > { %2561 = vmatprep.subr.mxu0 %v3966_v50  ;;  %2505 = vmatprep.mubr.msk.f32.mxu0 %vm2924_vm2, %v3966_v50  ;;  %v616_v31 = vmul.f32 %v2860_v23, %v3521_v12  ;;  %v3672_v60 = vpop.eup %2861 }
 0x387   : > { %2562 = vmatpush3.msra.mxu0 %v3467_v41  ;;  %v1745_v41 = vsel %vm565_vm5, %v3672_v60, 0.0 }
 0x388   : > { %2563 = vmatprep.subr.mxu0 %v3966_v50  ;;  %2506 = vmatmul.mubr.msk.f32.gmra.mxu0 %vm546_vm4, %v616_v31 }
 0x389   : > { %2564 = vmatpush3.msra.mxu0 %v3475_v59  ;;  %1740 = vadd.xlane.f32.xlu0 %v1739_v46 }
 0x38a   : > { %2565 = vmatprep.subr.mxu0 %v3966_v50  ;;  %2508 = vmatprep.mubr.msk.f32.mxu0 %vm2924_vm2, %v3966_v50 }
 0x38b   : > { %2566 = vmatpush3.msra.mxu0 %v3489_v14  ;;  %v610_v14 = vpop.xlane.xlu0 %609 }
 0x38c   : > { %2567 = vmatprep.subr.mxu0 %v3966_v50 }
 0x38d   : > { %2568 = vmatpush3.msra.mxu0 %v3485_v11  ;;  %1746 = vadd.xlane.f32.xlu0 %v1745_v41 }
 0x38e   : > { %2625 = vmatprep.subr.mxu0 %v3966_v50 }
 0x38f   : > { %v960_v63 = vpop.xlane.xlu0 %959 }
 0x392   : > { %1764 = vrot.lane.b32.xlu1 %v3092_v57, %s2929_s17 }
 0x3a3   : > { %1762 = vrot.lane.b32.xlu0 %v3096_v58, %s2929_s17 }
 0x3a4   : > { %v601_v59 = vpop.xlane.xlu1 %600 }
 0x3a5   : > { %2863 = vrcp.f32 %v601_v59 }
 0x3a8   : > { %v604_v1 = vpop.xlane.xlu1 %603 }
 0x3a9   : > { %2865 = vrcp.f32 %v604_v1 }
 0x3ac   : > { %v607_v12 = vpop.xlane.xlu1 %606 }
 0x3ad   : > { %2867 = vrcp.f32 %v607_v12 }
 0x3ae   : > { %2869 = vrcp.f32 %v610_v14 }
 0x3b0   : > { %v957_v35 = vpop.xlane.xlu1 %956 }
 0x3b1   : > { %2871 = vrcp.f32 %v957_v35 }
 0x3b2   : > { %v2864_v24 = vpop.eup %2863  ;;  %2873 = vrcp.f32 %v960_v63 }
 0x3b3   : > { %v618_v11 = vmul.f32 %v2864_v24, %v3541_v48 }
 0x3b4   : > { %v963_v10 = vpop.xlane.xlu1 %962 }
 0x3b5   : > { %2509 = vmatmul.mubr.msk.f32.gmra.mxu0 %vm546_vm4, %v618_v11  ;;  %2875 = vrcp.f32 %v963_v10 }
 0x3b6   : > { %v2866_v57 = vpop.eup %2865  ;;  %2511 = vmatprep.mubr.msk.f32.mxu0 %vm2924_vm2, %v3966_v50 }
 0x3b7   : > { %v620_v58 = vmul.f32 %v2866_v57, %v3545_v53  ;;  %v3701_v53 = vpop.permute.xlu0 %1768 }
 0x3b9   : > { %2512 = vmatmul.mubr.msk.f32.gmra.mxu0 %vm546_vm4, %v620_v58 }
 0x3ba   : > { %v2868_v4 = vpop.eup %2867  ;;  %2514 = vmatprep.mubr.msk.f32.mxu0 %vm2924_vm2, %v3966_v50 }
 0x3bb   : > { %v622_v48 = vmul.f32 %v2868_v4, %v3551_v38  ;;  %v2870_v47 = vpop.eup %2869 }
 0x3bc   : > { %v624_v55 = vmul.f32 %v2870_v47, %v3526_v40 }
 0x3bd   : > { %2515 = vmatmul.mubr.msk.f32.gmra.mxu0 %vm546_vm4, %v622_v48 }
 0x3be   : > { %2517 = vmatprep.mubr.msk.f32.mxu0 %vm2924_vm2, %v3966_v50  ;;  %v2872_v28 = vpop.eup %2871 }
 0x3bf   : > { %v977_v21 = vmul.f32 %v2872_v28, %v3556_v51  ;;  %v2874_v5 = vpop.eup %2873 }
 0x3c0   : > { %v979_v40 = vmul.f32 %v2874_v5, %v3532_v44 }
 0x3c1   : > { %2518 = vmatmul.mubr.msk.f32.gmra.mxu0 %vm546_vm4, %v624_v55 }
 0x3c2   : > { %2569 = vmatprep.mubr.msk.f32.mxu0 %vm2924_vm2, %v3966_v50  ;;  %v2876_v7 = vpop.eup %2875 }
 0x3c4   : > { %v966_v38 = vpop.xlane.xlu0 %965 }
 0x3c5   : > { %2877 = vrcp.f32 %v966_v38  ;;  %2570 = vmatmul.mubr.msk.f32.vlgmr.msra.gmra.mxu0 %vm546_vm4, %v977_v21 }
 0x3c6   : > { %2626 = vmatpush3.msk.msra.mxu0 %vm646_vm1, %v3505_v27  ;;  %2572 = vmatprep.mubr.msk.f32.mxu0 %vm2924_vm2, %v3966_v50  ;;  %v981_v27 = vmul.f32 %v2876_v7, %v3561_v30 }
 0x3c7   : > { %2627 = vmatprep.subr.mxu0 %v3966_v50 }
 0x3c8   : > { %2628 = vmatpush3.msra.mxu0 %v3491_v16  ;;  %v969_v33 = vpop.xlane.xlu0 %968 }
 0x3c9   : > { %2629 = vmatprep.subr.mxu0 %v3966_v50  ;;  %2879 = vrcp.f32 %v969_v33  ;;  %2573 = vmatmul.mubr.msk.f32.gmra.mxu0 %vm546_vm4, %v979_v40 }
 0x3ca   : > { %2630 = vmatpush3.msra.mxu0 %v3493_v49  ;;  %2575 = vmatprep.mubr.msk.f32.mxu0 %vm2924_vm2, %v3966_v50 }
 0x3cb   : > { %2631 = vmatprep.subr.mxu0 %v3966_v50 }
 0x3cc   : > { %2632 = vmatpush3.msra.mxu0 %v3495_v18  ;;  %v975_v44 = vpop.xlane.xlu0 %974 }
 0x3cd   : > { %2633 = vmatprep.subr.mxu0 %v3966_v50  ;;  %2576 = vmatmul.mubr.msk.f32.gmra.mxu0 %vm546_vm4, %v981_v27 }
 0x3ce   : > { %2634 = vmatpush3.msra.mxu0 %v3499_v22  ;;  %2578 = vmatprep.mubr.msk.f32.mxu0 %vm2924_vm2, %v3966_v50 }
 0x3cf   : > { %2635 = vmatprep.subr.mxu0 %v3966_v50 }
 0x3d0   : > { %2636 = vmatpush3.msra.mxu0 %v3497_v19  ;;  %v1771_v19 = vpop.permute.xlu1 %1770  ;;  %v1767_v56 = vpop.permute.xlu0 %1766 }
 0x3d1   : > { %2637 = vmatprep.subr.mxu0 %v3966_v50 }
 0x3d2   : > { %v2878_v16 = vpop.eup %2877  ;;  %2638 = vmatpush3.msra.mxu0 %v3503_v25 }
 0x3d3   : > { %v983_v49 = vmul.f32 %v2878_v16, %v3566_v2  ;;  %2695 = vmatprep.subr.mxu0 %v3966_v50 }
 0x3d5   : > { %2579 = vmatmul.mubr.msk.f32.gmra.mxu0 %vm546_vm4, %v983_v49 }
 0x3d6   : > { %v2880_v18 = vpop.eup %2879  ;;  %2581 = vmatprep.mubr.msk.f32.mxu0 %vm2924_vm2, %v3966_v50 }
 0x3d7   : > { %v985_v22 = vmul.f32 %v2880_v18, %v3570_v29 }
 0x3d9   : > { %2582 = vmatmul.mubr.msk.f32.gmra.mxu0 %vm546_vm4, %v985_v22 }
 0x3da   : > { %2584 = vmatprep.mubr.msk.f32.mxu0 %vm2924_vm2, %v3966_v50 }
 0x3e9   : > { %v972_v25 = vpop.xlane.xlu1 %971 }
 0x3ea   : > { %2881 = vrcp.f32 %v972_v25 }
 0x3eb   : > { %2883 = vrcp.f32 %v975_v44 }
 0x3ed   : > { %v1346_v51 = vpop.xlane.xlu1 %1345 }
 0x3ee   : > { %2885 = vrcp.f32 %v1346_v51 }
 0x3f1   : > { %v1352_v30 = vpop.xlane.xlu1 %1351 }
 0x3f5   : > { %v1355_v2 = vpop.xlane.xlu1 %1354 }
 0x3f7   : > { %v2882_v3 = vpop.eup %2881 }
 0x3f8   : > { %v987_v0 = vmul.f32 %v2882_v3, %v3588_v45  ;;  %v2884_v6 = vpop.eup %2883 }
 0x3f9   : > { %v1361_v15 = vpop.xlane.xlu1 %1360  ;;  %v989_v29 = vmul.f32 %v2884_v6, %v3576_v42  ;;  %v3967_v42 = vld [vmem:[#allocation2_spill] sm:$0xff] }
 0x3fa   : > { %2585 = vmatmul.mubr.msk.f32.gmra.mxu0 %vm546_vm4, %v987_v0 }
 0x3fb   : > { %2587 = vmatprep.mubr.msk.f32.mxu0 %vm2924_vm2, %v3966_v50  ;;  %v2886_v26 = vpop.eup %2885 }
 0x3fc   : > { %v1366_v23 = vmul.f32 %v2886_v26, %v3594_v36 }
 0x3fd   : > { %v1729_v54 = vpop.xlane.xlu1 %1728 }
 0x3fe   : > { %2588 = vmatmul.mubr.msk.f32.gmra.mxu0 %vm546_vm4, %v989_v29 }
 0x3ff   : > { %2639 = vmatprep.mubr.msk.f32.mxu0 %vm2924_vm2, %v3966_v50 }
 0x401   : > { %v1735_v45 = vpop.xlane.xlu1 %1734  ;;  %v1349_v31 = vpop.xlane.xlu0 %1348 }
 0x402   : > { %2640 = vmatmul.mubr.msk.f32.vlgmr.msra.gmra.mxu0 %vm546_vm4, %v1366_v23  ;;  %2887 = vrcp.f32 %v1349_v31 }
 0x403   : > { %2696 = vmatpush3.msk.msra.mxu0 %vm646_vm1, %v3530_v9  ;;  %2642 = vmatprep.mubr.msk.f32.mxu0 %vm2924_vm2, %v3966_v50  ;;  %2889 = vrcp.f32 %v1352_v30 }
 0x404   : > { %2697 = vmatprep.subr.mxu0 %v3966_v50  ;;  %2891 = vrcp.f32 %v1355_v2 }
 0x405   : > { %2698 = vmatpush3.msra.mxu0 %v3967_v42  ;;  %v1738_v46 = vpop.xlane.xlu1 %1737  ;;  %v1358_v41 = vpop.xlane.xlu0 %1357 }
 0x406   : > { %2699 = vmatprep.subr.mxu0 %v3966_v50  ;;  %2893 = vrcp.f32 %v1358_v41 }
 0x407   : > { %2700 = vmatpush3.msra.mxu0 %v1771_v19  ;;  %2895 = vrcp.f32 %v1361_v15 }
 0x408   : > { %2701 = vmatprep.subr.mxu0 %v3966_v50 }
 0x409   : > { %2702 = vmatpush3.msra.mxu0 %v3701_v53  ;;  %v1364_v36 = vpop.xlane.xlu0 %1363 }
 0x40a   : > { %v1744_v9 = vpop.xlane.xlu1 %1743  ;;  %2703 = vmatprep.subr.mxu0 %v3966_v50  ;;  %2897 = vrcp.f32 %v1364_v36  ;;  %v2019_v36 = vld [vmem:[%s3960_s3 + $0x38] sm:$0xff] }
 0x40b   : > { %2704 = vmatpush3.msra.mxu0 %v1767_v56  ;;  %2899 = vrcp.f32 %v1729_v54  ;;  %2775 = vmatpush3.msra.mxu1 %v2019_v36 }
 0x40c   : > { %2705 = vmatprep.subr.mxu0 %v3966_v50  ;;  %2768 = vmatprep.subr.mxu1 %v3966_v50 }
 0x40e   : > { %v1765_v59 = vpop.permute.xlu1 %1764  ;;  %v1732_v1 = vpop.xlane.xlu0 %1731 }
 0x40f   : > { %2706 = vmatpush3.msra.mxu0 %v1765_v59  ;;  %v2888_v14 = vpop.eup %2887  ;;  %2901 = vrcp.f32 %v1732_v1  ;;  %v2017_v59 = vld [vmem:[%s3960_s3 + $0x28] sm:$0xff] }
 0x410   : > { %2707 = vmatprep.subr.mxu0 %v3966_v50  ;;  %v1368_v12 = vmul.f32 %v2888_v14, %v3618_v20  ;;  %v2890_v35 = vpop.eup %2889  ;;  %2903 = vrcp.f32 %v1735_v45  ;;  %v2016_v14 = vld [vmem:[%s3960_s3 + $0x20] sm:$0xff] }
 0x411   : > { %v1370_v11 = vmul.f32 %v2890_v35, %v3600_v8  ;;  %v2892_v63 = vpop.eup %2891  ;;  %2905 = vrcp.f32 %v1738_v46 }
 0x412   : > { %v1741_v24 = vpop.xlane.xlu0 %1740  ;;  %2643 = vmatmul.mubr.msk.f32.gmra.mxu0 %vm546_vm4, %v1368_v12  ;;  %v1372_v20 = vmul.f32 %v2892_v63, %v3606_v61 }
 0x413   : > { %2645 = vmatprep.mubr.msk.f32.mxu0 %vm2924_vm2, %v3966_v50  ;;  %v2894_v58 = vpop.eup %2893  ;;  %2907 = vrcp.f32 %v1741_v24  ;;  %v2015_v24 = vld [vmem:[%s3960_s3 + $0x18] sm:$0xff] }
 0x414   : > { %v1374_v8 = vmul.f32 %v2894_v58, %v3625_v34  ;;  %v2896_v4 = vpop.eup %2895  ;;  %2909 = vrcp.f32 %v1744_v9  ;;  %v2018_v9 = vld [vmem:[%s3960_s3 + $0x30] sm:$0xff]  ;;  %v2012_v58 = vld [vmem:[%s3960_s3] sm:$0xff] }
 0x415   : > { %v1376_v61 = vmul.f32 %v2896_v4, %v3611_v13  ;;  %2776 = vmatpush3.msra.mxu1 %v2018_v9 }
 0x416   : > { %v1747_v57 = vpop.xlane.xlu0 %1746  ;;  %2646 = vmatmul.mubr.msk.f32.gmra.mxu0 %vm546_vm4, %v1370_v11  ;;  %2769 = vmatprep.subr.mxu1 %v3966_v50  ;;  %v2014_v11 = vld [vmem:[%s3960_s3 + $0x10] sm:$0xff] }
 0x417   : > { %2648 = vmatprep.mubr.msk.f32.mxu0 %vm2924_vm2, %v3966_v50  ;;  %v2898_v48 = vpop.eup %2897  ;;  %2911 = vrcp.f32 %v1747_v57  ;;  %2777 = vmatpush3.msra.mxu1 %v2017_v59  ;;  %v2013_v57 = vld [vmem:[%s3960_s3 + $0x8] sm:$0xff] }
 0x418   : > { %v1378_v34 = vmul.f32 %v2898_v48, %v3633_v37  ;;  %v2900_v47 = vpop.eup %2899  ;;  %2770 = vmatprep.subr.mxu1 %v3966_v50 }
 0x419   : > { %v1749_v55 = vmul.f32 %v2900_v47, %v3616_v32  ;;  %2778 = vmatpush3.msra.mxu1 %v2016_v14 }
 0x41a   : > { %v1763_v10 = vpop.permute.xlu0 %1762  ;;  %2649 = vmatmul.mubr.msk.f32.gmra.mxu0 %vm546_vm4, %v1372_v20  ;;  %2771 = vmatprep.subr.mxu1 %v3966_v50 }
 0x41b   : > { %2708 = vmatpush3.msra.mxu0 %v1763_v10  ;;  %2651 = vmatprep.mubr.msk.f32.mxu0 %vm2924_vm2, %v3966_v50 }
 0x41c   : > { %2730 = vmatprep.subr.mxu0 %v3966_v50  ;;  %v2902_v28 = vpop.eup %2901  ;;  %2779 = vmatpush3.msra.mxu1 %v2015_v24 }
 0x41d   : > { %v1751_v13 = vmul.f32 %v2902_v28, %v3644_v39  ;;  %v2904_v53 = vpop.eup %2903  ;;  %2772 = vmatprep.subr.mxu1 %v3966_v50 }
 0x41e   : > { %2652 = vmatmul.mubr.msk.f32.gmra.mxu0 %vm546_vm4, %v1374_v8  ;;  %v1753_v37 = vmul.f32 %v2904_v53, %v3622_v17  ;;  %v2906_v32 = vpop.eup %2905  ;;  %2780 = vmatpush3.msra.mxu1 %v2014_v11 }
 0x41f   : > { %2654 = vmatprep.mubr.msk.f32.mxu0 %vm2924_vm2, %v3966_v50  ;;  %v1755_v21 = vmul.f32 %v2906_v32, %v3631_v52  ;;  %2773 = vmatprep.subr.mxu1 %v3966_v50 }
 0x420   : > { %v2908_v5 = vpop.eup %2907  ;;  %2781 = vmatpush3.msra.mxu1 %v2013_v57 }
 0x421   : > { %v1757_v39 = vmul.f32 %v2908_v5, %v3656_v62  ;;  %v2910_v38 = vpop.eup %2909  ;;  %2774 = vmatprep.subr.mxu1 %v3966_v50 }
 0x422   : > { %2655 = vmatmul.mubr.msk.f32.gmra.mxu0 %vm546_vm4, %v1376_v61  ;;  %v1759_v17 = vmul.f32 %v2910_v38, %v3639_v43  ;;  %2782 = vmatpush3.msra.mxu1 %v2012_v58 }
 0x423   : > { %2657 = vmatprep.mubr.msk.f32.mxu0 %vm2924_vm2, %v3966_v50 }
 0x424   : > { %v2912_v40 = vpop.eup %2911 }
 0x425   : > { %v1761_v7 = vmul.f32 %v2912_v40, %v3672_v60 }
 0x426   : > { %2658 = vmatmul.mubr.msk.f32.gmra.mxu0 %vm546_vm4, %v1378_v34 }
 0x427   : > { %2709 = vmatprep.mubr.msk.f32.mxu0 %vm2924_vm2, %v3966_v50 }
 0x42a   : > { %2710 = vmatmul.mubr.msk.f32.vlgmr.msra.gmra.mxu0 %vm546_vm4, %v1749_v55 }
 0x42b   : > { %2712 = vmatprep.mubr.msk.f32.mxu0 %vm2924_vm2, %v3966_v50  ;;  %2731 = vmatpush3.msra.mxu0 %v2019_v36 }
 0x42c   : > { %2732 = vmatprep.subr.mxu0 %v3966_v50 }
 0x42d   : > { %2733 = vmatpush3.msra.mxu0 %v2018_v9 }
 0x42e   : > { %2713 = vmatmul.mubr.msk.f32.gmra.mxu0 %vm546_vm4, %v1751_v13  ;;  %2734 = vmatprep.subr.mxu0 %v3966_v50 }
 0x42f   : > { %2715 = vmatprep.mubr.msk.f32.mxu0 %vm2924_vm2, %v3966_v50  ;;  %2735 = vmatpush3.msra.mxu0 %v2017_v59 }
 0x430   : > { %2736 = vmatprep.subr.mxu0 %v3966_v50 }
 0x431   : > { %2737 = vmatpush3.msra.mxu0 %v2016_v14 }
 0x432   : > { %2716 = vmatmul.mubr.msk.f32.gmra.mxu0 %vm546_vm4, %v1753_v37  ;;  %2738 = vmatprep.subr.mxu0 %v3966_v50 }
 0x433   : > { %2718 = vmatprep.mubr.msk.f32.mxu0 %vm2924_vm2, %v3966_v50  ;;  %2739 = vmatpush3.msra.mxu0 %v2015_v24 }
 0x434   : > { %2740 = vmatprep.subr.mxu0 %v3966_v50 }
 0x435   : > { %2741 = vmatpush3.msra.mxu0 %v2014_v11 }
 0x436   : > { %2719 = vmatmul.mubr.msk.f32.gmra.mxu0 %vm546_vm4, %v1755_v21  ;;  %2742 = vmatprep.subr.mxu0 %v3966_v50 }
 0x437   : > { %2721 = vmatprep.mubr.msk.f32.mxu0 %vm2924_vm2, %v3966_v50  ;;  %2743 = vmatpush3.msra.mxu0 %v2013_v57 }
 0x438   : > { %2744 = vmatprep.subr.mxu0 %v3966_v50 }
 0x439   : > { %2745 = vmatpush3.msra.mxu0 %v2012_v58 }
 0x43a   : > { %2722 = vmatmul.mubr.msk.f32.gmra.mxu0 %vm546_vm4, %v1757_v39 }
 0x43b   : > { %2724 = vmatprep.mubr.msk.f32.mxu0 %vm2924_vm2, %v3966_v50 }
 0x43e   : > { %2725 = vmatmul.mubr.msk.f32.gmra.mxu0 %vm546_vm4, %v1759_v17 }
 0x43f   : > { %2727 = vmatprep.mubr.msk.f32.mxu0 %vm2924_vm2, %v3966_v50 }
 0x440   : > { %v3810_v52 = vpop.f32.mrf.mxu0 }
 0x442   : > { %v2501_v33 = vpop.f32.mrf.mxu0  ;;  %2728 = vmatmul.mubr.msk.f32.gmra.mxu0 %vm546_vm4, %v1761_v7 }
 0x443   : > { %2746 = vmatprep.mubr.msk.f32.mxu0 %vm2924_vm2, %v3966_v50 }
 0x444   : > { %v3816_v62 = vpop.f32.mrf.mxu0 }
 0x446   : > { %v2504_v27 = vpop.f32.mrf.mxu0 }
 0x448   : > { %v3820_v43 = vpop.f32.mrf.mxu0 }
 0x44a   : > { %v2507_v16 = vpop.f32.mrf.mxu0 }
 0x475   : > { %v3822_v49 = vpop.f32.mrf.mxu0 }
 0x477   : > { %v2510_v18 = vpop.f32.mrf.mxu0 }
 0x479   : > { %v3824_v22 = vpop.f32.mrf.mxu0 }
 0x47b   : > { %v2513_v19 = vpop.f32.mrf.mxu0 }
 0x47d   : > { %v3826_v44 = vpop.f32.mrf.mxu0 }
 0x47f   : > { %v2516_v60 = vpop.f32.mrf.mxu0 }
 0x481   : > { %v3828_v25 = vpop.f32.mrf.mxu0 }
 0x483   : > { %v2519_v51 = vpop.f32.mrf.mxu0 }
 0x485   : > { %v3830_v30 = vpop.f32.mrf.mxu0 }
 0x487   : > { %v2571_v2 = vpop.f32.mrf.mxu0 }
 0x489   : > { %v1110_v3 = vpop.f32.mrf.mxu0 }
 0x48a   : > { %1914 = vrot.lane.b32.xlu1 %v1110_v3, %s2927_s14 }
 0x48b   : > { %v2574_v0 = vpop.f32.mrf.mxu0 }
 0x48d   : > { %v1115_v6 = vpop.f32.mrf.mxu0 }
 0x48e   : > { %1916 = vrot.lane.b32.xlu1 %v1115_v6, %s2927_s14 }
 0x48f   : > { %v2577_v15 = vpop.f32.mrf.mxu0 }
 0x495   : > { %v1120_v29 = vpop.f32.mrf.mxu0 }
 0x496   : > { %1918 = vrot.lane.b32.xlu0 %v1120_v29, %s2927_s14 }
 0x497   : > { %v2580_v26 = vpop.f32.mrf.mxu0 }
 0x499   : > { %v1125_v56 = vpop.f32.mrf.mxu0 }
 0x49a   : > { %1920 = vrot.lane.b32.xlu1 %v1125_v56, %s2927_s14 }
 0x49b   : > { %v2583_v54 = vpop.f32.mrf.mxu0 }
 0x4ba   : > { %v1130_v23 = vpop.f32.mrf.mxu0 }
 0x4bb   : > { %1922 = vrot.lane.b32.xlu0 %v1130_v23, %s2927_s14 }
 0x4bc   : > { %v2586_v45 = vpop.f32.mrf.mxu0 }
 0x4be   : > { %v1135_v31 = vpop.f32.mrf.mxu0 }
 0x4c0   : > { %v2589_v42 = vpop.f32.mrf.mxu0 }
 0x4c2   : > { %v3837_v46 = vpop.f32.mrf.mxu0 }
 0x4c4   : > { %v2641_v41 = vpop.f32.mrf.mxu0 }
 0x4d2   : > { %v1493_v1 = vpop.f32.mrf.mxu0 }
 0x4d3   : > { %1942 = vrot.lane.b32.xlu1 %v1493_v1, %s2925_s12 }
 0x4d4   : > { %v2644_v12 = vpop.f32.mrf.mxu0 }
 0x4d6   : > { %v1498_v35 = vpop.f32.mrf.mxu0 }
 0x4d7   : > { %1944 = vrot.lane.b32.xlu0 %v1498_v35, %s2925_s12 }
 0x4d8   : > { %v2647_v63 = vpop.f32.mrf.mxu0 }
 0x4da   : > { %v1503_v20 = vpop.f32.mrf.mxu0 }
 0x4db   : > { %1946 = vrot.lane.b32.xlu1 %v1503_v20, %s2925_s12 }
 0x4dc   : > { %v2650_v10 = vpop.f32.mrf.mxu0 }
 0x4de   : > { %v1508_v8 = vpop.f32.mrf.mxu0 }
 0x4df   : > { %1948 = vrot.lane.b32.xlu0 %v1508_v8, %s2925_s12 }
 0x4e0   : > { %v2653_v4 = vpop.f32.mrf.mxu0 }
 0x4e2   : > { %v1513_v61 = vpop.f32.mrf.mxu0 }
 0x4e3   : > { %1924 = vrot.lane.b32.xlu0 %v1135_v31, %s2927_s14  ;;  %1950 = vrot.lane.b32.xlu1 %v1513_v61, %s2925_s12 }
 0x4e4   : > { %v2656_v48 = vpop.f32.mrf.mxu0 }
 0x4e6   : > { %v1518_v34 = vpop.f32.mrf.mxu0 }
 0x4e8   : > { %v2659_v47 = vpop.f32.mrf.mxu0 }
 0x4ea   : > { %v1871_v55 = vpop.f32.mrf.mxu0 }
 0x4ec   : > { %v2711_v28 = vpop.f32.mrf.mxu0 }
 0x4ee   : > { %v1876_v13 = vpop.f32.mrf.mxu0 }
 0x4ef   : > { %1970 = vrot.lane.b32.xlu1 %v1876_v13, %s2923_s11 }
 0x4f0   : > { %v2714_v53 = vpop.f32.mrf.mxu0 }
 0x4f2   : > { %v1881_v37 = vpop.f32.mrf.mxu0 }
 0x4f3   : > { %1972 = vrot.lane.b32.xlu1 %v1881_v37, %s2923_s11 }
 0x4f4   : > { %v2717_v32 = vpop.f32.mrf.mxu0 }
 0x4f6   : > { %v1886_v21 = vpop.f32.mrf.mxu0 }
 0x4f7   : > { %1912 = vrot.lane.b32.xlu1 %v3830_v30, %s2927_s14  ;;  %1974 = vrot.lane.b32.xlu0 %v1886_v21, %s2923_s11 }
 0x4f8   : > { %v2720_v5 = vpop.f32.mrf.mxu0 }
 0x4fa   : > { %v1891_v39 = vpop.f32.mrf.mxu0 }
 0x4fb   : > { %1952 = vrot.lane.b32.xlu0 %v1518_v34, %s2925_s12  ;;  %1976 = vrot.lane.b32.xlu1 %v1891_v39, %s2923_s11 }
 0x4fc   : > { %v2723_v38 = vpop.f32.mrf.mxu0  ;;  %v1915_v27 = vpop.permute.xlu1 %1914 }
 0x4fd   : > { %v1990_v6 = vsel %vm410_vm3, %v3816_v62, %v1915_v27 }
 0x4fe   : > { %v1896_v17 = vpop.f32.mrf.mxu0 }
 0x4ff   : > { %1940 = vrot.lane.b32.xlu1 %v3837_v46, %s2925_s12  ;;  %1978 = vrot.lane.b32.xlu0 %v1896_v17, %s2923_s11 }
 0x500   : > { %v2726_v40 = vpop.f32.mrf.mxu0  ;;  %v1917_v16 = vpop.permute.xlu1 %1916 }
 0x501   : > { %v1991_v56 = vsel %vm410_vm3, %v3820_v43, %v1917_v16 }
 0x502   : > { %v1901_v7 = vpop.f32.mrf.mxu0 }
 0x503   : > { %1968 = vrot.lane.b32.xlu1 %v1871_v55, %s2923_s11  ;;  %1980 = vrot.lane.b32.xlu0 %v1901_v7, %s2923_s11 }
 0x504   : > { %v2729_v33 = vpop.f32.mrf.mxu0 }
 0x508   : > { %v1919_v19 = vpop.permute.xlu0 %1918 }
 0x509   : > { %v1992_v62 = vsel %vm410_vm3, %v3822_v49, %v1919_v19 }
 0x50c   : > { %v1921_v18 = vpop.permute.xlu1 %1920 }
 0x50d   : > { %v1993_v36 = vsel %vm410_vm3, %v3824_v22, %v1921_v18 }
 0x52d   : > { %v1923_v51 = vpop.permute.xlu0 %1922 }
 0x52e   : > { %v1994_v14 = vsel %vm410_vm3, %v3826_v44, %v1923_v51 }
 0x545   : > { %v1943_v60 = vpop.permute.xlu1 %1942 }
 0x546   : > { %v1998_v15 = vsel %vm1996_vm6, %v1990_v6, %v1943_v60 }
 0x549   : > { %v1945_v2 = vpop.permute.xlu0 %1944 }
 0x54a   : > { %v1999_v54 = vsel %vm1996_vm6, %v1991_v56, %v1945_v2 }
 0x54d   : > { %v1947_v30 = vpop.permute.xlu1 %1946 }
 0x54e   : > { %v2000_v42 = vsel %vm1996_vm6, %v1992_v62, %v1947_v30 }
 0x551   : > { %v1949_v0 = vpop.permute.xlu0 %1948 }
 0x552   : > { %v2001_v9 = vsel %vm1996_vm6, %v1993_v36, %v1949_v0 }
 0x555   : > { %v1951_v3 = vpop.permute.xlu1 %1950  ;;  %v1925_v23 = vpop.permute.xlu0 %1924 }
 0x556   : > { %v2002_v12 = vsel %vm1996_vm6, %v1994_v14, %v1951_v3  ;;  %v1995_v11 = vsel %vm410_vm3, %v3828_v25, %v1925_v23 }
 0x561   : > { %v1971_v29 = vpop.permute.xlu1 %1970 }
 0x562   : > { %v2006_v26 = vsel %vm2004_vm7, %v1998_v15, %v1971_v29 }
 0x563   : > { %2750 = vmatmul.mubr.msk.f32.vlgmr.msra.gmra.mxu1 %vm260_vm0, %v2006_v26 }
 0x564   : > { %2752 = vmatprep.mubr.msk.f32.mxu1 %vm2924_vm2, %v3966_v50 }
 0x565   : > { %v1973_v45 = vpop.permute.xlu1 %1972 }
 0x566   : > { %v2007_v31 = vsel %vm2004_vm7, %v1999_v54, %v1973_v45 }
 0x567   : > { %2753 = vmatmul.mubr.msk.f32.gmra.mxu1 %vm260_vm0, %v2007_v31 }
 0x568   : > { %2755 = vmatprep.mubr.msk.f32.mxu1 %vm2924_vm2, %v3966_v50 }
 0x569   : > { %v1913_v43 = vpop.permute.xlu1 %1912  ;;  %v1975_v46 = vpop.permute.xlu0 %1974 }
 0x56a   : > { %v2008_v41 = vsel %vm2004_vm7, %v2000_v42, %v1975_v46  ;;  %v1989_v63 = vsel %vm410_vm3, %v3810_v52, %v1913_v43  ;;  %v2313_v52 = vld [vmem:[%s3961_s4] ss:$0 sm:$0xff] }
 0x56b   : > { %2756 = vmatmul.mubr.msk.f32.gmra.mxu1 %vm260_vm0, %v2008_v41 }
 0x56c   : > { %2758 = vmatprep.mubr.msk.f32.mxu1 %vm2924_vm2, %v3966_v50 }
 0x56d   : > { %v1977_v49 = vpop.permute.xlu1 %1976  ;;  %v1953_v59 = vpop.permute.xlu0 %1952 }
 0x56e   : > { %v2009_v1 = vsel %vm2004_vm7, %v2001_v9, %v1977_v49  ;;  %v2003_v44 = vsel %vm1996_vm6, %v1995_v11, %v1953_v59 }
 0x56f   : > { %2759 = vmatmul.mubr.msk.f32.gmra.mxu1 %vm260_vm0, %v2009_v1 }
 0x570   : > { %2761 = vmatprep.mubr.msk.f32.mxu1 %vm2924_vm2, %v3966_v50 }
 0x571   : > { %v1941_v22 = vpop.permute.xlu1 %1940  ;;  %v1979_v35 = vpop.permute.xlu0 %1978 }
 0x572   : > { %v2010_v24 = vsel %vm2004_vm7, %v2002_v12, %v1979_v35  ;;  %v1997_v57 = vsel %vm1996_vm6, %v1989_v63, %v1941_v22 }
 0x573   : > { %2762 = vmatmul.mubr.msk.f32.gmra.mxu1 %vm260_vm0, %v2010_v24 }
 0x574   : > { %2764 = vmatprep.mubr.msk.f32.mxu1 %vm2924_vm2, %v3966_v50 }
 0x575   : > { %v1969_v20 = vpop.permute.xlu1 %1968  ;;  %v1981_v58 = vpop.permute.xlu0 %1980 }
 0x576   : > { %v2005_v10 = vsel %vm2004_vm7, %v1997_v57, %v1969_v20  ;;  %v2011_v8 = vsel %vm2004_vm7, %v2003_v44, %v1981_v58 }
 0x577   : > { %2747 = vmatmul.mubr.msk.f32.vlgmr.msra.gmra.mxu0 %vm260_vm0, %v2005_v10  ;;  %2765 = vmatmul.mubr.msk.f32.gmra.mxu1 %vm260_vm0, %v2011_v8 }
 0x623   : > { %v2119_v50 = vpop.f32.mrf.mxu1 }
 0x624   : > { %v2120_v25 = vadd.f32 %v2313_v52, %v2119_v50 }
 0x625   : > { %v2751_v4 = vpop.f32.mrf.mxu1 }
 0x626   : > { %2149 = vst.msk [vmem:[%s224_s16 + $0x8] sm:$0xff] %vm260_vm0, %v2120_v25 }
 0x627   : > { %v2124_v61 = vpop.f32.mrf.mxu1 }
 0x628   : > { %v2125_v48 = vadd.f32 %v2313_v52, %v2124_v61 }
 0x629   : > { %v2754_v34 = vpop.f32.mrf.mxu1 }
 0x62a   : > { %2150 = vst.msk [vmem:[%s224_s16 + $0x10] sm:$0xff] %vm260_vm0, %v2125_v48 }
 0x62b   : > { %v2129_v47 = vpop.f32.mrf.mxu1 }
 0x62c   : > { %v2130_v55 = vadd.f32 %v2313_v52, %v2129_v47 }
 0x62d   : > { %v2757_v28 = vpop.f32.mrf.mxu1 }
 0x62e   : > { %2151 = vst.msk [vmem:[%s224_s16 + $0x18] sm:$0xff] %vm260_vm0, %v2130_v55 }
 0x62f   : > { %v2134_v13 = vpop.f32.mrf.mxu1 }
 0x630   : > { %v2135_v53 = vadd.f32 %v2313_v52, %v2134_v13 }
 0x631   : > { %v2760_v37 = vpop.f32.mrf.mxu1 }
 0x632   : > { %2152 = vst.msk [vmem:[%s224_s16 + $0x20] sm:$0xff] %vm260_vm0, %v2135_v53 }
 0x633   : > { %v2139_v32 = vpop.f32.mrf.mxu1 }
 0x634   : > { %v2140_v21 = vadd.f32 %v2313_v52, %v2139_v32 }
 0x635   : > { %v2763_v5 = vpop.f32.mrf.mxu1 }
 0x636   : > { %2153 = vst.msk [vmem:[%s224_s16 + $0x28] sm:$0xff] %vm260_vm0, %v2140_v21 }
 0x637   : > { %v2114_v39 = vpop.f32.mrf.mxu0  ;;  %v2144_v38 = vpop.f32.mrf.mxu1 }
 0x638   : > { %v2115_v17 = vadd.f32 %v2313_v52, %v2114_v39  ;;  %v2145_v40 = vadd.f32 %v2313_v52, %v2144_v38 }
 0x639   : > { %v2748_v7 = vpop.f32.mrf.mxu0  ;;  %v2766_v33 = vpop.f32.mrf.mxu1 }
 0x63a   : > { %2148 = vst.msk [vmem:[%s224_s16] sm:$0xff] %vm260_vm0, %v2115_v17 }
 0x63b   : > { %2155 = vst.msk [vmem:[%s224_s16 + $0x30] sm:$0x3] %vm2154_vm8, %v2145_v40 }
 0x63c PF: > { %s15_s18 = sadd.s32 1, %s2919_s18  }
 0x63d   : > { %p12_p4 = scmp.ge.s32.totalorder %s15_s18, 4  }
 0x63f   :  { %14 = sbr.rel (!%p12_p4) target bundleno = 1 (0x1), region = 70 }

</bundles_post_ra>
